<compile_context>
chip_gen: v5e
topology: v5e:2x2
jax: 0.10.0
libtpu: 0.0.40
codegen_flags: <defaults>
</compile_context>

<pallas_src>
import functools

import jax
import jax.numpy as jnp
from jax.experimental import pallas as pl
from jax.experimental.pallas import tpu as pltpu


def _round_up(n, m):
    return ((n + m - 1) // m) * m


def _select_tiling():
    """Generation-aware (tile_m, vmem_limit_bytes)."""
    try:
        kind = jax.devices()[0].device_kind.lower()
    except Exception:  # pragma: no cover - defensive
        kind = ""
    if "v5" in kind or "v6" in kind:
        # 128 MiB physical VMEM: big tiles amortize the ~0.35 us/grid-step cost.
        return 512, 80 * 1024 * 1024
    # v7x (64 MiB VMEM per TensorCore) and unknown chips: stay conservative.
    return 256, 40 * 1024 * 1024


def _vae_kernel(
    x_ref, eps_ref,
    w1_ref, b1_ref,
    w2_ref, b2_ref,
    w3_ref, b3_ref,      # fused [mu | log_var] head
    w4_ref, b4_ref,
    w5_ref, b5_ref,
    w6_ref, b6_ref,
    recon_ref, mu_ref, logvar_ref,
    *, z_dim,
):
    f32 = jnp.float32
    bf16 = jnp.bfloat16

    x = x_ref[...].astype(bf16)      # (TM, x_dim)
    eps = eps_ref[...]               # (TM, z_dim) f32

    # ---------------- encoder ----------------
    h = jnp.dot(x, w1_ref[...], preferred_element_type=f32) + b1_ref[...]
    h = jnp.maximum(h, 0.0)
    h = jnp.dot(h.astype(bf16), w2_ref[...], preferred_element_type=f32) + b2_ref[...]
    h = jnp.maximum(h, 0.0)

    # Fused mu/log_var head: one N=2*z_dim matmul instead of two N=z_dim matmuls.
    # z_dim == 128 keeps the split lane-tile aligned, so the slices are free.
    mu_lv = jnp.dot(h.astype(bf16), w3_ref[...], preferred_element_type=f32) + b3_ref[...]
    mu = mu_lv[:, :z_dim]
    log_var = mu_lv[:, z_dim:]

    # ------- reparameterize (faithful to reference: eps * log_var) -------
    z = mu + eps * log_var

    # ---------------- decoder ----------------
    d = jnp.dot(z.astype(bf16), w4_ref[...], preferred_element_type=f32) + b4_ref[...]
    d = jnp.maximum(d, 0.0)
    d = jnp.dot(d.astype(bf16), w5_ref[...], preferred_element_type=f32) + b5_ref[...]
    d = jnp.maximum(d, 0.0)
    logits = jnp.dot(d.astype(bf16), w6_ref[...], preferred_element_type=f32) + b6_ref[...]
    recon = jax.nn.sigmoid(logits)                  # f32 math

    recon_ref[...] = recon.astype(recon_ref.dtype)  # bf16 store (halves HBM writeback)
    mu_ref[...] = mu
    logvar_ref[...] = log_var


def vae_forward(x_nchw, eps, params, *, tile_m=None, vmem_limit_bytes=None):
    """VAE forward pass in one batched Pallas kernel.

    Args:
      x_nchw: (B, 3, 32, 32) float32 input (NCHW, as in PyTorch).
      eps:    (B, z_dim) float32 noise (replaces torch.randn_like).
      params: dict of pre-transposed weights (in, out) and biases (1, out), f32.
      tile_m: batch tile size (MXU M dimension per grid step); None -> per-chip default.
      vmem_limit_bytes: scoped VMEM limit; None -> per-chip default.
    Returns:
      (reconstruction (B, 3072) bf16, mu (B, z_dim) f32, log_var (B, z_dim) f32)
    """
    default_tm, default_vmem = _select_tiling()
    if tile_m is None:
        tile_m = default_tm
    if vmem_limit_bytes is None:
        vmem_limit_bytes = default_vmem

    B = x_nchw.shape[0]
    x_flat = x_nchw.reshape(B, -1).astype(jnp.float32)   # == x.view(-1, 3*32*32)
    x_dim = x_flat.shape[1]
    z_dim = eps.shape[1]
    assert z_dim % 128 == 0, "fused [mu|log_var] head assumes lane-aligned z_dim"

    # Don't let the row tile exceed the (sublane-rounded) batch: Pallas masks the
    # partial tail block, but there is no point computing hundreds of garbage rows.
    tile_m = min(tile_m, max(8, _round_up(B, 8)))
    n_tiles = pl.cdiv(B, tile_m)

    # bf16 weights halve the weight-DMA bytes; biases stay f32 (tiny).
    bf16 = jnp.bfloat16
    w1 = params["w1"].astype(bf16); b1 = params["b1"]
    w2 = params["w2"].astype(bf16); b2 = params["b2"]
    w3 = jnp.concatenate([params["w3m"], params["w3v"]], axis=1).astype(bf16)
    b3 = jnp.concatenate([params["b3m"], params["b3v"]], axis=1)
    w4 = params["w4"].astype(bf16); b4 = params["b4"]
    w5 = params["w5"].astype(bf16); b5 = params["b5"]
    w6 = params["w6"].astype(bf16); b6 = params["b6"]

    def batch_spec(cols):
        # Per-tile block marching down the batch dimension (tail block masked).
        return pl.BlockSpec((tile_m, cols), lambda i: (i, 0))

    def resident_spec(arr):
        # Whole array, same block for every grid step -> stays VMEM-resident.
        r, c = arr.shape
        return pl.BlockSpec((r, c), lambda i: (0, 0))

    in_specs = [
        batch_spec(x_dim), batch_spec(z_dim),
        resident_spec(w1), resident_spec(b1),
        resident_spec(w2), resident_spec(b2),
        resident_spec(w3), resident_spec(b3),
        resident_spec(w4), resident_spec(b4),
        resident_spec(w5), resident_spec(b5),
        resident_spec(w6), resident_spec(b6),
    ]
    out_specs = (batch_spec(x_dim), batch_spec(z_dim), batch_spec(z_dim))
    out_shape = (
        jax.ShapeDtypeStruct((B, x_dim), jnp.bfloat16),   # recon: bf16 halves writeback
        jax.ShapeDtypeStruct((B, z_dim), jnp.float32),
        jax.ShapeDtypeStruct((B, z_dim), jnp.float32),
    )

    recon, mu, log_var = pl.pallas_call(
        functools.partial(_vae_kernel, z_dim=z_dim),
        out_shape=out_shape,
        grid=(n_tiles,),
        in_specs=in_specs,
        out_specs=out_specs,
        compiler_params=pltpu.CompilerParams(
            dimension_semantics=("parallel",),      # split batch tiles across TCs
            vmem_limit_bytes=vmem_limit_bytes,
        ),
    )(x_flat, eps, w1, b1, w2, b2, w3, b3, w4, b4, w5, b5, w6, b6)

    return recon, mu, log_var


def init_params(key, x_dim, h_dim1, h_dim2, z_dim):
    """Deterministic synthetic parameters.

    Weights stored pre-transposed as (in, out); biases as (1, out) for
    lane-aligned broadcast in the kernel. Stored in f32; wrapper casts to bf16.
    """
    def linear(k, fan_in, fan_out):
        kw, kb = jax.random.split(k)
        bound = 1.0 / jnp.sqrt(fan_in)
        w = jax.random.uniform(kw, (fan_in, fan_out), jnp.float32, -bound, bound)
        b = jax.random.uniform(kb, (1, fan_out), jnp.float32, -bound, bound)
        return w, b

    keys = jax.random.split(key, 7)
    p = {}
    p["w1"], p["b1"] = linear(keys[0], x_dim, h_dim1)
    p["w2"], p["b2"] = linear(keys[1], h_dim1, h_dim2)
    p["w3m"], p["b3m"] = linear(keys[2], h_dim2, z_dim)
    p["w3v"], p["b3v"] = linear(keys[3], h_dim2, z_dim)
    p["w4"], p["b4"] = linear(keys[4], z_dim, h_dim2)
    p["w5"], p["b5"] = linear(keys[5], h_dim2, h_dim1)
    p["w6"], p["b6"] = linear(keys[6], h_dim1, x_dim)
    return p


def _reference_forward(x_nchw, eps, params):
    """Pure-JAX reference using the same bf16 weight/activation quantization."""
    B = x_nchw.shape[0]
    x = x_nchw.reshape(B, -1).astype(jnp.float32)
    bf16 = jnp.bfloat16

    def dense(a, w, b):
        return jnp.dot(a.astype(bf16), w.astype(bf16),
                       preferred_element_type=jnp.float32) + b

    h = jax.nn.relu(dense(x, params["w1"], params["b1"]))
    h = jax.nn.relu(dense(h, params["w2"], params["b2"]))
    mu = dense(h, params["w3m"], params["b3m"])
    log_var = dense(h, params["w3v"], params["b3v"])
    z = mu + eps * log_var
    d = jax.nn.relu(dense(z, params["w4"], params["b4"]))
    d = jax.nn.relu(dense(d, params["w5"], params["b5"]))
    recon = jax.nn.sigmoid(dense(d, params["w6"], params["b6"]))
    return recon, mu, log_var


if __name__ == "__main__":
    # Small-but-faithful configuration: x_dim is fixed by x.view(-1, 3*32*32).
    B = 2
    X_DIM = 3 * 32 * 32   # 3072
    H_DIM1 = 256
    H_DIM2 = 256
    Z_DIM = 128

    key = jax.random.PRNGKey(0)
    k_x, k_eps, k_params = jax.random.split(key, 3)

    x = jax.random.uniform(k_x, (B, 3, 32, 32), jnp.float32)          # CIFAR-like input
    eps = jax.random.normal(k_eps, (B, Z_DIM), jnp.float32)           # replaces torch.randn_like
    params = init_params(k_params, X_DIM, H_DIM1, H_DIM2, Z_DIM)

    recon, mu, log_var = jax.block_until_ready(vae_forward(x, eps, params))

    # Correctness check against a pure-JAX reference with matching bf16 weights.
    r_ref, mu_ref, lv_ref = _reference_forward(x, eps, params)
    assert recon.shape == (B, X_DIM) and mu.shape == (B, Z_DIM) and log_var.shape == (B, Z_DIM)
    assert recon.dtype == jnp.bfloat16
    assert jnp.allclose(recon.astype(jnp.float32), r_ref, atol=2e-2, rtol=2e-2)
    assert jnp.allclose(mu, mu_ref, atol=1e-2, rtol=1e-2)
    assert jnp.allclose(log_var, lv_ref, atol=1e-2, rtol=1e-2)

    print("KERNEL_OK")
</pallas_src>

<mosaic_0001>
module attributes {stable_mosaic.version = 11 : i64} {
  func.func @_vae_kernel(%arg0: i32, %arg1: memref<8x3072xf32, #tpu.memory_space<vmem>>, %arg2: memref<8x128xf32, #tpu.memory_space<vmem>>, %arg3: memref<3072x256xbf16, #tpu.memory_space<vmem>>, %arg4: memref<1x256xf32, #tpu.memory_space<vmem>>, %arg5: memref<256x256xbf16, #tpu.memory_space<vmem>>, %arg6: memref<1x256xf32, #tpu.memory_space<vmem>>, %arg7: memref<256x256xbf16, #tpu.memory_space<vmem>>, %arg8: memref<1x256xf32, #tpu.memory_space<vmem>>, %arg9: memref<128x256xbf16, #tpu.memory_space<vmem>>, %arg10: memref<1x256xf32, #tpu.memory_space<vmem>>, %arg11: memref<256x256xbf16, #tpu.memory_space<vmem>>, %arg12: memref<1x256xf32, #tpu.memory_space<vmem>>, %arg13: memref<256x3072xbf16, #tpu.memory_space<vmem>>, %arg14: memref<1x3072xf32, #tpu.memory_space<vmem>>, %arg15: memref<8x3072xbf16, #tpu.memory_space<vmem>>, %arg16: memref<8x128xf32, #tpu.memory_space<vmem>>, %arg17: memref<8x128xf32, #tpu.memory_space<vmem>>) attributes {dimension_semantics = [#tpu.dimension_semantics<parallel>], iteration_bounds = array<i64: 1>, scalar_prefetch = 0 : i64, scratch_operands = 0 : i64, tpu.core_type = #tpu.core_type<tc>, window_params = [{transform_indices = @transform_0, window_bounds = array<i64: 8, 3072>}, {transform_indices = @transform_1, window_bounds = array<i64: 8, 128>}, {pipeline_mode = #tpu.pipeline_mode<synchronous>, transform_indices = @transform_2, window_bounds = array<i64: 3072, 256>}, {pipeline_mode = #tpu.pipeline_mode<synchronous>, transform_indices = @transform_3, window_bounds = array<i64: 1, 256>}, {pipeline_mode = #tpu.pipeline_mode<synchronous>, transform_indices = @transform_4, window_bounds = array<i64: 256, 256>}, {pipeline_mode = #tpu.pipeline_mode<synchronous>, transform_indices = @transform_5, window_bounds = array<i64: 1, 256>}, {pipeline_mode = #tpu.pipeline_mode<synchronous>, transform_indices = @transform_6, window_bounds = array<i64: 256, 256>}, {pipeline_mode = #tpu.pipeline_mode<synchronous>, transform_indices = @transform_7, window_bounds = array<i64: 1, 256>}, {pipeline_mode = #tpu.pipeline_mode<synchronous>, transform_indices = @transform_8, window_bounds = array<i64: 128, 256>}, {pipeline_mode = #tpu.pipeline_mode<synchronous>, transform_indices = @transform_9, window_bounds = array<i64: 1, 256>}, {pipeline_mode = #tpu.pipeline_mode<synchronous>, transform_indices = @transform_10, window_bounds = array<i64: 256, 256>}, {pipeline_mode = #tpu.pipeline_mode<synchronous>, transform_indices = @transform_11, window_bounds = array<i64: 1, 256>}, {pipeline_mode = #tpu.pipeline_mode<synchronous>, transform_indices = @transform_12, window_bounds = array<i64: 256, 3072>}, {pipeline_mode = #tpu.pipeline_mode<synchronous>, transform_indices = @transform_13, window_bounds = array<i64: 1, 3072>}, {transform_indices = @transform_14, window_bounds = array<i64: 8, 3072>}, {transform_indices = @transform_15, window_bounds = array<i64: 8, 128>}, {transform_indices = @transform_16, window_bounds = array<i64: 8, 128>}]} {
    %c0 = arith.constant 0 : index
    %c0_0 = arith.constant 0 : index
    %0 = vector.load %arg1[%c0, %c0_0] : memref<8x3072xf32, #tpu.memory_space<vmem>>, vector<8x3072xf32>
    %1 = arith.truncf %0 : vector<8x3072xf32> to vector<8x3072xbf16>
    %c0_1 = arith.constant 0 : index
    %c0_2 = arith.constant 0 : index
    %2 = vector.load %arg2[%c0_1, %c0_2] : memref<8x128xf32, #tpu.memory_space<vmem>>, vector<8x128xf32>
    %c0_3 = arith.constant 0 : index
    %c0_4 = arith.constant 0 : index
    %3 = vector.load %arg3[%c0_3, %c0_4] : memref<3072x256xbf16, #tpu.memory_space<vmem>>, vector<3072x256xbf16>
    %cst = arith.constant dense<0.000000e+00> : vector<8x256xf32>
    %4 = tpu.matmul %1, %3, %cst {dimension_numbers = #tpu.dot_dimension_numbers<[1], [0], [0], [1], [0, 0, 1, 1], [], []>} : vector<8x3072xbf16>, vector<3072x256xbf16>, vector<8x256xf32> -> vector<8x256xf32>
    %c0_5 = arith.constant 0 : index
    %c0_6 = arith.constant 0 : index
    %5 = vector.load %arg4[%c0_5, %c0_6] : memref<1x256xf32, #tpu.memory_space<vmem>>, vector<1x256xf32>
    %6 = vector.broadcast %5 : vector<1x256xf32> to vector<8x256xf32>
    %7 = arith.addf %4, %6 : vector<8x256xf32>
    %cst_7 = arith.constant 0.000000e+00 : f32
    %8 = vector.broadcast %cst_7 : f32 to vector<8x256xf32>
    %9 = arith.maximumf %7, %8 : vector<8x256xf32>
    %10 = arith.truncf %9 : vector<8x256xf32> to vector<8x256xbf16>
    %c0_8 = arith.constant 0 : index
    %c0_9 = arith.constant 0 : index
    %11 = vector.load %arg5[%c0_8, %c0_9] : memref<256x256xbf16, #tpu.memory_space<vmem>>, vector<256x256xbf16>
    %cst_10 = arith.constant dense<0.000000e+00> : vector<8x256xf32>
    %12 = tpu.matmul %10, %11, %cst_10 {dimension_numbers = #tpu.dot_dimension_numbers<[1], [0], [0], [1], [0, 0, 1, 1], [], []>} : vector<8x256xbf16>, vector<256x256xbf16>, vector<8x256xf32> -> vector<8x256xf32>
    %c0_11 = arith.constant 0 : index
    %c0_12 = arith.constant 0 : index
    %13 = vector.load %arg6[%c0_11, %c0_12] : memref<1x256xf32, #tpu.memory_space<vmem>>, vector<1x256xf32>
    %14 = vector.broadcast %13 : vector<1x256xf32> to vector<8x256xf32>
    %15 = arith.addf %12, %14 : vector<8x256xf32>
    %cst_13 = arith.constant 0.000000e+00 : f32
    %16 = vector.broadcast %cst_13 : f32 to vector<8x256xf32>
    %17 = arith.maximumf %15, %16 : vector<8x256xf32>
    %18 = arith.truncf %17 : vector<8x256xf32> to vector<8x256xbf16>
    %c0_14 = arith.constant 0 : index
    %c0_15 = arith.constant 0 : index
    %19 = vector.load %arg7[%c0_14, %c0_15] : memref<256x256xbf16, #tpu.memory_space<vmem>>, vector<256x256xbf16>
    %cst_16 = arith.constant dense<0.000000e+00> : vector<8x256xf32>
    %20 = tpu.matmul %18, %19, %cst_16 {dimension_numbers = #tpu.dot_dimension_numbers<[1], [0], [0], [1], [0, 0, 1, 1], [], []>} : vector<8x256xbf16>, vector<256x256xbf16>, vector<8x256xf32> -> vector<8x256xf32>
    %c0_17 = arith.constant 0 : index
    %c0_18 = arith.constant 0 : index
    %21 = vector.load %arg8[%c0_17, %c0_18] : memref<1x256xf32, #tpu.memory_space<vmem>>, vector<1x256xf32>
    %22 = vector.broadcast %21 : vector<1x256xf32> to vector<8x256xf32>
    %23 = arith.addf %20, %22 : vector<8x256xf32>
    %24 = vector.extract_strided_slice %23 {offsets = [0, 0], sizes = [8, 128], strides = [1, 1]} : vector<8x256xf32> to vector<8x128xf32>
    %25 = vector.extract_strided_slice %23 {offsets = [0, 128], sizes = [8, 128], strides = [1, 1]} : vector<8x256xf32> to vector<8x128xf32>
    %26 = arith.mulf %2, %25 : vector<8x128xf32>
    %27 = arith.addf %24, %26 : vector<8x128xf32>
    %28 = arith.truncf %27 : vector<8x128xf32> to vector<8x128xbf16>
    %c0_19 = arith.constant 0 : index
    %c0_20 = arith.constant 0 : index
    %29 = vector.load %arg9[%c0_19, %c0_20] : memref<128x256xbf16, #tpu.memory_space<vmem>>, vector<128x256xbf16>
    %cst_21 = arith.constant dense<0.000000e+00> : vector<8x256xf32>
    %30 = tpu.matmul %28, %29, %cst_21 {dimension_numbers = #tpu.dot_dimension_numbers<[1], [0], [0], [1], [0, 0, 1, 1], [], []>} : vector<8x128xbf16>, vector<128x256xbf16>, vector<8x256xf32> -> vector<8x256xf32>
    %c0_22 = arith.constant 0 : index
    %c0_23 = arith.constant 0 : index
    %31 = vector.load %arg10[%c0_22, %c0_23] : memref<1x256xf32, #tpu.memory_space<vmem>>, vector<1x256xf32>
    %32 = vector.broadcast %31 : vector<1x256xf32> to vector<8x256xf32>
    %33 = arith.addf %30, %32 : vector<8x256xf32>
    %cst_24 = arith.constant 0.000000e+00 : f32
    %34 = vector.broadcast %cst_24 : f32 to vector<8x256xf32>
    %35 = arith.maximumf %33, %34 : vector<8x256xf32>
    %36 = arith.truncf %35 : vector<8x256xf32> to vector<8x256xbf16>
    %c0_25 = arith.constant 0 : index
    %c0_26 = arith.constant 0 : index
    %37 = vector.load %arg11[%c0_25, %c0_26] : memref<256x256xbf16, #tpu.memory_space<vmem>>, vector<256x256xbf16>
    %cst_27 = arith.constant dense<0.000000e+00> : vector<8x256xf32>
    %38 = tpu.matmul %36, %37, %cst_27 {dimension_numbers = #tpu.dot_dimension_numbers<[1], [0], [0], [1], [0, 0, 1, 1], [], []>} : vector<8x256xbf16>, vector<256x256xbf16>, vector<8x256xf32> -> vector<8x256xf32>
    %c0_28 = arith.constant 0 : index
    %c0_29 = arith.constant 0 : index
    %39 = vector.load %arg12[%c0_28, %c0_29] : memref<1x256xf32, #tpu.memory_space<vmem>>, vector<1x256xf32>
    %40 = vector.broadcast %39 : vector<1x256xf32> to vector<8x256xf32>
    %41 = arith.addf %38, %40 : vector<8x256xf32>
    %cst_30 = arith.constant 0.000000e+00 : f32
    %42 = vector.broadcast %cst_30 : f32 to vector<8x256xf32>
    %43 = arith.maximumf %41, %42 : vector<8x256xf32>
    %44 = arith.truncf %43 : vector<8x256xf32> to vector<8x256xbf16>
    %c0_31 = arith.constant 0 : index
    %c0_32 = arith.constant 0 : index
    %45 = vector.load %arg13[%c0_31, %c0_32] : memref<256x3072xbf16, #tpu.memory_space<vmem>>, vector<256x3072xbf16>
    %cst_33 = arith.constant dense<0.000000e+00> : vector<8x3072xf32>
    %46 = tpu.matmul %44, %45, %cst_33 {dimension_numbers = #tpu.dot_dimension_numbers<[1], [0], [0], [1], [0, 0, 1, 1], [], []>} : vector<8x256xbf16>, vector<256x3072xbf16>, vector<8x3072xf32> -> vector<8x3072xf32>
    %c0_34 = arith.constant 0 : index
    %c0_35 = arith.constant 0 : index
    %47 = vector.load %arg14[%c0_34, %c0_35] : memref<1x3072xf32, #tpu.memory_space<vmem>>, vector<1x3072xf32>
    %48 = vector.broadcast %47 : vector<1x3072xf32> to vector<8x3072xf32>
    %49 = arith.addf %46, %48 : vector<8x3072xf32>
    %50 = arith.negf %49 : vector<8x3072xf32>
    %51 = math.exp %50 : vector<8x3072xf32>
    %cst_36 = arith.constant 1.000000e+00 : f32
    %52 = vector.broadcast %cst_36 : f32 to vector<8x3072xf32>
    %53 = arith.addf %52, %51 : vector<8x3072xf32>
    %54 = arith.divf %52, %53 : vector<8x3072xf32>
    %55 = arith.truncf %54 : vector<8x3072xf32> to vector<8x3072xbf16>
    %c0_37 = arith.constant 0 : index
    %c0_38 = arith.constant 0 : index
    %56 = vector.load %arg15[%c0_37, %c0_38] : memref<8x3072xbf16, #tpu.memory_space<vmem>>, vector<8x3072xbf16>
    tpu.vector_store %arg15[%c0_37, %c0_38], %55 {strides = array<i32>} : memref<8x3072xbf16, #tpu.memory_space<vmem>>, vector<8x3072xbf16>,
    %c0_39 = arith.constant 0 : index
    %c0_40 = arith.constant 0 : index
    %57 = vector.load %arg16[%c0_39, %c0_40] : memref<8x128xf32, #tpu.memory_space<vmem>>, vector<8x128xf32>
    tpu.vector_store %arg16[%c0_39, %c0_40], %24 {strides = array<i32>} : memref<8x128xf32, #tpu.memory_space<vmem>>, vector<8x128xf32>,
    %c0_41 = arith.constant 0 : index
    %c0_42 = arith.constant 0 : index
    %58 = vector.load %arg17[%c0_41, %c0_42] : memref<8x128xf32, #tpu.memory_space<vmem>>, vector<8x128xf32>
    tpu.vector_store %arg17[%c0_41, %c0_42], %25 {strides = array<i32>} : memref<8x128xf32, #tpu.memory_space<vmem>>, vector<8x128xf32>,
    return
  }
  func.func @transform_0(%arg0: i32) -> (i32, i32) {
    %c0_i32 = arith.constant 0 : i32
    %c0_i32_0 = arith.constant 0 : i32
    return %arg0, %c0_i32 : i32, i32
  }
  func.func @transform_1(%arg0: i32) -> (i32, i32) {
    %c0_i32 = arith.constant 0 : i32
    %c0_i32_0 = arith.constant 0 : i32
    return %arg0, %c0_i32 : i32, i32
  }
  func.func @transform_2(%arg0: i32) -> (i32, i32) {
    %c0_i32 = arith.constant 0 : i32
    %c0_i32_0 = arith.constant 0 : i32
    %c0_i32_1 = arith.constant 0 : i32
    return %c0_i32, %c0_i32_0 : i32, i32
  }
  func.func @transform_3(%arg0: i32) -> (i32, i32) {
    %c0_i32 = arith.constant 0 : i32
    %c0_i32_0 = arith.constant 0 : i32
    %c0_i32_1 = arith.constant 0 : i32
    return %c0_i32, %c0_i32_0 : i32, i32
  }
  func.func @transform_4(%arg0: i32) -> (i32, i32) {
    %c0_i32 = arith.constant 0 : i32
    %c0_i32_0 = arith.constant 0 : i32
    %c0_i32_1 = arith.constant 0 : i32
    return %c0_i32, %c0_i32_0 : i32, i32
  }
  func.func @transform_5(%arg0: i32) -> (i32, i32) {
    %c0_i32 = arith.constant 0 : i32
    %c0_i32_0 = arith.constant 0 : i32
    %c0_i32_1 = arith.constant 0 : i32
    return %c0_i32, %c0_i32_0 : i32, i32
  }
  func.func @transform_6(%arg0: i32) -> (i32, i32) {
    %c0_i32 = arith.constant 0 : i32
    %c0_i32_0 = arith.constant 0 : i32
    %c0_i32_1 = arith.constant 0 : i32
    return %c0_i32, %c0_i32_0 : i32, i32
  }
  func.func @transform_7(%arg0: i32) -> (i32, i32) {
    %c0_i32 = arith.constant 0 : i32
    %c0_i32_0 = arith.constant 0 : i32
    %c0_i32_1 = arith.constant 0 : i32
    return %c0_i32, %c0_i32_0 : i32, i32
  }
  func.func @transform_8(%arg0: i32) -> (i32, i32) {
    %c0_i32 = arith.constant 0 : i32
    %c0_i32_0 = arith.constant 0 : i32
    %c0_i32_1 = arith.constant 0 : i32
    return %c0_i32, %c0_i32_0 : i32, i32
  }
  func.func @transform_9(%arg0: i32) -> (i32, i32) {
    %c0_i32 = arith.constant 0 : i32
    %c0_i32_0 = arith.constant 0 : i32
    %c0_i32_1 = arith.constant 0 : i32
    return %c0_i32, %c0_i32_0 : i32, i32
  }
  func.func @transform_10(%arg0: i32) -> (i32, i32) {
    %c0_i32 = arith.constant 0 : i32
    %c0_i32_0 = arith.constant 0 : i32
    %c0_i32_1 = arith.constant 0 : i32
    return %c0_i32, %c0_i32_0 : i32, i32
  }
  func.func @transform_11(%arg0: i32) -> (i32, i32) {
    %c0_i32 = arith.constant 0 : i32
    %c0_i32_0 = arith.constant 0 : i32
    %c0_i32_1 = arith.constant 0 : i32
    return %c0_i32, %c0_i32_0 : i32, i32
  }
  func.func @transform_12(%arg0: i32) -> (i32, i32) {
    %c0_i32 = arith.constant 0 : i32
    %c0_i32_0 = arith.constant 0 : i32
    %c0_i32_1 = arith.constant 0 : i32
    return %c0_i32, %c0_i32_0 : i32, i32
  }
  func.func @transform_13(%arg0: i32) -> (i32, i32) {
    %c0_i32 = arith.constant 0 : i32
    %c0_i32_0 = arith.constant 0 : i32
    %c0_i32_1 = arith.constant 0 : i32
    return %c0_i32, %c0_i32_0 : i32, i32
  }
  func.func @transform_14(%arg0: i32) -> (i32, i32) {
    %c0_i32 = arith.constant 0 : i32
    %c0_i32_0 = arith.constant 0 : i32
    return %arg0, %c0_i32 : i32, i32
  }
  func.func @transform_15(%arg0: i32) -> (i32, i32) {
    %c0_i32 = arith.constant 0 : i32
    %c0_i32_0 = arith.constant 0 : i32
    return %arg0, %c0_i32 : i32, i32
  }
  func.func @transform_16(%arg0: i32) -> (i32, i32) {
    %c0_i32 = arith.constant 0 : i32
    %c0_i32_0 = arith.constant 0 : i32
    return %arg0, %c0_i32 : i32, i32
  }
}

</mosaic_0001>

<bundles_post_ra>
// kernel: tpu_custom_call.1
= control target key start
LH: loop header
LB: loop body
LE: loop exit
PB: predicated region body
PF: predicated region fallthrough
CT: control target
= control target key end

     0   :  { %s14194_s0 = inlined_call_operand.hbm [shape: f32[2,3072], index: 0, kind: input, shape index: {}]   ;;  %s14195_s1 = inlined_call_operand.hbm [shape: f32[2,128], index: 1, kind: input, shape index: {}]   ;;  %s14196_s2 = inlined_call_operand.hbm [shape: bf16[3072,256], index: 2, kind: input, shape index: {}]   ;;  %s14197_s3 = inlined_call_operand.hbm [shape: f32[1,256], index: 3, kind: input, shape index: {}]   ;;  %s14198_s4 = inlined_call_operand.hbm [shape: bf16[256,256], index: 4, kind: input, shape index: {}]   ;;  %s14199_s5 = inlined_call_operand.hbm [shape: f32[1,256], index: 5, kind: input, shape index: {}]   ;;  %s14200_s6 = inlined_call_operand.hbm [shape: bf16[256,256], index: 6, kind: input, shape index: {}]   ;;  %s14201_s7 = inlined_call_operand.hbm [shape: f32[1,256], index: 7, kind: input, shape index: {}]   ;;  %s14202_s8 = inlined_call_operand.hbm [shape: bf16[128,256], index: 8, kind: input, shape index: {}]   ;;  %s14203_s9 = inlined_call_operand.hbm [shape: f32[1,256], index: 9, kind: input, shape index: {}]   ;;  %s14204_s10 = inlined_call_operand.hbm [shape: bf16[256,256], index: 10, kind: input, shape index: {}]   ;;  %s14205_s11 = inlined_call_operand.hbm [shape: f32[1,256], index: 11, kind: input, shape index: {}]   ;;  %s14206_s12 = inlined_call_operand.hbm [shape: bf16[256,3072], index: 12, kind: input, shape index: {}]   ;;  %s14207_s13 = inlined_call_operand.hbm [shape: f32[1,3072], index: 13, kind: input, shape index: {}]   ;;  %s14208_s14 = inlined_call_operand.hbm [shape: bf16[2,3072], index: 14, kind: output, shape index: {0}]   ;;  %s14209_s15 = inlined_call_operand.hbm [shape: f32[2,128], index: 15, kind: output, shape index: {1}]   ;;  %s14210_s16 = inlined_call_operand.hbm [shape: f32[2,128], index: 16, kind: output, shape index: {2}]  }
   0x1   :  { %14223 = sst [smem:[#allocation39_spill]] %s14194_s0 }
   0x2   :  { %22 = vsyncpa [#allocation3], 0 }
   0x3   :  { %23 = vsyncpa [#allocation6], 0 }
   0x4   :  { %24 = vsyncpa [#allocation9], 0 }
   0x5   :  { %25 = vsyncpa [#allocation12], 0 }
   0x6   :  { %26 = vsyncpa [#allocation15], 0 }
   0x7   :  { %27 = vsyncpa [#allocation18], 0 }
   0x8   :  { %28 = vsyncpa [#allocation21], 0 }
   0x9   :  { %29 = vsyncpa [#allocation24], 0 }
   0xa   :  { %30 = vsyncpa [#allocation4], 0 }
   0xb   :  { %31 = vsyncpa [#allocation27], 0 }
   0xc   :  { %35 = vsyncadd [#allocation3], 2304  ;;  %s14224_s23 = sld [smem:[#allocation39_spill]]  ;;  %s12934_s25 = smov [#allocation2]  }
   0xd   :  { %s38_s26 = sshll.u32 %s12934_s25, 4  ;;  %s12935_s27 = smov 768   ;;  %s39_s26 = int_to_ptr.vmem [resolvable:$true] %s38_s26 }
   0xe   :  { %s12936_s28 = smov 48  }
  0x12   :  { %s36_s24 = sshll.u32 %s14224_s23, 4  ;;  %s37_s24 = int_to_ptr.hbm [resolvable:$true] %s36_s24 }
  0x13   :  { %44 = dma.hbm_to_vmem [thread:$0]  %s37_s24, 768, %s39_s26, [#allocation3], %s12935_s27, %s12935_s27, %s12936_s28  }
  0x14   :  { %48 = vsyncadd [#allocation6], 96  ;;  %s49_s0 = sshll.u32 %s14195_s1, 4  ;;  %s12937_s17 = smov [#allocation5]   ;;  %s50_s0 = int_to_ptr.hbm [resolvable:$true] %s49_s0 }
  0x15   :  { %s51_s18 = sshll.u32 %s12937_s17, 4  ;;  %s76_s21 = sshll.u32 %s14197_s3, 4  ;;  %s52_s18 = int_to_ptr.vmem [resolvable:$true] %s51_s18  ;;  %s77_s21 = int_to_ptr.hbm [resolvable:$true] %s76_s21 }
  0x16   :  { %s12938_s22 = smov 32   ;;  %s12939_s23 = smov 2  }
  0x17   :  { %57 = dma.hbm_to_vmem [thread:$0]  %s50_s0, 32, %s52_s18, [#allocation6], %s12938_s22, %s12938_s22, %s12939_s23  }
  0x18   :  { %s12940_s24 = smov [#allocation8]   ;;  %s100_s1 = sshll.u32 %s14199_s5, 4  ;;  %s101_s1 = int_to_ptr.hbm [resolvable:$true] %s100_s1 }
  0x19   :  { %s78_s25 = sshll.u32 %s12940_s24, 4  ;;  %s124_s3 = sshll.u32 %s14201_s7, 4  ;;  %s79_s25 = int_to_ptr.vmem [resolvable:$true] %s78_s25  ;;  %s125_s3 = int_to_ptr.hbm [resolvable:$true] %s124_s3 }
  0x1a   :  { %81 = dma.hbm_to_vmem [thread:$0]  %s77_s21, 32, %s79_s25, [#allocation9]  }
  0x1b   :  { %s12941_s30 = smov [#allocation11]   ;;  %s12942_s0 = smov [#allocation14]  }
  0x1c   :  { %s102_s17 = sshll.u32 %s12941_s30, 4  ;;  %s126_s18 = sshll.u32 %s12942_s0, 4  ;;  %s103_s17 = int_to_ptr.vmem [resolvable:$true] %s102_s17  ;;  %s127_s18 = int_to_ptr.vmem [resolvable:$true] %s126_s18 }
  0x1d   :  { %105 = dma.hbm_to_vmem [thread:$0]  %s101_s1, 32, %s103_s17, [#allocation12]  }
  0x1e   :  { %s148_s24 = sshll.u32 %s14203_s9, 4  ;;  %s172_s25 = sshll.u32 %s14205_s11, 4  ;;  %s149_s24 = int_to_ptr.hbm [resolvable:$true] %s148_s24  ;;  %s173_s25 = int_to_ptr.hbm [resolvable:$true] %s172_s25 }
  0x1f   :  { %129 = dma.hbm_to_vmem [thread:$0]  %s125_s3, 32, %s127_s18, [#allocation15]  }
  0x20   :  { %s12943_s26 = smov [#allocation17]   ;;  %s12944_s27 = smov [#allocation20]  }
  0x21   :  { %s150_s7 = sshll.u32 %s12943_s26, 4  ;;  %s174_s1 = sshll.u32 %s12944_s27, 4  ;;  %s151_s7 = int_to_ptr.vmem [resolvable:$true] %s150_s7  ;;  %s175_s1 = int_to_ptr.vmem [resolvable:$true] %s174_s1 }
  0x22   :  { %153 = dma.hbm_to_vmem [thread:$0]  %s149_s24, 32, %s151_s7, [#allocation18]  }
  0x23   :  { %s62_s30 = sshll.u32 %s14196_s2, 4  ;;  %s12945_s9 = smov [#allocation7]   ;;  %s63_s30 = int_to_ptr.hbm [resolvable:$true] %s62_s30 }
  0x24   :  { %177 = dma.hbm_to_vmem [thread:$0]  %s173_s25, 32, %s175_s1, [#allocation21]  }
  0x25   :  { %s64_s3 = sshll.u32 %s12945_s9, 4  ;;  %s86_s11 = sshll.u32 %s14198_s4, 4  ;;  %s65_s3 = int_to_ptr.vmem [resolvable:$true] %s64_s3  ;;  %s87_s11 = int_to_ptr.hbm [resolvable:$true] %s86_s11 }
  0x26   :  { %s12946_s18 = smov 128   ;;  %s12947_s19 = smov 8  }
  0x27   :  { %70 = dma.hbm_to_vmem [thread:$0]  %s63_s30, 49152, %s65_s3, [#allocation6], %s12946_s18, %s12946_s18, %s12947_s19  }
  0x28   :  { %s12948_s20 = smov [#allocation10]   ;;  %s110_s21 = sshll.u32 %s14200_s6, 4  ;;  %s111_s21 = int_to_ptr.hbm [resolvable:$true] %s110_s21 }
  0x29   :  { %s88_s24 = sshll.u32 %s12948_s20, 4  ;;  %s134_s26 = sshll.u32 %s14202_s8, 4  ;;  %s89_s24 = int_to_ptr.vmem [resolvable:$true] %s88_s24  ;;  %s135_s26 = int_to_ptr.hbm [resolvable:$true] %s134_s26 }
  0x2a   :  { %94 = dma.hbm_to_vmem [thread:$0]  %s87_s11, 4096, %s89_s24, [#allocation9], %s12946_s18, %s12946_s18, %s12947_s19  }
  0x2b   :  { %s12949_s7 = smov [#allocation13]   ;;  %s12950_s1 = smov [#allocation16]  }
  0x2c   :  { %s112_s27 = sshll.u32 %s12949_s7, 4  ;;  %s136_s6 = sshll.u32 %s12950_s1, 4  ;;  %s113_s27 = int_to_ptr.vmem [resolvable:$true] %s112_s27  ;;  %s137_s6 = int_to_ptr.vmem [resolvable:$true] %s136_s6 }
  0x2d   :  { %118 = dma.hbm_to_vmem [thread:$0]  %s111_s21, 4096, %s113_s27, [#allocation12], %s12946_s18, %s12946_s18, %s12947_s19  }
  0x2e   :  { %s158_s30 = sshll.u32 %s14204_s10, 4  ;;  %s182_s3 = sshll.u32 %s14206_s12, 4  ;;  %s159_s30 = int_to_ptr.hbm [resolvable:$true] %s158_s30  ;;  %s183_s3 = int_to_ptr.hbm [resolvable:$true] %s182_s3 }
  0x2f   :  { %142 = dma.hbm_to_vmem [thread:$0]  %s135_s26, 2048, %s137_s6, [#allocation15], %s12946_s18, %s12946_s18, %s12947_s19  }
  0x30   :  { %s12951_s17 = smov [#allocation19]   ;;  %s12952_s11 = smov [#allocation22]  }
  0x31   :  { %s160_s0 = sshll.u32 %s12951_s17, 4  ;;  %s184_s10 = sshll.u32 %s12952_s11, 4  ;;  %s161_s0 = int_to_ptr.vmem [resolvable:$true] %s160_s0  ;;  %s185_s10 = int_to_ptr.vmem [resolvable:$true] %s184_s10 }
  0x32   :  { %166 = dma.hbm_to_vmem [thread:$0]  %s159_s30, 4096, %s161_s0, [#allocation18], %s12946_s18, %s12946_s18, %s12947_s19  }
  0x33   :  { %s12953_s20 = smov 1536   ;;  %s12954_s24 = smov 96  }
  0x34   :  { %190 = dma.hbm_to_vmem [thread:$0]  %s183_s3, 49152, %s185_s10, [#allocation21], %s12953_s20, %s12953_s20, %s12954_s24  }
  0x35   :  { %s196_s21 = sshll.u32 %s14207_s13, 4  ;;  %s12955_s12 = smov [#allocation23]   ;;  %s197_s21 = int_to_ptr.hbm [resolvable:$true] %s196_s21 }
  0x36   :  { %s198_s4 = sshll.u32 %s12955_s12, 4  ;;  %s199_s4 = int_to_ptr.vmem [resolvable:$true] %s198_s4 }
  0x37   :  { %201 = dma.hbm_to_vmem [thread:$0]  %s197_s21, 384, %s199_s4, [#allocation24]  }
  0x38   :  { %12914 = dma.done.wait [#allocation3], 3072  }
  0x39   :  { %12915 = vsyncadd [#allocation3], 4294964224 }
  0x3a   :  { %12916 = dma.done.wait [#allocation6], 49280  }
  0x3b   :  { %12917 = vsyncadd [#allocation6], 4294918016 }
  0x3c   :  { %12918 = dma.done.wait [#allocation9], 4128  }
  0x3d   :  { %12919 = vsyncadd [#allocation9], 4294963168 }
  0x3e   :  { %12920 = dma.done.wait [#allocation12], 4128  }
  0x3f   :  { %12921 = vsyncadd [#allocation12], 4294963168 }
  0x40   :  { %12922 = dma.done.wait [#allocation15], 2080  }
  0x41   :  { %12923 = vsyncadd [#allocation15], 4294965216 }
  0x42   :  { %12924 = dma.done.wait [#allocation18], 4128  }
  0x43   :  { %12925 = vsyncadd [#allocation18], 4294963168 }
  0x44   :  { %12926 = dma.done.wait [#allocation21], 49184  }
  0x45   :  { %12927 = vsyncadd [#allocation21], 4294918112 }
  0x46   :  { %12928 = dma.done.wait [#allocation24], 384  }
  0x47   :  { %12929 = vsyncadd [#allocation24], 4294966912  ;;  %v8015_v0 = vld [vmem:[#allocation7 + $0x70] sm:$0xf]  ;;  %v11516_v1 = vld [vmem:[#allocation7 + $0x74] sm:$0xf0] }
  0x48   :  { %v8079_v2 = vld [vmem:[#allocation7 + $0xf0] sm:$0xf]  ;;  %v8016_v3 = vor.u32 %v11516_v1, %v8015_v0  ;;  %v11532_v4 = vld [vmem:[#allocation7 + $0xf4] sm:$0xf0]  ;;  %v8007_v11 = vld [vmem:[#allocation7 + $0x60] sm:$0xf] }
  0x49   :  { %v8143_v5 = vld [vmem:[#allocation7 + $0x170] sm:$0xf]  ;;  %v11548_v6 = vld [vmem:[#allocation7 + $0x174] sm:$0xf0]  ;;  %v8080_v7 = vor.u32 %v11532_v4, %v8079_v2  ;;  %v11514_v13 = vld [vmem:[#allocation7 + $0x64] sm:$0xf0] }
  0x4a   :  { %v8144_v8 = vor.u32 %v11548_v6, %v8143_v5  ;;  %v8207_v9 = vld [vmem:[#allocation7 + $0x1f0] sm:$0xf]  ;;  %v11564_v10 = vld [vmem:[#allocation7 + $0x1f4] sm:$0xf0]  ;;  %2720 = vmatpush.bf16.msra.mxu0 %v8016_v3  ;;  %v8071_v14 = vld [vmem:[#allocation7 + $0xe0] sm:$0xf]  ;;  %v8008_v16 = vor.u32 %v11514_v13, %v8007_v11 }
  0x4b   :  { %v8208_v12 = vor.u32 %v11564_v10, %v8207_v9  ;;  %v11530_v15 = vld [vmem:[#allocation7 + $0xe4] sm:$0xf0]  ;;  %2733 = vmatpush.bf16.msra.mxu1 %v8080_v7  ;;  %v8135_v18 = vld [vmem:[#allocation7 + $0x160] sm:$0xf]  ;;  %v7999_v23 = vld [vmem:[#allocation7 + $0x50] sm:$0xf] }
  0x4c   :  { %2746 = vmatpush.bf16.msra.mxu2 %v8144_v8  ;;  %v8072_v17 = vor.u32 %v11530_v15, %v8071_v14  ;;  %v11546_v19 = vld [vmem:[#allocation7 + $0x164] sm:$0xf0]  ;;  %v8199_v20 = vld [vmem:[#allocation7 + $0x1e0] sm:$0xf]  ;;  %v11512_v24 = vld [vmem:[#allocation7 + $0x54] sm:$0xf0] }
  0x4d   :  { %2759 = vmatpush.bf16.msra.mxu3 %v8208_v12  ;;  %v8136_v21 = vor.u32 %v11546_v19, %v8135_v18  ;;  %v11562_v22 = vld [vmem:[#allocation7 + $0x1e4] sm:$0xf0]  ;;  %v8063_v26 = vld [vmem:[#allocation7 + $0xd0] sm:$0xf]  ;;  %v11528_v27 = vld [vmem:[#allocation7 + $0xd4] sm:$0xf0]  ;;  %v8000_v29 = vor.u32 %v11512_v24, %v7999_v23 }
  0x4e   :  { %v8200_v25 = vor.u32 %v11562_v22, %v8199_v20  ;;  %v8127_v28 = vld [vmem:[#allocation7 + $0x150] sm:$0xf]  ;;  %2721 = vmatpush.bf16.msra.mxu0 %v8008_v16  ;;  %v11544_v30 = vld [vmem:[#allocation7 + $0x154] sm:$0xf0]  ;;  %v8064_v33 = vor.u32 %v11528_v27, %v8063_v26  ;;  %v7991_v35 = vld [vmem:[#allocation7 + $0x40] sm:$0xf] }
  0x4f   :  { %v8191_v31 = vld [vmem:[#allocation7 + $0x1d0] sm:$0xf]  ;;  %v11560_v32 = vld [vmem:[#allocation7 + $0x1d4] sm:$0xf0]  ;;  %2734 = vmatpush.bf16.msra.mxu1 %v8072_v17  ;;  %v8128_v34 = vor.u32 %v11544_v30, %v8127_v28  ;;  %v11510_v36 = vld [vmem:[#allocation7 + $0x44] sm:$0xf0] }
  0x50   :  { %2747 = vmatpush.bf16.msra.mxu2 %v8136_v21  ;;  %v8055_v37 = vld [vmem:[#allocation7 + $0xc0] sm:$0xf]  ;;  %v8192_v38 = vor.u32 %v11560_v32, %v8191_v31  ;;  %v11526_v39 = vld [vmem:[#allocation7 + $0xc4] sm:$0xf0]  ;;  %v7992_v44 = vor.u32 %v11510_v36, %v7991_v35  ;;  %v7983_v47 = vld [vmem:[#allocation7 + $0x30] sm:$0xf] }
  0x51   :  { %2760 = vmatpush.bf16.msra.mxu3 %v8200_v25  ;;  %v8119_v40 = vld [vmem:[#allocation7 + $0x140] sm:$0xf]  ;;  %v11542_v41 = vld [vmem:[#allocation7 + $0x144] sm:$0xf0]  ;;  %v8056_v45 = vor.u32 %v11526_v39, %v8055_v37  ;;  %v11508_v48 = vld [vmem:[#allocation7 + $0x34] sm:$0xf0] }
  0x52   :  { %v8183_v42 = vld [vmem:[#allocation7 + $0x1c0] sm:$0xf]  ;;  %v11558_v43 = vld [vmem:[#allocation7 + $0x1c4] sm:$0xf0]  ;;  %2722 = vmatpush.bf16.msra.mxu0 %v8000_v29  ;;  %v8120_v46 = vor.u32 %v11542_v41, %v8119_v40  ;;  %v8047_v49 = vld [vmem:[#allocation7 + $0xb0] sm:$0xf]  ;;  %v7984_v56 = vor.u32 %v11508_v48, %v7983_v47 }
  0x53   :  { %2735 = vmatpush.bf16.msra.mxu1 %v8064_v33  ;;  %v8184_v50 = vor.u32 %v11558_v43, %v8183_v42  ;;  %v11524_v51 = vld [vmem:[#allocation7 + $0xb4] sm:$0xf0]  ;;  %v8111_v52 = vld [vmem:[#allocation7 + $0x130] sm:$0xf]  ;;  %v7975_v59 = vld [vmem:[#allocation7 + $0x20] sm:$0xf] }
  0x54   :  { %2748 = vmatpush.bf16.msra.mxu2 %v8128_v34  ;;  %v11540_v53 = vld [vmem:[#allocation7 + $0x134] sm:$0xf0]  ;;  %v8175_v54 = vld [vmem:[#allocation7 + $0x1b0] sm:$0xf]  ;;  %v8048_v57 = vor.u32 %v11524_v51, %v8047_v49  ;;  %v11506_v60 = vld [vmem:[#allocation7 + $0x24] sm:$0xf0] }
  0x55   :  { %2761 = vmatpush.bf16.msra.mxu3 %v8192_v38  ;;  %v11556_v55 = vld [vmem:[#allocation7 + $0x1b4] sm:$0xf0]  ;;  %v8112_v58 = vor.u32 %v11540_v53, %v8111_v52  ;;  %v8039_v61 = vld [vmem:[#allocation7 + $0xa0] sm:$0xf]  ;;  %v11522_v63 = vld [vmem:[#allocation7 + $0xa4] sm:$0xf0]  ;;  %v7976_v4 = vor.u32 %v11506_v60, %v7975_v59 }
  0x56   :  { %2723 = vmatpush.bf16.msra.mxu0 %v7992_v44  ;;  %v8176_v62 = vor.u32 %v11556_v55, %v8175_v54  ;;  %v8103_v0 = vld [vmem:[#allocation7 + $0x120] sm:$0xf]  ;;  %v11538_v1 = vld [vmem:[#allocation7 + $0x124] sm:$0xf0]  ;;  %v8040_v5 = vor.u32 %v11522_v63, %v8039_v61  ;;  %v7967_v7 = vld [vmem:[#allocation7 + $0x10] sm:$0xf] }
  0x57   :  { %2736 = vmatpush.bf16.msra.mxu1 %v8056_v45  ;;  %v8167_v2 = vld [vmem:[#allocation7 + $0x1a0] sm:$0xf]  ;;  %v11554_v3 = vld [vmem:[#allocation7 + $0x1a4] sm:$0xf0]  ;;  %v8104_v6 = vor.u32 %v11538_v1, %v8103_v0  ;;  %v11504_v8 = vld [vmem:[#allocation7 + $0x14] sm:$0xf0] }
  0x58   :  { %2749 = vmatpush.bf16.msra.mxu2 %v8120_v46  ;;  %v8031_v9 = vld [vmem:[#allocation7 + $0x90] sm:$0xf]  ;;  %v8168_v10 = vor.u32 %v11554_v3, %v8167_v2  ;;  %v11520_v11 = vld [vmem:[#allocation7 + $0x94] sm:$0xf0]  ;;  %v7968_v16 = vor.u32 %v11504_v8, %v7967_v7  ;;  %v7959_v17 = vld [vmem:[#allocation7] sm:$0xf] }
  0x59   :  { %2762 = vmatpush.bf16.msra.mxu3 %v8184_v50  ;;  %v8095_v12 = vld [vmem:[#allocation7 + $0x110] sm:$0xf]  ;;  %v11536_v13 = vld [vmem:[#allocation7 + $0x114] sm:$0xf0]  ;;  %v11502_v18 = vld [vmem:[#allocation7 + $0x4] sm:$0xf0]  ;;  %v8032_v19 = vor.u32 %v11520_v11, %v8031_v9 }
  0x5a   :  { %2724 = vmatpush.bf16.msra.mxu0 %v7984_v56  ;;  %v8159_v14 = vld [vmem:[#allocation7 + $0x190] sm:$0xf]  ;;  %v11552_v15 = vld [vmem:[#allocation7 + $0x194] sm:$0xf0]  ;;  %v8096_v20 = vor.u32 %v11536_v13, %v8095_v12  ;;  %v8023_v21 = vld [vmem:[#allocation7 + $0x80] sm:$0xf]  ;;  %v7960_v31 = vor.u32 %v11502_v18, %v7959_v17 }
  0x5b   :  { %2737 = vmatpush.bf16.msra.mxu1 %v8048_v57  ;;  %v11518_v22 = vld [vmem:[#allocation7 + $0x84] sm:$0xf0]  ;;  %v8087_v23 = vld [vmem:[#allocation7 + $0x100] sm:$0xf]  ;;  %v8160_v24 = vor.u32 %v11552_v15, %v8159_v14  ;;  %v8271_v28 = vld [vmem:[#allocation7 + $0x270] sm:$0xf] }
  0x5c   :  { %2750 = vmatpush.bf16.msra.mxu2 %v8112_v58  ;;  %v11534_v25 = vld [vmem:[#allocation7 + $0x104] sm:$0xf0]  ;;  %v8151_v26 = vld [vmem:[#allocation7 + $0x180] sm:$0xf]  ;;  %v11580_v29 = vld [vmem:[#allocation7 + $0x274] sm:$0xf0]  ;;  %v8024_v35 = vor.u32 %v11518_v22, %v8023_v21 }
  0x5d   :  { %2763 = vmatpush.bf16.msra.mxu3 %v8176_v62  ;;  %v11550_v27 = vld [vmem:[#allocation7 + $0x184] sm:$0xf0]  ;;  %v8335_v30 = vld [vmem:[#allocation7 + $0x2f0] sm:$0xf]  ;;  %v11596_v32 = vld [vmem:[#allocation7 + $0x2f4] sm:$0xf0]  ;;  %v8088_v36 = vor.u32 %v11534_v25, %v8087_v23  ;;  %v8272_v40 = vor.u32 %v11580_v29, %v8271_v28 }
  0x5e   :  { %2725 = vmatpush.bf16.msra.mxu0 %v7976_v4  ;;  %v8399_v33 = vld [vmem:[#allocation7 + $0x370] sm:$0xf]  ;;  %v11612_v34 = vld [vmem:[#allocation7 + $0x374] sm:$0xf0]  ;;  %v8152_v39 = vor.u32 %v11550_v27, %v8151_v26  ;;  %v8336_v41 = vor.u32 %v11596_v32, %v8335_v30  ;;  %v8263_v43 = vld [vmem:[#allocation7 + $0x260] sm:$0xf] }
  0x5f   :  { %2738 = vmatpush.bf16.msra.mxu1 %v8040_v5  ;;  %v8463_v37 = vld [vmem:[#allocation7 + $0x3f0] sm:$0xf]  ;;  %v11628_v38 = vld [vmem:[#allocation7 + $0x3f4] sm:$0xf0]  ;;  %v8400_v42 = vor.u32 %v11612_v34, %v8399_v33  ;;  %v11578_v44 = vld [vmem:[#allocation7 + $0x264] sm:$0xf0] }
  0x60   :  { %2751 = vmatpush.bf16.msra.mxu2 %v8104_v6  ;;  %v8327_v45 = vld [vmem:[#allocation7 + $0x2e0] sm:$0xf]  ;;  %v8464_v46 = vor.u32 %v11628_v38, %v8463_v37  ;;  %v11594_v47 = vld [vmem:[#allocation7 + $0x2e4] sm:$0xf0]  ;;  %v8264_v52 = vor.u32 %v11578_v44, %v8263_v43  ;;  %v8255_v53 = vld [vmem:[#allocation7 + $0x250] sm:$0xf] }
  0x61   :  { %2764 = vmatpush.bf16.msra.mxu3 %v8168_v10  ;;  %v8391_v48 = vld [vmem:[#allocation7 + $0x360] sm:$0xf]  ;;  %v11610_v49 = vld [vmem:[#allocation7 + $0x364] sm:$0xf0]  ;;  %v8328_v54 = vor.u32 %v11594_v47, %v8327_v45  ;;  %v11576_v56 = vld [vmem:[#allocation7 + $0x254] sm:$0xf0] }
  0x62   :  { %2726 = vmatpush.bf16.msra.mxu0 %v7968_v16  ;;  %v8455_v50 = vld [vmem:[#allocation7 + $0x3e0] sm:$0xf]  ;;  %v11626_v51 = vld [vmem:[#allocation7 + $0x3e4] sm:$0xf0]  ;;  %v8392_v55 = vor.u32 %v11610_v49, %v8391_v48  ;;  %v8319_v57 = vld [vmem:[#allocation7 + $0x2d0] sm:$0xf]  ;;  %v8256_v2 = vor.u32 %v11576_v56, %v8255_v53 }
  0x63   :  { %2739 = vmatpush.bf16.msra.mxu1 %v8032_v19  ;;  %v11592_v58 = vld [vmem:[#allocation7 + $0x2d4] sm:$0xf0]  ;;  %v8456_v59 = vor.u32 %v11626_v51, %v8455_v50  ;;  %v8383_v60 = vld [vmem:[#allocation7 + $0x350] sm:$0xf]  ;;  %v8247_v0 = vld [vmem:[#allocation7 + $0x240] sm:$0xf] }
  0x64   :  { %2752 = vmatpush.bf16.msra.mxu2 %v8096_v20  ;;  %v11608_v61 = vld [vmem:[#allocation7 + $0x354] sm:$0xf0]  ;;  %v8447_v62 = vld [vmem:[#allocation7 + $0x3d0] sm:$0xf]  ;;  %v11574_v1 = vld [vmem:[#allocation7 + $0x244] sm:$0xf0]  ;;  %v8320_v6 = vor.u32 %v11592_v58, %v8319_v57 }
  0x65   :  { %2765 = vmatpush.bf16.msra.mxu3 %v8160_v24  ;;  %v11624_v63 = vld [vmem:[#allocation7 + $0x3d4] sm:$0xf0]  ;;  %v8311_v3 = vld [vmem:[#allocation7 + $0x2c0] sm:$0xf]  ;;  %v264_v5 = vld [vmem:[#allocation2 + $0x30] sm:$0xff]  ;;  %v8384_v7 = vor.u32 %v11608_v61, %v8383_v60  ;;  %v8248_v16 = vor.u32 %v11574_v1, %v8247_v0  ;;  %vm7724_vm8 = vcmask 1040384  }
  0x66   :  { %2727 = vmatpush.bf16.msra.mxu0 %v7960_v31  ;;  %v258_v4 = vld [vmem:[#allocation2] sm:$0xff]  ;;  %v11590_v8 = vld [vmem:[#allocation7 + $0x2c4] sm:$0xf0]  ;;  %v8448_v11 = vor.u32 %v11624_v63, %v8447_v62  ;;  %v8375_v12 = vld [vmem:[#allocation7 + $0x340] sm:$0xf]  ;;  %vm7776_vm9 = vcmask 1041409  }
  0x67   :  { %2740 = vmatpush.bf16.msra.mxu1 %v8024_v35  ;;  %v270_v9 = vld [vmem:[#allocation2 + $0x60] sm:$0xff]  ;;  %v276_v10 = vld [vmem:[#allocation2 + $0x90] sm:$0xff]  ;;  %306 = vst [vmem:[#allocation1] ss:$4 sm:$0xff] %v258_v4  ;;  %v8439_v14 = vld [vmem:[#allocation7 + $0x3c0] sm:$0xf]  ;;  %v8312_v18 = vor.u32 %v11590_v8, %v8311_v3 }
  0x68   :  { %2753 = vmatpush.bf16.msra.mxu2 %v8088_v36  ;;  %v11606_v13 = vld [vmem:[#allocation7 + $0x344] sm:$0xf0]  ;;  %308 = vst [vmem:[#allocation1 + $0x1] ss:$4 sm:$0xff] %v264_v5  ;;  %v8239_v17 = vld [vmem:[#allocation7 + $0x230] sm:$0xf] }
  0x69   :  { %2766 = vmatpush.bf16.msra.mxu3 %v8152_v39  ;;  %v11622_v15 = vld [vmem:[#allocation7 + $0x3c4] sm:$0xf0]  ;;  %310 = vst [vmem:[#allocation1 + $0x2] ss:$4 sm:$0xff] %v270_v9  ;;  %v8376_v19 = vor.u32 %v11606_v13, %v8375_v12  ;;  %v11572_v20 = vld [vmem:[#allocation7 + $0x234] sm:$0xf0] }
  0x6a   :  { %2772 = vmatpush.bf16.msrb.mxu0 %v8272_v40  ;;  %312 = vst [vmem:[#allocation1 + $0x3] ss:$4 sm:$0xff] %v276_v10  ;;  %v8303_v21 = vld [vmem:[#allocation7 + $0x2b0] sm:$0xf]  ;;  %v11588_v22 = vld [vmem:[#allocation7 + $0x2b4] sm:$0xf0]  ;;  %v8440_v23 = vor.u32 %v11622_v15, %v8439_v14  ;;  %v8240_v30 = vor.u32 %v11572_v20, %v8239_v17 }
  0x6b   :  { %2785 = vmatpush.bf16.msrb.mxu1 %v8336_v41  ;;  %v8367_v24 = vld [vmem:[#allocation7 + $0x330] sm:$0xf]  ;;  %v11604_v25 = vld [vmem:[#allocation7 + $0x334] sm:$0xf0]  ;;  %v8231_v28 = vld [vmem:[#allocation7 + $0x220] sm:$0xf]  ;;  %v8304_v34 = vor.u32 %v11588_v22, %v8303_v21 }
  0x6c   :  { %2798 = vmatpush.bf16.msrb.mxu2 %v8400_v42  ;;  %v8431_v26 = vld [vmem:[#allocation7 + $0x3b0] sm:$0xf]  ;;  %v11620_v27 = vld [vmem:[#allocation7 + $0x3b4] sm:$0xf0]  ;;  %v11570_v29 = vld [vmem:[#allocation7 + $0x224] sm:$0xf0]  ;;  %v8368_v35 = vor.u32 %v11604_v25, %v8367_v24 }
  0x6d   :  { %2811 = vmatpush.bf16.msrb.mxu3 %v8464_v46  ;;  %v8295_v31 = vld [vmem:[#allocation7 + $0x2a0] sm:$0xf]  ;;  %v11586_v32 = vld [vmem:[#allocation7 + $0x2a4] sm:$0xf0]  ;;  %v8432_v39 = vor.u32 %v11620_v27, %v8431_v26  ;;  %v266_v41 = vld [vmem:[#allocation2 + $0x40] sm:$0xff]  ;;  %v8232_v47 = vor.u32 %v11570_v29, %v8231_v28  ;;  %vm14216_vm10 = vcmask 1042434  }
  0x6e   :  { %2773 = vmatpush.bf16.msrb.mxu0 %v8264_v52  ;;  %v8359_v33 = vld [vmem:[#allocation7 + $0x320] sm:$0xf]  ;;  %v11602_v36 = vld [vmem:[#allocation7 + $0x324] sm:$0xf0]  ;;  %v8223_v45 = vld [vmem:[#allocation7 + $0x210] sm:$0xf]  ;;  %v8296_v48 = vor.u32 %v11586_v32, %v8295_v31 }
  0x6f   :  { %2786 = vmatpush.bf16.msrb.mxu1 %v8328_v54  ;;  %v8423_v37 = vld [vmem:[#allocation7 + $0x3a0] sm:$0xf]  ;;  %v11618_v38 = vld [vmem:[#allocation7 + $0x3a4] sm:$0xf0]  ;;  %v11568_v46 = vld [vmem:[#allocation7 + $0x214] sm:$0xf0]  ;;  %v8360_v56 = vor.u32 %v11602_v36, %v8359_v33 }
  0x70   :  { %2799 = vmatpush.bf16.msrb.mxu2 %v8392_v55  ;;  %v260_v40 = vld [vmem:[#allocation2 + $0x10] sm:$0xff]  ;;  %v8287_v52 = vld [vmem:[#allocation7 + $0x290] sm:$0xf]  ;;  %v11584_v53 = vld [vmem:[#allocation7 + $0x294] sm:$0xf0]  ;;  %v8424_v61 = vor.u32 %v11618_v38, %v8423_v37  ;;  %vm14215_vm12 = vcmask 1043459  }
  0x71   :  { %2812 = vmatpush.bf16.msrb.mxu3 %v8456_v59  ;;  %v272_v42 = vld [vmem:[#allocation2 + $0x70] sm:$0xff]  ;;  %v323_v43 = vld.sshfl [vmem:[#allocation1 + $0x10] sm:$0xff pattern:$0x73625140]  ;;  %v8351_v54 = vld [vmem:[#allocation7 + $0x310] sm:$0xf] }
  0x72   :  { %2774 = vmatpush.bf16.msrb.mxu0 %v8256_v2  ;;  %v321_v44 = vld.sshfl [vmem:[#allocation1] sm:$0xff pattern:$0x73625140]  ;;  %v13106_v49 = vpack.c.bf16 %v323_v43, %v323_v43  ;;  %v324_v51 = vld.sshfl [vmem:[#allocation1 + $0x18] sm:$0xff pattern:$0x73625140]  ;;  %v8224_v2 = vor.u32 %v11568_v46, %v8223_v45 }
  0x73   :  { %2787 = vmatpush.bf16.msrb.mxu1 %v8320_v6  ;;  %v13108_v50 = vpack.c.bf16 %v321_v44, %v321_v44  ;;  %v322_v55 = vld.sshfl [vmem:[#allocation1 + $0x8] sm:$0xff pattern:$0x73625140]  ;;  %v13110_v57 = vpack.c.bf16 %v324_v51, %v324_v51  ;;  %v8415_v62 = vld [vmem:[#allocation7 + $0x390] sm:$0xf]  ;;  %v259_v15 = vld [vmem:[#allocation2 + $0x8] sm:$0xff] }
  0x74   :  { %2800 = vmatpush.bf16.msrb.mxu2 %v8384_v7  ;;  %v11600_v58 = vld [vmem:[#allocation7 + $0x314] sm:$0xf0]  ;;  %329 = vst [vmem:[#allocation1] ss:$4 sm:$0xff] %v260_v40  ;;  %v13112_v60 = vpack.c.bf16 %v322_v55, %v322_v55  ;;  %v8215_v0 = vld [vmem:[#allocation7 + $0x200] sm:$0xf]  ;;  %v8288_v7 = vor.u32 %v11584_v53, %v8287_v52 }
  0x75   :  { %2813 = vmatpush.bf16.msrb.mxu3 %v8448_v11  ;;  %v278_v59 = vld [vmem:[#allocation2 + $0xa0] sm:$0xff]  ;;  %2754 = vmatmul.bf16.vlgmr.msra.gmra.mxu2 %v13106_v49  ;;  %330 = vst [vmem:[#allocation1 + $0x1] ss:$4 sm:$0xff] %v266_v41  ;;  %v11566_v1 = vld [vmem:[#allocation7 + $0x204] sm:$0xf0]  ;;  %v8352_v8 = vor.u32 %v11600_v58, %v8351_v54  ;;  %v271_v17 = vld [vmem:[#allocation2 + $0x68] sm:$0xff] }
  0x76   :  { %2775 = vmatpush.bf16.msrb.mxu0 %v8248_v16  ;;  %v11616_v63 = vld [vmem:[#allocation7 + $0x394] sm:$0xf0]  ;;  %2767 = vmatmul.bf16.vlgmr.msra.gmra.mxu3 %v13110_v57  ;;  %331 = vst [vmem:[#allocation1 + $0x2] ss:$4 sm:$0xff] %v272_v42  ;;  %v8279_v3 = vld [vmem:[#allocation7 + $0x280] sm:$0xf]  ;;  %v8216_v20 = vor.u32 %v11566_v1, %v8215_v0 }
  0x77   :  { %2788 = vmatpush.bf16.msrb.mxu1 %v8312_v18  ;;  %2728 = vmatmul.bf16.vlgmr.msra.gmra.mxu0 %v13108_v50  ;;  %332 = vst [vmem:[#allocation1 + $0x3] ss:$4 sm:$0xff] %v278_v59  ;;  %v11582_v4 = vld [vmem:[#allocation7 + $0x284] sm:$0xf0]  ;;  %v8343_v5 = vld [vmem:[#allocation7 + $0x300] sm:$0xf]  ;;  %v8416_v13 = vor.u32 %v11616_v63, %v8415_v62 }
  0x78   :  { %2801 = vmatpush.bf16.msrb.mxu2 %v8376_v19  ;;  %2741 = vmatmul.bf16.vlgmr.msra.gmra.mxu1 %v13112_v60  ;;  %v11598_v6 = vld [vmem:[#allocation7 + $0x304] sm:$0xf0]  ;;  %v8407_v9 = vld [vmem:[#allocation7 + $0x380] sm:$0xf]  ;;  %v8527_v11 = vld [vmem:[#allocation7 + $0x470] sm:$0xf] }
  0x79   :  { %2814 = vmatpush.bf16.msrb.mxu3 %v8440_v23  ;;  %v11614_v10 = vld [vmem:[#allocation7 + $0x384] sm:$0xf0]  ;;  %v11644_v12 = vld [vmem:[#allocation7 + $0x474] sm:$0xf0]  ;;  %v8591_v14 = vld [vmem:[#allocation7 + $0x4f0] sm:$0xf]  ;;  %v8280_v23 = vor.u32 %v11582_v4, %v8279_v3  ;;  %v8344_v24 = vor.u32 %v11598_v6, %v8343_v5 }
  0x7a   :  { %2776 = vmatpush.bf16.msrb.mxu0 %v8240_v30  ;;  %v265_v16 = vld [vmem:[#allocation2 + $0x38] sm:$0xff]  ;;  %v11660_v18 = vld [vmem:[#allocation7 + $0x4f4] sm:$0xf0]  ;;  %314 = vst [vmem:[#allocation1 + $0x20] ss:$4 sm:$0xff] %v259_v15  ;;  %v8408_v27 = vor.u32 %v11614_v10, %v8407_v9  ;;  %v8528_v28 = vor.u32 %v11644_v12, %v8527_v11  ;;  %v267_v55 = vld [vmem:[#allocation2 + $0x48] sm:$0xff] }
  0x7b   :  { %2789 = vmatpush.bf16.msrb.mxu1 %v8304_v34  ;;  %v277_v19 = vld [vmem:[#allocation2 + $0x98] sm:$0xff]  ;;  %v11676_v22 = vld [vmem:[#allocation7 + $0x574] sm:$0xf0]  ;;  %316 = vst [vmem:[#allocation1 + $0x21] ss:$4 sm:$0xff] %v265_v16  ;;  %v8592_v29 = vor.u32 %v11660_v18, %v8591_v14 }
  0x7c   :  { %2802 = vmatpush.bf16.msrb.mxu2 %v8368_v35  ;;  %v8655_v21 = vld [vmem:[#allocation7 + $0x570] sm:$0xf]  ;;  %v11692_v26 = vld [vmem:[#allocation7 + $0x5f4] sm:$0xf0]  ;;  %318 = vst [vmem:[#allocation1 + $0x22] ss:$4 sm:$0xff] %v271_v17 }
  0x7d   :  { %2815 = vmatpush.bf16.msrb.mxu3 %v8432_v39  ;;  %v8719_v25 = vld [vmem:[#allocation7 + $0x5f0] sm:$0xf]  ;;  %320 = vst [vmem:[#allocation1 + $0x23] ss:$4 sm:$0xff] %v277_v19  ;;  %v8656_v30 = vor.u32 %v11676_v22, %v8655_v21  ;;  %v8519_v31 = vld [vmem:[#allocation7 + $0x460] sm:$0xf] }
  0x7e   :  { %2777 = vmatpush.bf16.msrb.mxu0 %v8232_v47  ;;  %v11642_v32 = vld [vmem:[#allocation7 + $0x464] sm:$0xf0]  ;;  %v8583_v33 = vld [vmem:[#allocation7 + $0x4e0] sm:$0xf]  ;;  %v8720_v34 = vor.u32 %v11692_v26, %v8719_v25  ;;  %v8511_v40 = vld [vmem:[#allocation7 + $0x450] sm:$0xf] }
  0x7f   :  { %2790 = vmatpush.bf16.msrb.mxu1 %v8296_v48  ;;  %v11658_v35 = vld [vmem:[#allocation7 + $0x4e4] sm:$0xf0]  ;;  %v8647_v36 = vld [vmem:[#allocation7 + $0x560] sm:$0xf]  ;;  %v8520_v41 = vor.u32 %v11642_v32, %v8519_v31  ;;  %v11640_v42 = vld [vmem:[#allocation7 + $0x454] sm:$0xf0] }
  0x80   :  { %2803 = vmatpush.bf16.msrb.mxu2 %v8360_v56  ;;  %v11674_v37 = vld [vmem:[#allocation7 + $0x564] sm:$0xf0]  ;;  %v8711_v38 = vld [vmem:[#allocation7 + $0x5e0] sm:$0xf]  ;;  %v8575_v43 = vld [vmem:[#allocation7 + $0x4d0] sm:$0xf]  ;;  %v8584_v46 = vor.u32 %v11658_v35, %v8583_v33  ;;  %v8512_v1 = vor.u32 %v11640_v42, %v8511_v40 }
  0x81   :  { %2816 = vmatpush.bf16.msrb.mxu3 %v8424_v61  ;;  %v11690_v39 = vld [vmem:[#allocation7 + $0x5e4] sm:$0xf0]  ;;  %v11656_v44 = vld [vmem:[#allocation7 + $0x4d4] sm:$0xf0]  ;;  %v261_v45 = vld [vmem:[#allocation2 + $0x18] sm:$0xff]  ;;  %v8648_v47 = vor.u32 %v11674_v37, %v8647_v36 }
  0x82   :  { %2778 = vmatpush.bf16.msrb.mxu0 %v8224_v2  ;;  %v8639_v48 = vld [vmem:[#allocation7 + $0x550] sm:$0xf]  ;;  %v11672_v51 = vld [vmem:[#allocation7 + $0x554] sm:$0xf0]  ;;  %v8712_v53 = vor.u32 %v11690_v39, %v8711_v38  ;;  %v279_v61 = vld [vmem:[#allocation2 + $0xa8] sm:$0xff]  ;;  %v8576_v2 = vor.u32 %v11656_v44, %v8575_v43 }
  0x83   :  { %2791 = vmatpush.bf16.msrb.mxu1 %v8288_v7  ;;  %v8703_v52 = vld [vmem:[#allocation7 + $0x5d0] sm:$0xf]  ;;  %v11688_v54 = vld [vmem:[#allocation7 + $0x5d4] sm:$0xf0]  ;;  %v8503_v62 = vld [vmem:[#allocation7 + $0x440] sm:$0xf]  ;;  %v8640_v6 = vor.u32 %v11672_v51, %v8639_v48 }
  0x84   :  { %2804 = vmatpush.bf16.msrb.mxu2 %v8352_v8  ;;  %v273_v56 = vld [vmem:[#allocation2 + $0x78] sm:$0xff]  ;;  %v327_v58 = vld.sshfl [vmem:[#allocation1 + $0x30] sm:$0xff pattern:$0x73625140]  ;;  %v11638_v63 = vld [vmem:[#allocation7 + $0x444] sm:$0xf0]  ;;  %v8704_v11 = vor.u32 %v11688_v54, %v8703_v52 }
  0x85   :  { %2817 = vmatpush.bf16.msrb.mxu3 %v8416_v13  ;;  %v325_v59 = vld.sshfl [vmem:[#allocation1 + $0x20] sm:$0xff pattern:$0x73625140]  ;;  %v13118_v0 = vpack.c.bf16 %v327_v58, %v327_v58  ;;  %v328_v4 = vld.sshfl [vmem:[#allocation1 + $0x38] sm:$0xff pattern:$0x73625140]  ;;  %v8504_v16 = vor.u32 %v11638_v63, %v8503_v62 }
  0x86   :  { %2779 = vmatpush.bf16.msrb.mxu0 %v8216_v20  ;;  %v13120_v3 = vpack.c.bf16 %v325_v59, %v325_v59  ;;  %v326_v5 = vld.sshfl [vmem:[#allocation1 + $0x28] sm:$0xff pattern:$0x73625140]  ;;  %v13122_v7 = vpack.c.bf16 %v328_v4, %v328_v4  ;;  %v8567_v9 = vld [vmem:[#allocation7 + $0x4c0] sm:$0xf] }
  0x87   :  { %2792 = vmatpush.bf16.msrb.mxu1 %v8280_v23  ;;  %333 = vst [vmem:[#allocation1 + $0x20] ss:$4 sm:$0xff] %v261_v45  ;;  %v13124_v8 = vpack.c.bf16 %v326_v5, %v326_v5  ;;  %v11654_v10 = vld [vmem:[#allocation7 + $0x4c4] sm:$0xf0]  ;;  %v8631_v12 = vld [vmem:[#allocation7 + $0x540] sm:$0xf] }
  0x88   :  { %2805 = vmatpush.bf16.msrb.mxu2 %v8344_v24  ;;  %334 = vst [vmem:[#allocation1 + $0x21] ss:$4 sm:$0xff] %v267_v55  ;;  %v11670_v13 = vld [vmem:[#allocation7 + $0x544] sm:$0xf0]  ;;  %v8695_v14 = vld [vmem:[#allocation7 + $0x5c0] sm:$0xf]  ;;  %v8568_v17 = vor.u32 %v11654_v10, %v8567_v9 }
  0x89   :  { %2818 = vmatpush.bf16.msrb.mxu3 %v8408_v27  ;;  %2780 = vmatmul.bf16.vlgmr.msrb.gmra.mxu0 %v13120_v3  ;;  %335 = vst [vmem:[#allocation1 + $0x22] ss:$4 sm:$0xff] %v273_v56  ;;  %v11686_v15 = vld [vmem:[#allocation7 + $0x5c4] sm:$0xf0]  ;;  %v8632_v18 = vor.u32 %v11670_v13, %v8631_v12  ;;  %v8495_v19 = vld [vmem:[#allocation7 + $0x430] sm:$0xf] }
  0x8a   :  { %2824 = vmatpush.bf16.msra.mxu0 %v8528_v28  ;;  %336 = vst [vmem:[#allocation1 + $0x23] ss:$4 sm:$0xff] %v279_v61  ;;  %2793 = vmatmul.bf16.vlgmr.msrb.gmra.mxu1 %v13124_v8  ;;  %v11636_v20 = vld [vmem:[#allocation7 + $0x434] sm:$0xf0]  ;;  %v8559_v21 = vld [vmem:[#allocation7 + $0x4b0] sm:$0xf]  ;;  %v8696_v22 = vor.u32 %v11686_v15, %v8695_v14 }
  0x8b   :  { %2837 = vmatpush.bf16.msra.mxu1 %v8592_v29  ;;  %2806 = vmatmul.bf16.vlgmr.msrb.gmra.mxu2 %v13118_v0  ;;  %v11652_v23 = vld [vmem:[#allocation7 + $0x4b4] sm:$0xf0]  ;;  %v8623_v24 = vld [vmem:[#allocation7 + $0x530] sm:$0xf]  ;;  %v8496_v28 = vor.u32 %v11636_v20, %v8495_v19  ;;  %v8487_v31 = vld [vmem:[#allocation7 + $0x420] sm:$0xf] }
  0x8c   :  { %2850 = vmatpush.bf16.msra.mxu2 %v8656_v30  ;;  %2819 = vmatmul.bf16.vlgmr.msrb.gmra.mxu3 %v13122_v7  ;;  %v11668_v25 = vld [vmem:[#allocation7 + $0x534] sm:$0xf0]  ;;  %v8687_v26 = vld [vmem:[#allocation7 + $0x5b0] sm:$0xf]  ;;  %v8560_v29 = vor.u32 %v11652_v23, %v8559_v21  ;;  %v11634_v32 = vld [vmem:[#allocation7 + $0x424] sm:$0xf0] }
  0x8d   :  { %2863 = vmatpush.bf16.msra.mxu3 %v8720_v34  ;;  %v11684_v27 = vld [vmem:[#allocation7 + $0x5b4] sm:$0xf0]  ;;  %v8624_v30 = vor.u32 %v11668_v25, %v8623_v24  ;;  %v8551_v33 = vld [vmem:[#allocation7 + $0x4a0] sm:$0xf]  ;;  %v11650_v35 = vld [vmem:[#allocation7 + $0x4a4] sm:$0xf0]  ;;  %v8488_v40 = vor.u32 %v11634_v32, %v8487_v31 }
  0x8e   :  { %2825 = vmatpush.bf16.msra.mxu0 %v8520_v41  ;;  %v8688_v34 = vor.u32 %v11684_v27, %v8687_v26  ;;  %v8615_v36 = vld [vmem:[#allocation7 + $0x520] sm:$0xf]  ;;  %v11666_v37 = vld [vmem:[#allocation7 + $0x524] sm:$0xf0]  ;;  %v8552_v41 = vor.u32 %v11650_v35, %v8551_v33  ;;  %v8479_v43 = vld [vmem:[#allocation7 + $0x410] sm:$0xf] }
  0x8f   :  { %2838 = vmatpush.bf16.msra.mxu1 %v8584_v46  ;;  %v8679_v38 = vld [vmem:[#allocation7 + $0x5a0] sm:$0xf]  ;;  %v11682_v39 = vld [vmem:[#allocation7 + $0x5a4] sm:$0xf0]  ;;  %v8616_v42 = vor.u32 %v11666_v37, %v8615_v36  ;;  %v11632_v44 = vld [vmem:[#allocation7 + $0x414] sm:$0xf0] }
  0x90   :  { %2851 = vmatpush.bf16.msra.mxu2 %v8648_v47  ;;  %v8543_v45 = vld [vmem:[#allocation7 + $0x490] sm:$0xf]  ;;  %v8680_v46 = vor.u32 %v11682_v39, %v8679_v38  ;;  %v11648_v47 = vld [vmem:[#allocation7 + $0x494] sm:$0xf0]  ;;  %v8471_v54 = vld [vmem:[#allocation7 + $0x400] sm:$0xf]  ;;  %v8480_v55 = vor.u32 %v11632_v44, %v8479_v43 }
  0x91   :  { %2864 = vmatpush.bf16.msra.mxu3 %v8712_v53  ;;  %v8607_v48 = vld [vmem:[#allocation7 + $0x510] sm:$0xf]  ;;  %v11664_v51 = vld [vmem:[#allocation7 + $0x514] sm:$0xf0]  ;;  %v11630_v56 = vld [vmem:[#allocation7 + $0x404] sm:$0xf0]  ;;  %v8544_v61 = vor.u32 %v11648_v47, %v8543_v45 }
  0x92   :  { %2826 = vmatpush.bf16.msra.mxu0 %v8512_v1  ;;  %v8671_v52 = vld [vmem:[#allocation7 + $0x590] sm:$0xf]  ;;  %v11680_v53 = vld [vmem:[#allocation7 + $0x594] sm:$0xf0]  ;;  %v8535_v58 = vld [vmem:[#allocation7 + $0x480] sm:$0xf]  ;;  %v8608_v62 = vor.u32 %v11664_v51, %v8607_v48  ;;  %v8472_v13 = vor.u32 %v11630_v56, %v8471_v54 }
  0x93   :  { %2839 = vmatpush.bf16.msra.mxu1 %v8576_v2  ;;  %v11646_v59 = vld [vmem:[#allocation7 + $0x484] sm:$0xf0]  ;;  %v8599_v63 = vld [vmem:[#allocation7 + $0x500] sm:$0xf]  ;;  %v8672_v4 = vor.u32 %v11680_v53, %v8671_v52  ;;  %v11708_v9 = vld [vmem:[#allocation7 + $0x674] sm:$0xf0] }
  0x94   :  { %2852 = vmatpush.bf16.msra.mxu2 %v8640_v6  ;;  %v11662_v1 = vld [vmem:[#allocation7 + $0x504] sm:$0xf0]  ;;  %v8663_v2 = vld [vmem:[#allocation7 + $0x580] sm:$0xf]  ;;  %v8783_v6 = vld [vmem:[#allocation7 + $0x670] sm:$0xf] }
  0x95   :  { %2865 = vmatpush.bf16.msra.mxu3 %v8704_v11  ;;  %v11678_v5 = vld [vmem:[#allocation7 + $0x584] sm:$0xf0]  ;;  %v8847_v10 = vld [vmem:[#allocation7 + $0x6f0] sm:$0xf]  ;;  %v11724_v11 = vld [vmem:[#allocation7 + $0x6f4] sm:$0xf0] }
  0x96   :  { %2827 = vmatpush.bf16.msra.mxu0 %v8504_v16  ;;  %v8911_v12 = vld [vmem:[#allocation7 + $0x770] sm:$0xf]  ;;  %v11740_v14 = vld [vmem:[#allocation7 + $0x774] sm:$0xf0]  ;;  %v8664_v21 = vor.u32 %v11678_v5, %v8663_v2  ;;  %v8848_v25 = vor.u32 %v11724_v11, %v8847_v10  ;;  %v8775_v27 = vld [vmem:[#allocation7 + $0x660] sm:$0xf] }
  0x97   :  { %2840 = vmatpush.bf16.msra.mxu1 %v8568_v17  ;;  %v8975_v15 = vld [vmem:[#allocation7 + $0x7f0] sm:$0xf]  ;;  %v11756_v16 = vld [vmem:[#allocation7 + $0x7f4] sm:$0xf0]  ;;  %v8536_v17 = vor.u32 %v11646_v59, %v8535_v58  ;;  %v8912_v26 = vor.u32 %v11740_v14, %v8911_v12  ;;  %v11722_v32 = vld [vmem:[#allocation7 + $0x6e4] sm:$0xf0] }
  0x98   :  { %2853 = vmatpush.bf16.msra.mxu2 %v8632_v18  ;;  %v8600_v18 = vor.u32 %v11662_v1, %v8599_v63  ;;  %v337_v19 = vld.sshfl [vmem:[#allocation1] sm:$0xff pattern:$0x73625140]  ;;  %v339_v20 = vld.sshfl [vmem:[#allocation1 + $0x10] sm:$0xff pattern:$0x73625140] }
  0x99   :  { %2866 = vmatpush.bf16.msra.mxu3 %v8696_v22  ;;  %v8784_v22 = vor.u32 %v11708_v9, %v8783_v6  ;;  %v338_v23 = vld.sshfl [vmem:[#allocation1 + $0x8] sm:$0xff pattern:$0x73625140]  ;;  %v340_v24 = vld.sshfl [vmem:[#allocation1 + $0x18] sm:$0xff pattern:$0x73625140]  ;;  %v13130_v31 = vpack.c.bf16 %v337_v19, %v337_v19  ;;  %v13132_v35 = vpack.c.bf16 %v339_v20, %v339_v20 }
  0x9a   :  { %2828 = vmatpush.bf16.msra.mxu0 %v8496_v28  ;;  %v11706_v28 = vld [vmem:[#allocation7 + $0x664] sm:$0xf0]  ;;  %v8903_v33 = vld [vmem:[#allocation7 + $0x760] sm:$0xf]  ;;  %v13134_v36 = vpack.c.bf16 %v338_v23, %v338_v23  ;;  %v13136_v39 = vpack.c.bf16 %v340_v24, %v340_v24  ;;  %v8767_v43 = vld [vmem:[#allocation7 + $0x650] sm:$0xf] }
  0x9b   :  { %2841 = vmatpush.bf16.msra.mxu1 %v8560_v29  ;;  %v8839_v29 = vld [vmem:[#allocation7 + $0x6e0] sm:$0xf]  ;;  %v11754_v38 = vld [vmem:[#allocation7 + $0x7e4] sm:$0xf0]  ;;  %v11704_v44 = vld [vmem:[#allocation7 + $0x654] sm:$0xf0] }
  0x9c   :  { %2854 = vmatpush.bf16.msra.mxu2 %v8624_v30  ;;  %v8976_v30 = vor.u32 %v11756_v16, %v8975_v15  ;;  %v8967_v37 = vld [vmem:[#allocation7 + $0x7e0] sm:$0xf]  ;;  %v8831_v45 = vld [vmem:[#allocation7 + $0x6d0] sm:$0xf]  ;;  %v11720_v47 = vld [vmem:[#allocation7 + $0x6d4] sm:$0xf0]  ;;  %v8768_v54 = vor.u32 %v11704_v44, %v8767_v43 }
  0x9d   :  { %2867 = vmatpush.bf16.msra.mxu3 %v8688_v34  ;;  %v11738_v34 = vld [vmem:[#allocation7 + $0x764] sm:$0xf0]  ;;  %v8895_v48 = vld [vmem:[#allocation7 + $0x750] sm:$0xf]  ;;  %v11736_v51 = vld [vmem:[#allocation7 + $0x754] sm:$0xf0] }
  0x9e   :  { %2829 = vmatpush.bf16.msra.mxu0 %v8488_v40  ;;  %v8776_v40 = vor.u32 %v11706_v28, %v8775_v27  ;;  %v8959_v52 = vld [vmem:[#allocation7 + $0x7d0] sm:$0xf]  ;;  %v11752_v53 = vld [vmem:[#allocation7 + $0x7d4] sm:$0xf0]  ;;  %v8896_v56 = vor.u32 %v11736_v51, %v8895_v48  ;;  %v8759_v58 = vld [vmem:[#allocation7 + $0x640] sm:$0xf] }
  0x9f   :  { %2842 = vmatpush.bf16.msra.mxu1 %v8552_v41  ;;  %v8840_v41 = vor.u32 %v11722_v32, %v8839_v29  ;;  %v11702_v59 = vld [vmem:[#allocation7 + $0x644] sm:$0xf0]  ;;  %v8887_v1 = vld [vmem:[#allocation7 + $0x740] sm:$0xf]  ;;  %v8751_v11 = vld [vmem:[#allocation7 + $0x630] sm:$0xf] }
  0xa0   :  { %2855 = vmatpush.bf16.msra.mxu2 %v8616_v42  ;;  %v8904_v42 = vor.u32 %v11738_v34, %v8903_v33  ;;  %v11718_v63 = vld [vmem:[#allocation7 + $0x6c4] sm:$0xf0]  ;;  %v8760_v6 = vor.u32 %v11702_v59, %v8759_v58  ;;  %v11700_v12 = vld [vmem:[#allocation7 + $0x634] sm:$0xf0]  ;;  %v8879_v16 = vld [vmem:[#allocation7 + $0x730] sm:$0xf] }
  0xa1   :  { %2868 = vmatpush.bf16.msra.mxu3 %v8680_v46  ;;  %v8968_v46 = vor.u32 %v11754_v38, %v8967_v37  ;;  %v11734_v2 = vld [vmem:[#allocation7 + $0x744] sm:$0xf0]  ;;  %v11716_v15 = vld [vmem:[#allocation7 + $0x6b4] sm:$0xf0]  ;;  %v8752_v20 = vor.u32 %v11700_v12, %v8751_v11  ;;  %v8743_v23 = vld [vmem:[#allocation7 + $0x620] sm:$0xf] }
  0xa2   :  { %2830 = vmatpush.bf16.msra.mxu0 %v8480_v55  ;;  %v8832_v55 = vor.u32 %v11720_v47, %v8831_v45  ;;  %v11750_v5 = vld [vmem:[#allocation7 + $0x7c4] sm:$0xf0]  ;;  %v8888_v10 = vor.u32 %v11734_v2, %v8887_v1  ;;  %v11748_v19 = vld [vmem:[#allocation7 + $0x7b4] sm:$0xf0]  ;;  %v8871_v28 = vld [vmem:[#allocation7 + $0x720] sm:$0xf] }
  0xa3   :  { %2843 = vmatpush.bf16.msra.mxu1 %v8544_v61  ;;  %v8823_v61 = vld [vmem:[#allocation7 + $0x6c0] sm:$0xf]  ;;  %v11698_v24 = vld [vmem:[#allocation7 + $0x624] sm:$0xf0]  ;;  %v8735_v38 = vld [vmem:[#allocation7 + $0x610] sm:$0xf] }
  0xa4   :  { %2856 = vmatpush.bf16.msra.mxu2 %v8608_v62  ;;  %v8960_v62 = vor.u32 %v11752_v53, %v8959_v52  ;;  %v8824_v9 = vor.u32 %v11718_v63, %v8823_v61  ;;  %v11714_v27 = vld [vmem:[#allocation7 + $0x6a4] sm:$0xf0]  ;;  %v8744_v33 = vor.u32 %v11698_v24, %v8743_v23  ;;  %v11712_v43 = vld [vmem:[#allocation7 + $0x694] sm:$0xf0]  ;;  %v8863_v44 = vld [vmem:[#allocation7 + $0x710] sm:$0xf] }
  0xa5   :  { %2869 = vmatpush.bf16.msra.mxu3 %v8672_v4  ;;  %v8951_v4 = vld [vmem:[#allocation7 + $0x7c0] sm:$0xf]  ;;  %v11730_v29 = vld [vmem:[#allocation7 + $0x724] sm:$0xf0]  ;;  %v11728_v45 = vld [vmem:[#allocation7 + $0x714] sm:$0xf0] }
  0xa6   :  { %2831 = vmatpush.bf16.msra.mxu0 %v8472_v13  ;;  %v8815_v13 = vld [vmem:[#allocation7 + $0x6b0] sm:$0xf]  ;;  %v8952_v14 = vor.u32 %v11750_v5, %v8951_v4  ;;  %v11746_v32 = vld [vmem:[#allocation7 + $0x7a4] sm:$0xf0]  ;;  %v8872_v37 = vor.u32 %v11730_v29, %v8871_v28  ;;  %v11744_v47 = vld [vmem:[#allocation7 + $0x794] sm:$0xf0] }
  0xa7   :  { %2844 = vmatpush.bf16.msra.mxu1 %v8536_v17  ;;  %v11732_v17 = vld [vmem:[#allocation7 + $0x734] sm:$0xf0]  ;;  %v8727_v48 = vld [vmem:[#allocation7 + $0x600] sm:$0xf]  ;;  %v11694_v52 = vld [vmem:[#allocation7 + $0x604] sm:$0xf0] }
  0xa8   :  { %2857 = vmatpush.bf16.msra.mxu2 %v8600_v18  ;;  %v8943_v18 = vld [vmem:[#allocation7 + $0x7b0] sm:$0xf]  ;;  %v8791_v53 = vld [vmem:[#allocation7 + $0x680] sm:$0xf]  ;;  %v11726_v59 = vld [vmem:[#allocation7 + $0x704] sm:$0xf0] }
  0xa9   :  { %2870 = vmatpush.bf16.msra.mxu3 %v8664_v21  ;;  %2832 = vmatmul.bf16.vlgmr.msra.gmra.mxu0 %v13130_v31  ;;  %v8816_v21 = vor.u32 %v11716_v15, %v8815_v13  ;;  %v8855_v58 = vld [vmem:[#allocation7 + $0x700] sm:$0xf]  ;;  %v11742_v63 = vld [vmem:[#allocation7 + $0x784] sm:$0xf0]  ;;  %v9039_v1 = vld [vmem:[#allocation7 + $0x870] sm:$0xf] }
  0xaa   :  { %2876 = vmatpush.bf16.msrb.mxu0 %v8784_v22  ;;  %2845 = vmatmul.bf16.vlgmr.msra.gmra.mxu1 %v13134_v36  ;;  %v8880_v22 = vor.u32 %v11732_v17, %v8879_v16  ;;  %v8919_v61 = vld [vmem:[#allocation7 + $0x780] sm:$0xf]  ;;  %v11772_v2 = vld [vmem:[#allocation7 + $0x874] sm:$0xf0]  ;;  %v9103_v4 = vld [vmem:[#allocation7 + $0x8f0] sm:$0xf] }
  0xab   :  { %2889 = vmatpush.bf16.msrb.mxu1 %v8848_v25  ;;  %2858 = vmatmul.bf16.vlgmr.msra.gmra.mxu2 %v13132_v35  ;;  %v8807_v25 = vld [vmem:[#allocation7 + $0x6a0] sm:$0xf]  ;;  %v11788_v5 = vld [vmem:[#allocation7 + $0x8f4] sm:$0xf0]  ;;  %v9231_v11 = vld [vmem:[#allocation7 + $0x9f0] sm:$0xf]  ;;  %v8920_v17 = vor.u32 %v11742_v63, %v8919_v61 }
  0xac   :  { %2902 = vmatpush.bf16.msrb.mxu2 %v8912_v26  ;;  %2871 = vmatmul.bf16.vlgmr.msra.gmra.mxu3 %v13136_v39  ;;  %v8944_v26 = vor.u32 %v11748_v19, %v8943_v18  ;;  %v8808_v34 = vor.u32 %v11714_v27, %v8807_v25  ;;  %v11820_v12 = vld [vmem:[#allocation7 + $0x9f4] sm:$0xf0]  ;;  %v341_v15 = vld.sshfl [vmem:[#allocation1 + $0x20] sm:$0xff pattern:$0x73625140]  ;;  %v9040_v18 = vor.u32 %v11772_v2, %v9039_v1  ;;  %v268_v61 = vld [vmem:[#allocation2 + $0x50] sm:$0xff] }
  0xad   :  { %2915 = vmatpush.bf16.msrb.mxu3 %v8976_v30  ;;  %v8935_v30 = vld [vmem:[#allocation7 + $0x7a0] sm:$0xf]  ;;  %v342_v19 = vld.sshfl [vmem:[#allocation1 + $0x28] sm:$0xff pattern:$0x73625140]  ;;  %v13142_v27 = vpack.c.bf16 %v341_v15, %v341_v15 }
  0xae   :  { %2877 = vmatpush.bf16.msrb.mxu0 %v8776_v40  ;;  %v11696_v40 = vld [vmem:[#allocation7 + $0x614] sm:$0xf0]  ;;  %v343_v16 = vld.sshfl [vmem:[#allocation1 + $0x30] sm:$0xff pattern:$0x73625140] }
  0xaf   :  { %2890 = vmatpush.bf16.msrb.mxu1 %v8840_v41  ;;  %v8799_v41 = vld [vmem:[#allocation7 + $0x690] sm:$0xf]  ;;  %v8736_v51 = vor.u32 %v11696_v40, %v8735_v38  ;;  %v9031_v23 = vld [vmem:[#allocation7 + $0x860] sm:$0xf]  ;;  %v11770_v24 = vld [vmem:[#allocation7 + $0x864] sm:$0xf0] }
  0xb0   :  { %2903 = vmatpush.bf16.msrb.mxu2 %v8904_v42  ;;  %v8936_v42 = vor.u32 %v11746_v32, %v8935_v30  ;;  %v9095_v25 = vld [vmem:[#allocation7 + $0x8e0] sm:$0xf]  ;;  %v11786_v28 = vld [vmem:[#allocation7 + $0x8e4] sm:$0xf0]  ;;  %v13144_v32 = vpack.c.bf16 %v343_v16, %v343_v16  ;;  %v9032_v40 = vor.u32 %v11770_v24, %v9031_v23  ;;  %v274_v2 = vld [vmem:[#allocation2 + $0x80] sm:$0xff] }
  0xb1   :  { %2916 = vmatpush.bf16.msrb.mxu3 %v8968_v46  ;;  %v8927_v46 = vld [vmem:[#allocation7 + $0x790] sm:$0xf]  ;;  %v9159_v29 = vld [vmem:[#allocation7 + $0x960] sm:$0xf]  ;;  %v11802_v30 = vld [vmem:[#allocation7 + $0x964] sm:$0xf0] }
  0xb2   :  { %2878 = vmatpush.bf16.msrb.mxu0 %v8768_v54  ;;  %v11710_v54 = vld [vmem:[#allocation7 + $0x684] sm:$0xf0]  ;;  %346 = vst [vmem:[#allocation1 + $0x1] ss:$4 sm:$0xff] %v268_v61  ;;  %v9007_v15 = vld [vmem:[#allocation7 + $0x830] sm:$0xf] }
  0xb3   :  { %2891 = vmatpush.bf16.msrb.mxu1 %v8832_v55  ;;  %v8800_v55 = vor.u32 %v11712_v43, %v8799_v41  ;;  %v8792_v13 = vor.u32 %v11710_v54, %v8791_v53  ;;  %v9023_v41 = vld [vmem:[#allocation7 + $0x850] sm:$0xf]  ;;  %v9160_v43 = vor.u32 %v11802_v30, %v9159_v29  ;;  %v11816_v53 = vld [vmem:[#allocation7 + $0x9d4] sm:$0xf0]  ;;  %v9015_v54 = vld [vmem:[#allocation7 + $0x840] sm:$0xf] }
  0xb4   :  { %2904 = vmatpush.bf16.msrb.mxu2 %v8896_v56  ;;  %v8864_v56 = vor.u32 %v11728_v45, %v8863_v44  ;;  %v11768_v44 = vld [vmem:[#allocation7 + $0x854] sm:$0xf0]  ;;  %v9087_v45 = vld [vmem:[#allocation7 + $0x8d0] sm:$0xf]  ;;  %v11782_v1 = vld [vmem:[#allocation7 + $0x8c4] sm:$0xf0] }
  0xb5   :  { %2917 = vmatpush.bf16.msrb.mxu3 %v8960_v62  ;;  %v8928_v62 = vor.u32 %v11744_v47, %v8927_v46  ;;  %v11784_v46 = vld [vmem:[#allocation7 + $0x8d4] sm:$0xf0]  ;;  %347 = vst [vmem:[#allocation1 + $0x2] ss:$4 sm:$0xff] %v274_v2  ;;  %v11762_v29 = vld [vmem:[#allocation7 + $0x824] sm:$0xf0] }
  0xb6   :  { %2879 = vmatpush.bf16.msrb.mxu0 %v8760_v6  ;;  %v9167_v6 = vld [vmem:[#allocation7 + $0x970] sm:$0xf]  ;;  %v11764_v16 = vld [vmem:[#allocation7 + $0x834] sm:$0xf0]  ;;  %v9063_v30 = vld [vmem:[#allocation7 + $0x8a0] sm:$0xf] }
  0xb7   :  { %2892 = vmatpush.bf16.msrb.mxu1 %v8824_v9  ;;  %v8728_v9 = vor.u32 %v11694_v52, %v8727_v48  ;;  %v9151_v48 = vld [vmem:[#allocation7 + $0x950] sm:$0xf]  ;;  %v11812_v23 = vld [vmem:[#allocation7 + $0x9b4] sm:$0xf0]  ;;  %v9008_v24 = vor.u32 %v11764_v16, %v9007_v15 }
  0xb8   :  { %2905 = vmatpush.bf16.msrb.mxu2 %v8888_v10  ;;  %v11804_v10 = vld [vmem:[#allocation7 + $0x974] sm:$0xf0]  ;;  %v9215_v52 = vld [vmem:[#allocation7 + $0x9d0] sm:$0xf] }
  0xb9   :  { %2918 = vmatpush.bf16.msrb.mxu3 %v8952_v14  ;;  %v8856_v14 = vor.u32 %v11726_v59, %v8855_v58  ;;  %v9079_v58 = vld [vmem:[#allocation7 + $0x8c0] sm:$0xf]  ;;  %v262_v59 = vld [vmem:[#allocation2 + $0x20] sm:$0xff]  ;;  %v9423_v16 = vld [vmem:[#allocation7 + $0xb70] sm:$0xf] }
  0xba   :  { %2880 = vmatpush.bf16.msrb.mxu0 %v8752_v20  ;;  %v344_v20 = vld.sshfl [vmem:[#allocation1 + $0x38] sm:$0xff pattern:$0x73625140]  ;;  %345 = vst [vmem:[#allocation1] ss:$4 sm:$0xff] %v262_v59 }
  0xbb   :  { %2893 = vmatpush.bf16.msrb.mxu1 %v8816_v21  ;;  %v9104_v21 = vor.u32 %v11788_v5, %v9103_v4  ;;  %v13148_v38 = vpack.c.bf16 %v344_v20, %v344_v20  ;;  %v280_v4 = vld [vmem:[#allocation2 + $0xb0] sm:$0xff]  ;;  %v9216_v5 = vor.u32 %v11816_v53, %v9215_v52  ;;  %v9135_v20 = vld [vmem:[#allocation7 + $0x930] sm:$0xf]  ;;  %v11776_v53 = vld [vmem:[#allocation7 + $0x894] sm:$0xf0] }
  0xbc   :  { %2906 = vmatpush.bf16.msrb.mxu2 %v8880_v22  ;;  %v9168_v22 = vor.u32 %v11804_v10, %v9167_v6  ;;  %v9143_v6 = vld [vmem:[#allocation7 + $0x940] sm:$0xf]  ;;  %348 = vst [vmem:[#allocation1 + $0x3] ss:$4 sm:$0xff] %v280_v4  ;;  %v11852_v15 = vld [vmem:[#allocation7 + $0xaf4] sm:$0xf0] }
  0xbd   :  { %2919 = vmatpush.bf16.msrb.mxu3 %v8944_v26  ;;  %v9232_v26 = vor.u32 %v11820_v12, %v9231_v11  ;;  %v9207_v10 = vld [vmem:[#allocation7 + $0x9c0] sm:$0xf]  ;;  %v11814_v11 = vld [vmem:[#allocation7 + $0x9c4] sm:$0xf0] }
  0xbe   :  { %2881 = vmatpush.bf16.msrb.mxu0 %v8744_v33  ;;  %v13146_v33 = vpack.c.bf16 %v342_v19, %v342_v19  ;;  %v11780_v19 = vld [vmem:[#allocation7 + $0x8b4] sm:$0xf0]  ;;  %v8983_v59 = vld [vmem:[#allocation7 + $0x800] sm:$0xf] }
  0xbf   :  { %2894 = vmatpush.bf16.msrb.mxu1 %v8808_v34  ;;  %v9223_v34 = vld [vmem:[#allocation7 + $0x9e0] sm:$0xf] }
  0xc0   :  { %2907 = vmatpush.bf16.msrb.mxu2 %v8872_v37  ;;  %v11818_v37 = vld [vmem:[#allocation7 + $0x9e4] sm:$0xf0] }
  0xc1   :  { %2920 = vmatpush.bf16.msrb.mxu3 %v8936_v42  ;;  %v9096_v42 = vor.u32 %v11786_v28, %v9095_v25  ;;  %v9224_v47 = vor.u32 %v11818_v37, %v9223_v34  ;;  %v8999_v28 = vld [vmem:[#allocation7 + $0x820] sm:$0xf]  ;;  %v11778_v37 = vld [vmem:[#allocation7 + $0x8a4] sm:$0xf0] }
  0xc2   :  { %2882 = vmatpush.bf16.msrb.mxu0 %v8736_v51  ;;  %v11800_v51 = vld [vmem:[#allocation7 + $0x954] sm:$0xf0] }
  0xc3   :  { %2895 = vmatpush.bf16.msrb.mxu1 %v8800_v55  ;;  %v11766_v55 = vld [vmem:[#allocation7 + $0x844] sm:$0xf0]  ;;  %v9152_v63 = vor.u32 %v11800_v51, %v9151_v48  ;;  %v11760_v48 = vld [vmem:[#allocation7 + $0x814] sm:$0xf0]  ;;  %v9055_v51 = vld [vmem:[#allocation7 + $0x890] sm:$0xf] }
  0xc4   :  { %2908 = vmatpush.bf16.msrb.mxu2 %v8864_v56  ;;  %v9024_v56 = vor.u32 %v11768_v44, %v9023_v41  ;;  %v9016_v12 = vor.u32 %v11766_v55, %v9015_v54  ;;  %v11794_v41 = vld [vmem:[#allocation7 + $0x924] sm:$0xf0]  ;;  %v9000_v44 = vor.u32 %v11762_v29, %v8999_v28  ;;  %v9119_v54 = vld [vmem:[#allocation7 + $0x910] sm:$0xf]  ;;  %v11792_v55 = vld [vmem:[#allocation7 + $0x914] sm:$0xf0]  ;;  %v9056_v2 = vor.u32 %v11776_v53, %v9055_v51 }
  0xc5   :  { %2921 = vmatpush.bf16.msrb.mxu3 %v8928_v62  ;;  %v9088_v62 = vor.u32 %v11784_v46, %v9087_v45  ;;  %v9064_v45 = vor.u32 %v11778_v37, %v9063_v30  ;;  %v9120_v4 = vor.u32 %v11792_v55, %v9119_v54  ;;  %v355_v29 = vld.sshfl [vmem:[#allocation1 + $0x10] sm:$0xff pattern:$0x73625140]  ;;  %v354_v30 = vld.sshfl [vmem:[#allocation1 + $0x8] sm:$0xff pattern:$0x73625140] }
  0xc6   :  { %2883 = vmatpush.bf16.msrb.mxu0 %v8728_v9  ;;  %v11798_v9 = vld [vmem:[#allocation7 + $0x944] sm:$0xf0]  ;;  %v13158_v51 = vpack.c.bf16 %v354_v30, %v354_v30  ;;  %v9279_v53 = vld [vmem:[#allocation7 + $0xa50] sm:$0xf]  ;;  %v11832_v54 = vld [vmem:[#allocation7 + $0xa54] sm:$0xf0] }
  0xc7   :  { %2896 = vmatpush.bf16.msrb.mxu1 %v8792_v13  ;;  %v9080_v13 = vor.u32 %v11782_v1, %v9079_v58  ;;  %v11808_v58 = vld [vmem:[#allocation7 + $0x994] sm:$0xf0]  ;;  %v11774_v1 = vld [vmem:[#allocation7 + $0x884] sm:$0xf0]  ;;  %v9327_v30 = vld [vmem:[#allocation7 + $0xab0] sm:$0xf] }
  0xc8   :  { %2909 = vmatpush.bf16.msrb.mxu2 %v8856_v14  ;;  %v9144_v14 = vor.u32 %v11798_v9, %v9143_v6  ;;  %v11790_v6 = vld [vmem:[#allocation7 + $0x904] sm:$0xf0]  ;;  %v9175_v9 = vld [vmem:[#allocation7 + $0x980] sm:$0xf] }
  0xc9   :  { %2922 = vmatpush.bf16.msrb.mxu3 %v8920_v17  ;;  %2884 = vmatmul.bf16.vlgmr.msrb.gmra.mxu0 %v13142_v27  ;;  %v9071_v17 = vld [vmem:[#allocation7 + $0x8b0] sm:$0xf] }
  0xca   :  { %2928 = vmatpush.bf16.msra.mxu0 %v9040_v18  ;;  %2897 = vmatmul.bf16.vlgmr.msrb.gmra.mxu1 %v13146_v33  ;;  %v9208_v18 = vor.u32 %v11814_v11, %v9207_v10  ;;  %v9072_v25 = vor.u32 %v11780_v19, %v9071_v17  ;;  %v11806_v11 = vld [vmem:[#allocation7 + $0x984] sm:$0xf0]  ;;  %v9487_v19 = vld [vmem:[#allocation7 + $0xbf0] sm:$0xf] }
  0xcb   :  { %2941 = vmatpush.bf16.msra.mxu1 %v9104_v21  ;;  %2910 = vmatmul.bf16.vlgmr.msrb.gmra.mxu2 %v13144_v32  ;;  %v11796_v21 = vld [vmem:[#allocation7 + $0x934] sm:$0xf0] }
  0xcc   :  { %2954 = vmatpush.bf16.msra.mxu2 %v9168_v22  ;;  %2923 = vmatmul.bf16.vlgmr.msrb.gmra.mxu3 %v13148_v38  ;;  %v9199_v22 = vld [vmem:[#allocation7 + $0x9b0] sm:$0xf] }
  0xcd   :  { %2967 = vmatpush.bf16.msra.mxu3 %v9232_v26  ;;  %v9136_v26 = vor.u32 %v11796_v21, %v9135_v20  ;;  %v9200_v34 = vor.u32 %v11812_v23, %v9199_v22  ;;  %v11884_v20 = vld [vmem:[#allocation7 + $0xbf4] sm:$0xf0]  ;;  %v353_v23 = vld.sshfl [vmem:[#allocation1] sm:$0xff pattern:$0x73625140] }
  0xce   :  { %2929 = vmatpush.bf16.msra.mxu0 %v9032_v40  ;;  %v9127_v40 = vld [vmem:[#allocation7 + $0x920] sm:$0xf] }
  0xcf   :  { %2942 = vmatpush.bf16.msra.mxu1 %v9096_v42  ;;  %v9191_v42 = vld [vmem:[#allocation7 + $0x9a0] sm:$0xf]  ;;  %v9128_v46 = vor.u32 %v11794_v41, %v9127_v40  ;;  %v356_v41 = vld.sshfl [vmem:[#allocation1 + $0x18] sm:$0xff pattern:$0x73625140] }
  0xd0   :  { %2955 = vmatpush.bf16.msra.mxu2 %v9160_v43  ;;  %v11810_v43 = vld [vmem:[#allocation7 + $0x9a4] sm:$0xf0]  ;;  %v13160_v55 = vpack.c.bf16 %v356_v41, %v356_v41  ;;  %v11860_v41 = vld [vmem:[#allocation7 + $0xb34] sm:$0xf0] }
  0xd1   :  { %2968 = vmatpush.bf16.msra.mxu3 %v9224_v47  ;;  %v8991_v47 = vld [vmem:[#allocation7 + $0x810] sm:$0xf]  ;;  %v9192_v52 = vor.u32 %v11810_v43, %v9191_v42  ;;  %v11850_v42 = vld [vmem:[#allocation7 + $0xae4] sm:$0xf0]  ;;  %v9488_v43 = vor.u32 %v11884_v20, %v9487_v19  ;;  %v9399_v20 = vld [vmem:[#allocation7 + $0xb40] sm:$0xf] }
  0xd2   :  { %2930 = vmatpush.bf16.msra.mxu0 %v9024_v56  ;;  %v9183_v56 = vld [vmem:[#allocation7 + $0x990] sm:$0xf]  ;;  %v8992_v61 = vor.u32 %v11760_v48, %v8991_v47  ;;  %v9479_v47 = vld [vmem:[#allocation7 + $0xbe0] sm:$0xf]  ;;  %v13156_v48 = vpack.c.bf16 %v355_v29, %v355_v29  ;;  %v11846_v19 = vld [vmem:[#allocation7 + $0xac4] sm:$0xf0] }
  0xd3   :  { %2943 = vmatpush.bf16.msra.mxu1 %v9088_v62  ;;  %v11758_v62 = vld [vmem:[#allocation7 + $0x804] sm:$0xf0]  ;;  %v9184_v10 = vor.u32 %v11808_v58, %v9183_v56  ;;  %v9343_v58 = vld [vmem:[#allocation7 + $0xad0] sm:$0xf]  ;;  %v11828_v29 = vld [vmem:[#allocation7 + $0xa34] sm:$0xf0] }
  0xd4   :  { %2956 = vmatpush.bf16.msra.mxu2 %v9152_v63  ;;  %v9047_v63 = vld [vmem:[#allocation7 + $0x880] sm:$0xf]  ;;  %v8984_v17 = vor.u32 %v11758_v62, %v8983_v59 }
  0xd5   :  { %2969 = vmatpush.bf16.msra.mxu3 %v9216_v5  ;;  %v9111_v5 = vld [vmem:[#allocation7 + $0x900] sm:$0xf]  ;;  %v9048_v21 = vor.u32 %v11774_v1, %v9047_v63 }
  0xd6   :  { %2931 = vmatpush.bf16.msra.mxu0 %v9016_v12  ;;  %v9295_v12 = vld [vmem:[#allocation7 + $0xa70] sm:$0xf]  ;;  %v9112_v22 = vor.u32 %v11790_v6, %v9111_v5  ;;  %v263_v59 = vld [vmem:[#allocation2 + $0x28] sm:$0xff] }
  0xd7   :  { %2944 = vmatpush.bf16.msra.mxu1 %v9080_v13  ;;  %v11836_v13 = vld [vmem:[#allocation7 + $0xa74] sm:$0xf0]  ;;  %v275_v62 = vld [vmem:[#allocation2 + $0x88] sm:$0xff]  ;;  %349 = vst [vmem:[#allocation1 + $0x20] ss:$4 sm:$0xff] %v263_v59 }
  0xd8   :  { %2957 = vmatpush.bf16.msra.mxu2 %v9144_v14  ;;  %v9359_v14 = vld [vmem:[#allocation7 + $0xaf0] sm:$0xf]  ;;  %v9296_v28 = vor.u32 %v11836_v13, %v9295_v12  ;;  %351 = vst [vmem:[#allocation1 + $0x22] ss:$4 sm:$0xff] %v275_v62  ;;  %v9280_v12 = vor.u32 %v11832_v54, %v9279_v53  ;;  %v11826_v53 = vld [vmem:[#allocation7 + $0xa24] sm:$0xf0] }
  0xd9   :  { %2970 = vmatpush.bf16.msra.mxu3 %v9208_v18  ;;  %v11868_v18 = vld [vmem:[#allocation7 + $0xb74] sm:$0xf0]  ;;  %v9360_v37 = vor.u32 %v11852_v15, %v9359_v14  ;;  %v9407_v6 = vld [vmem:[#allocation7 + $0xb50] sm:$0xf]  ;;  %v9271_v15 = vld [vmem:[#allocation7 + $0xa40] sm:$0xf] }
  0xda   :  { %2932 = vmatpush.bf16.msra.mxu0 %v9008_v24  ;;  %v9287_v24 = vld [vmem:[#allocation7 + $0xa60] sm:$0xf]  ;;  %v9424_v40 = vor.u32 %v11868_v18, %v9423_v16  ;;  %v11830_v16 = vld [vmem:[#allocation7 + $0xa44] sm:$0xf0] }
  0xdb   :  { %2945 = vmatpush.bf16.msra.mxu1 %v9072_v25  ;;  %v11834_v25 = vld [vmem:[#allocation7 + $0xa64] sm:$0xf0]  ;;  %v9319_v54 = vld [vmem:[#allocation7 + $0xaa0] sm:$0xf] }
  0xdc   :  { %2958 = vmatpush.bf16.msra.mxu2 %v9136_v26  ;;  %v9176_v26 = vor.u32 %v11806_v11, %v9175_v9  ;;  %v9288_v56 = vor.u32 %v11834_v25, %v9287_v24  ;;  %v11864_v9 = vld [vmem:[#allocation7 + $0xb54] sm:$0xf0]  ;;  %v9272_v24 = vor.u32 %v11830_v16, %v9271_v15  ;;  %v9383_v59 = vld [vmem:[#allocation7 + $0xb20] sm:$0xf] }
  0xdd   :  { %2971 = vmatpush.bf16.msra.mxu3 %v9200_v34  ;;  %v9351_v34 = vld [vmem:[#allocation7 + $0xae0] sm:$0xf]  ;;  %v11880_v11 = vld [vmem:[#allocation7 + $0xbd4] sm:$0xf0]  ;;  %v9408_v14 = vor.u32 %v11864_v9, %v9407_v6  ;;  %v9311_v9 = vld [vmem:[#allocation7 + $0xa90] sm:$0xf] }
  0xde   :  { %2933 = vmatpush.bf16.msra.mxu0 %v9000_v44  ;;  %v13154_v44 = vpack.c.bf16 %v353_v23, %v353_v23  ;;  %v9352_v63 = vor.u32 %v11850_v42, %v9351_v34  ;;  %v11878_v23 = vld [vmem:[#allocation7 + $0xbc4] sm:$0xf0]  ;;  %v9455_v42 = vld [vmem:[#allocation7 + $0xbb0] sm:$0xf]  ;;  %v9447_v62 = vld [vmem:[#allocation7 + $0xba0] sm:$0xf] }
  0xdf   :  { %2946 = vmatpush.bf16.msra.mxu1 %v9064_v45  ;;  %v9415_v45 = vld [vmem:[#allocation7 + $0xb60] sm:$0xf]  ;;  %v11872_v16 = vld [vmem:[#allocation7 + $0xb94] sm:$0xf0] }
  0xe0   :  { %2959 = vmatpush.bf16.msra.mxu2 %v9128_v46  ;;  %v11866_v46 = vld [vmem:[#allocation7 + $0xb64] sm:$0xf0]  ;;  %v794_v15 = vld [vmem:[#allocation8] sm:$0x3] }
  0xe1   :  { %2972 = vmatpush.bf16.msra.mxu3 %v9192_v52  ;;  %v11882_v52 = vld [vmem:[#allocation7 + $0xbe4] sm:$0xf0]  ;;  %v9416_v1 = vor.u32 %v11866_v46, %v9415_v45 }
  0xe2   :  { %2934 = vmatpush.bf16.msra.mxu0 %v8992_v61  ;;  %v269_v61 = vld [vmem:[#allocation2 + $0x58] sm:$0xff]  ;;  %v9480_v5 = vor.u32 %v11882_v52, %v9479_v47  ;;  %v9255_v52 = vld [vmem:[#allocation7 + $0xa20] sm:$0xf] }
  0xe3   :  { %2947 = vmatpush.bf16.msra.mxu1 %v9056_v2  ;;  %v11848_v2 = vld [vmem:[#allocation7 + $0xad4] sm:$0xf0]  ;;  %350 = vst [vmem:[#allocation1 + $0x21] ss:$4 sm:$0xff] %v269_v61  ;;  %v11858_v61 = vld [vmem:[#allocation7 + $0xb24] sm:$0xf0] }
  0xe4   :  { %2960 = vmatpush.bf16.msra.mxu2 %v9120_v4  ;;  %v281_v4 = vld [vmem:[#allocation2 + $0xb8] sm:$0xff]  ;;  %v9344_v13 = vor.u32 %v11848_v2, %v9343_v58  ;;  %v11842_v58 = vld [vmem:[#allocation7 + $0xaa4] sm:$0xf0]  ;;  %v9384_v6 = vor.u32 %v11858_v61, %v9383_v59  ;;  %v11513_v59 = vld [vmem:[#allocation7 + $0x64] sm:$0xf] }
  0xe5   :  { %2973 = vmatpush.bf16.msra.mxu3 %v9184_v10  ;;  %v9471_v10 = vld [vmem:[#allocation7 + $0xbd0] sm:$0xf]  ;;  %352 = vst [vmem:[#allocation1 + $0x23] ss:$4 sm:$0xff] %v281_v4  ;;  %v11824_v4 = vld [vmem:[#allocation7 + $0xa14] sm:$0xf0] }
  0xe6   :  { %2935 = vmatpush.bf16.msra.mxu0 %v8984_v17  ;;  %v9335_v17 = vld [vmem:[#allocation7 + $0xac0] sm:$0xf]  ;;  %v9472_v18 = vor.u32 %v11880_v11, %v9471_v10  ;;  %v9247_v2 = vld [vmem:[#allocation7 + $0xa10] sm:$0xf]  ;;  %v11840_v10 = vld [vmem:[#allocation7 + $0xa94] sm:$0xf0] }
  0xe7   :  { %2948 = vmatpush.bf16.msra.mxu1 %v9048_v21  ;;  %v11862_v21 = vld [vmem:[#allocation7 + $0xb44] sm:$0xf0]  ;;  %v9336_v25 = vor.u32 %v11846_v19, %v9335_v17  ;;  %v9375_v11 = vld [vmem:[#allocation7 + $0xb10] sm:$0xf]  ;;  %v9239_v17 = vld [vmem:[#allocation7 + $0xa00] sm:$0xf]  ;;  %v9248_v19 = vor.u32 %v11824_v4, %v9247_v2 }
  0xe8   :  { %2961 = vmatpush.bf16.msra.mxu2 %v9112_v22  ;;  %v9463_v22 = vld [vmem:[#allocation7 + $0xbc0] sm:$0xf]  ;;  %v8009_v61 = vld [vmem:[#allocation7 + $0x68] sm:$0xf0] }
  0xe9   :  { %2974 = vmatpush.bf16.msra.mxu3 %v9176_v26  ;;  %2936 = vmatmul.bf16.vlgmr.msra.gmra.mxu0 %v13154_v44  ;;  %v9400_v26 = vor.u32 %v11862_v21, %v9399_v20  ;;  %v9464_v34 = vor.u32 %v11878_v23, %v9463_v22  ;;  %v9303_v20 = vld [vmem:[#allocation7 + $0xa80] sm:$0xf]  ;;  %v11838_v21 = vld [vmem:[#allocation7 + $0xa84] sm:$0xf0]  ;;  %v9312_v23 = vor.u32 %v11840_v10, %v9311_v9  ;;  %v11529_v10 = vld [vmem:[#allocation7 + $0xe4] sm:$0xf] }
  0xea   :  { %2980 = vmatpush.bf16.msrb.mxu0 %v9296_v28  ;;  %2949 = vmatmul.bf16.vlgmr.msra.gmra.mxu1 %v13158_v51  ;;  %v9263_v28 = vld [vmem:[#allocation7 + $0xa30] sm:$0xf]  ;;  %v9367_v22 = vld [vmem:[#allocation7 + $0xb00] sm:$0xf] }
  0xeb   :  { %2993 = vmatpush.bf16.msrb.mxu1 %v9360_v37  ;;  %2962 = vmatmul.bf16.vlgmr.msra.gmra.mxu2 %v13156_v48  ;;  %v11844_v37 = vld [vmem:[#allocation7 + $0xab4] sm:$0xf0]  ;;  %v9264_v45 = vor.u32 %v11828_v29, %v9263_v28  ;;  %v796_v28 = vperm.slane %v794_v15, 0  ;;  %v11545_v15 = vld [vmem:[#allocation7 + $0x164] sm:$0xf] }
  0xec   :  { %3006 = vmatpush.bf16.msrb.mxu2 %v9424_v40  ;;  %2975 = vmatmul.bf16.vlgmr.msra.gmra.mxu3 %v13160_v55  ;;  %v9391_v40 = vld [vmem:[#allocation7 + $0xb30] sm:$0xf]  ;;  %v9328_v46 = vor.u32 %v11844_v37, %v9327_v30  ;;  %v11870_v30 = vld [vmem:[#allocation7 + $0xb84] sm:$0xf0]  ;;  %v8017_v37 = vld [vmem:[#allocation7 + $0x78] sm:$0xf0] }
  0xed   :  { %3019 = vmatpush.bf16.msrb.mxu3 %v9488_v43  ;;  %v11876_v43 = vld [vmem:[#allocation7 + $0xbb4] sm:$0xf0]  ;;  %v9392_v47 = vor.u32 %v11860_v41, %v9391_v40  ;;  %v11531_v40 = vld [vmem:[#allocation7 + $0xf4] sm:$0xf]  ;;  %v8081_v41 = vld [vmem:[#allocation7 + $0xf8] sm:$0xf0] }
  0xee   :  { %2981 = vmatpush.bf16.msrb.mxu0 %v9288_v56  ;;  %v9456_v56 = vor.u32 %v11876_v43, %v9455_v42  ;;  %v11547_v42 = vld [vmem:[#allocation7 + $0x174] sm:$0xf]  ;;  %v359_v2 = vld.sshfl [vmem:[#allocation1 + $0x30] sm:$0xff pattern:$0x73625140] }
  0xef   :  { %2994 = vmatpush.bf16.msrb.mxu1 %v9352_v63  ;;  %v11874_v63 = vld [vmem:[#allocation7 + $0xba4] sm:$0xf0]  ;;  %v358_v4 = vld.sshfl [vmem:[#allocation1 + $0x28] sm:$0xff pattern:$0x73625140] }
  0xf0   :  { %3007 = vmatpush.bf16.msrb.mxu2 %v9416_v1  ;;  %v9256_v1 = vor.u32 %v11826_v53, %v9255_v52  ;;  %v9304_v53 = vor.u32 %v11838_v21, %v9303_v20  ;;  %v360_v9 = vld.sshfl [vmem:[#allocation1 + $0x38] sm:$0xff pattern:$0x73625140] }
  0xf1   :  { %3020 = vmatpush.bf16.msrb.mxu3 %v9480_v5  ;;  %v9320_v5 = vor.u32 %v11842_v58, %v9319_v54  ;;  %v8201_v20 = vld [vmem:[#allocation7 + $0x1e8] sm:$0xf0] }
  0xf2   :  { %2982 = vmatpush.bf16.msrb.mxu0 %v9280_v12  ;;  %v9448_v12 = vor.u32 %v11874_v63, %v9447_v62 }
  0xf3   :  { %2995 = vmatpush.bf16.msrb.mxu1 %v9344_v13  ;;  %v11856_v13 = vld [vmem:[#allocation7 + $0xb14] sm:$0xf0] }
  0xf4   :  { %3008 = vmatpush.bf16.msrb.mxu2 %v9408_v14  ;;  %v9439_v14 = vld [vmem:[#allocation7 + $0xb90] sm:$0xf]  ;;  %v2729_v52 = vpop.f32.mrf.mxu0 }
  0xf5   :  { %3021 = vmatpush.bf16.msrb.mxu3 %v9472_v18  ;;  %v11822_v18 = vld [vmem:[#allocation7 + $0xa04] sm:$0xf0]  ;;  %v9440_v29 = vor.u32 %v11872_v16, %v9439_v14  ;;  %v2730_v58 = vadd.f32 %v2729_v52, %v796_v28  ;;  %v2742_v62 = vpop.f32.mrf.mxu1  ;;  %v8073_v14 = vld [vmem:[#allocation7 + $0xe8] sm:$0xf0] }
  0xf6   :  { %2983 = vmatpush.bf16.msrb.mxu0 %v9272_v24  ;;  %v9376_v24 = vor.u32 %v11856_v13, %v9375_v11  ;;  %v9240_v43 = vor.u32 %v11822_v18, %v9239_v17  ;;  %v8137_v16 = vld [vmem:[#allocation7 + $0x168] sm:$0xf0]  ;;  %v13168_v17 = vpack.c.bf16 %v359_v2, %v359_v2  ;;  %v13170_v18 = vpack.c.bf16 %v358_v4, %v358_v4  ;;  %v11557_v4 = vld [vmem:[#allocation7 + $0x1c4] sm:$0xf] }
  0xf7   :  { %2996 = vmatpush.bf16.msrb.mxu1 %v9336_v25  ;;  %v11854_v25 = vld [vmem:[#allocation7 + $0xb04] sm:$0xf0]  ;;  %v2743_v11 = vadd.f32 %v2742_v62, %v2730_v58  ;;  %v8140_v28 = vor.u32 %v11545_v15, %v8137_v16  ;;  %v11509_v58 = vld [vmem:[#allocation7 + $0x44] sm:$0xf]  ;;  %v8121_v2 = vld [vmem:[#allocation7 + $0x148] sm:$0xf0] }
  0xf8   :  { %3009 = vmatpush.bf16.msrb.mxu2 %v9400_v26  ;;  %v9431_v26 = vld [vmem:[#allocation7 + $0xb80] sm:$0xf]  ;;  %v9368_v54 = vor.u32 %v11854_v25, %v9367_v22  ;;  %v2755_v21 = vpop.f32.mrf.mxu2  ;;  %v13172_v22 = vpack.c.bf16 %v360_v9, %v360_v9  ;;  %v7985_v15 = vld [vmem:[#allocation7 + $0x38] sm:$0xf0]  ;;  %v11523_v16 = vld [vmem:[#allocation7 + $0xb4] sm:$0xf] }
  0xf9   :  { %3022 = vmatpush.bf16.msrb.mxu3 %v9464_v34  ;;  %v11515_v34 = vld [vmem:[#allocation7 + $0x74] sm:$0xf]  ;;  %v9432_v63 = vor.u32 %v11870_v30, %v9431_v26  ;;  %v2768_v25 = vpop.f32.mrf.mxu3  ;;  %v8076_v26 = vor.u32 %v11529_v10, %v8073_v14  ;;  %v8001_v30 = vld [vmem:[#allocation7 + $0x58] sm:$0xf0] }
  0xfa   :  { %2984 = vmatpush.bf16.msrb.mxu0 %v9264_v45  ;;  %v8145_v45 = vld [vmem:[#allocation7 + $0x178] sm:$0xf0]  ;;  %v11507_v14 = vld [vmem:[#allocation7 + $0x34] sm:$0xf] }
  0xfb   :  { %2997 = vmatpush.bf16.msrb.mxu1 %v9328_v46  ;;  %v11563_v46 = vld [vmem:[#allocation7 + $0x1f4] sm:$0xf] }
  0xfc   :  { %3010 = vmatpush.bf16.msrb.mxu2 %v9392_v47  ;;  %v8209_v47 = vld [vmem:[#allocation7 + $0x1f8] sm:$0xf0] }
  0xfd   :  { %3023 = vmatpush.bf16.msrb.mxu3 %v9456_v56  ;;  %v357_v56 = vld.sshfl [vmem:[#allocation1 + $0x20] sm:$0xff pattern:$0x73625140]  ;;  %v2744_v52 = vpop.f32.mrf.mxu1 }
  0xfe   :  { %2985 = vmatpush.bf16.msrb.mxu0 %v9256_v1  ;;  %v8020_v1 = vor.u32 %v11515_v34, %v8017_v37  ;;  %v13166_v13 = vpack.c.bf16 %v357_v56, %v357_v56  ;;  %v11527_v34 = vld [vmem:[#allocation7 + $0xd4] sm:$0xf]  ;;  %v8105_v52 = vld [vmem:[#allocation7 + $0x128] sm:$0xf0] }
  0xff   :  { %2998 = vmatpush.bf16.msrb.mxu1 %v9320_v5  ;;  %v8084_v5 = vor.u32 %v11531_v40, %v8081_v41  ;;  %v8065_v40 = vld [vmem:[#allocation7 + $0xd8] sm:$0xf0]  ;;  %v11543_v41 = vld [vmem:[#allocation7 + $0x154] sm:$0xf] }
 0x100   :  { %3011 = vmatpush.bf16.msrb.mxu2 %v9384_v6  ;;  %v8148_v6 = vor.u32 %v11547_v42, %v8145_v45  ;;  %v8129_v42 = vld [vmem:[#allocation7 + $0x158] sm:$0xf0]  ;;  %v2731_v45 = vpop.f32.mrf.mxu0 }
 0x101   :  { %3024 = vmatpush.bf16.msrb.mxu3 %v9448_v12  ;;  %v8212_v12 = vor.u32 %v11563_v46, %v8209_v47  ;;  %v11559_v46 = vld [vmem:[#allocation7 + $0x1d4] sm:$0xf]  ;;  %v8193_v47 = vld [vmem:[#allocation7 + $0x1d8] sm:$0xf0]  ;;  %v8132_v56 = vor.u32 %v11543_v41, %v8129_v42  ;;  %v2770_v10 = vpop.f32.mrf.mxu3  ;;  %v11521_v41 = vld [vmem:[#allocation7 + $0xa4] sm:$0xf] }
 0x102   :  { %2986 = vmatpush.bf16.msrb.mxu0 %v9248_v19  ;;  %v11561_v19 = vld [vmem:[#allocation7 + $0x1e4] sm:$0xf]  ;;  %v8196_v62 = vor.u32 %v11559_v46, %v8193_v47  ;;  %v8041_v46 = vld [vmem:[#allocation7 + $0xa8] sm:$0xf0] }
 0x103   :  { %2999 = vmatpush.bf16.msrb.mxu1 %v9312_v23  ;;  %v8012_v23 = vor.u32 %v11513_v59, %v8009_v61  ;;  %v8204_v37 = vor.u32 %v11561_v19, %v8201_v20  ;;  %v7993_v59 = vld [vmem:[#allocation7 + $0x48] sm:$0xf0]  ;;  %v11525_v61 = vld [vmem:[#allocation7 + $0xc4] sm:$0xf]  ;;  %v8049_v20 = vld [vmem:[#allocation7 + $0xb8] sm:$0xf0] }
 0x104   :  { %3012 = vmatpush.bf16.msrb.mxu2 %v9376_v24  ;;  %v2756_v24 = vadd.f32 %v2755_v21, %v2743_v11  ;;  %v7996_v9 = vor.u32 %v11509_v58, %v7993_v59  ;;  %v11539_v21 = vld [vmem:[#allocation7 + $0x134] sm:$0xf]  ;;  %v11537_v47 = vld [vmem:[#allocation7 + $0x124] sm:$0xf]  ;;  %v8044_v59 = vor.u32 %v11521_v41, %v8041_v46  ;;  %v8273_v41 = vld [vmem:[#allocation7 + $0x278] sm:$0xf0] }
 0x105   :  { %3025 = vmatpush.bf16.msrb.mxu3 %v9440_v29  ;;  %v11511_v29 = vld [vmem:[#allocation7 + $0x54] sm:$0xf]  ;;  %v8337_v46 = vld [vmem:[#allocation7 + $0x2f8] sm:$0xf0] }
 0x106   :  { %2987 = vmatpush.bf16.msrb.mxu0 %v9240_v43  ;;  %v2769_v43 = vadd.f32 %v2768_v25, %v2756_v24  ;;  %v11555_v24 = vld [vmem:[#allocation7 + $0x1b4] sm:$0xf]  ;;  %v8177_v25 = vld [vmem:[#allocation7 + $0x1b8] sm:$0xf0] }
 0x107   :  { %3000 = vmatpush.bf16.msrb.mxu1 %v9304_v53  ;;  %v8004_v53 = vor.u32 %v11511_v29, %v8001_v30  ;;  %v8052_v29 = vor.u32 %v11523_v16, %v8049_v20  ;;  %v2794_v42 = vpop.f32.mrf.mxu1  ;;  %v8180_v45 = vor.u32 %v11555_v24, %v8177_v25  ;;  %v11501_v16 = vld [vmem:[#allocation7 + $0x4] sm:$0xf]  ;;  %v8025_v25 = vld [vmem:[#allocation7 + $0x88] sm:$0xf0] }
 0x108   :  { %3013 = vmatpush.bf16.msrb.mxu2 %v9368_v54  ;;  %v8068_v54 = vor.u32 %v11527_v34, %v8065_v40  ;;  %v7977_v40 = vld [vmem:[#allocation7 + $0x28] sm:$0xf0]  ;;  %v11517_v24 = vld [vmem:[#allocation7 + $0x84] sm:$0xf] }
 0x109   :  { %3026 = vmatpush.bf16.msrb.mxu3 %v9432_v63  ;;  %2988 = vmatmul.bf16.vlgmr.msrb.gmra.mxu0 %v13166_v13  ;;  %v8057_v63 = vld [vmem:[#allocation7 + $0xc8] sm:$0xf0] }
 0x10a   :  { %3032 = vmatpush.bf16.msra.mxu0 %v8020_v1  ;;  %3001 = vmatmul.bf16.vlgmr.msrb.gmra.mxu1 %v13170_v18  ;;  %v11541_v1 = vld [vmem:[#allocation7 + $0x144] sm:$0xf]  ;;  %v8060_v11 = vor.u32 %v11525_v61, %v8057_v63  ;;  %v8108_v61 = vor.u32 %v11537_v47, %v8105_v52  ;;  %v7969_v63 = vld [vmem:[#allocation7 + $0x18] sm:$0xf0]  ;;  %v11611_v47 = vld [vmem:[#allocation7 + $0x374] sm:$0xf] }
 0x10b   :  { %3045 = vmatpush.bf16.msra.mxu1 %v8084_v5  ;;  %3014 = vmatmul.bf16.vlgmr.msrb.gmra.mxu2 %v13168_v17  ;;  %v8185_v5 = vld [vmem:[#allocation7 + $0x1c8] sm:$0xf0]  ;;  %v8401_v52 = vld [vmem:[#allocation7 + $0x378] sm:$0xf0] }
 0x10c   :  { %3058 = vmatpush.bf16.msra.mxu2 %v8148_v6  ;;  %3027 = vmatmul.bf16.vlgmr.msrb.gmra.mxu3 %v13172_v22  ;;  %v2757_v6 = vpop.f32.mrf.mxu2  ;;  %v8188_v19 = vor.u32 %v11557_v4, %v8185_v5  ;;  %v8033_v5 = vld [vmem:[#allocation7 + $0x98] sm:$0xf0] }
 0x10d   :  { %3071 = vmatpush.bf16.msra.mxu3 %v8212_v12  ;;  %v8124_v12 = vor.u32 %v11541_v1, %v8121_v2  ;;  %v11519_v1 = vld [vmem:[#allocation7 + $0x94] sm:$0xf] }
 0x10e   :  { %3033 = vmatpush.bf16.msra.mxu0 %v8012_v23  ;;  %v8113_v23 = vld [vmem:[#allocation7 + $0x138] sm:$0xf0]  ;;  %v11535_v6 = vld [vmem:[#allocation7 + $0x114] sm:$0xf] }
 0x10f   :  { %3046 = vmatpush.bf16.msra.mxu1 %v8076_v26  ;;  %v7988_v26 = vor.u32 %v11507_v14, %v7985_v15  ;;  %v8116_v30 = vor.u32 %v11539_v21, %v8113_v23  ;;  %v2820_v10 = vpop.f32.mrf.mxu3  ;;  %v8036_v21 = vor.u32 %v11519_v1, %v8033_v5  ;;  %v8404_v1 = vor.u32 %v11611_v47, %v8401_v52  ;;  %v11593_v5 = vld [vmem:[#allocation7 + $0x2e4] sm:$0xf] }
 0x110   :  { %3059 = vmatpush.bf16.msra.mxu2 %v8140_v28  ;;  %v2781_v28 = vpop.f32.mrf.mxu0  ;;  %v11605_v52 = vld [vmem:[#allocation7 + $0x344] sm:$0xf] }
 0x111   :  { %3072 = vmatpush.bf16.msra.mxu3 %v8204_v37  ;;  %v2782_v34 = vadd.f32 %v2781_v28, %v2769_v43  ;;  %v11505_v37 = vld [vmem:[#allocation7 + $0x24] sm:$0xf]  ;;  %v11503_v43 = vld [vmem:[#allocation7 + $0x14] sm:$0xf]  ;;  %v2796_v28 = vpop.f32.mrf.mxu1 }
 0x112   :  { %3034 = vmatpush.bf16.msra.mxu0 %v8004_v53  ;;  %v11553_v53 = vld [vmem:[#allocation7 + $0x1a4] sm:$0xf]  ;;  %v7980_v58 = vor.u32 %v11505_v37, %v7977_v40  ;;  %v7972_v14 = vor.u32 %v11503_v43, %v7969_v63  ;;  %v8153_v37 = vld [vmem:[#allocation7 + $0x188] sm:$0xf0]  ;;  %v11579_v40 = vld [vmem:[#allocation7 + $0x274] sm:$0xf] }
 0x113   :  { %3047 = vmatpush.bf16.msra.mxu1 %v8068_v54  ;;  %v8169_v54 = vld [vmem:[#allocation7 + $0x1a8] sm:$0xf0]  ;;  %v11607_v28 = vld [vmem:[#allocation7 + $0x354] sm:$0xf] }
 0x114   :  { %3060 = vmatpush.bf16.msra.mxu2 %v8132_v56  ;;  %v2795_v56 = vadd.f32 %v2794_v42, %v2782_v34  ;;  %v8172_v2 = vor.u32 %v11553_v53, %v8169_v54  ;;  %v11549_v34 = vld [vmem:[#allocation7 + $0x184] sm:$0xf]  ;;  %v11595_v42 = vld [vmem:[#allocation7 + $0x2f4] sm:$0xf]  ;;  %v8028_v53 = vor.u32 %v11517_v24, %v8025_v25 }
 0x115   :  { %3073 = vmatpush.bf16.msra.mxu3 %v8196_v62  ;;  %v2807_v62 = vpop.f32.mrf.mxu2  ;;  %v8340_v63 = vor.u32 %v11595_v42, %v8337_v46  ;;  %v11591_v24 = vld [vmem:[#allocation7 + $0x2d4] sm:$0xf]  ;;  %v11573_v42 = vld [vmem:[#allocation7 + $0x244] sm:$0xf] }
 0x116   :  { %3035 = vmatpush.bf16.msra.mxu0 %v7996_v9  ;;  %v2808_v4 = vadd.f32 %v2807_v62, %v2795_v56  ;;  %v8097_v9 = vld [vmem:[#allocation7 + $0x118] sm:$0xf0]  ;;  %v11627_v56 = vld [vmem:[#allocation7 + $0x3f4] sm:$0xf]  ;;  %v8276_v62 = vor.u32 %v11579_v40, %v8273_v41  ;;  %v11589_v46 = vld [vmem:[#allocation7 + $0x2c4] sm:$0xf] }
 0x117   :  { %3048 = vmatpush.bf16.msra.mxu1 %v8060_v11  ;;  %v11551_v11 = vld [vmem:[#allocation7 + $0x194] sm:$0xf]  ;;  %v8100_v23 = vor.u32 %v11535_v6, %v8097_v9  ;;  %v2822_v43 = vpop.f32.mrf.mxu3  ;;  %v8329_v9 = vld [vmem:[#allocation7 + $0x2e8] sm:$0xf0] }
 0x118   :  { %3061 = vmatpush.bf16.msra.mxu2 %v8124_v12  ;;  %v8161_v12 = vld [vmem:[#allocation7 + $0x198] sm:$0xf0]  ;;  %v13178_v15 = vadd.f32 %v2820_v10, %v2808_v4  ;;  %v2783_v20 = vpop.f32.mrf.mxu0  ;;  %v8265_v4 = vld [vmem:[#allocation7 + $0x268] sm:$0xf0]  ;;  %v11609_v10 = vld [vmem:[#allocation7 + $0x364] sm:$0xf] }
 0x119   :  { %3074 = vmatpush.bf16.msra.mxu3 %v8188_v19  ;;  %v7961_v19 = vld [vmem:[#allocation7 + $0x8] sm:$0xf0]  ;;  %v8241_v43 = vld [vmem:[#allocation7 + $0x238] sm:$0xf0] }
 0x11a   :  { %3036 = vmatpush.bf16.msra.mxu0 %v7988_v26  ;;  %v11533_v26 = vld [vmem:[#allocation7 + $0x104] sm:$0xf] }
 0x11b   :  { %3049 = vmatpush.bf16.msra.mxu1 %v8052_v29  ;;  %v8164_v29 = vor.u32 %v11551_v11, %v8161_v12  ;;  %v8393_v11 = vld [vmem:[#allocation7 + $0x368] sm:$0xf0]  ;;  %v11625_v12 = vld [vmem:[#allocation7 + $0x3e4] sm:$0xf] }
 0x11c   :  { %3062 = vmatpush.bf16.msra.mxu2 %v8116_v30  ;;  %v8089_v30 = vld [vmem:[#allocation7 + $0x108] sm:$0xf0]  ;;  %v8396_v20 = vor.u32 %v11609_v10, %v8393_v11  ;;  %v8433_v10 = vld [vmem:[#allocation7 + $0x3b8] sm:$0xf0] }
 0x11d   :  { %3075 = vmatpush.bf16.msra.mxu3 %v8180_v45  ;;  %v7964_v45 = vor.u32 %v11501_v16, %v7961_v19  ;;  %v8092_v54 = vor.u32 %v11533_v26, %v8089_v30  ;;  %v8332_v19 = vor.u32 %v11593_v5, %v8329_v9  ;;  %v8321_v26 = vld [vmem:[#allocation7 + $0x2d8] sm:$0xf0]  ;;  %v11623_v30 = vld [vmem:[#allocation7 + $0x3d4] sm:$0xf] }
 0x11e   :  { %3037 = vmatpush.bf16.msra.mxu0 %v7980_v58  ;;  %v8465_v58 = vld [vmem:[#allocation7 + $0x3f8] sm:$0xf0]  ;;  %v8324_v40 = vor.u32 %v11591_v24, %v8321_v26  ;;  %v11603_v5 = vld [vmem:[#allocation7 + $0x334] sm:$0xf]  ;;  %v11601_v24 = vld [vmem:[#allocation7 + $0x324] sm:$0xf] }
 0x11f   :  { %3050 = vmatpush.bf16.msra.mxu1 %v8044_v59  ;;  %v2809_v59 = vpop.f32.mrf.mxu2  ;;  %v8468_v6 = vor.u32 %v11627_v56, %v8465_v58  ;;  %v8441_v56 = vld [vmem:[#allocation7 + $0x3c8] sm:$0xf0]  ;;  %v11619_v9 = vld [vmem:[#allocation7 + $0x3b4] sm:$0xf] }
 0x120   :  { %3063 = vmatpush.bf16.msra.mxu2 %v8108_v61  ;;  %v8156_v61 = vor.u32 %v11549_v34, %v8153_v37  ;;  %v8449_v34 = vld [vmem:[#allocation7 + $0x3d8] sm:$0xf0] }
 0x121   :  { %3076 = vmatpush.bf16.msra.mxu3 %v8172_v2  ;;  %v11577_v2 = vld [vmem:[#allocation7 + $0x264] sm:$0xf]  ;;  %v8452_v47 = vor.u32 %v11623_v30, %v8449_v34  ;;  %v8425_v30 = vld [vmem:[#allocation7 + $0x3a8] sm:$0xf0] }
 0x122   :  { %3038 = vmatpush.bf16.msra.mxu0 %v7972_v14  ;;  %v8457_v14 = vld [vmem:[#allocation7 + $0x3e8] sm:$0xf0]  ;;  %v8268_v16 = vor.u32 %v11577_v2, %v8265_v4  ;;  %v8305_v4 = vld [vmem:[#allocation7 + $0x2b8] sm:$0xf0] }
 0x123   :  { %3051 = vmatpush.bf16.msra.mxu1 %v8036_v21  ;;  %v11575_v21 = vld [vmem:[#allocation7 + $0x254] sm:$0xf]  ;;  %v8460_v25 = vor.u32 %v11625_v12, %v8457_v14  ;;  %v11569_v14 = vld [vmem:[#allocation7 + $0x224] sm:$0xf] }
 0x124   :  { %3064 = vmatpush.bf16.msra.mxu2 %v8100_v23  ;;  %v8257_v23 = vld [vmem:[#allocation7 + $0x258] sm:$0xf0] }
 0x125   :  { %3077 = vmatpush.bf16.msra.mxu3 %v8164_v29  ;;  %v8385_v29 = vld [vmem:[#allocation7 + $0x358] sm:$0xf0]  ;;  %v8260_v37 = vor.u32 %v11575_v21, %v8257_v23  ;;  %v8297_v23 = vld [vmem:[#allocation7 + $0x2a8] sm:$0xf0] }
 0x126   :  { %3039 = vmatpush.bf16.msra.mxu0 %v7964_v45  ;;  %v8388_v41 = vor.u32 %v11607_v28, %v8385_v29  ;;  %v8249_v45 = vld [vmem:[#allocation7 + $0x248] sm:$0xf0]  ;;  %v11617_v29 = vld [vmem:[#allocation7 + $0x3a4] sm:$0xf] }
 0x127   :  { %3052 = vmatpush.bf16.msra.mxu1 %v8028_v53  ;;  %v8377_v53 = vld [vmem:[#allocation7 + $0x348] sm:$0xf0]  ;;  %v8252_v58 = vor.u32 %v11573_v42, %v8249_v45 }
 0x128   :  { %3065 = vmatpush.bf16.msra.mxu2 %v8092_v54  ;;  %v2833_v54 = vpop.f32.mrf.mxu0 }
 0x129   :  { %3078 = vmatpush.bf16.msra.mxu3 %v8156_v61  ;;  %3040 = vmatmul.bf16.vlgmr.msra.gmra.mxu0 %v13108_v50  ;;  %v11621_v50 = vld [vmem:[#allocation7 + $0x3c4] sm:$0xf]  ;;  %v8380_v61 = vor.u32 %v11605_v52, %v8377_v53  ;;  %v8428_v52 = vor.u32 %v11617_v29, %v8425_v30  ;;  %v8289_v53 = vld [vmem:[#allocation7 + $0x298] sm:$0xf0] }
 0x12a   :  { %3084 = vmatpush.bf16.msrb.mxu0 %v8276_v62  ;;  %3053 = vmatmul.bf16.vlgmr.msra.gmra.mxu1 %v13112_v60  ;;  %v2846_v60 = vpop.f32.mrf.mxu1  ;;  %v11571_v62 = vld [vmem:[#allocation7 + $0x234] sm:$0xf] }
 0x12b   :  { %3097 = vmatpush.bf16.msrb.mxu1 %v8340_v63  ;;  %3066 = vmatmul.bf16.vlgmr.msra.gmra.mxu2 %v13106_v49  ;;  %v8313_v49 = vld [vmem:[#allocation7 + $0x2c8] sm:$0xf0]  ;;  %v11587_v63 = vld [vmem:[#allocation7 + $0x2b4] sm:$0xf]  ;;  %v8244_v11 = vor.u32 %v11571_v62, %v8241_v43  ;;  %v11581_v43 = vld [vmem:[#allocation7 + $0x284] sm:$0xf] }
 0x12c   :  { %3110 = vmatpush.bf16.msrb.mxu2 %v8404_v1  ;;  %3079 = vmatmul.bf16.vlgmr.msra.gmra.mxu3 %v13110_v57  ;;  %v2834_v57 = vadd.f32 %v2833_v54, %v13178_v15  ;;  %v8316_v59 = vor.u32 %v11589_v46, %v8313_v49  ;;  %v8444_v1 = vor.u32 %v11621_v50, %v8441_v56  ;;  %v11567_v46 = vld [vmem:[#allocation7 + $0x214] sm:$0xf]  ;;  %v8353_v50 = vld [vmem:[#allocation7 + $0x318] sm:$0xf0] }
 0x12d   :  { %3123 = vmatpush.bf16.msrb.mxu3 %v8468_v6  ;;  %v8369_v6 = vld [vmem:[#allocation7 + $0x338] sm:$0xf0]  ;;  %v8308_v15 = vor.u32 %v11587_v63, %v8305_v4  ;;  %v11583_v49 = vld [vmem:[#allocation7 + $0x294] sm:$0xf]  ;;  %v8281_v63 = vld [vmem:[#allocation7 + $0x288] sm:$0xf0] }
 0x12e   :  { %3085 = vmatpush.bf16.msrb.mxu0 %v8268_v16  ;;  %v2847_v2 = vadd.f32 %v2846_v60, %v2834_v57  ;;  %v8372_v12 = vor.u32 %v11603_v5, %v8369_v6  ;;  %v8233_v16 = vld [vmem:[#allocation7 + $0x228] sm:$0xf0]  ;;  %v2859_v21 = vpop.f32.mrf.mxu2  ;;  %v11599_v54 = vld [vmem:[#allocation7 + $0x314] sm:$0xf]  ;;  %v8417_v57 = vld [vmem:[#allocation7 + $0x398] sm:$0xf0] }
 0x12f   :  { %3098 = vmatpush.bf16.msrb.mxu1 %v8332_v19  ;;  %v11585_v19 = vld [vmem:[#allocation7 + $0x2a4] sm:$0xf]  ;;  %v2872_v28 = vpop.f32.mrf.mxu3  ;;  %v11615_v56 = vld [vmem:[#allocation7 + $0x394] sm:$0xf]  ;;  %v8356_v62 = vor.u32 %v11599_v54, %v8353_v50  ;;  %v8345_v4 = vld [vmem:[#allocation7 + $0x308] sm:$0xf0] }
 0x130   :  { %3111 = vmatpush.bf16.msrb.mxu2 %v8396_v20  ;;  %v8436_v20 = vor.u32 %v11619_v9, %v8433_v10  ;;  %v2860_v26 = vadd.f32 %v2859_v21, %v2847_v2  ;;  %v2835_v34 = vpop.f32.mrf.mxu0  ;;  %v8300_v42 = vor.u32 %v11585_v19, %v8297_v23  ;;  %v11565_v60 = vld [vmem:[#allocation7 + $0x204] sm:$0xf]  ;;  %v8420_v2 = vor.u32 %v11615_v56, %v8417_v57  ;;  %v8409_v6 = vld [vmem:[#allocation7 + $0x388] sm:$0xf0]  ;;  %v11643_v10 = vld [vmem:[#allocation7 + $0x474] sm:$0xf] }
 0x131   :  { %3124 = vmatpush.bf16.msrb.mxu3 %v8460_v25  ;;  %v8361_v25 = vld [vmem:[#allocation7 + $0x328] sm:$0xf0]  ;;  %v11613_v5 = vld [vmem:[#allocation7 + $0x384] sm:$0xf]  ;;  %v11675_v19 = vld [vmem:[#allocation7 + $0x574] sm:$0xf]  ;;  %v8284_v21 = vor.u32 %v11581_v43, %v8281_v63 }
 0x132   :  { %3086 = vmatpush.bf16.msrb.mxu0 %v8260_v37  ;;  %v8236_v37 = vor.u32 %v11569_v14, %v8233_v16  ;;  %v8364_v45 = vor.u32 %v11601_v24, %v8361_v25  ;;  %v8593_v16 = vld [vmem:[#allocation7 + $0x4f8] sm:$0xf0]  ;;  %v11691_v24 = vld [vmem:[#allocation7 + $0x5f4] sm:$0xf]  ;;  %v11641_v34 = vld [vmem:[#allocation7 + $0x464] sm:$0xf] }
 0x133   :  { %3099 = vmatpush.bf16.msrb.mxu1 %v8324_v40  ;;  %v2848_v40 = vpop.f32.mrf.mxu1  ;;  %v8721_v25 = vld [vmem:[#allocation7 + $0x5f8] sm:$0xf0]  ;;  %v11639_v56 = vld [vmem:[#allocation7 + $0x454] sm:$0xf] }
 0x134   :  { %3112 = vmatpush.bf16.msrb.mxu2 %v8388_v41  ;;  %v13185_v41 = vadd.f32 %v2872_v28, %v2860_v26  ;;  %v8412_v26 = vor.u32 %v11613_v5, %v8409_v6  ;;  %v11657_v40 = vld [vmem:[#allocation7 + $0x4e4] sm:$0xf]  ;;  %v8513_v57 = vld [vmem:[#allocation7 + $0x458] sm:$0xf0]  ;;  %v11687_v43 = vld [vmem:[#allocation7 + $0x5d4] sm:$0xf] }
 0x135   :  { %3125 = vmatpush.bf16.msrb.mxu3 %v8452_v47  ;;  %v8225_v47 = vld [vmem:[#allocation7 + $0x218] sm:$0xf0]  ;;  %v11637_v5 = vld [vmem:[#allocation7 + $0x444] sm:$0xf]  ;;  %v8505_v6 = vld [vmem:[#allocation7 + $0x448] sm:$0xf0] }
 0x136   :  { %3087 = vmatpush.bf16.msrb.mxu0 %v8252_v58  ;;  %v8228_v58 = vor.u32 %v11567_v46, %v8225_v47  ;;  %v2861_v9 = vpop.f32.mrf.mxu2  ;;  %v11673_v46 = vld [vmem:[#allocation7 + $0x564] sm:$0xf]  ;;  %v8649_v47 = vld [vmem:[#allocation7 + $0x568] sm:$0xf0]  ;;  %v8705_v63 = vld [vmem:[#allocation7 + $0x5d8] sm:$0xf0] }
 0x137   :  { %3100 = vmatpush.bf16.msrb.mxu1 %v8316_v59  ;;  %v8217_v59 = vld [vmem:[#allocation7 + $0x208] sm:$0xf0]  ;;  %v8652_v50 = vor.u32 %v11673_v46, %v8649_v47  ;;  %v8708_v9 = vor.u32 %v11687_v43, %v8705_v63  ;;  %v11649_v47 = vld [vmem:[#allocation7 + $0x4a4] sm:$0xf] }
 0x138   :  { %3113 = vmatpush.bf16.msrb.mxu2 %v8380_v61  ;;  %v8292_v61 = vor.u32 %v11583_v49, %v8289_v53  ;;  %v8220_v14 = vor.u32 %v11565_v60, %v8217_v59  ;;  %v11689_v49 = vld [vmem:[#allocation7 + $0x5e4] sm:$0xf]  ;;  %v8577_v59 = vld [vmem:[#allocation7 + $0x4d8] sm:$0xf0]  ;;  %v8489_v46 = vld [vmem:[#allocation7 + $0x428] sm:$0xf0] }
 0x139   :  { %3126 = vmatpush.bf16.msrb.mxu3 %v8444_v1  ;;  %v11597_v1 = vld [vmem:[#allocation7 + $0x304] sm:$0xf] }
 0x13a   :  { %3088 = vmatpush.bf16.msrb.mxu0 %v8244_v11  ;;  %v8529_v11 = vld [vmem:[#allocation7 + $0x478] sm:$0xf0]  ;;  %v8348_v23 = vor.u32 %v11597_v1, %v8345_v4  ;;  %v8516_v1 = vor.u32 %v11639_v56, %v8513_v57 }
 0x13b   :  { %3101 = vmatpush.bf16.msrb.mxu1 %v8308_v15  ;;  %v11659_v15 = vld [vmem:[#allocation7 + $0x4f4] sm:$0xf]  ;;  %v8532_v28 = vor.u32 %v11643_v10, %v8529_v11  ;;  %v8569_v10 = vld [vmem:[#allocation7 + $0x4c8] sm:$0xf0]  ;;  %v11669_v11 = vld [vmem:[#allocation7 + $0x544] sm:$0xf] }
 0x13c   :  { %3114 = vmatpush.bf16.msrb.mxu2 %v8372_v12  ;;  %v2874_v12 = vpop.f32.mrf.mxu3  ;;  %v8596_v29 = vor.u32 %v11659_v15, %v8593_v16  ;;  %v8633_v15 = vld [vmem:[#allocation7 + $0x548] sm:$0xf0]  ;;  %v8508_v16 = vor.u32 %v11637_v5, %v8505_v6  ;;  %v11647_v5 = vld [vmem:[#allocation7 + $0x494] sm:$0xf] }
 0x13d   :  { %3127 = vmatpush.bf16.msrb.mxu3 %v8436_v20  ;;  %v8657_v20 = vld [vmem:[#allocation7 + $0x578] sm:$0xf0] }
 0x13e   :  { %3089 = vmatpush.bf16.msrb.mxu0 %v8236_v37  ;;  %v8660_v30 = vor.u32 %v11675_v19, %v8657_v20  ;;  %v8521_v37 = vld [vmem:[#allocation7 + $0x468] sm:$0xf0]  ;;  %v8636_v20 = vor.u32 %v11669_v11, %v8633_v15  ;;  %v11679_v11 = vld [vmem:[#allocation7 + $0x594] sm:$0xf]  ;;  %v8673_v15 = vld [vmem:[#allocation7 + $0x598] sm:$0xf0] }
 0x13f   :  { %3102 = vmatpush.bf16.msrb.mxu1 %v8300_v42  ;;  %v8724_v42 = vor.u32 %v11691_v24, %v8721_v25  ;;  %v8524_v53 = vor.u32 %v11641_v34, %v8521_v37  ;;  %v11651_v24 = vld [vmem:[#allocation7 + $0x4b4] sm:$0xf]  ;;  %v8689_v37 = vld [vmem:[#allocation7 + $0x5b8] sm:$0xf0] }
 0x140   :  { %3115 = vmatpush.bf16.msrb.mxu2 %v8364_v45  ;;  %v8585_v45 = vld [vmem:[#allocation7 + $0x4e8] sm:$0xf0]  ;;  %v11683_v34 = vld [vmem:[#allocation7 + $0x5b4] sm:$0xf] }
 0x141   :  { %3128 = vmatpush.bf16.msrb.mxu3 %v8428_v52  ;;  %v8713_v52 = vld [vmem:[#allocation7 + $0x5e8] sm:$0xf0]  ;;  %v8588_v54 = vor.u32 %v11657_v40, %v8585_v45  ;;  %v11633_v45 = vld [vmem:[#allocation7 + $0x424] sm:$0xf] }
 0x142   :  { %3090 = vmatpush.bf16.msrb.mxu0 %v8228_v58  ;;  %v11655_v58 = vld [vmem:[#allocation7 + $0x4d4] sm:$0xf]  ;;  %v8716_v60 = vor.u32 %v11689_v49, %v8713_v52  ;;  %v8692_v49 = vor.u32 %v11683_v34, %v8689_v37 }
 0x143   :  { %3103 = vmatpush.bf16.msrb.mxu1 %v8292_v61  ;;  %v11671_v61 = vld [vmem:[#allocation7 + $0x554] sm:$0xf] }
 0x144   :  { %3116 = vmatpush.bf16.msrb.mxu2 %v8356_v62  ;;  %v8641_v62 = vld [vmem:[#allocation7 + $0x558] sm:$0xf0] }
 0x145   :  { %3129 = vmatpush.bf16.msrb.mxu3 %v8420_v2  ;;  %v8580_v2 = vor.u32 %v11655_v58, %v8577_v59  ;;  %v8644_v4 = vor.u32 %v11671_v61, %v8641_v62  ;;  %v11681_v58 = vld [vmem:[#allocation7 + $0x5a4] sm:$0xf]  ;;  %v8492_v61 = vor.u32 %v11633_v45, %v8489_v46 }
 0x146   :  { %3091 = vmatpush.bf16.msrb.mxu0 %v8220_v14  ;;  %v2885_v12 = vpop.f32.mrf.mxu0  ;;  %v8697_v14 = vld [vmem:[#allocation7 + $0x5c8] sm:$0xf0] }
 0x147   :  { %3104 = vmatpush.bf16.msrb.mxu1 %v8284_v21  ;;  %v11635_v21 = vld [vmem:[#allocation7 + $0x434] sm:$0xf] }
 0x148   :  { %3117 = vmatpush.bf16.msrb.mxu2 %v8348_v23  ;;  %v8497_v23 = vld [vmem:[#allocation7 + $0x438] sm:$0xf0] }
 0x149   :  { %3130 = vmatpush.bf16.msrb.mxu3 %v8412_v26  ;;  %3092 = vmatmul.bf16.vlgmr.msrb.gmra.mxu0 %v13120_v3  ;;  %v11685_v3 = vld [vmem:[#allocation7 + $0x5c4] sm:$0xf]  ;;  %v8500_v40 = vor.u32 %v11635_v21, %v8497_v23  ;;  %v8676_v21 = vor.u32 %v11679_v11, %v8673_v15  ;;  %v8601_v23 = vld [vmem:[#allocation7 + $0x508] sm:$0xf0]  ;;  %v8833_v11 = vld [vmem:[#allocation7 + $0x6d8] sm:$0xf0] }
 0x14a   :  { %3136 = vmatpush.bf16.msra.mxu0 %v8532_v28  ;;  %3105 = vmatmul.bf16.vlgmr.msrb.gmra.mxu1 %v13124_v8  ;;  %v2898_v8 = vpop.f32.mrf.mxu1  ;;  %v8700_v25 = vor.u32 %v11685_v3, %v8697_v14  ;;  %v8561_v28 = vld [vmem:[#allocation7 + $0x4b8] sm:$0xf0]  ;;  %v11629_v3 = vld [vmem:[#allocation7 + $0x404] sm:$0xf]  ;;  %v8473_v14 = vld [vmem:[#allocation7 + $0x408] sm:$0xf0] }
 0x14b   :  { %3149 = vmatpush.bf16.msra.mxu1 %v8596_v29  ;;  %3118 = vmatmul.bf16.vlgmr.msrb.gmra.mxu2 %v13118_v0  ;;  %v11653_v0 = vld [vmem:[#allocation7 + $0x4c4] sm:$0xf]  ;;  %v11667_v29 = vld [vmem:[#allocation7 + $0x534] sm:$0xf]  ;;  %v8476_v37 = vor.u32 %v11629_v3, %v8473_v14  ;;  %v8961_v14 = vld [vmem:[#allocation7 + $0x7d8] sm:$0xf0] }
 0x14c   :  { %3162 = vmatpush.bf16.msra.mxu2 %v8660_v30  ;;  %3131 = vmatmul.bf16.vlgmr.msrb.gmra.mxu3 %v13122_v7  ;;  %v2886_v7 = vadd.f32 %v2885_v12, %v13185_v41  ;;  %v8572_v19 = vor.u32 %v11653_v0, %v8569_v10  ;;  %v8625_v30 = vld [vmem:[#allocation7 + $0x538] sm:$0xf0]  ;;  %v8564_v41 = vor.u32 %v11651_v24, %v8561_v28  ;;  %v11677_v24 = vld [vmem:[#allocation7 + $0x584] sm:$0xf]  ;;  %v11707_v28 = vld [vmem:[#allocation7 + $0x674] sm:$0xf] }
 0x14d   :  { %3175 = vmatpush.bf16.msra.mxu3 %v8724_v42  ;;  %v8628_v42 = vor.u32 %v11667_v29, %v8625_v30  ;;  %v8545_v0 = vld [vmem:[#allocation7 + $0x498] sm:$0xf0]  ;;  %v11723_v30 = vld [vmem:[#allocation7 + $0x6f4] sm:$0xf] }
 0x14e   :  { %3137 = vmatpush.bf16.msra.mxu0 %v8524_v53  ;;  %v2899_v26 = vadd.f32 %v2898_v8, %v2886_v7  ;;  %v2911_v52 = vpop.f32.mrf.mxu2  ;;  %v8553_v53 = vld [vmem:[#allocation7 + $0x4a8] sm:$0xf0]  ;;  %v2887_v59 = vpop.f32.mrf.mxu0  ;;  %v8609_v10 = vld [vmem:[#allocation7 + $0x518] sm:$0xf0]  ;;  %v8548_v7 = vor.u32 %v11647_v5, %v8545_v0  ;;  %v11645_v8 = vld [vmem:[#allocation7 + $0x484] sm:$0xf] }
 0x14f   :  { %3150 = vmatpush.bf16.msra.mxu1 %v8588_v54  ;;  %v11665_v54 = vld [vmem:[#allocation7 + $0x524] sm:$0xf]  ;;  %v2924_v57 = vpop.f32.mrf.mxu3  ;;  %v8556_v63 = vor.u32 %v11649_v47, %v8553_v53  ;;  %v8785_v29 = vld [vmem:[#allocation7 + $0x678] sm:$0xf0]  ;;  %v11755_v47 = vld [vmem:[#allocation7 + $0x7f4] sm:$0xf] }
 0x150   :  { %3163 = vmatpush.bf16.msra.mxu2 %v8652_v50  ;;  %v8617_v50 = vld [vmem:[#allocation7 + $0x528] sm:$0xf0]  ;;  %v2912_v56 = vadd.f32 %v2911_v52, %v2899_v26  ;;  %v8788_v53 = vor.u32 %v11707_v28, %v8785_v29  ;;  %v8769_v0 = vld [vmem:[#allocation7 + $0x658] sm:$0xf0]  ;;  %v11735_v15 = vld [vmem:[#allocation7 + $0x754] sm:$0xf] }
 0x151   :  { %3176 = vmatpush.bf16.msra.mxu3 %v8716_v60  ;;  %v8681_v60 = vld [vmem:[#allocation7 + $0x5a8] sm:$0xf0]  ;;  %v11751_v3 = vld [vmem:[#allocation7 + $0x7d4] sm:$0xf] }
 0x152   :  { %3138 = vmatpush.bf16.msra.mxu0 %v8516_v1  ;;  %v2900_v62 = vpop.f32.mrf.mxu1  ;;  %v13192_v43 = vadd.f32 %v2924_v57, %v2912_v56  ;;  %v8620_v1 = vor.u32 %v11665_v54, %v8617_v50  ;;  %v8684_v6 = vor.u32 %v11681_v58, %v8681_v60  ;;  %v11705_v56 = vld [vmem:[#allocation7 + $0x664] sm:$0xf]  ;;  %v8777_v57 = vld [vmem:[#allocation7 + $0x668] sm:$0xf0] }
 0x153   :  { %3151 = vmatpush.bf16.msra.mxu1 %v8580_v2  ;;  %v11631_v2 = vld [vmem:[#allocation7 + $0x414] sm:$0xf]  ;;  %v11721_v58 = vld [vmem:[#allocation7 + $0x6e4] sm:$0xf]  ;;  %v8841_v59 = vld [vmem:[#allocation7 + $0x6e8] sm:$0xf0] }
 0x154   :  { %3164 = vmatpush.bf16.msra.mxu2 %v8644_v4  ;;  %v8481_v4 = vld [vmem:[#allocation7 + $0x418] sm:$0xf0]  ;;  %v8905_v62 = vld [vmem:[#allocation7 + $0x768] sm:$0xf0] }
 0x155   :  { %3177 = vmatpush.bf16.msra.mxu3 %v8708_v9  ;;  %v11663_v9 = vld [vmem:[#allocation7 + $0x514] sm:$0xf]  ;;  %v8484_v12 = vor.u32 %v11631_v2, %v8481_v4  ;;  %v8780_v2 = vor.u32 %v11705_v56, %v8777_v57  ;;  %v8844_v4 = vor.u32 %v11721_v58, %v8841_v59  ;;  %v11697_v56 = vld [vmem:[#allocation7 + $0x624] sm:$0xf]  ;;  %v8745_v57 = vld [vmem:[#allocation7 + $0x628] sm:$0xf0] }
 0x156   :  { %3139 = vmatpush.bf16.msra.mxu0 %v8508_v16  ;;  %v8612_v16 = vor.u32 %v11663_v9, %v8609_v10  ;;  %v2913_v26 = vpop.f32.mrf.mxu2  ;;  %v11719_v9 = vld [vmem:[#allocation7 + $0x6d4] sm:$0xf]  ;;  %v11713_v58 = vld [vmem:[#allocation7 + $0x6a4] sm:$0xf] }
 0x157   :  { %3152 = vmatpush.bf16.msra.mxu1 %v8572_v19  ;;  %v8537_v19 = vld [vmem:[#allocation7 + $0x488] sm:$0xf0]  ;;  %v2926_v34 = vpop.f32.mrf.mxu3 }
 0x158   :  { %3165 = vmatpush.bf16.msra.mxu2 %v8636_v20  ;;  %v11661_v20 = vld [vmem:[#allocation7 + $0x504] sm:$0xf]  ;;  %v8540_v45 = vor.u32 %v11645_v8, %v8537_v19  ;;  %v8953_v26 = vld [vmem:[#allocation7 + $0x7c8] sm:$0xf0] }
 0x159   :  { %3178 = vmatpush.bf16.msra.mxu3 %v8700_v25  ;;  %v8665_v25 = vld [vmem:[#allocation7 + $0x588] sm:$0xf0]  ;;  %v8604_v46 = vor.u32 %v11661_v20, %v8601_v23  ;;  %v11701_v19 = vld [vmem:[#allocation7 + $0x644] sm:$0xf] }
 0x15a   :  { %3140 = vmatpush.bf16.msra.mxu0 %v8500_v40  ;;  %v8849_v40 = vld [vmem:[#allocation7 + $0x6f8] sm:$0xf0]  ;;  %v8668_v52 = vor.u32 %v11677_v24, %v8665_v25  ;;  %v11717_v20 = vld [vmem:[#allocation7 + $0x6c4] sm:$0xf]  ;;  %v8825_v23 = vld [vmem:[#allocation7 + $0x6c8] sm:$0xf0] }
 0x15b   :  { %3153 = vmatpush.bf16.msra.mxu1 %v8564_v41  ;;  %v11739_v41 = vld [vmem:[#allocation7 + $0x774] sm:$0xf]  ;;  %v8852_v54 = vor.u32 %v11723_v30, %v8849_v40  ;;  %v11733_v24 = vld [vmem:[#allocation7 + $0x744] sm:$0xf]  ;;  %v8828_v30 = vor.u32 %v11717_v20, %v8825_v23  ;;  %v8753_v40 = vld [vmem:[#allocation7 + $0x638] sm:$0xf0] }
 0x15c   :  { %3166 = vmatpush.bf16.msra.mxu2 %v8628_v42  ;;  %v8913_v42 = vld [vmem:[#allocation7 + $0x778] sm:$0xf0]  ;;  %v11693_v23 = vld [vmem:[#allocation7 + $0x604] sm:$0xf] }
 0x15d   :  { %3179 = vmatpush.bf16.msra.mxu3 %v8692_v49  ;;  %v8977_v49 = vld [vmem:[#allocation7 + $0x7f8] sm:$0xf0]  ;;  %v8916_v50 = vor.u32 %v11739_v41, %v8913_v42  ;;  %v11715_v41 = vld [vmem:[#allocation7 + $0x6b4] sm:$0xf] }
 0x15e   :  { %3141 = vmatpush.bf16.msra.mxu0 %v8492_v61  ;;  %v8980_v60 = vor.u32 %v11755_v47, %v8977_v49  ;;  %v11737_v61 = vld [vmem:[#allocation7 + $0x764] sm:$0xf]  ;;  %v11731_v47 = vld [vmem:[#allocation7 + $0x734] sm:$0xf]  ;;  %v8881_v49 = vld [vmem:[#allocation7 + $0x738] sm:$0xf0] }
 0x15f   :  { %3154 = vmatpush.bf16.msra.mxu1 %v8556_v63  ;;  %v11753_v63 = vld [vmem:[#allocation7 + $0x7e4] sm:$0xf]  ;;  %v8908_v5 = vor.u32 %v11737_v61, %v8905_v62  ;;  %v8809_v61 = vld [vmem:[#allocation7 + $0x6a8] sm:$0xf0]  ;;  %v8929_v20 = vld [vmem:[#allocation7 + $0x798] sm:$0xf0] }
 0x160   :  { %3167 = vmatpush.bf16.msra.mxu2 %v8620_v1  ;;  %v8969_v1 = vld [vmem:[#allocation7 + $0x7e8] sm:$0xf0]  ;;  %v11729_v62 = vld [vmem:[#allocation7 + $0x724] sm:$0xf] }
 0x161   :  { %3180 = vmatpush.bf16.msra.mxu3 %v8684_v6  ;;  %v11703_v6 = vld [vmem:[#allocation7 + $0x654] sm:$0xf]  ;;  %v8972_v10 = vor.u32 %v11753_v63, %v8969_v1  ;;  %v8873_v63 = vld [vmem:[#allocation7 + $0x728] sm:$0xf0] }
 0x162   :  { %3142 = vmatpush.bf16.msra.mxu0 %v8484_v12  ;;  %v8897_v12 = vld [vmem:[#allocation7 + $0x758] sm:$0xf0] }
 0x163   :  { %3155 = vmatpush.bf16.msra.mxu1 %v8548_v7  ;;  %v8772_v7 = vor.u32 %v11703_v6, %v8769_v0  ;;  %v8900_v8 = vor.u32 %v11735_v15, %v8897_v12  ;;  %v8748_v0 = vor.u32 %v11697_v56, %v8745_v57  ;;  %v8876_v15 = vor.u32 %v11729_v62, %v8873_v63  ;;  %v11695_v12 = vld [vmem:[#allocation7 + $0x614] sm:$0xf]  ;;  %v11785_v62 = vld [vmem:[#allocation7 + $0x8e4] sm:$0xf] }
 0x164   :  { %3168 = vmatpush.bf16.msra.mxu2 %v8612_v16  ;;  %v8836_v16 = vor.u32 %v11719_v9, %v8833_v11  ;;  %v8812_v11 = vor.u32 %v11713_v58, %v8809_v61  ;;  %v9033_v61 = vld [vmem:[#allocation7 + $0x868] sm:$0xf0] }
 0x165   :  { %3181 = vmatpush.bf16.msra.mxu3 %v8676_v21  ;;  %v8964_v21 = vor.u32 %v11751_v3, %v8961_v14  ;;  %v8737_v3 = vld [vmem:[#allocation7 + $0x618] sm:$0xf0]  ;;  %v11711_v14 = vld [vmem:[#allocation7 + $0x694] sm:$0xf] }
 0x166   :  { %3143 = vmatpush.bf16.msra.mxu0 %v8476_v37  ;;  %v2937_v25 = vpop.f32.mrf.mxu0  ;;  %v11699_v37 = vld [vmem:[#allocation7 + $0x634] sm:$0xf] }
 0x167   :  { %3156 = vmatpush.bf16.msra.mxu1 %v8540_v45  ;;  %v2950_v29 = vpop.f32.mrf.mxu1 }
 0x168   :  { %3169 = vmatpush.bf16.msra.mxu2 %v8604_v46  ;;  %v8817_v46 = vld [vmem:[#allocation7 + $0x6b8] sm:$0xf0] }
 0x169   :  { %3182 = vmatpush.bf16.msra.mxu3 %v8668_v52  ;;  %3144 = vmatmul.bf16.vlgmr.msra.gmra.mxu0 %v13130_v31  ;;  %v8761_v31 = vld [vmem:[#allocation7 + $0x648] sm:$0xf0]  ;;  %v11747_v52 = vld [vmem:[#allocation7 + $0x7b4] sm:$0xf] }
 0x16a   :  { %3188 = vmatpush.bf16.msrb.mxu0 %v8788_v53  ;;  %3157 = vmatmul.bf16.vlgmr.msra.gmra.mxu1 %v13134_v36  ;;  %v11749_v36 = vld [vmem:[#allocation7 + $0x7c4] sm:$0xf]  ;;  %v8764_v28 = vor.u32 %v11701_v19, %v8761_v31  ;;  %v8945_v53 = vld [vmem:[#allocation7 + $0x7b8] sm:$0xf0]  ;;  %v11743_v31 = vld [vmem:[#allocation7 + $0x794] sm:$0xf] }
 0x16b   :  { %3201 = vmatpush.bf16.msrb.mxu1 %v8852_v54  ;;  %3170 = vmatmul.bf16.vlgmr.msra.gmra.mxu2 %v13132_v35  ;;  %v8889_v35 = vld [vmem:[#allocation7 + $0x748] sm:$0xf0]  ;;  %v8956_v42 = vor.u32 %v11749_v36, %v8953_v26  ;;  %v8756_v54 = vor.u32 %v11699_v37, %v8753_v40  ;;  %v8865_v19 = vld [vmem:[#allocation7 + $0x718] sm:$0xf0]  ;;  %v11709_v36 = vld [vmem:[#allocation7 + $0x684] sm:$0xf] }
 0x16c   :  { %3214 = vmatpush.bf16.msrb.mxu2 %v8916_v50  ;;  %3183 = vmatmul.bf16.vlgmr.msra.gmra.mxu3 %v13136_v39  ;;  %v2938_v39 = vadd.f32 %v2937_v25, %v13192_v43  ;;  %v8892_v34 = vor.u32 %v11733_v24, %v8889_v35  ;;  %v8820_v43 = vor.u32 %v11715_v41, %v8817_v46  ;;  %v8729_v24 = vld [vmem:[#allocation7 + $0x608] sm:$0xf0]  ;;  %v11771_v40 = vld [vmem:[#allocation7 + $0x874] sm:$0xf]  ;;  %v9041_v41 = vld [vmem:[#allocation7 + $0x878] sm:$0xf0] }
 0x16d   :  { %3227 = vmatpush.bf16.msrb.mxu3 %v8980_v60  ;;  %v8884_v50 = vor.u32 %v11731_v47, %v8881_v49  ;;  %v8948_v60 = vor.u32 %v11747_v52, %v8945_v53  ;;  %v8793_v26 = vld [vmem:[#allocation7 + $0x688] sm:$0xf0]  ;;  %v8732_v46 = vor.u32 %v11693_v23, %v8729_v24  ;;  %v9105_v47 = vld [vmem:[#allocation7 + $0x8f8] sm:$0xf0]  ;;  %v11803_v49 = vld [vmem:[#allocation7 + $0x974] sm:$0xf]  ;;  %v9044_v57 = vor.u32 %v11771_v40, %v9041_v41 }
 0x16e   :  { %3189 = vmatpush.bf16.msrb.mxu0 %v8780_v2  ;;  %v2951_v45 = vadd.f32 %v2950_v29, %v2938_v39  ;;  %v2963_v59 = vpop.f32.mrf.mxu2  ;;  %v2939_v6 = vpop.f32.mrf.mxu0  ;;  %v11725_v39 = vld [vmem:[#allocation7 + $0x704] sm:$0xf]  ;;  %v8857_v29 = vld [vmem:[#allocation7 + $0x708] sm:$0xf0]  ;;  %v9169_v52 = vld [vmem:[#allocation7 + $0x978] sm:$0xf0]  ;;  %v8796_v53 = vor.u32 %v11709_v36, %v8793_v26 }
 0x16f   :  { %3202 = vmatpush.bf16.msrb.mxu1 %v8844_v4  ;;  %v2976_v2 = vpop.f32.mrf.mxu3  ;;  %v11745_v4 = vld [vmem:[#allocation7 + $0x7a4] sm:$0xf]  ;;  %v2952_v9 = vpop.f32.mrf.mxu1  ;;  %v9225_v6 = vld [vmem:[#allocation7 + $0x9e8] sm:$0xf0]  ;;  %v11763_v40 = vld [vmem:[#allocation7 + $0x834] sm:$0xf] }
 0x170   :  { %3215 = vmatpush.bf16.msrb.mxu2 %v8908_v5  ;;  %v2964_v1 = vadd.f32 %v2963_v59, %v2951_v45  ;;  %v8937_v5 = vld [vmem:[#allocation7 + $0x7a8] sm:$0xf0]  ;;  %v11769_v59 = vld [vmem:[#allocation7 + $0x864] sm:$0xf]  ;;  %v9009_v41 = vld [vmem:[#allocation7 + $0x838] sm:$0xf0] }
 0x171   :  { %3228 = vmatpush.bf16.msrb.mxu3 %v8972_v10  ;;  %v11765_v24 = vld [vmem:[#allocation7 + $0x844] sm:$0xf]  ;;  %v9081_v36 = vld [vmem:[#allocation7 + $0x8c8] sm:$0xf0] }
 0x172   :  { %3190 = vmatpush.bf16.msrb.mxu0 %v8772_v7  ;;  %v13199_v10 = vadd.f32 %v2976_v2, %v2964_v1  ;;  %v8940_v7 = vor.u32 %v11745_v4, %v8937_v5  ;;  %v9097_v1 = vld [vmem:[#allocation7 + $0x8e8] sm:$0xf0]  ;;  %v11801_v2 = vld [vmem:[#allocation7 + $0x964] sm:$0xf] }
 0x173   :  { %3203 = vmatpush.bf16.msrb.mxu1 %v8836_v16  ;;  %v8801_v16 = vld [vmem:[#allocation7 + $0x698] sm:$0xf0]  ;;  %v9161_v4 = vld [vmem:[#allocation7 + $0x968] sm:$0xf0]  ;;  %v11817_v5 = vld [vmem:[#allocation7 + $0x9e4] sm:$0xf]  ;;  %v9100_v9 = vor.u32 %v11785_v62, %v9097_v1 }
 0x174   :  { %3216 = vmatpush.bf16.msrb.mxu2 %v8900_v8  ;;  %v11727_v8 = vld [vmem:[#allocation7 + $0x714] sm:$0xf]  ;;  %v8804_v35 = vor.u32 %v11711_v14, %v8801_v16  ;;  %v9228_v14 = vor.u32 %v11817_v5, %v9225_v6  ;;  %v11797_v26 = vld [vmem:[#allocation7 + $0x944] sm:$0xf]  ;;  %v9193_v5 = vld [vmem:[#allocation7 + $0x9a8] sm:$0xf0] }
 0x175   :  { %3229 = vmatpush.bf16.msrb.mxu3 %v8964_v21  ;;  %v8740_v21 = vor.u32 %v11695_v12, %v8737_v3  ;;  %v8868_v25 = vor.u32 %v11727_v8, %v8865_v19  ;;  %v9025_v12 = vld [vmem:[#allocation7 + $0x858] sm:$0xf0]  ;;  %v11783_v3 = vld [vmem:[#allocation7 + $0x8d4] sm:$0xf]  ;;  %v11793_v62 = vld [vmem:[#allocation7 + $0x924] sm:$0xf] }
 0x176   :  { %3191 = vmatpush.bf16.msrb.mxu0 %v8764_v28  ;;  %v8932_v28 = vor.u32 %v11743_v31, %v8929_v20  ;;  %v2965_v37 = vpop.f32.mrf.mxu2  ;;  %v11799_v16 = vld [vmem:[#allocation7 + $0x954] sm:$0xf]  ;;  %v9153_v8 = vld [vmem:[#allocation7 + $0x958] sm:$0xf0] }
 0x177   :  { %3204 = vmatpush.bf16.msrb.mxu1 %v8828_v30  ;;  %v11741_v30 = vld [vmem:[#allocation7 + $0x784] sm:$0xf]  ;;  %v2978_v45 = vpop.f32.mrf.mxu3  ;;  %v11815_v19 = vld [vmem:[#allocation7 + $0x9d4] sm:$0xf]  ;;  %v9217_v31 = vld [vmem:[#allocation7 + $0x9d8] sm:$0xf0]  ;;  %v9156_v23 = vor.u32 %v11799_v16, %v9153_v8 }
 0x178   :  { %3217 = vmatpush.bf16.msrb.mxu2 %v8892_v34  ;;  %v8921_v34 = vld [vmem:[#allocation7 + $0x788] sm:$0xf0]  ;;  %v9057_v8 = vld [vmem:[#allocation7 + $0x898] sm:$0xf0] }
 0x179   :  { %3230 = vmatpush.bf16.msrb.mxu3 %v8956_v42  ;;  %v11787_v42 = vld [vmem:[#allocation7 + $0x8f4] sm:$0xf]  ;;  %v8924_v56 = vor.u32 %v11741_v30, %v8921_v34 }
 0x17a   :  { %3192 = vmatpush.bf16.msrb.mxu0 %v8756_v54  ;;  %v8860_v54 = vor.u32 %v11725_v39, %v8857_v29  ;;  %v9108_v58 = vor.u32 %v11787_v42, %v9105_v47  ;;  %v11779_v42 = vld [vmem:[#allocation7 + $0x8b4] sm:$0xf]  ;;  %v9073_v47 = vld [vmem:[#allocation7 + $0x8b8] sm:$0xf0] }
 0x17b   :  { %3205 = vmatpush.bf16.msrb.mxu1 %v8820_v43  ;;  %v11819_v43 = vld [vmem:[#allocation7 + $0x9f4] sm:$0xf] }
 0x17c   :  { %3218 = vmatpush.bf16.msrb.mxu2 %v8884_v50  ;;  %v9233_v50 = vld [vmem:[#allocation7 + $0x9f8] sm:$0xf0] }
 0x17d   :  { %3231 = vmatpush.bf16.msrb.mxu3 %v8948_v60  ;;  %v9172_v60 = vor.u32 %v11803_v49, %v9169_v52  ;;  %v9236_v63 = vor.u32 %v11819_v43, %v9233_v50  ;;  %v11795_v49 = vld [vmem:[#allocation7 + $0x934] sm:$0xf]  ;;  %v9137_v52 = vld [vmem:[#allocation7 + $0x938] sm:$0xf0]  ;;  %v9012_v43 = vor.u32 %v11763_v40, %v9009_v41 }
 0x17e   :  { %3193 = vmatpush.bf16.msrb.mxu0 %v8748_v0  ;;  %v9036_v0 = vor.u32 %v11769_v59, %v9033_v61  ;;  %v9140_v50 = vor.u32 %v11795_v49, %v9137_v52  ;;  %v9065_v61 = vld [vmem:[#allocation7 + $0x8a8] sm:$0xf0]  ;;  %v11883_v52 = vld [vmem:[#allocation7 + $0xbf4] sm:$0xf] }
 0x17f   :  { %3206 = vmatpush.bf16.msrb.mxu1 %v8812_v11  ;;  %v9164_v11 = vor.u32 %v11801_v2, %v9161_v4  ;;  %v11809_v4 = vld [vmem:[#allocation7 + $0x9a4] sm:$0xf] }
 0x180   :  { %3219 = vmatpush.bf16.msrb.mxu2 %v8876_v15  ;;  %v11767_v15 = vld [vmem:[#allocation7 + $0x854] sm:$0xf]  ;;  %v9196_v16 = vor.u32 %v11809_v4, %v9193_v5 }
 0x181   :  { %3232 = vmatpush.bf16.msrb.mxu3 %v8940_v7  ;;  %v9089_v7 = vld [vmem:[#allocation7 + $0x8d8] sm:$0xf0]  ;;  %v9028_v20 = vor.u32 %v11767_v15, %v9025_v12 }
 0x182   :  { %3194 = vmatpush.bf16.msrb.mxu0 %v8740_v21  ;;  %v9092_v21 = vor.u32 %v11783_v3, %v9089_v7  ;;  %v11759_v3 = vld [vmem:[#allocation7 + $0x814] sm:$0xf] }
 0x183   :  { %3207 = vmatpush.bf16.msrb.mxu1 %v8804_v35  ;;  %v11781_v35 = vld [vmem:[#allocation7 + $0x8c4] sm:$0xf]  ;;  %v11775_v7 = vld [vmem:[#allocation7 + $0x894] sm:$0xf] }
 0x184   :  { %3220 = vmatpush.bf16.msrb.mxu2 %v8868_v25  ;;  %v9220_v25 = vor.u32 %v11815_v19, %v9217_v31  ;;  %v9084_v34 = vor.u32 %v11781_v35, %v9081_v36  ;;  %v11791_v19 = vld [vmem:[#allocation7 + $0x914] sm:$0xf]  ;;  %v9121_v31 = vld [vmem:[#allocation7 + $0x918] sm:$0xf0]  ;;  %v9060_v35 = vor.u32 %v11775_v7, %v9057_v8  ;;  %v11773_v36 = vld [vmem:[#allocation7 + $0x884] sm:$0xf] }
 0x185   :  { %3233 = vmatpush.bf16.msrb.mxu3 %v8932_v28  ;;  %v9209_v28 = vld [vmem:[#allocation7 + $0x9c8] sm:$0xf0]  ;;  %v11879_v7 = vld [vmem:[#allocation7 + $0xbd4] sm:$0xf] }
 0x186   :  { %3195 = vmatpush.bf16.msrb.mxu0 %v8732_v46  ;;  %v2989_v39 = vpop.f32.mrf.mxu0 }
 0x187   :  { %3208 = vmatpush.bf16.msrb.mxu1 %v8796_v53  ;;  %v3002_v30 = vpop.f32.mrf.mxu1  ;;  %v11811_v53 = vld [vmem:[#allocation7 + $0x9b4] sm:$0xf] }
 0x188   :  { %3221 = vmatpush.bf16.msrb.mxu2 %v8860_v54  ;;  %v9201_v54 = vld [vmem:[#allocation7 + $0x9b8] sm:$0xf0] }
 0x189   :  { %3234 = vmatpush.bf16.msrb.mxu3 %v8924_v56  ;;  %3196 = vmatmul.bf16.vlgmr.msrb.gmra.mxu0 %v13142_v27  ;;  %v9017_v27 = vld [vmem:[#allocation7 + $0x848] sm:$0xf0]  ;;  %v11761_v56 = vld [vmem:[#allocation7 + $0x824] sm:$0xf] }
 0x18a   :  { %3240 = vmatpush.bf16.msra.mxu0 %v9044_v57  ;;  %3209 = vmatmul.bf16.vlgmr.msrb.gmra.mxu1 %v13146_v33  ;;  %v11813_v33 = vld [vmem:[#allocation7 + $0x9c4] sm:$0xf]  ;;  %v9020_v29 = vor.u32 %v11765_v24, %v9017_v27  ;;  %v9001_v57 = vld [vmem:[#allocation7 + $0x828] sm:$0xf0] }
 0x18b   :  { %3253 = vmatpush.bf16.msra.mxu1 %v9108_v58  ;;  %3222 = vmatmul.bf16.vlgmr.msrb.gmra.mxu2 %v13144_v32  ;;  %v9145_v32 = vld [vmem:[#allocation7 + $0x948] sm:$0xf0]  ;;  %v9212_v45 = vor.u32 %v11813_v33, %v9209_v28  ;;  %v11777_v58 = vld [vmem:[#allocation7 + $0x8a4] sm:$0xf] }
 0x18c   :  { %3266 = vmatpush.bf16.msra.mxu2 %v9172_v60  ;;  %3235 = vmatmul.bf16.vlgmr.msrb.gmra.mxu3 %v13148_v38  ;;  %v2990_v38 = vadd.f32 %v2989_v39, %v13199_v10  ;;  %v9148_v37 = vor.u32 %v11797_v26, %v9145_v32  ;;  %v9076_v10 = vor.u32 %v11779_v42, %v9073_v47  ;;  %v11757_v24 = vld [vmem:[#allocation7 + $0x804] sm:$0xf]  ;;  %v8985_v27 = vld [vmem:[#allocation7 + $0x808] sm:$0xf0]  ;;  %v9361_v42 = vld [vmem:[#allocation7 + $0xaf8] sm:$0xf0] }
 0x18d   :  { %3279 = vmatpush.bf16.msra.mxu3 %v9236_v63  ;;  %v9204_v60 = vor.u32 %v11811_v53, %v9201_v54  ;;  %v9129_v63 = vld [vmem:[#allocation7 + $0x928] sm:$0xf0]  ;;  %v9068_v15 = vor.u32 %v11777_v58, %v9065_v61  ;;  %v11789_v32 = vld [vmem:[#allocation7 + $0x904] sm:$0xf]  ;;  %v8988_v41 = vor.u32 %v11757_v24, %v8985_v27  ;;  %v9489_v53 = vld [vmem:[#allocation7 + $0xbf8] sm:$0xf0] }
 0x18e   :  { %3241 = vmatpush.bf16.msra.mxu0 %v9036_v0  ;;  %v3003_v46 = vadd.f32 %v3002_v30, %v2990_v38  ;;  %v3015_v59 = vpop.f32.mrf.mxu2  ;;  %v2991_v6 = vpop.f32.mrf.mxu0  ;;  %v9004_v0 = vor.u32 %v11761_v56, %v9001_v57  ;;  %v9132_v12 = vor.u32 %v11793_v62, %v9129_v63  ;;  %v9049_v26 = vld [vmem:[#allocation7 + $0x888] sm:$0xf0]  ;;  %v11805_v28 = vld [vmem:[#allocation7 + $0x984] sm:$0xf]  ;;  %v11835_v30 = vld [vmem:[#allocation7 + $0xa74] sm:$0xf] }
 0x18f   :  { %3254 = vmatpush.bf16.msra.mxu1 %v9100_v9  ;;  %v3028_v2 = vpop.f32.mrf.mxu3  ;;  %v3004_v9 = vpop.f32.mrf.mxu1  ;;  %v9113_v33 = vld [vmem:[#allocation7 + $0x908] sm:$0xf0]  ;;  %v9052_v47 = vor.u32 %v11773_v36, %v9049_v26  ;;  %v11833_v56 = vld [vmem:[#allocation7 + $0xa64] sm:$0xf]  ;;  %v11831_v6 = vld [vmem:[#allocation7 + $0xa54] sm:$0xf] }
 0x190   :  { %3267 = vmatpush.bf16.msra.mxu2 %v9164_v11  ;;  %v3016_v1 = vadd.f32 %v3015_v59, %v3003_v46  ;;  %v9177_v38 = vld [vmem:[#allocation7 + $0x988] sm:$0xf0]  ;;  %v9425_v46 = vld [vmem:[#allocation7 + $0xb78] sm:$0xf0]  ;;  %v9116_v49 = vor.u32 %v11789_v32, %v9113_v33  ;;  %v11849_v58 = vld [vmem:[#allocation7 + $0xae4] sm:$0xf] }
 0x191   :  { %3280 = vmatpush.bf16.msra.mxu3 %v9228_v14  ;;  %v8993_v14 = vld [vmem:[#allocation7 + $0x818] sm:$0xf0]  ;;  %v9180_v54 = vor.u32 %v11805_v28, %v9177_v38  ;;  %v9289_v57 = vld [vmem:[#allocation7 + $0xa68] sm:$0xf0]  ;;  %v11865_v61 = vld [vmem:[#allocation7 + $0xb64] sm:$0xf] }
 0x192   :  { %3242 = vmatpush.bf16.msra.mxu0 %v9028_v20  ;;  %v13206_v11 = vadd.f32 %v3028_v2, %v3016_v1  ;;  %v11807_v20 = vld [vmem:[#allocation7 + $0x994] sm:$0xf]  ;;  %v9353_v59 = vld [vmem:[#allocation7 + $0xae8] sm:$0xf0]  ;;  %v11881_v63 = vld [vmem:[#allocation7 + $0xbe4] sm:$0xf]  ;;  %v9292_v2 = vor.u32 %v11833_v56, %v9289_v57 }
 0x193   :  { %3255 = vmatpush.bf16.msra.mxu1 %v9092_v21  ;;  %v9185_v21 = vld [vmem:[#allocation7 + $0x998] sm:$0xf0]  ;;  %v9417_v62 = vld [vmem:[#allocation7 + $0xb68] sm:$0xf0]  ;;  %v9356_v4 = vor.u32 %v11849_v58, %v9353_v59  ;;  %v11847_v9 = vld [vmem:[#allocation7 + $0xad4] sm:$0xf] }
 0x194   :  { %3268 = vmatpush.bf16.msra.mxu2 %v9156_v23  ;;  %v8996_v23 = vor.u32 %v11759_v3, %v8993_v14  ;;  %v9188_v39 = vor.u32 %v11807_v20, %v9185_v21  ;;  %v9481_v1 = vld [vmem:[#allocation7 + $0xbe8] sm:$0xf0]  ;;  %v9420_v5 = vor.u32 %v11865_v61, %v9417_v62  ;;  %v11863_v3 = vld [vmem:[#allocation7 + $0xb54] sm:$0xf]  ;;  %v9409_v14 = vld [vmem:[#allocation7 + $0xb58] sm:$0xf0] }
 0x195   :  { %3281 = vmatpush.bf16.msra.mxu3 %v9220_v25  ;;  %v9124_v25 = vor.u32 %v11791_v19, %v9121_v31  ;;  %v11829_v19 = vld [vmem:[#allocation7 + $0xa44] sm:$0xf]  ;;  %v9412_v20 = vor.u32 %v11863_v3, %v9409_v14  ;;  %v9465_v36 = vld [vmem:[#allocation7 + $0xbc8] sm:$0xf0]  ;;  %v11827_v33 = vld [vmem:[#allocation7 + $0xa34] sm:$0xf] }
 0x196   :  { %3243 = vmatpush.bf16.msra.mxu0 %v9020_v29  ;;  %v3017_v29 = vpop.f32.mrf.mxu2  ;;  %v11845_v21 = vld [vmem:[#allocation7 + $0xac4] sm:$0xf]  ;;  %v9265_v28 = vld [vmem:[#allocation7 + $0xa38] sm:$0xf0]  ;;  %v11843_v38 = vld [vmem:[#allocation7 + $0xab4] sm:$0xf] }
 0x197   :  { %3256 = vmatpush.bf16.msra.mxu1 %v9084_v34  ;;  %v9297_v34 = vld [vmem:[#allocation7 + $0xa78] sm:$0xf0]  ;;  %v3030_v40 = vpop.f32.mrf.mxu3  ;;  %v9321_v56 = vld [vmem:[#allocation7 + $0xaa8] sm:$0xf0]  ;;  %v11857_v57 = vld [vmem:[#allocation7 + $0xb24] sm:$0xf] }
 0x198   :  { %3269 = vmatpush.bf16.msra.mxu2 %v9148_v37  ;;  %v11851_v37 = vld [vmem:[#allocation7 + $0xaf4] sm:$0xf]  ;;  %v9385_v58 = vld [vmem:[#allocation7 + $0xb28] sm:$0xf0]  ;;  %v11873_v61 = vld [vmem:[#allocation7 + $0xba4] sm:$0xf] }
 0x199   :  { %3282 = vmatpush.bf16.msra.mxu3 %v9212_v45  ;;  %v11867_v45 = vld [vmem:[#allocation7 + $0xb74] sm:$0xf]  ;;  %v9449_v62 = vld [vmem:[#allocation7 + $0xba8] sm:$0xf0]  ;;  %v9313_v3 = vld [vmem:[#allocation7 + $0xa98] sm:$0xf0] }
 0x19a   :  { %3244 = vmatpush.bf16.msra.mxu0 %v9012_v43  ;;  %v9300_v43 = vor.u32 %v11835_v30, %v9297_v34  ;;  %v11859_v40 = vld [vmem:[#allocation7 + $0xb34] sm:$0xf] }
 0x19b   :  { %3257 = vmatpush.bf16.msra.mxu1 %v9076_v10  ;;  %v9364_v10 = vor.u32 %v11851_v37, %v9361_v42  ;;  %v9329_v37 = vld [vmem:[#allocation7 + $0xab8] sm:$0xf0]  ;;  %v11875_v42 = vld [vmem:[#allocation7 + $0xbb4] sm:$0xf] }
 0x19c   :  { %3270 = vmatpush.bf16.msra.mxu2 %v9140_v50  ;;  %v9428_v50 = vor.u32 %v11867_v45, %v9425_v46  ;;  %v9457_v45 = vld [vmem:[#allocation7 + $0xbb8] sm:$0xf0]  ;;  %v11855_v14 = vld [vmem:[#allocation7 + $0xb14] sm:$0xf] }
 0x19d   :  { %3283 = vmatpush.bf16.msra.mxu3 %v9204_v60  ;;  %v9492_v60 = vor.u32 %v11883_v52, %v9489_v53  ;;  %v11825_v53 = vld [vmem:[#allocation7 + $0xa24] sm:$0xf] }
 0x19e   :  { %3245 = vmatpush.bf16.msra.mxu0 %v9004_v0  ;;  %v9281_v0 = vld [vmem:[#allocation7 + $0xa58] sm:$0xf0] }
 0x19f   :  { %3258 = vmatpush.bf16.msra.mxu1 %v9068_v15  ;;  %v9484_v15 = vor.u32 %v11881_v63, %v9481_v1  ;;  %v9284_v8 = vor.u32 %v11831_v6, %v9281_v0  ;;  %v11823_v6 = vld [vmem:[#allocation7 + $0xa14] sm:$0xf]  ;;  %v9249_v0 = vld [vmem:[#allocation7 + $0xa18] sm:$0xf0] }
 0x1a0   :  { %3271 = vmatpush.bf16.msra.mxu2 %v9132_v12  ;;  %v9345_v12 = vld [vmem:[#allocation7 + $0xad8] sm:$0xf0] }
 0x1a1   :  { %3284 = vmatpush.bf16.msra.mxu3 %v9196_v16  ;;  %v9473_v16 = vld [vmem:[#allocation7 + $0xbd8] sm:$0xf0]  ;;  %v9348_v31 = vor.u32 %v11847_v9, %v9345_v12  ;;  %v11839_v9 = vld [vmem:[#allocation7 + $0xa94] sm:$0xf]  ;;  %v9452_v12 = vor.u32 %v11873_v61, %v9449_v62 }
 0x1a2   :  { %3246 = vmatpush.bf16.msra.mxu0 %v8996_v23  ;;  %v12504_v23 = vld [vmem:[#allocation8] sm:$0x3]  ;;  %v9476_v27 = vor.u32 %v11879_v7, %v9473_v16  ;;  %v9377_v7 = vld [vmem:[#allocation7 + $0xb18] sm:$0xf0]  ;;  %v11871_v16 = vld [vmem:[#allocation7 + $0xb94] sm:$0xf] }
 0x1a3   :  { %3259 = vmatpush.bf16.msra.mxu1 %v9060_v35  ;;  %v797_v24 = vperm.slane %v12504_v23, 1  ;;  %v11861_v35 = vld [vmem:[#allocation7 + $0xb44] sm:$0xf]  ;;  %v11892_v61 = vld [vmem:[#allocation10 + $0x34] sm:$0xf0] }
 0x1a4   :  { %3272 = vmatpush.bf16.msra.mxu2 %v9124_v25  ;;  %v11877_v25 = vld [vmem:[#allocation7 + $0xbc4] sm:$0xf] }
 0x1a5   :  { %3285 = vmatpush.bf16.msra.mxu3 %v9188_v39  ;;  %v9468_v34 = vor.u32 %v11877_v25, %v9465_v36  ;;  %v11837_v23 = vld [vmem:[#allocation7 + $0xa84] sm:$0xf] }
 0x1a6   :  { %3247 = vmatpush.bf16.msra.mxu0 %v8988_v41  ;;  %v3041_v26 = vpop.f32.mrf.mxu0  ;;  %v9393_v41 = vld [vmem:[#allocation7 + $0xb38] sm:$0xf0]  ;;  %v11869_v25 = vld [vmem:[#allocation7 + $0xb84] sm:$0xf] }
 0x1a7   :  { %3260 = vmatpush.bf16.msra.mxu1 %v9052_v47  ;;  %v3042_v29 = vadd.f32 %v3041_v26, %v797_v24  ;;  %v3054_v30 = vpop.f32.mrf.mxu1  ;;  %v9268_v47 = vor.u32 %v11827_v33, %v9265_v28  ;;  %v9396_v52 = vor.u32 %v11859_v40, %v9393_v41  ;;  %v9305_v24 = vld [vmem:[#allocation7 + $0xa88] sm:$0xf0]  ;;  %v9551_v26 = vld [vmem:[#allocation10 + $0x70] sm:$0xf]  ;;  %v11899_v33 = vld [vmem:[#allocation10 + $0x74] sm:$0xf] }
 0x1a8   :  { %3273 = vmatpush.bf16.msra.mxu2 %v9116_v49  ;;  %v9332_v49 = vor.u32 %v11843_v38, %v9329_v37  ;;  %v9553_v28 = vld [vmem:[#allocation10 + $0x78] sm:$0xf0]  ;;  %v9308_v38 = vor.u32 %v11837_v23, %v9305_v24  ;;  %v9543_v40 = vld [vmem:[#allocation10 + $0x60] sm:$0xf]  ;;  %v11898_v41 = vld [vmem:[#allocation10 + $0x64] sm:$0xf0] }
 0x1a9   :  { %3286 = vmatpush.bf16.msra.mxu3 %v9180_v54  ;;  %3248 = vmatmul.bf16.vlgmr.msra.gmra.mxu0 %v13154_v44  ;;  %v9273_v44 = vld [vmem:[#allocation7 + $0xa48] sm:$0xf0]  ;;  %v3055_v46 = vadd.f32 %v3054_v30, %v3042_v29  ;;  %v9556_v37 = vor.u32 %v11899_v33, %v9553_v28 }
 0x1aa   :  { %3292 = vmatpush.bf16.msrb.mxu0 %v9300_v43  ;;  %3261 = vmatmul.bf16.vlgmr.msra.gmra.mxu1 %v13158_v51  ;;  %v9401_v51 = vld [vmem:[#allocation7 + $0xb48] sm:$0xf0]  ;;  %v11841_v43 = vld [vmem:[#allocation7 + $0xaa4] sm:$0xf] }
 0x1ab   :  { %3305 = vmatpush.bf16.msrb.mxu1 %v9364_v10  ;;  %3274 = vmatmul.bf16.vlgmr.msra.gmra.mxu2 %v13156_v48  ;;  %v9337_v48 = vld [vmem:[#allocation7 + $0xac8] sm:$0xf0]  ;;  %v9404_v39 = vor.u32 %v11861_v35, %v9401_v51  ;;  %v11853_v35 = vld [vmem:[#allocation7 + $0xb04] sm:$0xf] }
 0x1ac   :  { %3318 = vmatpush.bf16.msrb.mxu2 %v9428_v50  ;;  %3287 = vmatmul.bf16.vlgmr.msra.gmra.mxu3 %v13160_v55  ;;  %v9276_v55 = vor.u32 %v11829_v19, %v9273_v44  ;;  %v9340_v32 = vor.u32 %v11845_v21, %v9337_v48  ;;  %v9257_v54 = vld [vmem:[#allocation7 + $0xa28] sm:$0xf0]  ;;  %v9460_v50 = vor.u32 %v11875_v42, %v9457_v45  ;;  %v11897_v42 = vld [vmem:[#allocation10 + $0x64] sm:$0xf] }
 0x1ad   :  { %3331 = vmatpush.bf16.msrb.mxu3 %v9492_v60  ;;  %v9260_v63 = vor.u32 %v11825_v53, %v9257_v54  ;;  %v9252_v19 = vor.u32 %v11823_v6, %v9249_v0  ;;  %v9380_v44 = vor.u32 %v11855_v14, %v9377_v7  ;;  %v9241_v21 = vld [vmem:[#allocation7 + $0xa08] sm:$0xf0]  ;;  %v11895_v53 = vld [vmem:[#allocation10 + $0x54] sm:$0xf]  ;;  %v9537_v54 = vld [vmem:[#allocation10 + $0x58] sm:$0xf0] }
 0x1ae   :  { %3293 = vmatpush.bf16.msrb.mxu0 %v9292_v2  ;;  %v3067_v10 = vpop.f32.mrf.mxu2  ;;  %v3043_v2 = vpop.f32.mrf.mxu0  ;;  %v9369_v51 = vld [vmem:[#allocation7 + $0xb08] sm:$0xf0]  ;;  %v9511_v6 = vld [vmem:[#allocation10 + $0x20] sm:$0xf] }
 0x1af   :  { %3306 = vmatpush.bf16.msrb.mxu1 %v9356_v4  ;;  %v3068_v60 = vadd.f32 %v3067_v10, %v3055_v46  ;;  %v3080_v59 = vpop.f32.mrf.mxu3  ;;  %v9324_v4 = vor.u32 %v11841_v43, %v9321_v56  ;;  %v9372_v29 = vor.u32 %v11853_v35, %v9369_v51  ;;  %v9545_v45 = vld [vmem:[#allocation10 + $0x68] sm:$0xf0]  ;;  %v9544_v46 = vor.u32 %v11898_v41, %v9543_v40  ;;  %v11894_v56 = vld [vmem:[#allocation10 + $0x44] sm:$0xf0]  ;;  %v11885_v51 = vld [vmem:[#allocation10 + $0x4] sm:$0xf] }
 0x1b0   :  { %3319 = vmatpush.bf16.msrb.mxu2 %v9420_v5  ;;  %v9388_v5 = vor.u32 %v11857_v57, %v9385_v58  ;;  %v9540_v10 = vor.u32 %v11895_v53, %v9537_v54  ;;  %v11893_v57 = vld [vmem:[#allocation10 + $0x44] sm:$0xf]  ;;  %v9529_v58 = vld [vmem:[#allocation10 + $0x48] sm:$0xf0]  ;;  %v11890_v0 = vld [vmem:[#allocation10 + $0x24] sm:$0xf0] }
 0x1b1   :  { %3332 = vmatpush.bf16.msrb.mxu3 %v9484_v15  ;;  %v13212_v1 = vadd.f32 %v3080_v59, %v3068_v60  ;;  %v3056_v15 = vpop.f32.mrf.mxu1  ;;  %v9532_v59 = vor.u32 %v11893_v57, %v9529_v58  ;;  %v9512_v7 = vor.u32 %v11890_v0, %v9511_v6  ;;  %v9615_v54 = vld [vmem:[#allocation10 + $0xf0] sm:$0xf]  ;;  %v9617_v57 = vld [vmem:[#allocation10 + $0xf8] sm:$0xf0]  ;;  %v9607_v58 = vld [vmem:[#allocation10 + $0xe0] sm:$0xf] }
 0x1b2   :  { %3294 = vmatpush.bf16.msrb.mxu0 %v9284_v8  ;;  %v9441_v8 = vld [vmem:[#allocation7 + $0xb98] sm:$0xf0]  ;;  %v11889_v15 = vld [vmem:[#allocation10 + $0x24] sm:$0xf] }
 0x1b3   :  { %3307 = vmatpush.bf16.msrb.mxu1 %v9348_v31  ;;  %v11821_v31 = vld [vmem:[#allocation7 + $0xa04] sm:$0xf]  ;;  %v9444_v48 = vor.u32 %v11871_v16, %v9441_v8 }
 0x1b4   :  { %3320 = vmatpush.bf16.msrb.mxu2 %v9412_v20  ;;  %v9316_v20 = vor.u32 %v11839_v9, %v9313_v3 }
 0x1b5   :  { %3333 = vmatpush.bf16.msrb.mxu3 %v9476_v27 }
 0x1b6   :  { %3295 = vmatpush.bf16.msrb.mxu0 %v9276_v55  ;;  %v3069_v27 = vpop.f32.mrf.mxu2  ;;  %v9433_v55 = vld [vmem:[#allocation7 + $0xb88] sm:$0xf0] }
 0x1b7   :  { %3308 = vmatpush.bf16.msrb.mxu1 %v9340_v32  ;;  %v3082_v36 = vpop.f32.mrf.mxu3  ;;  %v11900_v32 = vld [vmem:[#allocation10 + $0x74] sm:$0xf0]  ;;  %v9436_v30 = vor.u32 %v11869_v25, %v9433_v55  ;;  %v9495_v27 = vld [vmem:[#allocation10] sm:$0xf]  ;;  %v9497_v25 = vld [vmem:[#allocation10 + $0x8] sm:$0xf0] }
 0x1b8   :  { %3321 = vmatpush.bf16.msrb.mxu2 %v9404_v39  ;;  %v9244_v39 = vor.u32 %v11821_v31, %v9241_v21  ;;  %v11888_v31 = vld [vmem:[#allocation10 + $0x14] sm:$0xf0]  ;;  %v9505_v21 = vld [vmem:[#allocation10 + $0x18] sm:$0xf0] }
 0x1b9   :  { %3334 = vmatpush.bf16.msrb.mxu3 %v9468_v34  ;;  %v9552_v34 = vor.u32 %v11900_v32, %v9551_v26  ;;  %v3344_v26 = vmax.f32 %v13206_v11, 0.0  ;;  %v9500_v32 = vor.u32 %v11885_v51, %v9497_v25  ;;  %v9567_v25 = vld [vmem:[#allocation10 + $0x90] sm:$0xf] }
 0x1ba   :  { %3296 = vmatpush.bf16.msrb.mxu0 %v9268_v47  ;;  %v9548_v47 = vor.u32 %v11897_v42, %v9545_v45 }
 0x1bb   :  { %3309 = vmatpush.bf16.msrb.mxu1 %v9332_v49  ;;  %v9535_v49 = vld [vmem:[#allocation10 + $0x50] sm:$0xf] }
 0x1bc   :  { %3322 = vmatpush.bf16.msrb.mxu2 %v9396_v52  ;;  %v11896_v52 = vld [vmem:[#allocation10 + $0x54] sm:$0xf0] }
 0x1bd   :  { %3335 = vmatpush.bf16.msrb.mxu3 %v9460_v50  ;;  %v9536_v43 = vor.u32 %v11896_v52, %v9535_v49  ;;  %v9527_v50 = vld [vmem:[#allocation10 + $0x40] sm:$0xf] }
 0x1be   :  { %3297 = vmatpush.bf16.msrb.mxu0 %v9260_v63  ;;  %v11891_v63 = vld [vmem:[#allocation10 + $0x34] sm:$0xf] }
 0x1bf   :  { %3310 = vmatpush.bf16.msrb.mxu1 %v9324_v4 }
 0x1c0   :  { %3323 = vmatpush.bf16.msrb.mxu2 %v9388_v5 }
 0x1c1   :  { %3336 = vmatpush.bf16.msrb.mxu3 %v9452_v12  ;;  %v9513_v12 = vld [vmem:[#allocation10 + $0x28] sm:$0xf0] }
 0x1c2   :  { %3298 = vmatpush.bf16.msrb.mxu0 %v9252_v19  ;;  %v9503_v19 = vld [vmem:[#allocation10 + $0x10] sm:$0xf] }
 0x1c3   :  { %3311 = vmatpush.bf16.msrb.mxu1 %v9316_v20  ;;  %v9504_v23 = vor.u32 %v11888_v31, %v9503_v19  ;;  %v9585_v31 = vld [vmem:[#allocation10 + $0xb8] sm:$0xf0] }
 0x1c4   :  { %3324 = vmatpush.bf16.msrb.mxu2 %v9380_v44  ;;  %v11887_v44 = vld [vmem:[#allocation10 + $0x14] sm:$0xf] }
 0x1c5   :  { %3337 = vmatpush.bf16.msrb.mxu3 %v9444_v48  ;;  %v9508_v24 = vor.u32 %v11887_v44, %v9505_v21  ;;  %v11886_v48 = vld [vmem:[#allocation10 + $0x4] sm:$0xf0]  ;;  %v9575_v21 = vld [vmem:[#allocation10 + $0xa0] sm:$0xf] }
 0x1c6   :  { %3299 = vmatpush.bf16.msrb.mxu0 %v9244_v39  ;;  %v3093_v60 = vpop.f32.mrf.mxu0  ;;  %v9496_v55 = vor.u32 %v11886_v48, %v9495_v27  ;;  %v3346_v39 = vpack.c.bf16 %v3344_v26, %v3344_v26 }
 0x1c7   :  { %3312 = vmatpush.bf16.msrb.mxu1 %v9308_v38  ;;  %v3106_v62 = vpop.f32.mrf.mxu1 }
 0x1c8   :  { %3325 = vmatpush.bf16.msrb.mxu2 %v9372_v29 }
 0x1c9   :  { %3338 = vmatpush.bf16.msrb.mxu3 %v9436_v30  ;;  %3300 = vmatmul.bf16.vlgmr.msrb.gmra.mxu0 %v13166_v13  ;;  %v9528_v13 = vor.u32 %v11894_v56, %v9527_v50 }
 0x1ca   :  { %3546 = vmatpush.bf16.msra.mxu0 %v9552_v34  ;;  %3313 = vmatmul.bf16.vlgmr.msrb.gmra.mxu1 %v13170_v18  ;;  %v9519_v18 = vld [vmem:[#allocation10 + $0x30] sm:$0xf] }
 0x1cb   :  { %3326 = vmatmul.bf16.vlgmr.msrb.gmra.mxu2 %v13168_v17  ;;  %v3094_v17 = vadd.f32 %v3093_v60, %v13212_v1  ;;  %v9520_v4 = vor.u32 %v11892_v61, %v9519_v18  ;;  %v9516_v1 = vor.u32 %v11889_v15, %v9513_v12  ;;  %v9609_v18 = vld [vmem:[#allocation10 + $0xe8] sm:$0xf0]  ;;  %v11910_v15 = vld [vmem:[#allocation10 + $0xc4] sm:$0xf0]  ;;  %v11909_v12 = vld [vmem:[#allocation10 + $0xc4] sm:$0xf] }
 0x1cc   :  { %3572 = vmatpush.bf16.msra.mxu2 %v9556_v37  ;;  %3339 = vmatmul.bf16.vlgmr.msrb.gmra.mxu3 %v13172_v22  ;;  %v9521_v22 = vld [vmem:[#allocation10 + $0x38] sm:$0xf0] }
 0x1cd   :  { %v3107_v2 = vadd.f32 %v3106_v62, %v3094_v17  ;;  %v9524_v5 = vor.u32 %v11891_v63, %v9521_v22  ;;  %v9599_v62 = vld [vmem:[#allocation10 + $0xd0] sm:$0xf]  ;;  %v11912_v63 = vld [vmem:[#allocation10 + $0xd4] sm:$0xf0]  ;;  %v11911_v22 = vld [vmem:[#allocation10 + $0xd4] sm:$0xf] }
 0x1ce   :  { %3547 = vmatpush.bf16.msra.mxu0 %v9544_v46  ;;  %v3119_v9 = vpop.f32.mrf.mxu2  ;;  %v3095_v8 = vpop.f32.mrf.mxu0 }
 0x1cf   :  { %v3120_v3 = vadd.f32 %v3119_v9, %v3107_v2  ;;  %v3132_v14 = vpop.f32.mrf.mxu3  ;;  %v3108_v20 = vpop.f32.mrf.mxu1  ;;  %v9591_v9 = vld [vmem:[#allocation10 + $0xc0] sm:$0xf]  ;;  %v11908_v8 = vld [vmem:[#allocation10 + $0xb4] sm:$0xf0] }
 0x1d0   :  { %3573 = vmatpush.bf16.msra.mxu2 %v9548_v47 }
 0x1d1   :  { %v3133_v16 = vadd.f32 %v3132_v14, %v3120_v3  ;;  %v9593_v3 = vld [vmem:[#allocation10 + $0xc8] sm:$0xf0]  ;;  %v9592_v14 = vor.u32 %v11910_v15, %v9591_v9 }
 0x1d2   :  { %3548 = vmatpush.bf16.msra.mxu0 %v9536_v43  ;;  %v11916_v43 = vld [vmem:[#allocation10 + $0xf4] sm:$0xf0]  ;;  %v11930_v9 = vld [vmem:[#allocation13 + $0x64] sm:$0xf0] }
 0x1d3   :  { %v9616_v56 = vor.u32 %v11916_v43, %v9615_v54 }
 0x1d4   :  { %3574 = vmatpush.bf16.msra.mxu2 %v9540_v10  ;;  %v11915_v10 = vld [vmem:[#allocation10 + $0xf4] sm:$0xf] }
 0x1d5   :  { %v9620_v60 = vor.u32 %v11915_v10, %v9617_v57  ;;  %3559 = vmatpush.bf16.msra.mxu1 %v9616_v56 }
 0x1d6   :  { %3549 = vmatpush.bf16.msra.mxu0 %v9528_v13  ;;  %v3121_v35 = vpop.f32.mrf.mxu2  ;;  %v11914_v13 = vld [vmem:[#allocation10 + $0xe4] sm:$0xf0] }
 0x1d7   :  { %v3134_v36 = vpop.f32.mrf.mxu3  ;;  %v9608_v61 = vor.u32 %v11914_v13, %v9607_v58  ;;  %3585 = vmatpush.bf16.msra.mxu3 %v9620_v60  ;;  %v9577_v35 = vld [vmem:[#allocation10 + $0xa8] sm:$0xf0] }
 0x1d8   :  { %3575 = vmatpush.bf16.msra.mxu2 %v9532_v59  ;;  %v11913_v59 = vld [vmem:[#allocation10 + $0xe4] sm:$0xf]  ;;  %v11904_v36 = vld [vmem:[#allocation10 + $0x94] sm:$0xf0] }
 0x1d9   :  { %v9612_v17 = vor.u32 %v11913_v59, %v9609_v18  ;;  %3560 = vmatpush.bf16.msra.mxu1 %v9608_v61  ;;  %v9568_v26 = vor.u32 %v11904_v36, %v9567_v25  ;;  %v11945_v36 = vld [vmem:[#allocation13 + $0xe4] sm:$0xf] }
 0x1da   :  { %3550 = vmatpush.bf16.msra.mxu0 %v9520_v4  ;;  %v9600_v4 = vor.u32 %v11912_v63, %v9599_v62 }
 0x1db   :  { %3586 = vmatpush.bf16.msra.mxu3 %v9612_v17 }
 0x1dc   :  { %3576 = vmatpush.bf16.msra.mxu2 %v9524_v5  ;;  %v9601_v5 = vld [vmem:[#allocation10 + $0xd8] sm:$0xf0] }
 0x1dd   :  { %v9604_v0 = vor.u32 %v11911_v22, %v9601_v5  ;;  %3561 = vmatpush.bf16.msra.mxu1 %v9600_v4  ;;  %v11931_v4 = vld [vmem:[#allocation13 + $0x74] sm:$0xf] }
 0x1de   :  { %3551 = vmatpush.bf16.msra.mxu0 %v9512_v7  ;;  %v9596_v7 = vor.u32 %v11909_v12, %v9593_v3  ;;  %v11929_v3 = vld [vmem:[#allocation13 + $0x64] sm:$0xf] }
 0x1df   :  { %3587 = vmatpush.bf16.msra.mxu3 %v9604_v0  ;;  %v9671_v0 = vld [vmem:[#allocation13 + $0x60] sm:$0xf] }
 0x1e0   :  { %3577 = vmatpush.bf16.msra.mxu2 %v9516_v1  ;;  %v11907_v1 = vld [vmem:[#allocation10 + $0xb4] sm:$0xf] }
 0x1e1   :  { %3562 = vmatpush.bf16.msra.mxu1 %v9592_v14  ;;  %v9588_v20 = vor.u32 %v11907_v1, %v9585_v31  ;;  %v9673_v14 = vld [vmem:[#allocation13 + $0x68] sm:$0xf0]  ;;  %v11948_v1 = vld [vmem:[#allocation13 + $0xf4] sm:$0xf0]  ;;  %v9745_v31 = vld [vmem:[#allocation13 + $0xf8] sm:$0xf0] }
 0x1e2   :  { %3552 = vmatpush.bf16.msra.mxu0 %v9504_v23  ;;  %v11906_v23 = vld [vmem:[#allocation10 + $0xa4] sm:$0xf0] }
 0x1e3   :  { %3588 = vmatpush.bf16.msra.mxu3 %v9596_v7  ;;  %v9576_v48 = vor.u32 %v11906_v23, %v9575_v21  ;;  %v9743_v7 = vld [vmem:[#allocation13 + $0xf0] sm:$0xf] }
 0x1e4   :  { %3578 = vmatpush.bf16.msra.mxu2 %v9508_v24  ;;  %v11905_v24 = vld [vmem:[#allocation10 + $0xa4] sm:$0xf]  ;;  %v9663_v23 = vld [vmem:[#allocation13 + $0x50] sm:$0xf] }
 0x1e5   :  { %v9580_v51 = vor.u32 %v11905_v24, %v9577_v35  ;;  %v11928_v24 = vld [vmem:[#allocation13 + $0x54] sm:$0xf0]  ;;  %v9735_v35 = vld [vmem:[#allocation13 + $0xe0] sm:$0xf] }
 0x1e6   :  { %3553 = vmatpush.bf16.msra.mxu0 %v9496_v55  ;;  %v3145_v33 = vpop.f32.mrf.mxu0  ;;  %v11903_v55 = vld [vmem:[#allocation10 + $0x94] sm:$0xf] }
 0x1e7   :  { %v3146_v28 = vadd.f32 %v3145_v33, %v3133_v16  ;;  %v3158_v38 = vpop.f32.mrf.mxu1  ;;  %v9583_v16 = vld [vmem:[#allocation10 + $0xb0] sm:$0xf]  ;;  %3589 = vmatpush.bf16.msra.mxu3 %v9588_v20  ;;  %v9676_v20 = vor.u32 %v11929_v3, %v9673_v14  ;;  %v11920_v3 = vld [vmem:[#allocation13 + $0x14] sm:$0xf0]  ;;  %v11919_v14 = vld [vmem:[#allocation13 + $0x14] sm:$0xf] }
 0x1e8   :  { %3579 = vmatpush.bf16.msra.mxu2 %v9500_v32  ;;  %v9584_v19 = vor.u32 %v11908_v8, %v9583_v16  ;;  %v9569_v32 = vld [vmem:[#allocation10 + $0x98] sm:$0xf0]  ;;  %v9672_v8 = vor.u32 %v11930_v9, %v9671_v0 }
 0x1e9   :  { %3554 = vmatmul.bf16.vlgmr.msra.gmra.mxu0 %v3346_v39  ;;  %v3159_v29 = vadd.f32 %v3158_v38, %v3146_v28 }
 0x1ea   :  { %3563 = vmatpush.bf16.msra.mxu1 %v9584_v19  ;;  %v11947_v19 = vld [vmem:[#allocation13 + $0xf4] sm:$0xf] }
 0x1eb   :  { %3580 = vmatmul.bf16.vlgmr.msra.gmra.mxu2 %v3346_v39  ;;  %3590 = vmatpush.bf16.msra.mxu3 %v9580_v51  ;;  %v9572_v39 = vor.u32 %v11903_v55, %v9569_v32  ;;  %v9748_v21 = vor.u32 %v11947_v19, %v9745_v31  ;;  %v11946_v51 = vld [vmem:[#allocation13 + $0xe4] sm:$0xf0]  ;;  %v9737_v55 = vld [vmem:[#allocation13 + $0xe8] sm:$0xf0]  ;;  %v9655_v32 = vld [vmem:[#allocation13 + $0x40] sm:$0xf] }
 0x1ec   :  { %v9736_v25 = vor.u32 %v11946_v51, %v9735_v35  ;;  %v11938_v19 = vld [vmem:[#allocation13 + $0xa4] sm:$0xf0]  ;;  %v11937_v31 = vld [vmem:[#allocation13 + $0xa4] sm:$0xf]  ;;  %v9625_v35 = vld [vmem:[#allocation13 + $0x8] sm:$0xf0] }
 0x1ee   :  { %v3171_v30 = vpop.f32.mrf.mxu2  ;;  %v3147_v40 = vpop.f32.mrf.mxu0  ;;  %3564 = vmatpush.bf16.msra.mxu1 %v9576_v48  ;;  %v9665_v48 = vld [vmem:[#allocation13 + $0x58] sm:$0xf0] }
 0x1ef   :  { %v3172_v34 = vadd.f32 %v3171_v30, %v3159_v29  ;;  %v3184_v37 = vpop.f32.mrf.mxu3  ;;  %v3160_v41 = vpop.f32.mrf.mxu1  ;;  %3591 = vmatpush.bf16.msra.mxu3 %v9572_v39  ;;  %v9559_v30 = vld [vmem:[#allocation10 + $0x80] sm:$0xf]  ;;  %v11926_v39 = vld [vmem:[#allocation13 + $0x44] sm:$0xf0] }
 0x1f1   :  { %v13220_v42 = vadd.f32 %v3184_v37, %v3172_v34  ;;  %v11902_v34 = vld [vmem:[#allocation10 + $0x84] sm:$0xf0]  ;;  %v11901_v37 = vld [vmem:[#allocation10 + $0x84] sm:$0xf] }
 0x1f2   :  { %3565 = vmatpush.bf16.msra.mxu1 %v9568_v26  ;;  %v9560_v41 = vor.u32 %v11902_v34, %v9559_v30  ;;  %v9740_v26 = vor.u32 %v11945_v36, %v9737_v55  ;;  %v11943_v30 = vld [vmem:[#allocation13 + $0xd4] sm:$0xf]  ;;  %v11925_v34 = vld [vmem:[#allocation13 + $0x44] sm:$0xf]  ;;  %v11936_v36 = vld [vmem:[#allocation13 + $0x94] sm:$0xf0] }
 0x1f3   :  { %v11935_v55 = vld [vmem:[#allocation13 + $0x94] sm:$0xf] }
 0x1f6   :  { %v3173_v45 = vpop.f32.mrf.mxu2  ;;  %3566 = vmatpush.bf16.msra.mxu1 %v9560_v41 }
 0x1f7   :  { %v3186_v11 = vpop.f32.mrf.mxu3  ;;  %v9561_v45 = vld [vmem:[#allocation10 + $0x88] sm:$0xf0] }
 0x1f8   :  { %v9564_v11 = vor.u32 %v11901_v37, %v9561_v45  ;;  %v9657_v37 = vld [vmem:[#allocation13 + $0x48] sm:$0xf0] }
 0x1fa   :  { %3592 = vmatpush.bf16.msra.mxu3 %v9564_v11  ;;  %v9719_v11 = vld [vmem:[#allocation13 + $0xc0] sm:$0xf] }
 0x1fe   :  { %3839 = vmatpush.bf16.msrb.mxu3 %v9748_v21 }
 0x202   :  { %3840 = vmatpush.bf16.msrb.mxu3 %v9740_v26 }
 0x206   :  { %v13222_v46 = vpop.f32.mrf.mxu0 }
 0x207   :  { %v13224_v47 = vpop.f32.mrf.mxu1  ;;  %v3198_v33 = vadd.f32 %v13222_v46, %v13220_v42 }
 0x20e   :  { %v13226_v49 = vpop.f32.mrf.mxu2  ;;  %v3199_v53 = vpop.f32.mrf.mxu0 }
 0x20f   :  { %v13228_v52 = vpop.f32.mrf.mxu3  ;;  %v3212_v50 = vpop.f32.mrf.mxu1  ;;  %v3211_v53 = vadd.f32 %v13224_v47, %v3198_v33  ;;  %v9664_v33 = vor.u32 %v11928_v24, %v9663_v23  ;;  %v9623_v23 = vld [vmem:[#allocation13] sm:$0xf]  ;;  %v11918_v24 = vld [vmem:[#allocation13 + $0x4] sm:$0xf0] }
 0x211   :  { %v3224_v54 = vadd.f32 %v13226_v49, %v3211_v53  ;;  %v9679_v49 = vld [vmem:[#allocation13 + $0x70] sm:$0xf]  ;;  %v11942_v53 = vld [vmem:[#allocation13 + $0xc4] sm:$0xf0] }
 0x213   :  { %v3237_v46 = vadd.f32 %v13228_v52, %v3224_v54  ;;  %v11941_v54 = vld [vmem:[#allocation13 + $0xc4] sm:$0xf] }
 0x216   :  { %v3225_v2 = vpop.f32.mrf.mxu2 }
 0x217   :  { %v3238_v6 = vpop.f32.mrf.mxu3  ;;  %v11932_v2 = vld [vmem:[#allocation13 + $0x74] sm:$0xf0] }
 0x218   :  { %v9680_v52 = vor.u32 %v11932_v2, %v9679_v49  ;;  %v9681_v6 = vld [vmem:[#allocation13 + $0x78] sm:$0xf0]  ;;  %v11921_v49 = vld [vmem:[#allocation13 + $0x24] sm:$0xf]  ;;  %v9641_v2 = vld [vmem:[#allocation13 + $0x28] sm:$0xf0] }
 0x219   :  { %v9684_v12 = vor.u32 %v11931_v4, %v9681_v6  ;;  %v9644_v6 = vor.u32 %v11921_v49, %v9641_v2 }
 0x21a   :  { %3800 = vmatpush.bf16.msrb.mxu0 %v9680_v52 }
 0x21b   :  { %3826 = vmatpush.bf16.msrb.mxu2 %v9684_v12  ;;  %v9631_v12 = vld [vmem:[#allocation13 + $0x10] sm:$0xf] }
 0x21e   :  { %3801 = vmatpush.bf16.msrb.mxu0 %v9672_v8 }
 0x21f   :  { %3827 = vmatpush.bf16.msrb.mxu2 %v9676_v20 }
 0x222   :  { %3802 = vmatpush.bf16.msrb.mxu0 %v9664_v33  ;;  %v9687_v33 = vld [vmem:[#allocation13 + $0x80] sm:$0xf] }
 0x226   :  { %v3249_v44 = vpop.f32.mrf.mxu0 }
 0x227   :  { %v3262_v27 = vpop.f32.mrf.mxu1  ;;  %v3250_v10 = vadd.f32 %v3249_v44, %v3237_v46  ;;  %v9744_v44 = vor.u32 %v11948_v1, %v9743_v7  ;;  %v9660_v46 = vor.u32 %v11925_v34, %v9657_v37  ;;  %v9632_v7 = vor.u32 %v11920_v3, %v9631_v12  ;;  %v9703_v1 = vld [vmem:[#allocation13 + $0xa0] sm:$0xf]  ;;  %v9807_v37 = vld [vmem:[#allocation16 + $0x70] sm:$0xf] }
 0x228   :  { %v9704_v20 = vor.u32 %v11938_v19, %v9703_v1  ;;  %v9783_v3 = vld [vmem:[#allocation16 + $0x40] sm:$0xf]  ;;  %v11956_v1 = vld [vmem:[#allocation16 + $0x34] sm:$0xf0]  ;;  %v11955_v19 = vld [vmem:[#allocation16 + $0x34] sm:$0xf] }
 0x229   :  { %v3263_v50 = vadd.f32 %v3262_v27, %v3250_v10  ;;  %v11927_v27 = vld [vmem:[#allocation13 + $0x54] sm:$0xf]  ;;  %3813 = vmatpush.bf16.msrb.mxu1 %v9744_v44  ;;  %v9647_v10 = vld [vmem:[#allocation13 + $0x30] sm:$0xf]  ;;  %v9705_v44 = vld [vmem:[#allocation13 + $0xa8] sm:$0xf0] }
 0x22a   :  { %v9708_v21 = vor.u32 %v11937_v31, %v9705_v44 }
 0x22d   :  { %3814 = vmatpush.bf16.msrb.mxu1 %v9736_v25  ;;  %v9695_v25 = vld [vmem:[#allocation13 + $0x90] sm:$0xf] }
 0x22e   :  { %v3275_v28 = vpop.f32.mrf.mxu2  ;;  %v3251_v29 = vpop.f32.mrf.mxu0  ;;  %v9696_v26 = vor.u32 %v11936_v36, %v9695_v25  ;;  %v11952_v25 = vld [vmem:[#allocation16 + $0x14] sm:$0xf0]  ;;  %v11951_v36 = vld [vmem:[#allocation16 + $0x14] sm:$0xf] }
 0x22f   :  { %v3288_v38 = vpop.f32.mrf.mxu3  ;;  %v3264_v40 = vpop.f32.mrf.mxu1  ;;  %v3276_v56 = vadd.f32 %v3275_v28, %v3263_v50  ;;  %v9668_v28 = vor.u32 %v11927_v27, %v9665_v48  ;;  %v11944_v29 = vld [vmem:[#allocation13 + $0xd4] sm:$0xf0]  ;;  %v11917_v27 = vld [vmem:[#allocation13 + $0x4] sm:$0xf]  ;;  %v9624_v48 = vor.u32 %v11918_v24, %v9623_v23  ;;  %v11954_v23 = vld [vmem:[#allocation16 + $0x24] sm:$0xf0] }
 0x230   :  { %v9729_v40 = vld [vmem:[#allocation13 + $0xd8] sm:$0xf0]  ;;  %v11924_v50 = vld [vmem:[#allocation13 + $0x34] sm:$0xf0]  ;;  %v9628_v51 = vor.u32 %v11917_v27, %v9625_v35  ;;  %v11953_v24 = vld [vmem:[#allocation16 + $0x24] sm:$0xf] }
 0x231   :  { %v3289_v57 = vadd.f32 %v3288_v38, %v3276_v56  ;;  %v9727_v38 = vld [vmem:[#allocation13 + $0xd0] sm:$0xf]  ;;  %v9732_v45 = vor.u32 %v11943_v30, %v9729_v40  ;;  %3828 = vmatpush.bf16.msrb.mxu2 %v9668_v28  ;;  %v11923_v56 = vld [vmem:[#allocation13 + $0x34] sm:$0xf]  ;;  %v11934_v28 = vld [vmem:[#allocation13 + $0x84] sm:$0xf0] }
 0x232   :  { %v9728_v41 = vor.u32 %v11944_v29, %v9727_v38  ;;  %v11933_v38 = vld [vmem:[#allocation13 + $0x84] sm:$0xf]  ;;  %v9688_v29 = vor.u32 %v11934_v28, %v9687_v33  ;;  %v9689_v30 = vld [vmem:[#allocation13 + $0x88] sm:$0xf0]  ;;  %v11964_v40 = vld [vmem:[#allocation16 + $0x74] sm:$0xf0] }
 0x233   :  { %3841 = vmatpush.bf16.msrb.mxu3 %v9732_v45  ;;  %v9692_v34 = vor.u32 %v11933_v38, %v9689_v30  ;;  %v9808_v45 = vor.u32 %v11964_v40, %v9807_v37  ;;  %v11950_v33 = vld [vmem:[#allocation16 + $0x4] sm:$0xf0]  ;;  %v11949_v28 = vld [vmem:[#allocation16 + $0x4] sm:$0xf]  ;;  %v11980_v37 = vld [vmem:[#allocation19 + $0x74] sm:$0xf0] }
 0x234   :  { %3815 = vmatpush.bf16.msrb.mxu1 %v9728_v41  ;;  %v11963_v41 = vld [vmem:[#allocation16 + $0x74] sm:$0xf] }
 0x235   :  { %3829 = vmatpush.bf16.msrb.mxu2 %v9660_v46  ;;  %v9801_v46 = vld [vmem:[#allocation16 + $0x68] sm:$0xf0]  ;;  %v9935_v40 = vld [vmem:[#allocation19 + $0xf0] sm:$0xf] }
 0x236   :  { %v3277_v43 = vpop.f32.mrf.mxu2 }
 0x237   :  { %v3290_v42 = vpop.f32.mrf.mxu3  ;;  %v9721_v43 = vld [vmem:[#allocation13 + $0xc8] sm:$0xf0] }
 0x238   :  { %v9656_v42 = vor.u32 %v11926_v39, %v9655_v32  ;;  %v9697_v32 = vld [vmem:[#allocation13 + $0x98] sm:$0xf0] }
 0x239   :  { %v9700_v39 = vor.u32 %v11935_v55, %v9697_v32 }
 0x23a   :  { %3803 = vmatpush.bf16.msrb.mxu0 %v9656_v42  ;;  %v11961_v42 = vld [vmem:[#allocation16 + $0x64] sm:$0xf] }
 0x246   :  { %v3301_v58 = vpop.f32.mrf.mxu0 }
 0x247   :  { %v3314_v13 = vpop.f32.mrf.mxu1  ;;  %v3302_v60 = vadd.f32 %v3301_v58, %v3289_v57  ;;  %v9649_v57 = vld [vmem:[#allocation13 + $0x38] sm:$0xf0]  ;;  %v9720_v58 = vor.u32 %v11942_v53, %v9719_v11  ;;  %v9799_v53 = vld [vmem:[#allocation16 + $0x60] sm:$0xf] }
 0x248   :  { %v9809_v11 = vld [vmem:[#allocation16 + $0x78] sm:$0xf0] }
 0x249   :  { %v3315_v59 = vadd.f32 %v3314_v13, %v3302_v60  ;;  %v9724_v13 = vor.u32 %v11941_v54, %v9721_v43  ;;  %v9711_v60 = vld [vmem:[#allocation13 + $0xb0] sm:$0xf]  ;;  %3816 = vmatpush.bf16.msrb.mxu1 %v9720_v58  ;;  %v11962_v54 = vld [vmem:[#allocation16 + $0x64] sm:$0xf0]  ;;  %v9812_v43 = vor.u32 %v11963_v41, %v9809_v11  ;;  %v11959_v58 = vld [vmem:[#allocation16 + $0x54] sm:$0xf] }
 0x24a   :  { %v11979_v11 = vld [vmem:[#allocation19 + $0x74] sm:$0xf] }
 0x24b   :  { %3842 = vmatpush.bf16.msrb.mxu3 %v9724_v13  ;;  %v9793_v13 = vld [vmem:[#allocation16 + $0x58] sm:$0xf0] }
 0x24e   :  { %v3327_v18 = vpop.f32.mrf.mxu2  ;;  %v3303_v47 = vpop.f32.mrf.mxu0 }
 0x24f   :  { %v3328_v61 = vadd.f32 %v3327_v18, %v3315_v59  ;;  %v3340_v17 = vpop.f32.mrf.mxu3  ;;  %v3316_v62 = vpop.f32.mrf.mxu1  ;;  %v11940_v59 = vld [vmem:[#allocation13 + $0xb4] sm:$0xf0]  ;;  %v11939_v18 = vld [vmem:[#allocation13 + $0xb4] sm:$0xf]  ;;  %v9652_v47 = vor.u32 %v11923_v56, %v9649_v57 }
 0x250   :  { %v9639_v62 = vld [vmem:[#allocation13 + $0x20] sm:$0xf]  ;;  %v9712_v4 = vor.u32 %v11940_v59, %v9711_v60  ;;  %v9791_v56 = vld [vmem:[#allocation16 + $0x50] sm:$0xf]  ;;  %v11960_v57 = vld [vmem:[#allocation16 + $0x54] sm:$0xf0]  ;;  %v9796_v59 = vor.u32 %v11959_v58, %v9793_v13 }
 0x251   :  { %v3341_v63 = vadd.f32 %v3340_v17, %v3328_v61  ;;  %v9713_v61 = vld [vmem:[#allocation13 + $0xb8] sm:$0xf0]  ;;  %v9648_v17 = vor.u32 %v11924_v50, %v9647_v10  ;;  %3830 = vmatpush.bf16.msrb.mxu2 %v9652_v47  ;;  %v9800_v10 = vor.u32 %v11962_v54, %v9799_v53  ;;  %v9804_v50 = vor.u32 %v11961_v42, %v9801_v46  ;;  %v9873_v53 = vld [vmem:[#allocation19 + $0x78] sm:$0xf0]  ;;  %v11995_v42 = vld [vmem:[#allocation19 + $0xf4] sm:$0xf] }
 0x252   :  { %3817 = vmatpush.bf16.msrb.mxu1 %v9712_v4  ;;  %v9792_v60 = vor.u32 %v11960_v57, %v9791_v56  ;;  %v9937_v46 = vld [vmem:[#allocation19 + $0xf8] sm:$0xf0]  ;;  %v11978_v56 = vld [vmem:[#allocation19 + $0x64] sm:$0xf0]  ;;  %v9927_v57 = vld [vmem:[#allocation19 + $0xe0] sm:$0xf] }
 0x253   :  { %v3345_v22 = vmax.f32 %v3341_v63, 0.0  ;;  %3804 = vmatpush.bf16.msrb.mxu0 %v9648_v17  ;;  %v11994_v58 = vld [vmem:[#allocation19 + $0xe4] sm:$0xf0] }
 0x255   :  { %v3347_v5 = vpack.c.bf16 %v3345_v22, %v3345_v22  ;;  %v11922_v22 = vld [vmem:[#allocation13 + $0x24] sm:$0xf0]  ;;  %3831 = vmatpush.bf16.msrb.mxu2 %v9644_v6 }
 0x256   :  { %v3329_v15 = vpop.f32.mrf.mxu2  ;;  %v9640_v52 = vor.u32 %v11922_v22, %v9639_v62  ;;  %3818 = vmatpush.bf16.msrb.mxu1 %v9704_v20  ;;  %v9777_v20 = vld [vmem:[#allocation16 + $0x38] sm:$0xf0] }
 0x257   :  { %v3342_v16 = vpop.f32.mrf.mxu3  ;;  %3567 = vmatmul.bf16.vlgmr.msra.gmra.mxu1 %v3347_v5  ;;  %3593 = vmatmul.bf16.vlgmr.msra.gmra.mxu3 %v3347_v5  ;;  %v9716_v5 = vor.u32 %v11939_v18, %v9713_v61  ;;  %v3380_v18 = vld [vmem:[#allocation11] sm:$0x3]  ;;  %v9780_v44 = vor.u32 %v11955_v19, %v9777_v20  ;;  %v9849_v19 = vld [vmem:[#allocation19 + $0x48] sm:$0xf0] }
 0x258   :  { %3805 = vmatpush.bf16.msrb.mxu0 %v9640_v52  ;;  %v9633_v16 = vld [vmem:[#allocation13 + $0x18] sm:$0xf0]  ;;  %v3382_v61 = vperm.slane %v3380_v18, 0  ;;  %v3383_v62 = vperm.slane %v3380_v18, 1  ;;  %v9865_v18 = vld [vmem:[#allocation19 + $0x68] sm:$0xf0] }
 0x259   :  { %3843 = vmatpush.bf16.msrb.mxu3 %v9716_v5  ;;  %v9636_v8 = vor.u32 %v11919_v14, %v9633_v16  ;;  %v11958_v14 = vld [vmem:[#allocation16 + $0x44] sm:$0xf0]  ;;  %v9785_v16 = vld [vmem:[#allocation16 + $0x48] sm:$0xf0] }
 0x25a   :  { %3819 = vmatpush.bf16.msrb.mxu1 %v9696_v26  ;;  %v9761_v26 = vld [vmem:[#allocation16 + $0x18] sm:$0xf0]  ;;  %v9913_v20 = vld [vmem:[#allocation19 + $0xc8] sm:$0xf0] }
 0x25b   :  { %3832 = vmatpush.bf16.msrb.mxu2 %v9636_v8  ;;  %v9764_v32 = vor.u32 %v11951_v36, %v9761_v26  ;;  %v11988_v36 = vld [vmem:[#allocation19 + $0xb4] sm:$0xf0]  ;;  %v9841_v26 = vld [vmem:[#allocation19 + $0x38] sm:$0xf0] }
 0x25c   :  { %3806 = vmatpush.bf16.msrb.mxu0 %v9632_v7  ;;  %v9784_v7 = vor.u32 %v11958_v14, %v9783_v3 }
 0x25d   :  { %3844 = vmatpush.bf16.msrb.mxu3 %v9708_v21  ;;  %v9767_v21 = vld [vmem:[#allocation16 + $0x20] sm:$0xf] }
 0x25e   :  { %3820 = vmatpush.bf16.msrb.mxu1 %v9688_v29  ;;  %v9768_v27 = vor.u32 %v11954_v23, %v9767_v21  ;;  %v9753_v29 = vld [vmem:[#allocation16 + $0x8] sm:$0xf0] }
 0x25f   :  { %3833 = vmatpush.bf16.msrb.mxu2 %v9628_v51  ;;  %v9759_v51 = vld [vmem:[#allocation16 + $0x10] sm:$0xf]  ;;  %v9756_v30 = vor.u32 %v11949_v28, %v9753_v29 }
 0x260   :  { %3807 = vmatpush.bf16.msrb.mxu0 %v9624_v48  ;;  %v9769_v48 = vld [vmem:[#allocation16 + $0x28] sm:$0xf0]  ;;  %v9760_v55 = vor.u32 %v11952_v25, %v9759_v51  ;;  %v9903_v51 = vld [vmem:[#allocation19 + $0xb0] sm:$0xf] }
 0x261   :  { %3845 = vmatpush.bf16.msrb.mxu3 %v9700_v39  ;;  %v9772_v35 = vor.u32 %v11953_v24, %v9769_v48  ;;  %v9751_v39 = vld [vmem:[#allocation16] sm:$0xf]  ;;  %v9839_v48 = vld [vmem:[#allocation19 + $0x30] sm:$0xf] }
 0x262   :  { %3970 = vmatpush.bf16.msra.mxu1 %v9812_v43  ;;  %v9752_v38 = vor.u32 %v11950_v33, %v9751_v39  ;;  %v9876_v43 = vor.u32 %v11979_v11, %v9873_v53  ;;  %v9905_v39 = vld [vmem:[#allocation19 + $0xb8] sm:$0xf0]  ;;  %v11986_v11 = vld [vmem:[#allocation19 + $0xa4] sm:$0xf0]  ;;  %v11969_v53 = vld [vmem:[#allocation19 + $0x24] sm:$0xf] }
 0x264   :  { %3957 = vmatpush.bf16.msra.mxu0 %v9808_v45  ;;  %v11996_v45 = vld [vmem:[#allocation19 + $0xf4] sm:$0xf0] }
 0x265   :  { %3846 = vmatpush.bf16.msrb.mxu3 %v9692_v34  ;;  %v9871_v34 = vld [vmem:[#allocation19 + $0x70] sm:$0xf]  ;;  %v9936_v54 = vor.u32 %v11996_v45, %v9935_v40 }
 0x266   :  { %v13235_v63 = vpop.f32.mrf.mxu0  ;;  %3971 = vmatpush.bf16.msra.mxu1 %v9804_v50  ;;  %v9872_v41 = vor.u32 %v11980_v37, %v9871_v34  ;;  %v9940_v50 = vor.u32 %v11995_v42, %v9937_v46  ;;  %v11970_v34 = vld [vmem:[#allocation19 + $0x24] sm:$0xf0]  ;;  %v9895_v37 = vld [vmem:[#allocation19 + $0xa0] sm:$0xf]  ;;  %v11985_v46 = vld [vmem:[#allocation19 + $0xa4] sm:$0xf] }
 0x267   :  { %v3556_v17 = vadd.f32 %v13235_v63, %v3382_v61  ;;  %v11957_v63 = vld [vmem:[#allocation16 + $0x44] sm:$0xf] }
 0x268   :  { %3958 = vmatpush.bf16.msra.mxu0 %v9800_v10  ;;  %v9788_v8 = vor.u32 %v11957_v63, %v9785_v16  ;;  %v9863_v10 = vld [vmem:[#allocation19 + $0x60] sm:$0xf]  ;;  %4185 = vmatpush.bf16.msra.mxu2 %v9872_v41  ;;  %v11993_v61 = vld [vmem:[#allocation19 + $0xe4] sm:$0xf] }
 0x269   :  { %4198 = vmatpush.bf16.msra.mxu3 %v9936_v54  ;;  %v9864_v13 = vor.u32 %v11978_v56, %v9863_v10  ;;  %v9847_v63 = vld [vmem:[#allocation19 + $0x40] sm:$0xf]  ;;  %v9833_v54 = vld [vmem:[#allocation19 + $0x28] sm:$0xf0] }
 0x26a   :  { %3972 = vmatpush.bf16.msra.mxu1 %v9796_v59  ;;  %v11977_v59 = vld [vmem:[#allocation19 + $0x64] sm:$0xf]  ;;  %v9911_v16 = vld [vmem:[#allocation19 + $0xc0] sm:$0xf]  ;;  %v9897_v10 = vld [vmem:[#allocation19 + $0xa8] sm:$0xf0] }
 0x26c   :  { %3959 = vmatpush.bf16.msra.mxu0 %v9792_v60  ;;  %v9928_v60 = vor.u32 %v11994_v58, %v9927_v57  ;;  %4186 = vmatpush.bf16.msra.mxu2 %v9864_v13  ;;  %v9896_v57 = vor.u32 %v11986_v11, %v9895_v37  ;;  %v9836_v58 = vor.u32 %v11969_v53, %v9833_v54  ;;  %v10617_v37 = vld [vmem:[#allocation22 + $0x5a0] sm:$0xf0]  ;;  %v11191_v11 = vld [vmem:[#allocation22 + $0x9c0] sm:$0xf] }
 0x26d   :  { %v9900_v13 = vor.u32 %v11985_v46, %v9897_v10  ;;  %v12321_v53 = vld [vmem:[#allocation22 + $0xa1c] sm:$0xf0]  ;;  %v12309_v54 = vld [vmem:[#allocation22 + $0x9c4] sm:$0xf] }
 0x26e   :  { %v13237_v0 = vpop.f32.mrf.mxu2  ;;  %v3557_v9 = vpop.f32.mrf.mxu0  ;;  %3973 = vmatpush.bf16.msra.mxu1 %v9788_v8  ;;  %4199 = vmatpush.bf16.msra.mxu3 %v9928_v60  ;;  %v12153_v46 = vld [vmem:[#allocation22 + $0x4dc] sm:$0xf0] }
 0x26f   :  { %v3582_v2 = vadd.f32 %v13237_v0, %v3383_v62  ;;  %v9775_v0 = vld [vmem:[#allocation16 + $0x30] sm:$0xf] }
 0x270   :  { %3960 = vmatpush.bf16.msra.mxu0 %v9784_v7  ;;  %v9776_v31 = vor.u32 %v11956_v1, %v9775_v0  ;;  %v9855_v62 = vld [vmem:[#allocation19 + $0x50] sm:$0xf]  ;;  %v11974_v7 = vld [vmem:[#allocation19 + $0x44] sm:$0xf0]  ;;  %v11973_v1 = vld [vmem:[#allocation19 + $0x44] sm:$0xf] }
 0x271   :  { %v11990_v0 = vld [vmem:[#allocation19 + $0xc4] sm:$0xf0]  ;;  %v9848_v23 = vor.u32 %v11974_v7, %v9847_v63  ;;  %v11983_v63 = vld [vmem:[#allocation19 + $0x94] sm:$0xf]  ;;  %v9889_v7 = vld [vmem:[#allocation19 + $0x98] sm:$0xf0] }
 0x272   :  { %3974 = vmatpush.bf16.msra.mxu1 %v9780_v44  ;;  %v9912_v24 = vor.u32 %v11990_v0, %v9911_v16  ;;  %v9892_v16 = vor.u32 %v11983_v63, %v9889_v7  ;;  %v11966_v0 = vld [vmem:[#allocation19 + $0x4] sm:$0xf0] }
 0x273   :  { %v11001_v63 = vld [vmem:[#allocation22 + $0x8a0] sm:$0xf0] }
 0x274   :  { %3961 = vmatpush.bf16.msra.mxu0 %v9776_v31  ;;  %v11989_v31 = vld [vmem:[#allocation19 + $0xc4] sm:$0xf] }
 0x275   :  { %v9916_v25 = vor.u32 %v11989_v31, %v9913_v20  ;;  %v11982_v31 = vld [vmem:[#allocation19 + $0x84] sm:$0xf0]  ;;  %v11965_v20 = vld [vmem:[#allocation19 + $0x4] sm:$0xf] }
 0x276   :  { %v3583_v15 = vpop.f32.mrf.mxu2  ;;  %3975 = vmatpush.bf16.msra.mxu1 %v9772_v35  ;;  %v11972_v35 = vld [vmem:[#allocation19 + $0x34] sm:$0xf0] }
 0x277   :  { %v9840_v33 = vor.u32 %v11972_v35, %v9839_v48  ;;  %v11383_v35 = vld [vmem:[#allocation22 + $0xb40] sm:$0xf] }
 0x278   :  { %3962 = vmatpush.bf16.msra.mxu0 %v9768_v27  ;;  %v9852_v27 = vor.u32 %v11973_v1, %v9849_v19  ;;  %v9879_v1 = vld [vmem:[#allocation19 + $0x80] sm:$0xf] }
 0x27a   :  { %3976 = vmatpush.bf16.msra.mxu1 %v9764_v32  ;;  %v11987_v32 = vld [vmem:[#allocation19 + $0xb4] sm:$0xf] }
 0x27b   :  { %v9908_v45 = vor.u32 %v11987_v32, %v9905_v39  ;;  %v12345_v32 = vld [vmem:[#allocation22 + $0xadc] sm:$0xf0] }
 0x27c   :  { %3963 = vmatpush.bf16.msra.mxu0 %v9760_v55  ;;  %v11971_v55 = vld [vmem:[#allocation19 + $0x34] sm:$0xf] }
 0x27d   :  { %v9844_v29 = vor.u32 %v11971_v55, %v9841_v26  ;;  %v11385_v55 = vld [vmem:[#allocation22 + $0xba0] sm:$0xf0]  ;;  %v11287_v26 = vld [vmem:[#allocation22 + $0xa80] sm:$0xf] }
 0x27e   :  { %3977 = vmatpush.bf16.msra.mxu1 %v9756_v30  ;;  %v9831_v30 = vld [vmem:[#allocation19 + $0x20] sm:$0xf] }
 0x27f   :  { %v9832_v56 = vor.u32 %v11970_v34, %v9831_v30  ;;  %v12177_v30 = vld [vmem:[#allocation22 + $0x59c] sm:$0xf0]  ;;  %v12165_v34 = vld [vmem:[#allocation22 + $0x544] sm:$0xf] }
 0x280   :  { %3964 = vmatpush.bf16.msra.mxu0 %v9752_v38  ;;  %v9904_v38 = vor.u32 %v11988_v36, %v9903_v51  ;;  %v12369_v51 = vld [vmem:[#allocation22 + $0xb9c] sm:$0xf0] }
 0x281   :  { %v11384_v36 = vor.u32 %v12369_v51, %v11383_v35  ;;  %v10135_v51 = vld [vmem:[#allocation22 + $0x180] sm:$0xf] }
 0x2d4   :  { %v3568_v47 = vpop.f32.mrf.mxu1 }
 0x2d5   :  { %v3569_v22 = vadd.f32 %v3568_v47, %v3556_v17  ;;  %v9868_v17 = vor.u32 %v11977_v59, %v9865_v18  ;;  %v9929_v47 = vld [vmem:[#allocation19 + $0xe8] sm:$0xf0]  ;;  %v409_v59 = vld [vmem:[#allocation5] sm:$0xff] }
 0x2d7   :  { %v3598_v49 = vmax.f32 %v3569_v22, 0.0  ;;  %v11976_v22 = vld [vmem:[#allocation19 + $0x54] sm:$0xf0] }
 0x2d9   :  { %v3600_v4 = vpack.c.bf16 %v3598_v49, %v3598_v49  ;;  %v13241_v49 = vld [vmem:[#allocation14] sm:$0x3] }
 0x2da   :  { %v3594_v5 = vpop.f32.mrf.mxu3  ;;  %v3636_v44 = vperm.slane %v13241_v49, 0  ;;  %v3637_v42 = vperm.slane %v13241_v49, 1 }
 0x2db   :  { %v3595_v52 = vadd.f32 %v3594_v5, %v3582_v2  ;;  %3808 = vmatmul.bf16.vlgmr.msrb.gmra.mxu0 %v3600_v4  ;;  %3834 = vmatmul.bf16.vlgmr.msrb.gmra.mxu2 %v3600_v4  ;;  %v9932_v2 = vor.u32 %v11993_v61, %v9929_v47  ;;  %v9919_v4 = vld [vmem:[#allocation19 + $0xd0] sm:$0xf]  ;;  %v11992_v5 = vld [vmem:[#allocation19 + $0xd4] sm:$0xf0] }
 0x2dc   :  { %v3570_v6 = vpop.f32.mrf.mxu1  ;;  %4211 = vmatpush.bf16.msrb.mxu0 %v9876_v43  ;;  %v9920_v3 = vor.u32 %v11992_v5, %v9919_v4  ;;  %v9823_v4 = vld [vmem:[#allocation19 + $0x10] sm:$0xf]  ;;  %v11968_v5 = vld [vmem:[#allocation19 + $0x14] sm:$0xf0] }
 0x2dd   :  { %v3599_v9 = vmax.f32 %v3595_v52, 0.0  ;;  %v11975_v52 = vld [vmem:[#allocation19 + $0x54] sm:$0xf]  ;;  %v9856_v6 = vor.u32 %v11976_v22, %v9855_v62 }
 0x2de   :  { %4200 = vmatpush.bf16.msra.mxu3 %v9920_v3 }
 0x2df   :  { %v3601_v15 = vpack.c.bf16 %v3599_v9, %v3599_v9  ;;  %v9857_v9 = vld [vmem:[#allocation19 + $0x58] sm:$0xf0]  ;;  %4187 = vmatpush.bf16.msra.mxu2 %v9856_v6  ;;  %v9824_v6 = vor.u32 %v11968_v5, %v9823_v4  ;;  %v10327_v4 = vld [vmem:[#allocation22 + $0x300] sm:$0xf] }
 0x2e0   :  { %4212 = vmatpush.bf16.msrb.mxu0 %v9868_v17  ;;  %v9860_v14 = vor.u32 %v11975_v52, %v9857_v9  ;;  %v9887_v52 = vld [vmem:[#allocation19 + $0x90] sm:$0xf]  ;;  %v11984_v9 = vld [vmem:[#allocation19 + $0x94] sm:$0xf0] }
 0x2e1   :  { %3821 = vmatmul.bf16.vlgmr.msrb.gmra.mxu1 %v3601_v15  ;;  %3847 = vmatmul.bf16.vlgmr.msrb.gmra.mxu3 %v3601_v15  ;;  %v11991_v15 = vld [vmem:[#allocation19 + $0xd4] sm:$0xf]  ;;  %v9888_v3 = vor.u32 %v11984_v9, %v9887_v52  ;;  %v12105_v52 = vld [vmem:[#allocation22 + $0x35c] sm:$0xf0]  ;;  %v10329_v9 = vld [vmem:[#allocation22 + $0x360] sm:$0xf0] }
 0x2e2   :  { %v3596_v12 = vpop.f32.mrf.mxu3  ;;  %4224 = vmatpush.bf16.msrb.mxu1 %v9940_v50  ;;  %4201 = vmatpush.bf16.msra.mxu3 %v9912_v24  ;;  %v11981_v24 = vld [vmem:[#allocation19 + $0x84] sm:$0xf]  ;;  %v10328_v7 = vor.u32 %v12105_v52, %v10327_v4 }
 0x2e3   :  { %v9921_v12 = vld [vmem:[#allocation19 + $0xd8] sm:$0xf0]  ;;  %4188 = vmatpush.bf16.msra.mxu2 %v9848_v23  ;;  %v9945_v4 = vld [vmem:[#allocation22 + $0x60] sm:$0xf0] }
 0x2e4   :  { %v9924_v8 = vor.u32 %v11991_v15, %v9921_v12  ;;  %4213 = vmatpush.bf16.msrb.mxu0 %v9860_v14  ;;  %v11967_v15 = vld [vmem:[#allocation19 + $0x14] sm:$0xf]  ;;  %v9825_v12 = vld [vmem:[#allocation19 + $0x18] sm:$0xf0] }
 0x2e5   :  { %v9828_v14 = vor.u32 %v11967_v15, %v9825_v12  ;;  %v10999_v12 = vld [vmem:[#allocation22 + $0x840] sm:$0xf] }
 0x2e6   :  { %4225 = vmatpush.bf16.msrb.mxu1 %v9932_v2  ;;  %4202 = vmatpush.bf16.msra.mxu3 %v9904_v38  ;;  %v10615_v38 = vld [vmem:[#allocation22 + $0x540] sm:$0xf] }
 0x2e7   :  { %4189 = vmatpush.bf16.msra.mxu2 %v9840_v33  ;;  %v12333_v33 = vld [vmem:[#allocation22 + $0xa84] sm:$0xf] }
 0x2e8   :  { %4214 = vmatpush.bf16.msrb.mxu0 %v9852_v27  ;;  %v9881_v27 = vld [vmem:[#allocation19 + $0x88] sm:$0xf0] }
 0x2e9   :  { %v9884_v48 = vor.u32 %v11981_v24, %v9881_v27  ;;  %v10905_v24 = vld [vmem:[#allocation22 + $0x7e0] sm:$0xf0]  ;;  %v3871_v27 = vld [vmem:[#allocation17] sm:$0x3] }
 0x2ea   :  { %4226 = vmatpush.bf16.msrb.mxu1 %v9924_v8  ;;  %4203 = vmatpush.bf16.msra.mxu3 %v9896_v57  ;;  %v9815_v8 = vld [vmem:[#allocation19] sm:$0xf]  ;;  %v11192_v57 = vor.u32 %v12321_v53, %v11191_v11  ;;  %v12021_v11 = vld [vmem:[#allocation22 + $0xc4] sm:$0xf] }
 0x2eb   :  { %4190 = vmatpush.bf16.msra.mxu2 %v9832_v56  ;;  %v9816_v19 = vor.u32 %v11966_v0, %v9815_v8  ;;  %v10521_v56 = vld [vmem:[#allocation22 + $0x4e0] sm:$0xf0]  ;;  %v10231_v8 = vld [vmem:[#allocation22 + $0x240] sm:$0xf] }
 0x2ec   :  { %4215 = vmatpush.bf16.msrb.mxu0 %v9844_v29  ;;  %v11288_v29 = vor.u32 %v12345_v32, %v11287_v26  ;;  %v10137_v26 = vld [vmem:[#allocation22 + $0x1e0] sm:$0xf0] }
 0x2ed   :  { %v10041_v53 = vld [vmem:[#allocation22 + $0x120] sm:$0xf0] }
 0x2ee   :  { %4227 = vmatpush.bf16.msrb.mxu1 %v9916_v25  ;;  %4204 = vmatpush.bf16.msra.mxu3 %v9888_v3  ;;  %v12357_v25 = vld [vmem:[#allocation22 + $0xb44] sm:$0xf]  ;;  %v12273_v3 = vld [vmem:[#allocation22 + $0x89c] sm:$0xf0] }
 0x2ef   :  { %4191 = vmatpush.bf16.msra.mxu2 %v9824_v6  ;;  %v11388_v39 = vor.u32 %v12357_v25, %v11385_v55  ;;  %v12093_v6 = vld [vmem:[#allocation22 + $0x304] sm:$0xf]  ;;  %v11000_v0 = vor.u32 %v12273_v3, %v10999_v12  ;;  %v12178_v12 = vld [vmem:[#allocation22 + $0x5a4] sm:$0xf0]  ;;  %v12166_v3 = vld [vmem:[#allocation22 + $0x54c] sm:$0xf] }
 0x2f0   :  { %4216 = vmatpush.bf16.msrb.mxu0 %v9836_v58  ;;  %v12045_v55 = vld [vmem:[#allocation22 + $0x184] sm:$0xf] }
 0x2f2   :  { %4228 = vmatpush.bf16.msrb.mxu1 %v9908_v45  ;;  %v10620_v45 = vor.u32 %v12165_v34, %v10617_v37  ;;  %v10140_v37 = vor.u32 %v12045_v55, %v10137_v26  ;;  %v12322_v55 = vld [vmem:[#allocation22 + $0xa24] sm:$0xf0]  ;;  %v12310_v26 = vld [vmem:[#allocation22 + $0x9cc] sm:$0xf] }
 0x2f3   :  { %4192 = vmatpush.bf16.msra.mxu2 %v9816_v19  ;;  %v12069_v19 = vld [vmem:[#allocation22 + $0x244] sm:$0xf] }
 0x2f4   :  { %4217 = vmatpush.bf16.msrb.mxu0 %v9828_v14  ;;  %v12261_v14 = vld [vmem:[#allocation22 + $0x844] sm:$0xf] }
 0x2f6   :  { %4229 = vmatpush.bf16.msrb.mxu1 %v9900_v13  ;;  %v11095_v13 = vld [vmem:[#allocation22 + $0x900] sm:$0xf] }
 0x2fa   :  { %4230 = vmatpush.bf16.msrb.mxu1 %v9892_v16  ;;  %v10332_v16 = vor.u32 %v12093_v6, %v10329_v9 }
 0x2fe   :  { %4231 = vmatpush.bf16.msrb.mxu1 %v9884_v48 }
 0x358   :  { %v3809_v21 = vpop.f32.mrf.mxu0 }
 0x359   :  { %v3810_v28 = vadd.f32 %v3809_v21, %v3636_v44  ;;  %v9817_v44 = vld [vmem:[#allocation19 + $0x8] sm:$0xf0]  ;;  %v9880_v21 = vor.u32 %v11982_v31, %v9879_v1  ;;  %v12081_v1 = vld [vmem:[#allocation22 + $0x29c] sm:$0xf0]  ;;  %v10233_v31 = vld [vmem:[#allocation22 + $0x2a0] sm:$0xf0] }
 0x35a   :  { %v9820_v23 = vor.u32 %v11965_v20, %v9817_v44  ;;  %v11004_v20 = vor.u32 %v12261_v14, %v11001_v63  ;;  %v10903_v44 = vld [vmem:[#allocation22 + $0x780] sm:$0xf]  ;;  %v10232_v48 = vor.u32 %v12081_v1, %v10231_v8  ;;  %v10236_v35 = vor.u32 %v12069_v19, %v10233_v31  ;;  %v10625_v14 = vld [vmem:[#allocation22 + $0x5a8] sm:$0xf0]  ;;  %v12346_v8 = vld [vmem:[#allocation22 + $0xae4] sm:$0xf0] }
 0x35b   :  { %4205 = vmatpush.bf16.msra.mxu3 %v9880_v21  ;;  %v12249_v21 = vld [vmem:[#allocation22 + $0x7dc] sm:$0xf0]  ;;  %v11297_v1 = vld [vmem:[#allocation22 + $0xae8] sm:$0xf0] }
 0x35c   :  { %4218 = vmatpush.bf16.msrb.mxu0 %v9820_v23  ;;  %v12237_v23 = vld [vmem:[#allocation22 + $0x784] sm:$0xf]  ;;  %v10904_v25 = vor.u32 %v12249_v21, %v10903_v44 }
 0x35d   :  { %v10908_v32 = vor.u32 %v12237_v23, %v10905_v24  ;;  %v10628_v23 = vor.u32 %v12166_v3, %v10625_v14  ;;  %v10527_v24 = vld [vmem:[#allocation22 + $0x488] sm:$0xf] }
 0x35e   :  { %v3822_v40 = vpop.f32.mrf.mxu1  ;;  %v3835_v41 = vpop.f32.mrf.mxu2  ;;  %v10815_v3 = vld [vmem:[#allocation22 + $0x6c8] sm:$0xf] }
 0x35f   :  { %v3823_v43 = vadd.f32 %v3822_v40, %v3810_v28  ;;  %v3836_v60 = vadd.f32 %v3835_v41, %v3637_v42  ;;  %v11289_v28 = vld [vmem:[#allocation22 + $0xae0] sm:$0xf0]  ;;  %6612 = vmatpush.bf16.msrb.mxu3 %v11384_v36  ;;  %v10616_v41 = vor.u32 %v12177_v30, %v10615_v38  ;;  %v10519_v42 = vld [vmem:[#allocation22 + $0x480] sm:$0xf]  ;;  %v3874_v38 = vperm.slane %v3871_v27, 1 }
 0x360   :  { %v3811_v50 = vpop.f32.mrf.mxu0  ;;  %v11292_v40 = vor.u32 %v12333_v33, %v11289_v28  ;;  %v10520_v10 = vor.u32 %v12153_v46, %v10519_v42  ;;  %v12057_v36 = vld [vmem:[#allocation22 + $0x1dc] sm:$0xf0]  ;;  %v3873_v28 = vperm.slane %v3871_v27, 0  ;;  %v10809_v30 = vld [vmem:[#allocation22 + $0x720] sm:$0xf0] }
 0x361   :  { %7894 = vst [vmem:[#allocation26] sm:$0xff] %v3823_v43  ;;  %6599 = vmatpush.bf16.msrb.mxu2 %v10616_v41  ;;  %v12141_v50 = vld [vmem:[#allocation22 + $0x484] sm:$0xf]  ;;  %v12225_v33 = vld [vmem:[#allocation22 + $0x71c] sm:$0xf0]  ;;  %v10136_v34 = vor.u32 %v12057_v36, %v10135_v51 }
 0x362   :  { %v10524_v58 = vor.u32 %v12141_v50, %v10521_v56  ;;  %v10711_v46 = vld [vmem:[#allocation22 + $0x600] sm:$0xf]  ;;  %v12154_v27 = vld [vmem:[#allocation22 + $0x4e4] sm:$0xf0] }
 0x363   :  { %6613 = vmatpush.bf16.msrb.mxu3 %v11288_v29  ;;  %v12213_v29 = vld [vmem:[#allocation22 + $0x6c4] sm:$0xf]  ;;  %v11199_v36 = vld [vmem:[#allocation22 + $0x9c8] sm:$0xf] }
 0x364   :  { %v3848_v18 = vpop.f32.mrf.mxu3  ;;  %v10812_v42 = vor.u32 %v12213_v29, %v10809_v30  ;;  %v12118_v29 = vld [vmem:[#allocation22 + $0x3cc] sm:$0xf]  ;;  %v12226_v14 = vld [vmem:[#allocation22 + $0x724] sm:$0xf0] }
 0x365   :  { %v3849_v61 = vadd.f32 %v3848_v18, %v3836_v60  ;;  %v12297_v60 = vld [vmem:[#allocation22 + $0x95c] sm:$0xf0]  ;;  %6600 = vmatpush.bf16.msrb.mxu2 %v10520_v10  ;;  %v10433_v30 = vld [vmem:[#allocation22 + $0x428] sm:$0xf0] }
 0x366   :  { %v3824_v17 = vpop.f32.mrf.mxu1  ;;  %v3837_v47 = vpop.f32.mrf.mxu2  ;;  %v10423_v18 = vld [vmem:[#allocation22 + $0x3c0] sm:$0xf]  ;;  %v11096_v5 = vor.u32 %v12297_v60, %v11095_v13  ;;  %v11391_v13 = vld [vmem:[#allocation22 + $0xb48] sm:$0xf] }
 0x367   :  { %v3852_v62 = vmul.f32 %v3849_v61, %v409_v59  ;;  %7895 = vst [vmem:[#allocation28] sm:$0xff] %v3849_v61  ;;  %v12129_v61 = vld [vmem:[#allocation22 + $0x41c] sm:$0xf0]  ;;  %v12117_v17 = vld [vmem:[#allocation22 + $0x3c4] sm:$0xf]  ;;  %6614 = vmatpush.bf16.msrb.mxu3 %v11192_v57 }
 0x368   :  { %v12285_v47 = vld [vmem:[#allocation22 + $0x904] sm:$0xf]  ;;  %v12201_v10 = vld [vmem:[#allocation22 + $0x65c] sm:$0xf0]  ;;  %v12370_v60 = vld [vmem:[#allocation22 + $0xba4] sm:$0xf0] }
 0x369   :  { %v3853_v22 = vadd.f32 %v3852_v62, %v3823_v43  ;;  %v11193_v43 = vld [vmem:[#allocation22 + $0xa20] sm:$0xf0]  ;;  %v10712_v9 = vor.u32 %v12201_v10, %v10711_v46  ;;  %v11392_v63 = vor.u32 %v12370_v60, %v11391_v13  ;;  %v12094_v46 = vld [vmem:[#allocation22 + $0x30c] sm:$0xf] }
 0x36a   :  { %v11196_v59 = vor.u32 %v12309_v54, %v11193_v43  ;;  %v11097_v62 = vld [vmem:[#allocation22 + $0x960] sm:$0xf0]  ;;  %v10337_v10 = vld [vmem:[#allocation22 + $0x368] sm:$0xf0] }
 0x36b   :  { %v3854_v49 = vpack.c.bf16 %v3853_v22, %v3853_v22  ;;  %v10425_v22 = vld [vmem:[#allocation22 + $0x420] sm:$0xf0]  ;;  %v11100_v15 = vor.u32 %v12285_v47, %v11097_v62  ;;  %6615 = vmatpush.bf16.msrb.mxu3 %v11096_v5  ;;  %v10623_v5 = vld [vmem:[#allocation22 + $0x548] sm:$0xf]  ;;  %v12262_v13 = vld [vmem:[#allocation22 + $0x84c] sm:$0xf] }
 0x36c   :  { %v3850_v2 = vpop.f32.mrf.mxu3  ;;  %v12189_v57 = vld [vmem:[#allocation22 + $0x604] sm:$0xf]  ;;  %v10624_v21 = vor.u32 %v12178_v12, %v10623_v5  ;;  %v11009_v60 = vld [vmem:[#allocation22 + $0x8a8] sm:$0xf0]  ;;  %v10239_v5 = vld [vmem:[#allocation22 + $0x248] sm:$0xf] }
 0x36d   :  { %3965 = vmatmul.bf16.vlgmr.msra.gmra.mxu0 %v3854_v49  ;;  %3978 = vmatmul.bf16.vlgmr.msra.gmra.mxu1 %v3854_v49  ;;  %v10424_v49 = vor.u32 %v12129_v61, %v10423_v18  ;;  %v10428_v2 = vor.u32 %v12117_v17, %v10425_v22  ;;  %v11393_v18 = vld [vmem:[#allocation22 + $0xba8] sm:$0xf0]  ;;  %v10044_v17 = vor.u32 %v12021_v11, %v10041_v53  ;;  %v9943_v22 = vld [vmem:[#allocation22] sm:$0xf] }
 0x36e   :  { %6638 = vmatpush.bf16.msra.mxu1 %v11388_v39  ;;  %6625 = vmatpush.bf16.msra.mxu0 %v10620_v45  ;;  %v10807_v39 = vld [vmem:[#allocation22 + $0x6c0] sm:$0xf]  ;;  %v11105_v11 = vld [vmem:[#allocation22 + $0x968] sm:$0xf0] }
 0x36f   :  { %6601 = vmatpush.bf16.msrb.mxu2 %v10424_v49  ;;  %6616 = vmatpush.bf16.msrb.mxu3 %v11000_v0  ;;  %v10808_v41 = vor.u32 %v12225_v33, %v10807_v39  ;;  %v12033_v45 = vld [vmem:[#allocation22 + $0x11c] sm:$0xf0]  ;;  %v12334_v0 = vld [vmem:[#allocation22 + $0xa8c] sm:$0xf]  ;;  %v10528_v39 = vor.u32 %v12154_v27, %v10527_v24 }
 0x370   :  { %v12009_v49 = vld [vmem:[#allocation22 + $0x5c] sm:$0xf0]  ;;  %v12190_v27 = vld [vmem:[#allocation22 + $0x60c] sm:$0xf] }
 0x371   :  { %v9944_v19 = vor.u32 %v12009_v49, %v9943_v22  ;;  %v12238_v22 = vld [vmem:[#allocation22 + $0x78c] sm:$0xf] }
 0x372   :  { %6639 = vmatpush.bf16.msra.mxu1 %v11292_v40  ;;  %6626 = vmatpush.bf16.msra.mxu0 %v10524_v58  ;;  %v10039_v40 = vld [vmem:[#allocation22 + $0xc0] sm:$0xf]  ;;  %v10713_v58 = vld [vmem:[#allocation22 + $0x660] sm:$0xf0] }
 0x373   :  { %6602 = vmatpush.bf16.msrb.mxu2 %v10328_v7  ;;  %6617 = vmatpush.bf16.msrb.mxu3 %v10904_v25  ;;  %v10040_v61 = vor.u32 %v12033_v45, %v10039_v40  ;;  %v11300_v25 = vor.u32 %v12334_v0, %v11297_v1  ;;  %v11103_v40 = vld [vmem:[#allocation22 + $0x908] sm:$0xf]  ;;  %v12286_v45 = vld [vmem:[#allocation22 + $0x90c] sm:$0xf] }
 0x374   :  { %v10143_v0 = vld [vmem:[#allocation22 + $0x188] sm:$0xf] }
 0x375   :  { %v12058_v1 = vld [vmem:[#allocation22 + $0x1e4] sm:$0xf0] }
 0x376   :  { %6640 = vmatpush.bf16.msra.mxu1 %v11196_v59  ;;  %6627 = vmatpush.bf16.msra.mxu0 %v10428_v2  ;;  %v12358_v59 = vld [vmem:[#allocation22 + $0xb4c] sm:$0xf]  ;;  %v11997_v2 = vld [vmem:[#allocation22 + $0x4] sm:$0xf] }
 0x377   :  { %6603 = vmatpush.bf16.msrb.mxu2 %v10232_v48  ;;  %6618 = vmatpush.bf16.msrb.mxu3 %v10808_v41  ;;  %v11396_v7 = vor.u32 %v12358_v59, %v11393_v18  ;;  %v9948_v31 = vor.u32 %v11997_v2, %v9945_v4  ;;  %v12142_v48 = vld [vmem:[#allocation22 + $0x48c] sm:$0xf]  ;;  %v12298_v41 = vld [vmem:[#allocation22 + $0x964] sm:$0xf0]  ;;  %v10340_v18 = vor.u32 %v12094_v46, %v10337_v10  ;;  %v11401_v46 = vld [vmem:[#allocation22 + $0xbb0] sm:$0xf0] }
 0x378   :  { %v10913_v2 = vld [vmem:[#allocation22 + $0x7e8] sm:$0xf0] }
 0x379   :  { %v10916_v4 = vor.u32 %v12238_v22, %v10913_v2  ;;  %v12179_v2 = vld [vmem:[#allocation22 + $0x5ac] sm:$0xf0] }
 0x37a   :  { %6641 = vmatpush.bf16.msra.mxu1 %v11100_v15  ;;  %6628 = vmatpush.bf16.msra.mxu0 %v10332_v16  ;;  %v10716_v15 = vor.u32 %v12189_v57, %v10713_v58  ;;  %v11295_v16 = vld [vmem:[#allocation22 + $0xa88] sm:$0xf] }
 0x37b   :  { %6604 = vmatpush.bf16.msrb.mxu2 %v10136_v34  ;;  %6619 = vmatpush.bf16.msrb.mxu3 %v10712_v9  ;;  %v11296_v51 = vor.u32 %v12346_v8, %v11295_v16  ;;  %v11200_v34 = vor.u32 %v12322_v55, %v11199_v36  ;;  %v11007_v57 = vld [vmem:[#allocation22 + $0x848] sm:$0xf]  ;;  %v10817_v16 = vld [vmem:[#allocation22 + $0x728] sm:$0xf0] }
 0x37c   :  { %v12274_v58 = vld [vmem:[#allocation22 + $0x8a4] sm:$0xf0]  ;;  %v12022_v36 = vld [vmem:[#allocation22 + $0xcc] sm:$0xf] }
 0x37e   :  { %6642 = vmatpush.bf16.msra.mxu1 %v11004_v20  ;;  %6629 = vmatpush.bf16.msra.mxu0 %v10236_v35  ;;  %v10529_v35 = vld [vmem:[#allocation22 + $0x4e8] sm:$0xf0] }
 0x37f   :  { %6605 = vmatpush.bf16.msrb.mxu2 %v10040_v61  ;;  %v10532_v33 = vor.u32 %v12142_v48, %v10529_v35  ;;  %v11008_v61 = vor.u32 %v12274_v58, %v11007_v57  ;;  %v10721_v48 = vld [vmem:[#allocation22 + $0x668] sm:$0xf0] }
 0x380   :  { %v10724_v35 = vor.u32 %v12190_v27, %v10721_v48  ;;  %v12287_v27 = vld [vmem:[#allocation22 + $0x914] sm:$0xf] }
 0x381   :  { %v11113_v48 = vld [vmem:[#allocation22 + $0x970] sm:$0xf0] }
 0x382   :  { %6643 = vmatpush.bf16.msra.mxu1 %v10908_v32  ;;  %6630 = vmatpush.bf16.msra.mxu0 %v10140_v37  ;;  %v11201_v32 = vld [vmem:[#allocation22 + $0xa28] sm:$0xf0] }
 0x383   :  { %6606 = vmatpush.bf16.msrb.mxu2 %v9944_v19  ;;  %v11204_v37 = vor.u32 %v12310_v26, %v11201_v32  ;;  %v12046_v19 = vld [vmem:[#allocation22 + $0x18c] sm:$0xf] }
 0x384   :  { %v10049_v26 = vld [vmem:[#allocation22 + $0x128] sm:$0xf0] }
 0x385   :  { %v10052_v32 = vor.u32 %v12022_v36, %v10049_v26  ;;  %v12131_v36 = vld [vmem:[#allocation22 + $0x42c] sm:$0xf0]  ;;  %v10441_v26 = vld [vmem:[#allocation22 + $0x430] sm:$0xf0] }
 0x386   :  { %6644 = vmatpush.bf16.msra.mxu1 %v10812_v42  ;;  %6631 = vmatpush.bf16.msra.mxu0 %v10044_v17  ;;  %v12106_v42 = vld [vmem:[#allocation22 + $0x364] sm:$0xf0]  ;;  %v11012_v17 = vor.u32 %v12262_v13, %v11009_v60  ;;  %v11303_v60 = vld [vmem:[#allocation22 + $0xa90] sm:$0xf] }
 0x38a   :  { %6645 = vmatpush.bf16.msra.mxu1 %v10716_v15  ;;  %6632 = vmatpush.bf16.msra.mxu0 %v9948_v31  ;;  %v10241_v15 = vld [vmem:[#allocation22 + $0x2a8] sm:$0xf0]  ;;  %v10144_v31 = vor.u32 %v12058_v1, %v10143_v0 }
 0x3ea   :  { %v3966_v54 = vpop.f32.mrf.mxu0  ;;  %v3979_v43 = vpop.f32.mrf.mxu1 }
 0x3eb   :  { %v3967_v50 = vadd.f32 %v3966_v54, %v3873_v28  ;;  %v3980_v56 = vadd.f32 %v3979_v43, %v3874_v38  ;;  %v10431_v28 = vld [vmem:[#allocation22 + $0x3c8] sm:$0xf]  ;;  %v10436_v54 = vor.u32 %v12118_v29, %v10433_v30  ;;  %v9953_v29 = vld [vmem:[#allocation22 + $0x68] sm:$0xf0] }
 0x3ec   :  { %v12130_v38 = vld [vmem:[#allocation22 + $0x424] sm:$0xf0] }
 0x3ed   :  { %v3983_v47 = vmax.f32 %v3967_v50, 0.0  ;;  %v3984_v62 = vmax.f32 %v3980_v56, 0.0  ;;  %v10432_v53 = vor.u32 %v12130_v38, %v10431_v28  ;;  %v10335_v43 = vld [vmem:[#allocation22 + $0x308] sm:$0xf]  ;;  %v11104_v50 = vor.u32 %v12298_v41, %v11103_v40  ;;  %v11998_v38 = vld [vmem:[#allocation22 + $0xc] sm:$0xf] }
 0x3ee   :  { %v11108_v56 = vor.u32 %v12286_v45, %v11105_v11  ;;  %v10336_v59 = vor.u32 %v12106_v42, %v10335_v43  ;;  %v9956_v30 = vor.u32 %v11998_v38, %v9953_v29  ;;  %v12371_v43 = vld [vmem:[#allocation22 + $0xbac] sm:$0xf0]  ;;  %v12359_v42 = vld [vmem:[#allocation22 + $0xb54] sm:$0xf] }
 0x3ef   :  { %v3985_v52 = vpack.c.bf16 %v3983_v47, %v3983_v47  ;;  %v3986_v6 = vpack.c.bf16 %v3984_v62, %v3984_v62  ;;  %v10911_v47 = vld [vmem:[#allocation22 + $0x788] sm:$0xf]  ;;  %v11404_v13 = vor.u32 %v12359_v42, %v11401_v46  ;;  %v12263_v38 = vld [vmem:[#allocation22 + $0x854] sm:$0xf] }
 0x3f0   :  { %v12250_v62 = vld [vmem:[#allocation22 + $0x7e4] sm:$0xf0]  ;;  %v11017_v29 = vld [vmem:[#allocation22 + $0x8b0] sm:$0xf0] }
 0x3f1   :  { %4193 = vmatmul.bf16.vlgmr.msra.gmra.mxu2 %v3985_v52  ;;  %4206 = vmatmul.bf16.vlgmr.msra.gmra.mxu3 %v3986_v6  ;;  %v10912_v49 = vor.u32 %v12250_v62, %v10911_v47  ;;  %v12239_v42 = vld [vmem:[#allocation22 + $0x794] sm:$0xf] }
 0x3f2   :  { %4219 = vmatmul.bf16.vlgmr.msrb.gmra.mxu0 %v3985_v52  ;;  %4232 = vmatmul.bf16.vlgmr.msrb.gmra.mxu1 %v3986_v6  ;;  %v3968_v20 = vpop.f32.mrf.mxu0  ;;  %v3981_v44 = vpop.f32.mrf.mxu1  ;;  %v12082_v52 = vld [vmem:[#allocation22 + $0x2a4] sm:$0xf0]  ;;  %v12070_v6 = vld [vmem:[#allocation22 + $0x24c] sm:$0xf]  ;;  %v10921_v46 = vld [vmem:[#allocation22 + $0x7f0] sm:$0xf0] }
 0x3f3   :  { %6664 = vmatpush.bf16.msra.mxu3 %v11392_v63  ;;  %6690 = vmatpush.bf16.msrb.mxu1 %v11396_v7  ;;  %v10240_v9 = vor.u32 %v12082_v52, %v10239_v5  ;;  %v10244_v12 = vor.u32 %v12070_v6, %v10241_v15  ;;  %v12214_v63 = vld [vmem:[#allocation22 + $0x6cc] sm:$0xf]  ;;  %v10816_v7 = vor.u32 %v12226_v14, %v10815_v3  ;;  %v10633_v5 = vld [vmem:[#allocation22 + $0x5b0] sm:$0xf0]  ;;  %v11207_v15 = vld [vmem:[#allocation22 + $0x9d0] sm:$0xf] }
 0x3f4   :  { %6651 = vmatpush.bf16.msra.mxu2 %v10624_v21  ;;  %6677 = vmatpush.bf16.msrb.mxu0 %v10628_v23  ;;  %v10820_v8 = vor.u32 %v12214_v63, %v10817_v16  ;;  %v10145_v20 = vld [vmem:[#allocation22 + $0x1e8] sm:$0xf0]  ;;  %v10719_v21 = vld [vmem:[#allocation22 + $0x608] sm:$0xf]  ;;  %v12311_v3 = vld [vmem:[#allocation22 + $0x9d4] sm:$0xf] }
 0x3f5   :  { %v10148_v44 = vor.u32 %v12046_v19, %v10145_v20  ;;  %v12202_v23 = vld [vmem:[#allocation22 + $0x664] sm:$0xf0]  ;;  %v11209_v14 = vld [vmem:[#allocation22 + $0xa30] sm:$0xf0]  ;;  %v12155_v19 = vld [vmem:[#allocation22 + $0x4ec] sm:$0xf0] }
 0x3f6   :  { %v10720_v24 = vor.u32 %v12202_v23, %v10719_v21  ;;  %v10537_v20 = vld [vmem:[#allocation22 + $0x4f0] sm:$0xf0]  ;;  %v11212_v21 = vor.u32 %v12311_v3, %v11209_v14  ;;  %v11111_v23 = vld [vmem:[#allocation22 + $0x910] sm:$0xf] }
 0x3f7   :  { %6665 = vmatpush.bf16.msra.mxu3 %v11296_v51  ;;  %6691 = vmatpush.bf16.msrb.mxu1 %v11300_v25  ;;  %v10047_v51 = vld [vmem:[#allocation22 + $0xc8] sm:$0xf]  ;;  %v12191_v3 = vld [vmem:[#allocation22 + $0x614] sm:$0xf] }
 0x3f8   :  { %6652 = vmatpush.bf16.msra.mxu2 %v10528_v39  ;;  %6678 = vmatpush.bf16.msrb.mxu0 %v10532_v33  ;;  %v12034_v25 = vld [vmem:[#allocation22 + $0x124] sm:$0xf0]  ;;  %v10729_v14 = vld [vmem:[#allocation22 + $0x670] sm:$0xf0] }
 0x3f9   :  { %v10048_v55 = vor.u32 %v12034_v25, %v10047_v51  ;;  %v9951_v39 = vld [vmem:[#allocation22 + $0x8] sm:$0xf]  ;;  %v10439_v25 = vld [vmem:[#allocation22 + $0x3d0] sm:$0xf] }
 0x3fa   :  { %v12010_v33 = vld [vmem:[#allocation22 + $0x64] sm:$0xf0] }
 0x3fb   :  { %6666 = vmatpush.bf16.msra.mxu3 %v11200_v34  ;;  %6692 = vmatpush.bf16.msrb.mxu1 %v11204_v37  ;;  %v9952_v28 = vor.u32 %v12010_v33, %v9951_v39  ;;  %v4019_v34 = vld [vmem:[#allocation20] sm:$0x3]  ;;  %v11116_v39 = vor.u32 %v12287_v27, %v11113_v48  ;;  %v11015_v33 = vld [vmem:[#allocation22 + $0x850] sm:$0xf] }
 0x3fc   :  { %6653 = vmatpush.bf16.msra.mxu2 %v10432_v53  ;;  %6679 = vmatpush.bf16.msrb.mxu0 %v10436_v54  ;;  %v4022_v37 = vperm.slane %v4019_v34, 1  ;;  %v4021_v11 = vperm.slane %v4019_v34, 0  ;;  %v11399_v53 = vld [vmem:[#allocation22 + $0xb50] sm:$0xf] }
 0x3fd   :  { %v11400_v58 = vor.u32 %v12371_v43, %v11399_v53  ;;  %v11020_v53 = vor.u32 %v12263_v38, %v11017_v29  ;;  %v12251_v43 = vld [vmem:[#allocation22 + $0x7ec] sm:$0xf0]  ;;  %v10639_v38 = vld [vmem:[#allocation22 + $0x558] sm:$0xf] }
 0x3fe   :  { %v12180_v29 = vld [vmem:[#allocation22 + $0x5b4] sm:$0xf0] }
 0x3ff   :  { %6667 = vmatpush.bf16.msra.mxu3 %v11104_v50  ;;  %6693 = vmatpush.bf16.msrb.mxu1 %v11108_v56 }
 0x400   :  { %6654 = vmatpush.bf16.msra.mxu2 %v10336_v59  ;;  %6680 = vmatpush.bf16.msrb.mxu0 %v10340_v18  ;;  %v12347_v18 = vld [vmem:[#allocation22 + $0xaec] sm:$0xf0] }
 0x401   :  { %v11304_v6 = vor.u32 %v12347_v18, %v11303_v60  ;;  %v10924_v18 = vor.u32 %v12239_v42, %v10921_v46  ;;  %v10640_v42 = vor.u32 %v12180_v29, %v10639_v38  ;;  %v10159_v38 = vld [vmem:[#allocation22 + $0x198] sm:$0xf] }
 0x402   :  { %v12060_v29 = vld [vmem:[#allocation22 + $0x1f4] sm:$0xf0] }
 0x403   :  { %6668 = vmatpush.bf16.msra.mxu3 %v11008_v61  ;;  %6694 = vmatpush.bf16.msrb.mxu1 %v11012_v17  ;;  %v12335_v61 = vld [vmem:[#allocation22 + $0xa94] sm:$0xf] }
 0x404   :  { %6655 = vmatpush.bf16.msra.mxu2 %v10240_v9  ;;  %6681 = vmatpush.bf16.msrb.mxu0 %v10244_v12  ;;  %v11305_v17 = vld [vmem:[#allocation22 + $0xaf0] sm:$0xf0]  ;;  %v12323_v12 = vld [vmem:[#allocation22 + $0xa2c] sm:$0xf0] }
 0x405   :  { %v11308_v9 = vor.u32 %v12335_v61, %v11305_v17  ;;  %v10823_v61 = vld [vmem:[#allocation22 + $0x6d0] sm:$0xf] }
 0x406   :  { %v12227_v17 = vld [vmem:[#allocation22 + $0x72c] sm:$0xf0] }
 0x407   :  { %6669 = vmatpush.bf16.msra.mxu3 %v10912_v49  ;;  %6695 = vmatpush.bf16.msrb.mxu1 %v10916_v4  ;;  %v10631_v49 = vld [vmem:[#allocation22 + $0x550] sm:$0xf]  ;;  %v12167_v4 = vld [vmem:[#allocation22 + $0x554] sm:$0xf] }
 0x408   :  { %6656 = vmatpush.bf16.msra.mxu2 %v10144_v31  ;;  %6682 = vmatpush.bf16.msrb.mxu0 %v10148_v44  ;;  %v10636_v16 = vor.u32 %v12167_v4, %v10633_v5  ;;  %v12143_v31 = vld [vmem:[#allocation22 + $0x494] sm:$0xf]  ;;  %v11208_v44 = vor.u32 %v12323_v12, %v11207_v15  ;;  %v12059_v4 = vld [vmem:[#allocation22 + $0x1ec] sm:$0xf0] }
 0x409   :  { %v10540_v51 = vor.u32 %v12143_v31, %v10537_v20  ;;  %v12047_v5 = vld [vmem:[#allocation22 + $0x194] sm:$0xf]  ;;  %v10727_v15 = vld [vmem:[#allocation22 + $0x610] sm:$0xf] }
 0x40a   :  { %v12203_v12 = vld [vmem:[#allocation22 + $0x66c] sm:$0xf0] }
 0x40b   :  { %6670 = vmatpush.bf16.msra.mxu3 %v10816_v7  ;;  %6696 = vmatpush.bf16.msrb.mxu1 %v10820_v8  ;;  %v10632_v7 = vor.u32 %v12179_v2, %v10631_v49  ;;  %v10535_v8 = vld [vmem:[#allocation22 + $0x490] sm:$0xf] }
 0x40c   :  { %6657 = vmatpush.bf16.msra.mxu2 %v10048_v55  ;;  %6683 = vmatpush.bf16.msrb.mxu0 %v10052_v32  ;;  %v12119_v55 = vld [vmem:[#allocation22 + $0x3d4] sm:$0xf]  ;;  %v10151_v2 = vld [vmem:[#allocation22 + $0x190] sm:$0xf] }
 0x40d   :  { %v10444_v34 = vor.u32 %v12119_v55, %v10441_v26  ;;  %v10055_v31 = vld [vmem:[#allocation22 + $0xd0] sm:$0xf]  ;;  %v11313_v26 = vld [vmem:[#allocation22 + $0xaf8] sm:$0xf0] }
 0x40e   :  { %v12035_v20 = vld [vmem:[#allocation22 + $0x12c] sm:$0xf0] }
 0x40f   :  { %6671 = vmatpush.bf16.msra.mxu3 %v10720_v24  ;;  %6697 = vmatpush.bf16.msrb.mxu1 %v10724_v35  ;;  %v12299_v24 = vld [vmem:[#allocation22 + $0x96c] sm:$0xf0]  ;;  %v10536_v35 = vor.u32 %v12155_v19, %v10535_v8  ;;  %v10152_v8 = vor.u32 %v12059_v4, %v10151_v2  ;;  %v11409_v19 = vld [vmem:[#allocation22 + $0xbb8] sm:$0xf0] }
 0x410   :  { %6658 = vmatpush.bf16.msra.mxu2 %v9952_v28  ;;  %6684 = vmatpush.bf16.msrb.mxu0 %v9956_v30  ;;  %v11112_v32 = vor.u32 %v12299_v24, %v11111_v23  ;;  %v12275_v28 = vld [vmem:[#allocation22 + $0x8ac] sm:$0xf0]  ;;  %v10440_v30 = vor.u32 %v12131_v36, %v10439_v25  ;;  %v10728_v23 = vor.u32 %v12203_v12, %v10727_v15  ;;  %v12336_v25 = vld [vmem:[#allocation22 + $0xa9c] sm:$0xf] }
 0x411   :  { %v10732_v24 = vor.u32 %v12191_v3, %v10729_v14  ;;  %v10056_v36 = vor.u32 %v12035_v20, %v10055_v31  ;;  %v12120_v2 = vld [vmem:[#allocation22 + $0x3dc] sm:$0xf]  ;;  %v10927_v31 = vld [vmem:[#allocation22 + $0x798] sm:$0xf] }
 0x412   :  { %v10449_v4 = vld [vmem:[#allocation22 + $0x438] sm:$0xf0]  ;;  %v12252_v20 = vld [vmem:[#allocation22 + $0x7f4] sm:$0xf0] }
 0x413   :  { %v12264_v15 = vld [vmem:[#allocation22 + $0x85c] sm:$0xf]  ;;  %v10452_v14 = vor.u32 %v12120_v2, %v10449_v4  ;;  %v11321_v4 = vld [vmem:[#allocation22 + $0xb00] sm:$0xf0] }
 0x414   :  { %v11025_v12 = vld [vmem:[#allocation22 + $0x8b8] sm:$0xf0] }
 0x46f   :  { %v4220_v40 = vpop.f32.mrf.mxu0  ;;  %v4233_v41 = vpop.f32.mrf.mxu1 }
 0x470   :  { %v4221_v45 = vadd.f32 %v4220_v40, %v4022_v37  ;;  %v10343_v37 = vld [vmem:[#allocation22 + $0x310] sm:$0xf] }
 0x471   :  { %v12107_v40 = vld [vmem:[#allocation22 + $0x36c] sm:$0xf0] }
 0x472   :  { %v4234_v54 = vadd.f32 %v4233_v41, %v4221_v45  ;;  %v12095_v41 = vld [vmem:[#allocation22 + $0x314] sm:$0xf] }
 0x473   :  { %v10345_v45 = vld [vmem:[#allocation22 + $0x370] sm:$0xf0] }
 0x474   :  { %v4238_v10 = vmax.f32 %v4234_v54, 0.0  ;;  %v4194_v50 = vpop.f32.mrf.mxu2  ;;  %v4207_v56 = vpop.f32.mrf.mxu3  ;;  %v10919_v54 = vld [vmem:[#allocation22 + $0x790] sm:$0xf] }
 0x475   :  { %v4195_v57 = vadd.f32 %v4194_v50, %v4021_v11  ;;  %v11016_v11 = vor.u32 %v12275_v28, %v11015_v33  ;;  %v10348_v50 = vor.u32 %v12095_v41, %v10345_v45  ;;  %v10920_v60 = vor.u32 %v12251_v43, %v10919_v54  ;;  %v11999_v33 = vld [vmem:[#allocation22 + $0x14] sm:$0xf]  ;;  %v11215_v41 = vld [vmem:[#allocation22 + $0x9d8] sm:$0xf]  ;;  %v12312_v54 = vld [vmem:[#allocation22 + $0x9dc] sm:$0xf] }
 0x476   :  { %v13245_v59 = vpack.c.bf16 %v4238_v10, %v4238_v10  ;;  %v10344_v10 = vor.u32 %v12107_v40, %v10343_v37  ;;  %v9961_v28 = vld [vmem:[#allocation22 + $0x70] sm:$0xf0]  ;;  %v11316_v40 = vor.u32 %v12336_v25, %v11313_v26  ;;  %v11217_v43 = vld [vmem:[#allocation22 + $0xa38] sm:$0xf0]  ;;  %v10928_v25 = vor.u32 %v12252_v20, %v10927_v31  ;;  %v12228_v26 = vld [vmem:[#allocation22 + $0x734] sm:$0xf0] }
 0x477   :  { %v4208_v47 = vadd.f32 %v4207_v56, %v4195_v57  ;;  %v4222_v62 = vpop.f32.mrf.mxu0  ;;  %v4235_v22 = vpop.f32.mrf.mxu1  ;;  %v10247_v56 = vld [vmem:[#allocation22 + $0x250] sm:$0xf] }
 0x478   :  { %6620 = vmatmul.bf16.vlgmr.msrb.gmra.mxu3 %v13245_v59  ;;  %6646 = vmatmul.bf16.vlgmr.msra.gmra.mxu1 %v13245_v59  ;;  %v12083_v57 = vld [vmem:[#allocation22 + $0x2ac] sm:$0xf0]  ;;  %v10825_v62 = vld [vmem:[#allocation22 + $0x730] sm:$0xf0] }
 0x479   :  { %v4237_v52 = vmax.f32 %v4208_v47, 0.0  ;;  %6716 = vmatpush.bf16.msrb.mxu3 %v11400_v58  ;;  %6742 = vmatpush.bf16.msra.mxu1 %v11404_v13  ;;  %v12071_v58 = vld [vmem:[#allocation22 + $0x254] sm:$0xf]  ;;  %v10248_v22 = vor.u32 %v12083_v57, %v10247_v56  ;;  %v12144_v56 = vld [vmem:[#allocation22 + $0x49c] sm:$0xf] }
 0x47a   :  { %v10249_v13 = vld [vmem:[#allocation22 + $0x2b0] sm:$0xf0]  ;;  %v10545_v57 = vld [vmem:[#allocation22 + $0x4f8] sm:$0xf0] }
 0x47b   :  { %v13249_v63 = vpack.c.bf16 %v4237_v52, %v4237_v52  ;;  %v12215_v47 = vld [vmem:[#allocation22 + $0x6d4] sm:$0xf]  ;;  %v10252_v49 = vor.u32 %v12071_v58, %v10249_v13  ;;  %v11220_v13 = vor.u32 %v12312_v54, %v11217_v43  ;;  %v11415_v54 = vld [vmem:[#allocation22 + $0xb60] sm:$0xf] }
 0x47c   :  { %v4196_v0 = vpop.f32.mrf.mxu2  ;;  %v4209_v1 = vpop.f32.mrf.mxu3  ;;  %v10153_v52 = vld [vmem:[#allocation22 + $0x1f0] sm:$0xf0]  ;;  %v12373_v43 = vld [vmem:[#allocation22 + $0xbbc] sm:$0xf0] }
 0x47d   :  { %6717 = vmatpush.bf16.msrb.mxu3 %v11304_v6  ;;  %6743 = vmatpush.bf16.msra.mxu1 %v11308_v9  ;;  %v10824_v6 = vor.u32 %v12227_v17, %v10823_v61  ;;  %v10828_v9 = vor.u32 %v12215_v47, %v10825_v62  ;;  %v10156_v0 = vor.u32 %v12047_v5, %v10153_v52  ;;  %v12360_v1 = vld [vmem:[#allocation22 + $0xb5c] sm:$0xf] }
 0x47e   :  { %6607 = vmatmul.bf16.vlgmr.msrb.gmra.mxu2 %v13249_v63  ;;  %6633 = vmatmul.bf16.vlgmr.msra.gmra.mxu0 %v13249_v63  ;;  %v11412_v48 = vor.u32 %v12360_v1, %v11409_v19  ;;  %v12288_v61 = vld [vmem:[#allocation22 + $0x91c] sm:$0xf]  ;;  %v10548_v62 = vor.u32 %v12144_v56, %v10545_v57  ;;  %v11028_v19 = vor.u32 %v12264_v15, %v11025_v12  ;;  %v10063_v56 = vld [vmem:[#allocation22 + $0xd8] sm:$0xf]  ;;  %v10647_v15 = vld [vmem:[#allocation22 + $0x560] sm:$0xf] }
 0x47f   :  { %6703 = vmatpush.bf16.msrb.mxu2 %v10632_v7  ;;  %6729 = vmatpush.bf16.msra.mxu0 %v10636_v16  ;;  %v11407_v7 = vld [vmem:[#allocation22 + $0xb58] sm:$0xf]  ;;  %v11121_v17 = vld [vmem:[#allocation22 + $0x978] sm:$0xf0]  ;;  %v12181_v12 = vld [vmem:[#allocation22 + $0x5bc] sm:$0xf0] }
 0x480   :  { %v12372_v16 = vld [vmem:[#allocation22 + $0xbb4] sm:$0xf0]  ;;  %v11124_v52 = vor.u32 %v12288_v61, %v11121_v17  ;;  %v11416_v61 = vor.u32 %v12373_v43, %v11415_v54  ;;  %v10648_v31 = vor.u32 %v12181_v12, %v10647_v15  ;;  %v10359_v54 = vld [vmem:[#allocation22 + $0x320] sm:$0xf] }
 0x481   :  { %6718 = vmatpush.bf16.msrb.mxu3 %v11208_v44  ;;  %6744 = vmatpush.bf16.msra.mxu1 %v11212_v21  ;;  %v12023_v44 = vld [vmem:[#allocation22 + $0xd4] sm:$0xf]  ;;  %v11408_v27 = vor.u32 %v12372_v16, %v11407_v7  ;;  %v10351_v7 = vld [vmem:[#allocation22 + $0x318] sm:$0xf]  ;;  %v12109_v43 = vld [vmem:[#allocation22 + $0x37c] sm:$0xf0] }
 0x482   :  { %v10057_v21 = vld [vmem:[#allocation22 + $0x130] sm:$0xf0]  ;;  %v12108_v16 = vld [vmem:[#allocation22 + $0x374] sm:$0xf0]  ;;  %v10167_v15 = vld [vmem:[#allocation22 + $0x1a0] sm:$0xf] }
 0x483   :  { %6704 = vmatpush.bf16.msrb.mxu2 %v10536_v35  ;;  %6730 = vmatpush.bf16.msra.mxu0 %v10540_v51  ;;  %v11311_v35 = vld [vmem:[#allocation22 + $0xa98] sm:$0xf]  ;;  %v10060_v55 = vor.u32 %v12023_v44, %v10057_v21  ;;  %v12240_v44 = vld [vmem:[#allocation22 + $0x79c] sm:$0xf]  ;;  %v12061_v12 = vld [vmem:[#allocation22 + $0x1fc] sm:$0xf0] }
 0x484   :  { %v12348_v51 = vld [vmem:[#allocation22 + $0xaf4] sm:$0xf0]  ;;  %v10929_v21 = vld [vmem:[#allocation22 + $0x7f8] sm:$0xf0] }
 0x485   :  { %6719 = vmatpush.bf16.msrb.mxu3 %v11112_v32  ;;  %6745 = vmatpush.bf16.msra.mxu1 %v11116_v39  ;;  %v9959_v32 = vld [vmem:[#allocation22 + $0x10] sm:$0xf]  ;;  %v11312_v37 = vor.u32 %v12348_v51, %v11311_v35  ;;  %v12072_v35 = vld [vmem:[#allocation22 + $0x25c] sm:$0xf]  ;;  %v12036_v57 = vld [vmem:[#allocation22 + $0x134] sm:$0xf0] }
 0x486   :  { %v12011_v39 = vld [vmem:[#allocation22 + $0x6c] sm:$0xf0]  ;;  %v10257_v51 = vld [vmem:[#allocation22 + $0x2b8] sm:$0xf0] }
 0x487   :  { %6705 = vmatpush.bf16.msrb.mxu2 %v10440_v30  ;;  %6731 = vmatpush.bf16.msra.mxu0 %v10444_v34  ;;  %v12168_v30 = vld [vmem:[#allocation22 + $0x55c] sm:$0xf]  ;;  %v9960_v45 = vor.u32 %v12011_v39, %v9959_v32 }
 0x488   :  { %6672 = vmatmul.bf16.vlgmr.msra.gmra.mxu3 %v13245_v59  ;;  %6698 = vmatmul.bf16.vlgmr.msrb.gmra.mxu1 %v13245_v59  ;;  %v10641_v34 = vld [vmem:[#allocation22 + $0x5b8] sm:$0xf0] }
 0x489   :  { %6720 = vmatpush.bf16.msrb.mxu3 %v11016_v11  ;;  %6746 = vmatpush.bf16.msra.mxu1 %v11020_v53  ;;  %v9964_v11 = vor.u32 %v11999_v33, %v9961_v28  ;;  %v12324_v53 = vld [vmem:[#allocation22 + $0xa34] sm:$0xf0]  ;;  %v10644_v46 = vor.u32 %v12168_v30, %v10641_v34  ;;  %v12216_v32 = vld [vmem:[#allocation22 + $0x6dc] sm:$0xf]  ;;  %v10260_v28 = vor.u32 %v12072_v35, %v10257_v51 }
 0x48a   :  { %v11216_v58 = vor.u32 %v12324_v53, %v11215_v41  ;;  %v10833_v39 = vld [vmem:[#allocation22 + $0x738] sm:$0xf0]  ;;  %v10735_v41 = vld [vmem:[#allocation22 + $0x618] sm:$0xf] }
 0x48b   :  { %6706 = vmatpush.bf16.msrb.mxu2 %v10344_v10  ;;  %6732 = vmatpush.bf16.msra.mxu0 %v10348_v50  ;;  %v10543_v10 = vld [vmem:[#allocation22 + $0x498] sm:$0xf]  ;;  %v12048_v30 = vld [vmem:[#allocation22 + $0x19c] sm:$0xf] }
 0x48c   :  { %v12156_v50 = vld [vmem:[#allocation22 + $0x4f4] sm:$0xf0]  ;;  %v10161_v34 = vld [vmem:[#allocation22 + $0x1f8] sm:$0xf0] }
 0x48d   :  { %6721 = vmatpush.bf16.msrb.mxu3 %v10920_v60  ;;  %6747 = vmatpush.bf16.msra.mxu1 %v10924_v18  ;;  %v11119_v60 = vld [vmem:[#allocation22 + $0x918] sm:$0xf]  ;;  %v10544_v47 = vor.u32 %v12156_v50, %v10543_v10  ;;  %v10737_v53 = vld [vmem:[#allocation22 + $0x678] sm:$0xf0]  ;;  %v12361_v10 = vld [vmem:[#allocation22 + $0xb64] sm:$0xf] }
 0x48e   :  { %6659 = vmatmul.bf16.vlgmr.msra.gmra.mxu2 %v13249_v63  ;;  %6685 = vmatmul.bf16.vlgmr.msrb.gmra.mxu0 %v13249_v63  ;;  %v12300_v18 = vld [vmem:[#allocation22 + $0x974] sm:$0xf0]  ;;  %v11417_v50 = vld [vmem:[#allocation22 + $0xbc0] sm:$0xf0] }
 0x48f   :  { %6707 = vmatpush.bf16.msrb.mxu2 %v10248_v22  ;;  %6733 = vmatpush.bf16.msra.mxu0 %v10252_v49  ;;  %v10447_v22 = vld [vmem:[#allocation22 + $0x3d8] sm:$0xf]  ;;  %v11120_v5 = vor.u32 %v12300_v18, %v11119_v60  ;;  %v11420_v17 = vor.u32 %v12361_v10, %v11417_v50 }
 0x490   :  { %v12132_v49 = vld [vmem:[#allocation22 + $0x434] sm:$0xf0] }
 0x491   :  { %6722 = vmatpush.bf16.msrb.mxu3 %v10824_v6  ;;  %6748 = vmatpush.bf16.msra.mxu1 %v10828_v9  ;;  %v11023_v6 = vld [vmem:[#allocation22 + $0x858] sm:$0xf]  ;;  %v10448_v3 = vor.u32 %v12132_v49, %v10447_v22  ;;  %v12337_v22 = vld [vmem:[#allocation22 + $0xaa4] sm:$0xf]  ;;  %v10064_v49 = vor.u32 %v12036_v57, %v10063_v56  ;;  %v10935_v56 = vld [vmem:[#allocation22 + $0x7a0] sm:$0xf] }
 0x492   :  { %v12276_v9 = vld [vmem:[#allocation22 + $0x8b4] sm:$0xf0]  ;;  %v12253_v57 = vld [vmem:[#allocation22 + $0x7fc] sm:$0xf0] }
 0x493   :  { %6708 = vmatpush.bf16.msrb.mxu2 %v10152_v8  ;;  %6734 = vmatpush.bf16.msra.mxu0 %v10156_v0  ;;  %v12096_v8 = vld [vmem:[#allocation22 + $0x31c] sm:$0xf]  ;;  %v11024_v1 = vor.u32 %v12276_v9, %v11023_v6 }
 0x494   :  { %v10353_v0 = vld [vmem:[#allocation22 + $0x378] sm:$0xf0] }
 0x495   :  { %6723 = vmatpush.bf16.msrb.mxu3 %v10728_v23  ;;  %6749 = vmatpush.bf16.msra.mxu1 %v10732_v24  ;;  %v10352_v23 = vor.u32 %v12108_v16, %v10351_v7  ;;  %v10356_v24 = vor.u32 %v12096_v8, %v10353_v0  ;;  %v12000_v6 = vld [vmem:[#allocation22 + $0x1c] sm:$0xf]  ;;  %v11324_v16 = vor.u32 %v12337_v22, %v11321_v4  ;;  %v12229_v4 = vld [vmem:[#allocation22 + $0x73c] sm:$0xf0] }
 0x496   :  { %v9969_v9 = vld [vmem:[#allocation22 + $0x78] sm:$0xf0]  ;;  %v10936_v22 = vor.u32 %v12253_v57, %v10935_v56 }
 0x497   :  { %6709 = vmatpush.bf16.msrb.mxu2 %v10056_v36  ;;  %6735 = vmatpush.bf16.msra.mxu0 %v10060_v55  ;;  %v10932_v36 = vor.u32 %v12240_v44, %v10929_v21  ;;  %v10831_v55 = vld [vmem:[#allocation22 + $0x6d8] sm:$0xf]  ;;  %v9972_v0 = vor.u32 %v12000_v6, %v9969_v9  ;;  %v12313_v44 = vld [vmem:[#allocation22 + $0x9e4] sm:$0xf] }
 0x498   :  { %6724 = vmatmul.bf16.vlgmr.msrb.gmra.mxu3 %v13245_v59  ;;  %6750 = vmatmul.bf16.vlgmr.msra.gmra.mxu1 %v13245_v59  ;;  %v11225_v21 = vld [vmem:[#allocation22 + $0xa40] sm:$0xf0] }
 0x499   :  { %6768 = vmatpush.bf16.msra.mxu3 %v11408_v27  ;;  %6794 = vmatpush.bf16.msrb.mxu1 %v11412_v48  ;;  %v10255_v27 = vld [vmem:[#allocation22 + $0x258] sm:$0xf]  ;;  %v11228_v51 = vor.u32 %v12313_v44, %v11225_v21  ;;  %v12217_v6 = vld [vmem:[#allocation22 + $0x6e4] sm:$0xf]  ;;  %v11423_v44 = vld [vmem:[#allocation22 + $0xb68] sm:$0xf] }
 0x49a   :  { %v12084_v48 = vld [vmem:[#allocation22 + $0x2b4] sm:$0xf0]  ;;  %v10841_v9 = vld [vmem:[#allocation22 + $0x740] sm:$0xf0]  ;;  %v12374_v21 = vld [vmem:[#allocation22 + $0xbc4] sm:$0xf0] }
 0x49b   :  { %6710 = vmatpush.bf16.msrb.mxu2 %v9960_v45  ;;  %6736 = vmatpush.bf16.msra.mxu0 %v9964_v11  ;;  %v10256_v33 = vor.u32 %v12084_v48, %v10255_v27  ;;  %v12204_v45 = vld [vmem:[#allocation22 + $0x674] sm:$0xf0]  ;;  %v12192_v11 = vld [vmem:[#allocation22 + $0x61c] sm:$0xf]  ;;  %v12145_v27 = vld [vmem:[#allocation22 + $0x4a4] sm:$0xf] }
 0x49c   :  { %v10736_v60 = vor.u32 %v12204_v45, %v10735_v41  ;;  %v10740_v18 = vor.u32 %v12192_v11, %v10737_v53  ;;  %v10553_v48 = vld [vmem:[#allocation22 + $0x500] sm:$0xf0] }
 0x49d   :  { %6769 = vmatpush.bf16.msra.mxu3 %v11312_v37  ;;  %6795 = vmatpush.bf16.msrb.mxu1 %v11316_v40  ;;  %v10832_v37 = vor.u32 %v12228_v26, %v10831_v55  ;;  %v10836_v40 = vor.u32 %v12216_v32, %v10833_v39  ;;  %v10556_v26 = vor.u32 %v12145_v27, %v10553_v48  ;;  %v12289_v32 = vld [vmem:[#allocation22 + $0x924] sm:$0xf]  ;;  %v10071_v27 = vld [vmem:[#allocation22 + $0xe0] sm:$0xf] }
 0x49e   :  { %6711 = vmatmul.bf16.vlgmr.msrb.gmra.mxu2 %v13249_v63  ;;  %6737 = vmatmul.bf16.vlgmr.msra.gmra.mxu0 %v13249_v63  ;;  %v11129_v39 = vld [vmem:[#allocation22 + $0x980] sm:$0xf0]  ;;  %v12037_v48 = vld [vmem:[#allocation22 + $0x13c] sm:$0xf0] }
 0x49f   :  { %6755 = vmatpush.bf16.msra.mxu2 %v10640_v42  ;;  %6781 = vmatpush.bf16.msrb.mxu0 %v10644_v46  ;;  %v10160_v42 = vor.u32 %v12060_v29, %v10159_v38  ;;  %v10164_v46 = vor.u32 %v12048_v30, %v10161_v34  ;;  %v12121_v38 = vld [vmem:[#allocation22 + $0x3e4] sm:$0xf]  ;;  %v11132_v34 = vor.u32 %v12289_v32, %v11129_v39  ;;  %v11327_v32 = vld [vmem:[#allocation22 + $0xaa8] sm:$0xf] }
 0x4a0   :  { %v10457_v29 = vld [vmem:[#allocation22 + $0x440] sm:$0xf0]  ;;  %v12350_v39 = vld [vmem:[#allocation22 + $0xb04] sm:$0xf0] }
 0x4a1   :  { %6770 = vmatpush.bf16.msra.mxu3 %v11216_v58  ;;  %6796 = vmatpush.bf16.msrb.mxu1 %v11220_v13  ;;  %v12024_v58 = vld [vmem:[#allocation22 + $0xdc] sm:$0xf]  ;;  %v10460_v45 = vor.u32 %v12121_v38, %v10457_v29  ;;  %v12265_v11 = vld [vmem:[#allocation22 + $0x864] sm:$0xf]  ;;  %v11329_v29 = vld [vmem:[#allocation22 + $0xb08] sm:$0xf0] }
 0x4a2   :  { %v10065_v13 = vld [vmem:[#allocation22 + $0x138] sm:$0xf0]  ;;  %v11033_v53 = vld [vmem:[#allocation22 + $0x8c0] sm:$0xf0] }
 0x4a3   :  { %6756 = vmatpush.bf16.msra.mxu2 %v10544_v47  ;;  %6782 = vmatpush.bf16.msrb.mxu0 %v10548_v62  ;;  %v11319_v47 = vld [vmem:[#allocation22 + $0xaa0] sm:$0xf]  ;;  %v10068_v2 = vor.u32 %v12024_v58, %v10065_v13  ;;  %v11036_v50 = vor.u32 %v12265_v11, %v11033_v53  ;;  %v10360_v58 = vor.u32 %v12109_v43, %v10359_v54  ;;  %v12170_v11 = vld [vmem:[#allocation22 + $0x56c] sm:$0xf] }
 0x4a4   :  { %v12349_v62 = vld [vmem:[#allocation22 + $0xafc] sm:$0xf0]  ;;  %v10657_v53 = vld [vmem:[#allocation22 + $0x5c8] sm:$0xf0]  ;;  %v11328_v54 = vor.u32 %v12350_v39, %v11327_v32 }
 0x4a5   :  { %6771 = vmatpush.bf16.msra.mxu3 %v11120_v5  ;;  %6797 = vmatpush.bf16.msrb.mxu1 %v11124_v52  ;;  %v9967_v5 = vld [vmem:[#allocation22 + $0x18] sm:$0xf]  ;;  %v11320_v7 = vor.u32 %v12349_v62, %v11319_v47  ;;  %v12073_v47 = vld [vmem:[#allocation22 + $0x264] sm:$0xf]  ;;  %v10660_v57 = vor.u32 %v12170_v11, %v10657_v53  ;;  %v12074_v32 = vld [vmem:[#allocation22 + $0x26c] sm:$0xf] }
 0x4a6   :  { %v12012_v52 = vld [vmem:[#allocation22 + $0x74] sm:$0xf0]  ;;  %v10265_v62 = vld [vmem:[#allocation22 + $0x2c0] sm:$0xf0]  ;;  %v10273_v39 = vld [vmem:[#allocation22 + $0x2c8] sm:$0xf0] }
 0x4a7   :  { %6757 = vmatpush.bf16.msra.mxu2 %v10448_v3  ;;  %6783 = vmatpush.bf16.msrb.mxu0 %v10452_v14  ;;  %v12169_v3 = vld [vmem:[#allocation22 + $0x564] sm:$0xf]  ;;  %v9968_v8 = vor.u32 %v12012_v52, %v9967_v5  ;;  %v10268_v52 = vor.u32 %v12073_v47, %v10265_v62  ;;  %v12050_v11 = vld [vmem:[#allocation22 + $0x1ac] sm:$0xf] }
 0x4a8   :  { %v10649_v14 = vld [vmem:[#allocation22 + $0x5c0] sm:$0xf0]  ;;  %v10177_v53 = vld [vmem:[#allocation22 + $0x208] sm:$0xf0] }
 0x4a9   :  { %6772 = vmatpush.bf16.msra.mxu3 %v11024_v1  ;;  %6798 = vmatpush.bf16.msrb.mxu1 %v11028_v19  ;;  %v11223_v1 = vld [vmem:[#allocation22 + $0x9e0] sm:$0xf]  ;;  %v10652_v20 = vor.u32 %v12169_v3, %v10649_v14  ;;  %v12049_v3 = vld [vmem:[#allocation22 + $0x1a4] sm:$0xf] }
 0x4aa   :  { %v12325_v19 = vld [vmem:[#allocation22 + $0xa3c] sm:$0xf0]  ;;  %v10169_v14 = vld [vmem:[#allocation22 + $0x200] sm:$0xf0] }
 0x4ab   :  { %6758 = vmatpush.bf16.msra.mxu2 %v10352_v23  ;;  %6784 = vmatpush.bf16.msrb.mxu0 %v10356_v24  ;;  %v10551_v23 = vld [vmem:[#allocation22 + $0x4a0] sm:$0xf]  ;;  %v11224_v35 = vor.u32 %v12325_v19, %v11223_v1  ;;  %v12193_v1 = vld [vmem:[#allocation22 + $0x624] sm:$0xf]  ;;  %v10168_v19 = vor.u32 %v12061_v12, %v10167_v15  ;;  %v12122_v15 = vld [vmem:[#allocation22 + $0x3ec] sm:$0xf] }
 0x4ac   :  { %v12157_v24 = vld [vmem:[#allocation22 + $0x4fc] sm:$0xf0]  ;;  %v10465_v12 = vld [vmem:[#allocation22 + $0x448] sm:$0xf0] }
 0x4ad   :  { %6773 = vmatpush.bf16.msra.mxu3 %v10928_v25  ;;  %6799 = vmatpush.bf16.msrb.mxu1 %v10932_v36  ;;  %v11127_v25 = vld [vmem:[#allocation22 + $0x920] sm:$0xf]  ;;  %v10552_v55 = vor.u32 %v12157_v24, %v10551_v23  ;;  %v12362_v23 = vld [vmem:[#allocation22 + $0xb6c] sm:$0xf] }
 0x4ae   :  { %v12301_v36 = vld [vmem:[#allocation22 + $0x97c] sm:$0xf0]  ;;  %v11425_v24 = vld [vmem:[#allocation22 + $0xbc8] sm:$0xf0] }
 0x4af   :  { %6759 = vmatpush.bf16.msra.mxu2 %v10256_v33  ;;  %6785 = vmatpush.bf16.msrb.mxu0 %v10260_v28  ;;  %v10455_v33 = vld [vmem:[#allocation22 + $0x3e0] sm:$0xf]  ;;  %v11128_v30 = vor.u32 %v12301_v36, %v11127_v25 }
 0x4b0   :  { %v12133_v28 = vld [vmem:[#allocation22 + $0x43c] sm:$0xf0] }
 0x4b1   :  { %6774 = vmatpush.bf16.msra.mxu3 %v10832_v37  ;;  %6800 = vmatpush.bf16.msrb.mxu1 %v10836_v40  ;;  %v11031_v37 = vld [vmem:[#allocation22 + $0x860] sm:$0xf]  ;;  %v10456_v41 = vor.u32 %v12133_v28, %v10455_v33  ;;  %v12338_v33 = vld [vmem:[#allocation22 + $0xaac] sm:$0xf]  ;;  %v10072_v28 = vor.u32 %v12037_v48, %v10071_v27  ;;  %v10943_v27 = vld [vmem:[#allocation22 + $0x7a8] sm:$0xf] }
 0x4b2   :  { %v12277_v40 = vld [vmem:[#allocation22 + $0x8bc] sm:$0xf0]  ;;  %v11332_v43 = vor.u32 %v12338_v33, %v11329_v29  ;;  %v12254_v48 = vld [vmem:[#allocation22 + $0x804] sm:$0xf0] }
 0x4b3   :  { %6760 = vmatpush.bf16.msra.mxu2 %v10160_v42  ;;  %6786 = vmatpush.bf16.msrb.mxu0 %v10164_v46  ;;  %v12097_v42 = vld [vmem:[#allocation22 + $0x324] sm:$0xf]  ;;  %v11032_v10 = vor.u32 %v12277_v40, %v11031_v37  ;;  %v10944_v33 = vor.u32 %v12254_v48, %v10943_v27  ;;  %v12230_v29 = vld [vmem:[#allocation22 + $0x744] sm:$0xf0] }
 0x4b4   :  { %v10361_v46 = vld [vmem:[#allocation22 + $0x380] sm:$0xf0] }
 0x4b5   :  { %6775 = vmatpush.bf16.msra.mxu3 %v10736_v60  ;;  %6801 = vmatpush.bf16.msrb.mxu1 %v10740_v18  ;;  %v10364_v13 = vor.u32 %v12097_v42, %v10361_v46  ;;  %v12241_v60 = vld [vmem:[#allocation22 + $0x7a4] sm:$0xf] }
 0x4b6   :  { %v10937_v18 = vld [vmem:[#allocation22 + $0x800] sm:$0xf0] }
 0x4b7   :  { %6761 = vmatpush.bf16.msra.mxu2 %v10064_v49  ;;  %6787 = vmatpush.bf16.msrb.mxu0 %v10068_v2  ;;  %v10940_v49 = vor.u32 %v12241_v60, %v10937_v18  ;;  %v10839_v2 = vld [vmem:[#allocation22 + $0x6e0] sm:$0xf]  ;;  %v12001_v37 = vld [vmem:[#allocation22 + $0x24] sm:$0xf]  ;;  %v10559_v60 = vld [vmem:[#allocation22 + $0x4a8] sm:$0xf] }
 0x4b8   :  { %6776 = vmatmul.bf16.vlgmr.msra.gmra.mxu3 %v13245_v59  ;;  %6802 = vmatmul.bf16.vlgmr.msrb.gmra.mxu1 %v13245_v59  ;;  %v9977_v40 = vld [vmem:[#allocation22 + $0x80] sm:$0xf0]  ;;  %v12158_v18 = vld [vmem:[#allocation22 + $0x504] sm:$0xf0] }
 0x4b9   :  { %6820 = vmatpush.bf16.msrb.mxu3 %v11416_v61  ;;  %6846 = vmatpush.bf16.msra.mxu1 %v11420_v17  ;;  %v10263_v61 = vld [vmem:[#allocation22 + $0x260] sm:$0xf]  ;;  %v9980_v46 = vor.u32 %v12001_v37, %v9977_v40  ;;  %v12218_v37 = vld [vmem:[#allocation22 + $0x6ec] sm:$0xf] }
 0x4ba   :  { %v12085_v17 = vld [vmem:[#allocation22 + $0x2bc] sm:$0xf0]  ;;  %v10849_v40 = vld [vmem:[#allocation22 + $0x748] sm:$0xf0] }
 0x4bb   :  { %6762 = vmatpush.bf16.msra.mxu2 %v9968_v8  ;;  %6788 = vmatpush.bf16.msrb.mxu0 %v9972_v0  ;;  %v10264_v5 = vor.u32 %v12085_v17, %v10263_v61  ;;  %v10743_v8 = vld [vmem:[#allocation22 + $0x620] sm:$0xf]  ;;  %v12146_v61 = vld [vmem:[#allocation22 + $0x4ac] sm:$0xf] }
 0x4bc   :  { %v12205_v0 = vld [vmem:[#allocation22 + $0x67c] sm:$0xf0]  ;;  %v10561_v17 = vld [vmem:[#allocation22 + $0x508] sm:$0xf0] }
 0x4bd   :  { %6821 = vmatpush.bf16.msrb.mxu3 %v11320_v7  ;;  %6847 = vmatpush.bf16.msra.mxu1 %v11324_v16  ;;  %v10840_v7 = vor.u32 %v12229_v4, %v10839_v2  ;;  %v10844_v16 = vor.u32 %v12217_v6, %v10841_v9  ;;  %v10744_v25 = vor.u32 %v12205_v0, %v10743_v8  ;;  %v10463_v6 = vld [vmem:[#allocation22 + $0x3e8] sm:$0xf] }
 0x4be   :  { %6763 = vmatmul.bf16.vlgmr.msra.gmra.mxu2 %v13249_v63  ;;  %6789 = vmatmul.bf16.vlgmr.msrb.gmra.mxu0 %v13249_v63  ;;  %v10560_v2 = vor.u32 %v12158_v18, %v10559_v60  ;;  %v10564_v4 = vor.u32 %v12146_v61, %v10561_v17  ;;  %v12134_v9 = vld [vmem:[#allocation22 + $0x444] sm:$0xf0]  ;;  %v10468_v0 = vor.u32 %v12122_v15, %v10465_v12  ;;  %v12363_v60 = vld [vmem:[#allocation22 + $0xb74] sm:$0xf] }
 0x4bf   :  { %6807 = vmatpush.bf16.msrb.mxu2 %v10648_v31  ;;  %6833 = vmatpush.bf16.msra.mxu0 %v10652_v20  ;;  %v10172_v31 = vor.u32 %v12049_v3, %v10169_v14  ;;  %v10745_v20 = vld [vmem:[#allocation22 + $0x680] sm:$0xf0]  ;;  %v10464_v8 = vor.u32 %v12134_v9, %v10463_v6  ;;  %v11433_v18 = vld [vmem:[#allocation22 + $0xbd0] sm:$0xf0]  ;;  %v10079_v61 = vld [vmem:[#allocation22 + $0xe8] sm:$0xf] }
 0x4c0   :  { %v10748_v36 = vor.u32 %v12193_v1, %v10745_v20  ;;  %v12266_v1 = vld [vmem:[#allocation22 + $0x86c] sm:$0xf]  ;;  %v12110_v20 = vld [vmem:[#allocation22 + $0x384] sm:$0xf0]  ;;  %v12339_v6 = vld [vmem:[#allocation22 + $0xab4] sm:$0xf] }
 0x4c1   :  { %6822 = vmatpush.bf16.msrb.mxu3 %v11224_v35  ;;  %6848 = vmatpush.bf16.msra.mxu1 %v11228_v51  ;;  %v12025_v35 = vld [vmem:[#allocation22 + $0xe4] sm:$0xf]  ;;  %v12038_v17 = vld [vmem:[#allocation22 + $0x144] sm:$0xf0]  ;;  %v11337_v12 = vld [vmem:[#allocation22 + $0xb10] sm:$0xf0] }
 0x4c2   :  { %v10073_v51 = vld [vmem:[#allocation22 + $0x140] sm:$0xf0]  ;;  %v10080_v9 = vor.u32 %v12038_v17, %v10079_v61  ;;  %v10377_v61 = vld [vmem:[#allocation22 + $0x390] sm:$0xf0] }
 0x4c3   :  { %6808 = vmatpush.bf16.msrb.mxu2 %v10552_v55  ;;  %6834 = vmatpush.bf16.msra.mxu0 %v10556_v26  ;;  %v11424_v55 = vor.u32 %v12374_v21, %v11423_v44  ;;  %v11428_v26 = vor.u32 %v12362_v23, %v11425_v24  ;;  %v10076_v38 = vor.u32 %v12025_v35, %v10073_v51  ;;  %v12098_v44 = vld [vmem:[#allocation22 + $0x32c] sm:$0xf] }
 0x4c4   :  { %v10369_v21 = vld [vmem:[#allocation22 + $0x388] sm:$0xf0] }
 0x4c5   :  { %6823 = vmatpush.bf16.msrb.mxu3 %v11128_v30  ;;  %6849 = vmatpush.bf16.msra.mxu1 %v11132_v34  ;;  %v9975_v30 = vld [vmem:[#allocation22 + $0x20] sm:$0xf]  ;;  %v10372_v51 = vor.u32 %v12098_v44, %v10369_v21 }
 0x4c6   :  { %v12013_v34 = vld [vmem:[#allocation22 + $0x7c] sm:$0xf0] }
 0x4c7   :  { %6809 = vmatpush.bf16.msrb.mxu2 %v10456_v41  ;;  %6835 = vmatpush.bf16.msra.mxu0 %v10460_v45  ;;  %v10655_v41 = vld [vmem:[#allocation22 + $0x568] sm:$0xf]  ;;  %v9976_v42 = vor.u32 %v12013_v34, %v9975_v30  ;;  %v10276_v34 = vor.u32 %v12074_v32, %v10273_v39 }
 0x4c8   :  { %v12182_v45 = vld [vmem:[#allocation22 + $0x5c4] sm:$0xf0] }
 0x4c9   :  { %6824 = vmatpush.bf16.msrb.mxu3 %v11032_v10  ;;  %6850 = vmatpush.bf16.msra.mxu1 %v11036_v50  ;;  %v11231_v10 = vld [vmem:[#allocation22 + $0x9e8] sm:$0xf]  ;;  %v10656_v56 = vor.u32 %v12182_v45, %v10655_v41 }
 0x4ca   :  { %v12326_v50 = vld [vmem:[#allocation22 + $0xa44] sm:$0xf0] }
 0x4cb   :  { %6810 = vmatpush.bf16.msrb.mxu2 %v10360_v58  ;;  %6836 = vmatpush.bf16.msra.mxu0 %v10364_v13  ;;  %v12314_v58 = vld [vmem:[#allocation22 + $0x9ec] sm:$0xf]  ;;  %v11232_v47 = vor.u32 %v12326_v50, %v11231_v10  ;;  %v10175_v41 = vld [vmem:[#allocation22 + $0x1a8] sm:$0xf] }
 0x4cc   :  { %v11233_v13 = vld [vmem:[#allocation22 + $0xa48] sm:$0xf0]  ;;  %v12062_v45 = vld [vmem:[#allocation22 + $0x204] sm:$0xf0] }
 0x4cd   :  { %6825 = vmatpush.bf16.msrb.mxu3 %v10936_v22  ;;  %6851 = vmatpush.bf16.msra.mxu1 %v10940_v49  ;;  %v11236_v62 = vor.u32 %v12314_v58, %v11233_v13  ;;  %v11135_v22 = vld [vmem:[#allocation22 + $0x928] sm:$0xf]  ;;  %v12194_v10 = vld [vmem:[#allocation22 + $0x62c] sm:$0xf]  ;;  %v10176_v50 = vor.u32 %v12062_v45, %v10175_v41  ;;  %v11431_v58 = vld [vmem:[#allocation22 + $0xb70] sm:$0xf] }
 0x4ce   :  { %v12302_v49 = vld [vmem:[#allocation22 + $0x984] sm:$0xf0]  ;;  %v12375_v13 = vld [vmem:[#allocation22 + $0xbcc] sm:$0xf0]  ;;  %v13271_v41 = vld [vmem:[#allocation23] sm:$0xff] }
 0x4cf   :  { %6811 = vmatpush.bf16.msrb.mxu2 %v10264_v5  ;;  %6837 = vmatpush.bf16.msra.mxu0 %v10268_v52  ;;  %v12290_v5 = vld [vmem:[#allocation22 + $0x92c] sm:$0xf]  ;;  %v11136_v3 = vor.u32 %v12302_v49, %v11135_v22  ;;  %v12135_v45 = vld [vmem:[#allocation22 + $0x44c] sm:$0xf0] }
 0x4d0   :  { %v11137_v52 = vld [vmem:[#allocation22 + $0x988] sm:$0xf0] }
 0x4d1   :  { %6826 = vmatpush.bf16.msrb.mxu3 %v10840_v7  ;;  %6852 = vmatpush.bf16.msra.mxu1 %v10844_v16  ;;  %v11140_v14 = vor.u32 %v12290_v5, %v11137_v52  ;;  %v11039_v7 = vld [vmem:[#allocation22 + $0x868] sm:$0xf]  ;;  %v11335_v5 = vld [vmem:[#allocation22 + $0xab0] sm:$0xf] }
 0x4d2   :  { %v12278_v16 = vld [vmem:[#allocation22 + $0x8c4] sm:$0xf0]  ;;  %v12351_v52 = vld [vmem:[#allocation22 + $0xb0c] sm:$0xf0] }
 0x4d3   :  { %6812 = vmatpush.bf16.msrb.mxu2 %v10168_v19  ;;  %6838 = vmatpush.bf16.msra.mxu0 %v10172_v31  ;;  %v11041_v19 = vld [vmem:[#allocation22 + $0x8c8] sm:$0xf0]  ;;  %v10367_v31 = vld [vmem:[#allocation22 + $0x328] sm:$0xf]  ;;  %v11040_v23 = vor.u32 %v12278_v16, %v11039_v7 }
 0x4d4   :  { %v11044_v24 = vor.u32 %v12266_v1, %v11041_v19  ;;  %v10368_v35 = vor.u32 %v12110_v20, %v10367_v31  ;;  %v12002_v7 = vld [vmem:[#allocation22 + $0x2c] sm:$0xf]  ;;  %v12171_v1 = vld [vmem:[#allocation22 + $0x574] sm:$0xf]  ;;  %v11336_v31 = vor.u32 %v12351_v52, %v11335_v5  ;;  %v11340_v20 = vor.u32 %v12339_v6, %v11337_v12  ;;  %v10279_v12 = vld [vmem:[#allocation22 + $0x270] sm:$0xf] }
 0x4d5   :  { %6827 = vmatpush.bf16.msrb.mxu3 %v10744_v25  ;;  %6853 = vmatpush.bf16.msra.mxu1 %v10748_v36  ;;  %v12242_v25 = vld [vmem:[#allocation22 + $0x7ac] sm:$0xf]  ;;  %v10665_v19 = vld [vmem:[#allocation22 + $0x5d0] sm:$0xf0] }
 0x4d6   :  { %v10945_v36 = vld [vmem:[#allocation22 + $0x808] sm:$0xf0]  ;;  %v10668_v48 = vor.u32 %v12171_v1, %v10665_v19  ;;  %v12243_v5 = vld [vmem:[#allocation22 + $0x7b4] sm:$0xf] }
 0x4d7   :  { %6813 = vmatpush.bf16.msrb.mxu2 %v10072_v28  ;;  %6839 = vmatpush.bf16.msra.mxu0 %v10076_v38  ;;  %v10948_v28 = vor.u32 %v12242_v25, %v10945_v36  ;;  %v10847_v38 = vld [vmem:[#allocation22 + $0x6e8] sm:$0xf]  ;;  %v9985_v16 = vld [vmem:[#allocation22 + $0x88] sm:$0xf0]  ;;  %v10567_v25 = vld [vmem:[#allocation22 + $0x4b0] sm:$0xf] }
 0x4d8   :  { %6828 = vmatmul.bf16.vlgmr.msrb.gmra.mxu3 %v13245_v59  ;;  %6854 = vmatmul.bf16.vlgmr.msra.gmra.mxu1 %v13245_v59  ;;  %v9988_v21 = vor.u32 %v12002_v7, %v9985_v16  ;;  %v12159_v36 = vld [vmem:[#allocation22 + $0x50c] sm:$0xf0]  ;;  %v4631_v7 = vperm.slane %v13271_v41, 0  ;;  %v12075_v16 = vld [vmem:[#allocation22 + $0x274] sm:$0xf] }
 0x4d9   :  { %6872 = vmatpush.bf16.msra.mxu3 %v11424_v55  ;;  %6898 = vmatpush.bf16.msrb.mxu1 %v11428_v26  ;;  %v10271_v55 = vld [vmem:[#allocation22 + $0x268] sm:$0xf] }
 0x4da   :  { %v12086_v26 = vld [vmem:[#allocation22 + $0x2c4] sm:$0xf0] }
 0x4db   :  { %6814 = vmatpush.bf16.msrb.mxu2 %v9976_v42  ;;  %6840 = vmatpush.bf16.msra.mxu0 %v9980_v46  ;;  %v10272_v30 = vor.u32 %v12086_v26, %v10271_v55  ;;  %v10751_v42 = vld [vmem:[#allocation22 + $0x628] sm:$0xf]  ;;  %v12147_v55 = vld [vmem:[#allocation22 + $0x4b4] sm:$0xf] }
 0x4dc   :  { %v12206_v46 = vld [vmem:[#allocation22 + $0x684] sm:$0xf0]  ;;  %v10569_v26 = vld [vmem:[#allocation22 + $0x510] sm:$0xf0] }
 0x4dd   :  { %6873 = vmatpush.bf16.msra.mxu3 %v11328_v54  ;;  %6899 = vmatpush.bf16.msrb.mxu1 %v11332_v43  ;;  %v10848_v54 = vor.u32 %v12230_v29, %v10847_v38  ;;  %v10852_v43 = vor.u32 %v12218_v37, %v10849_v40  ;;  %v10752_v22 = vor.u32 %v12206_v46, %v10751_v42  ;;  %v12291_v38 = vld [vmem:[#allocation22 + $0x934] sm:$0xf]  ;;  %v10471_v40 = vld [vmem:[#allocation22 + $0x3f0] sm:$0xf]  ;;  %v4632_v42 = vperm.slane %v13271_v41, 1 }
 0x4de   :  { %6815 = vmatmul.bf16.vlgmr.msrb.gmra.mxu2 %v13249_v63  ;;  %6841 = vmatmul.bf16.vlgmr.msra.gmra.mxu0 %v13249_v63  ;;  %v11145_v37 = vld [vmem:[#allocation22 + $0x990] sm:$0xf0]  ;;  %v11047_v46 = vld [vmem:[#allocation22 + $0x870] sm:$0xf] }
 0x4df   :  { %6859 = vmatpush.bf16.msra.mxu2 %v10656_v56  ;;  %6885 = vmatpush.bf16.msrb.mxu0 %v10660_v57  ;;  %v10180_v56 = vor.u32 %v12050_v11, %v10177_v53  ;;  %v10753_v57 = vld [vmem:[#allocation22 + $0x688] sm:$0xf0]  ;;  %v12123_v11 = vld [vmem:[#allocation22 + $0x3f4] sm:$0xf] }
 0x4e0   :  { %v10756_v49 = vor.u32 %v12194_v10, %v10753_v57  ;;  %v10473_v53 = vld [vmem:[#allocation22 + $0x450] sm:$0xf0]  ;;  %v12279_v10 = vld [vmem:[#allocation22 + $0x8cc] sm:$0xf0] }
 0x4e1   :  { %6874 = vmatpush.bf16.msra.mxu3 %v11232_v47  ;;  %6900 = vmatpush.bf16.msrb.mxu1 %v11236_v62  ;;  %v12026_v47 = vld [vmem:[#allocation22 + $0xec] sm:$0xf]  ;;  %v12267_v57 = vld [vmem:[#allocation22 + $0x874] sm:$0xf] }
 0x4e2   :  { %v10081_v62 = vld [vmem:[#allocation22 + $0x148] sm:$0xf0] }
 0x4e3   :  { %6860 = vmatpush.bf16.msra.mxu2 %v10560_v2  ;;  %6886 = vmatpush.bf16.msrb.mxu0 %v10564_v4  ;;  %v11432_v2 = vor.u32 %v12375_v13, %v11431_v58  ;;  %v11436_v4 = vor.u32 %v12363_v60, %v11433_v18  ;;  %v10084_v15 = vor.u32 %v12026_v47, %v10081_v62  ;;  %v11049_v58 = vld [vmem:[#allocation22 + $0x8d0] sm:$0xf0]  ;;  %v10375_v13 = vld [vmem:[#allocation22 + $0x330] sm:$0xf] }
 0x4e4   :  { %v12111_v60 = vld [vmem:[#allocation22 + $0x38c] sm:$0xf0]  ;;  %v12099_v18 = vld [vmem:[#allocation22 + $0x334] sm:$0xf] }
 0x4e5   :  { %6875 = vmatpush.bf16.msra.mxu3 %v11136_v3  ;;  %6901 = vmatpush.bf16.msrb.mxu1 %v11140_v14  ;;  %v9983_v3 = vld [vmem:[#allocation22 + $0x28] sm:$0xf]  ;;  %v10376_v6 = vor.u32 %v12111_v60, %v10375_v13  ;;  %v11343_v13 = vld [vmem:[#allocation22 + $0xab8] sm:$0xf] }
 0x4e6   :  { %v12014_v14 = vld [vmem:[#allocation22 + $0x84] sm:$0xf0] }
 0x4e7   :  { %6861 = vmatpush.bf16.msra.mxu2 %v10464_v8  ;;  %6887 = vmatpush.bf16.msrb.mxu0 %v10468_v0  ;;  %v10663_v8 = vld [vmem:[#allocation22 + $0x570] sm:$0xf]  ;;  %v9984_v44 = vor.u32 %v12014_v14, %v9983_v3 }
 0x4e8   :  { %v12183_v0 = vld [vmem:[#allocation22 + $0x5cc] sm:$0xf0] }
 0x4e9   :  { %6876 = vmatpush.bf16.msra.mxu3 %v11040_v23  ;;  %6902 = vmatpush.bf16.msrb.mxu1 %v11044_v24  ;;  %v11239_v23 = vld [vmem:[#allocation22 + $0x9f0] sm:$0xf]  ;;  %v10664_v27 = vor.u32 %v12183_v0, %v10663_v8  ;;  %v10281_v8 = vld [vmem:[#allocation22 + $0x2d0] sm:$0xf0] }
 0x4ea   :  { %v12327_v24 = vld [vmem:[#allocation22 + $0xa4c] sm:$0xf0] }
 0x4eb   :  { %6862 = vmatpush.bf16.msra.mxu2 %v10368_v35  ;;  %6888 = vmatpush.bf16.msrb.mxu0 %v10372_v51  ;;  %v12315_v35 = vld [vmem:[#allocation22 + $0x9f4] sm:$0xf]  ;;  %v11240_v32 = vor.u32 %v12327_v24, %v11239_v23  ;;  %v12087_v3 = vld [vmem:[#allocation22 + $0x2cc] sm:$0xf0]  ;;  %v10284_v23 = vor.u32 %v12075_v16, %v10281_v8  ;;  %v10673_v16 = vld [vmem:[#allocation22 + $0x5d8] sm:$0xf0] }
 0x4ec   :  { %v11241_v51 = vld [vmem:[#allocation22 + $0xa50] sm:$0xf0] }
 0x4ed   :  { %6877 = vmatpush.bf16.msra.mxu3 %v10944_v33  ;;  %6903 = vmatpush.bf16.msrb.mxu1 %v10948_v28  ;;  %v11244_v39 = vor.u32 %v12315_v35, %v11241_v51  ;;  %v11143_v33 = vld [vmem:[#allocation22 + $0x930] sm:$0xf]  ;;  %v12219_v24 = vld [vmem:[#allocation22 + $0x6f4] sm:$0xf] }
 0x4ee   :  { %v12303_v28 = vld [vmem:[#allocation22 + $0x98c] sm:$0xf0] }
 0x4ef   :  { %6863 = vmatpush.bf16.msra.mxu2 %v10272_v30  ;;  %6889 = vmatpush.bf16.msrb.mxu0 %v10276_v34  ;;  %v10568_v30 = vor.u32 %v12159_v36, %v10567_v25  ;;  %v10572_v34 = vor.u32 %v12147_v55, %v10569_v26  ;;  %v12063_v51 = vld [vmem:[#allocation22 + $0x20c] sm:$0xf0]  ;;  %v12051_v25 = vld [vmem:[#allocation22 + $0x1b4] sm:$0xf] }
 0x4f0   :  { %v10185_v36 = vld [vmem:[#allocation22 + $0x210] sm:$0xf0] }
 0x4f1   :  { %6878 = vmatpush.bf16.msra.mxu3 %v10848_v54  ;;  %6904 = vmatpush.bf16.msrb.mxu1 %v10852_v43  ;;  %v11144_v54 = vor.u32 %v12303_v28, %v11143_v33  ;;  %v11148_v43 = vor.u32 %v12291_v38, %v11145_v37  ;;  %v12207_v38 = vld [vmem:[#allocation22 + $0x68c] sm:$0xf0] }
 0x4f3   :  { %6864 = vmatpush.bf16.msra.mxu2 %v10176_v50  ;;  %6890 = vmatpush.bf16.msrb.mxu0 %v10180_v56  ;;  %v10472_v50 = vor.u32 %v12135_v45, %v10471_v40  ;;  %v10476_v56 = vor.u32 %v12123_v11, %v10473_v53  ;;  %v10188_v40 = vor.u32 %v12051_v25, %v10185_v36  ;;  %v11439_v45 = vld [vmem:[#allocation22 + $0xb78] sm:$0xf]  ;;  %v12364_v53 = vld [vmem:[#allocation22 + $0xb7c] sm:$0xf] }
 0x4f4   :  { %v12376_v11 = vld [vmem:[#allocation22 + $0xbd4] sm:$0xf0]  ;;  %v11249_v25 = vld [vmem:[#allocation22 + $0xa58] sm:$0xf0] }
 0x4f5   :  { %6879 = vmatpush.bf16.msra.mxu3 %v10752_v22  ;;  %6905 = vmatpush.bf16.msrb.mxu1 %v10756_v49  ;;  %v6647_v29 = vpop.f32.mrf.mxu1  ;;  %v11048_v22 = vor.u32 %v12279_v10, %v11047_v46  ;;  %v11052_v49 = vor.u32 %v12267_v57, %v11049_v58  ;;  %v12039_v46 = vld [vmem:[#allocation22 + $0x14c] sm:$0xf0]  ;;  %v12027_v10 = vld [vmem:[#allocation22 + $0xf4] sm:$0xf]  ;;  %v10575_v36 = vld [vmem:[#allocation22 + $0x4b8] sm:$0xf] }
 0x4f7   :  { %6865 = vmatpush.bf16.msra.mxu2 %v10080_v9  ;;  %6891 = vmatpush.bf16.msrb.mxu0 %v10084_v15  ;;  %v10380_v9 = vor.u32 %v12099_v18, %v10377_v61  ;;  %v10953_v15 = vld [vmem:[#allocation22 + $0x810] sm:$0xf0]  ;;  %v11440_v61 = vor.u32 %v12376_v11, %v11439_v45  ;;  %v12304_v45 = vld [vmem:[#allocation22 + $0x994] sm:$0xf0]  ;;  %v12292_v11 = vld [vmem:[#allocation22 + $0x93c] sm:$0xf] }
 0x4f8   :  { %6880 = vmatmul.bf16.vlgmr.msra.gmra.mxu3 %v13245_v59  ;;  %6906 = vmatmul.bf16.vlgmr.msrb.gmra.mxu1 %v13245_v59  ;;  %v10956_v19 = vor.u32 %v12243_v5, %v10953_v15  ;;  %v9991_v5 = vld [vmem:[#allocation22 + $0x30] sm:$0xf]  ;;  %v12003_v15 = vld [vmem:[#allocation22 + $0x34] sm:$0xf] }
 0x4f9   :  { %6924 = vmatpush.bf16.msrb.mxu3 %v11432_v2  ;;  %6950 = vmatpush.bf16.msra.mxu1 %v11436_v4  ;;  %v10951_v2 = vld [vmem:[#allocation22 + $0x7b0] sm:$0xf] }
 0x4fa   :  { %v12255_v4 = vld [vmem:[#allocation22 + $0x80c] sm:$0xf0] }
 0x4fb   :  { %6866 = vmatpush.bf16.msra.mxu2 %v9984_v44  ;;  %6892 = vmatpush.bf16.msrb.mxu0 %v9988_v21  ;;  %v6621_v17 = vpop.f32.mrf.mxu3  ;;  %v6634_v47 = vpop.f32.mrf.mxu0  ;;  %v10952_v1 = vor.u32 %v12255_v4, %v10951_v2  ;;  %v10280_v21 = vor.u32 %v12087_v3, %v10279_v12  ;;  %v11345_v4 = vld [vmem:[#allocation22 + $0xb18] sm:$0xf0]  ;;  %v9993_v12 = vld [vmem:[#allocation22 + $0x90] sm:$0xf0]  ;;  %v10671_v3 = vld [vmem:[#allocation22 + $0x578] sm:$0xf] }
 0x4fc   :  { %v6635_v62 = vadd.f32 %v6634_v47, %v4632_v42  ;;  %v10087_v42 = vld [vmem:[#allocation22 + $0xf0] sm:$0xf]  ;;  %v4634_v47 = vperm.slane %v13271_v41, 3 }
 0x4fd   :  { %6925 = vmatpush.bf16.msrb.mxu3 %v11336_v31  ;;  %6951 = vmatpush.bf16.msra.mxu1 %v11340_v20  ;;  %v6649_v52 = vpop.f32.mrf.mxu1  ;;  %v10855_v31 = vld [vmem:[#allocation22 + $0x6f0] sm:$0xf] }
 0x4fe   :  { %6867 = vmatmul.bf16.vlgmr.msra.gmra.mxu2 %v13249_v63  ;;  %6893 = vmatmul.bf16.vlgmr.msrb.gmra.mxu0 %v13249_v63  ;;  %v6648_v14 = vadd.f32 %v6647_v29, %v6635_v62  ;;  %v12231_v20 = vld [vmem:[#allocation22 + $0x74c] sm:$0xf0]  ;;  %v12195_v29 = vld [vmem:[#allocation22 + $0x634] sm:$0xf]  ;;  %v12352_v62 = vld [vmem:[#allocation22 + $0xb14] sm:$0xf0] }
 0x4ff   :  { %6911 = vmatpush.bf16.msrb.mxu2 %v10664_v27  ;;  %6937 = vmatpush.bf16.msra.mxu0 %v10668_v48  ;;  %v10857_v27 = vld [vmem:[#allocation22 + $0x750] sm:$0xf0]  ;;  %v10183_v48 = vld [vmem:[#allocation22 + $0x1b0] sm:$0xf]  ;;  %v10856_v33 = vor.u32 %v12231_v20, %v10855_v31  ;;  %v11247_v31 = vld [vmem:[#allocation22 + $0x9f8] sm:$0xf] }
 0x500   :  { %v11478_v0 = vmul.f32 -1.442695, %v6648_v14  ;;  %v10860_v28 = vor.u32 %v12219_v24, %v10857_v27  ;;  %v10184_v37 = vor.u32 %v12063_v51, %v10183_v48  ;;  %v12015_v52 = vld [vmem:[#allocation22 + $0x8c] sm:$0xf0]  ;;  %v12184_v14 = vld [vmem:[#allocation22 + $0x5d4] sm:$0xf0] }
 0x501   :  { %6926 = vmatpush.bf16.msrb.mxu3 %v11240_v32  ;;  %6952 = vmatpush.bf16.msra.mxu1 %v11244_v39  ;;  %v6608_v44 = vpop.f32.mrf.mxu2  ;;  %v10759_v32 = vld [vmem:[#allocation22 + $0x630] sm:$0xf]  ;;  %v12328_v24 = vld [vmem:[#allocation22 + $0xa54] sm:$0xf0]  ;;  %v12316_v27 = vld [vmem:[#allocation22 + $0x9fc] sm:$0xf] }
 0x502   :  { %12408 = vpow2.f32 %v11478_v0  ;;  %v6609_v35 = vadd.f32 %v6608_v44, %v4631_v7  ;;  %v10760_v57 = vor.u32 %v12207_v38, %v10759_v32  ;;  %v12172_v7 = vld [vmem:[#allocation22 + $0x57c] sm:$0xf]  ;;  %v9992_v44 = vor.u32 %v12015_v52, %v9991_v5  ;;  %v13301_v5 = vld [vmem:[#allocation22 + $0x338] sm:$0xf] }
 0x503   :  { %6912 = vmatpush.bf16.msrb.mxu2 %v10568_v30  ;;  %6938 = vmatpush.bf16.msra.mxu0 %v10572_v34  ;;  %v6623_v55 = vpop.f32.mrf.mxu3  ;;  %v6636_v26 = vpop.f32.mrf.mxu0  ;;  %v10761_v30 = vld [vmem:[#allocation22 + $0x690] sm:$0xf0]  ;;  %v10676_v51 = vor.u32 %v12172_v7, %v10673_v16  ;;  %v10577_v32 = vld [vmem:[#allocation22 + $0x518] sm:$0xf0]  ;;  %v11248_v38 = vor.u32 %v12328_v24, %v11247_v31  ;;  %v4636_v7 = vperm.slane %v13271_v41, 5 }
 0x504   :  { %v6622_v39 = vadd.f32 %v6621_v17, %v6609_v35  ;;  %v10764_v58 = vor.u32 %v12195_v29, %v10761_v30  ;;  %v10672_v35 = vor.u32 %v12184_v14, %v10671_v3  ;;  %v12160_v55 = vld [vmem:[#allocation22 + $0x514] sm:$0xf0]  ;;  %v12148_v26 = vld [vmem:[#allocation22 + $0x4bc] sm:$0xf] }
 0x505   :  { %6927 = vmatpush.bf16.msrb.mxu3 %v11144_v54  ;;  %6953 = vmatpush.bf16.msra.mxu1 %v11148_v43  ;;  %v13277_v34 = vpop.f32.mrf.mxu1  ;;  %v11441_v43 = vld [vmem:[#allocation22 + $0xbd8] sm:$0xf0]  ;;  %v11151_v29 = vld [vmem:[#allocation22 + $0x938] sm:$0xf] }
 0x506   :  { %v11477_v54 = vmul.f32 -1.442695, %v6622_v39  ;;  %v11444_v17 = vor.u32 %v12364_v53, %v11441_v43  ;;  %v11153_v53 = vld [vmem:[#allocation22 + $0x998] sm:$0xf0]  ;;  %v13308_v16 = vld [vmem:[#allocation22 + $0x7b8] sm:$0xf] }
 0x507   :  { %6913 = vmatpush.bf16.msrb.mxu2 %v10472_v50  ;;  %6939 = vmatpush.bf16.msra.mxu0 %v10476_v56  ;;  %v10089_v50 = vld [vmem:[#allocation22 + $0x150] sm:$0xf0]  ;;  %v10385_v3 = vld [vmem:[#allocation22 + $0x398] sm:$0xf0] }
 0x508   :  { %v12409_v56 = vpop.eup %12408  ;;  %12410 = vpow2.f32 %v11477_v54  ;;  %v10092_v2 = vor.u32 %v12027_v10, %v10089_v50  ;;  %v12136_v10 = vld [vmem:[#allocation22 + $0x454] sm:$0xf0]  ;;  %v12124_v50 = vld [vmem:[#allocation22 + $0x3fc] sm:$0xf] }
 0x509   :  { %6928 = vmatpush.bf16.msrb.mxu3 %v11048_v22  ;;  %6954 = vmatpush.bf16.msra.mxu1 %v11052_v49  ;;  %v13279_v60 = vadd.f32 1.0, %v12409_v56  ;;  %v6610_v18 = vpop.f32.mrf.mxu2  ;;  %v12340_v22 = vld [vmem:[#allocation22 + $0xabc] sm:$0xf]  ;;  %v10088_v49 = vor.u32 %v12039_v46, %v10087_v42  ;;  %v10580_v42 = vor.u32 %v12148_v26, %v10577_v32  ;;  %v10479_v46 = vld [vmem:[#allocation22 + $0x3f8] sm:$0xf] }
 0x50a   :  { %v12244_v31 = vld [vmem:[#allocation22 + $0x7bc] sm:$0xf] }
 0x50b   :  { %6914 = vmatpush.bf16.msrb.mxu2 %v10376_v6  ;;  %6940 = vmatpush.bf16.msra.mxu0 %v10380_v9  ;;  %12412 = vrcp.f32 %v13279_v60  ;;  %v6673_v6 = vpop.f32.mrf.mxu3  ;;  %v6686_v9 = vpop.f32.mrf.mxu0  ;;  %v10289_v32 = vld [vmem:[#allocation22 + $0x2d8] sm:$0xf0]  ;;  %vm7339_vm1 = vweird.f32 %v13279_v60 }
 0x50c   :  { %v6687_v8 = vadd.f32 %v6686_v9, %v4634_v47  ;;  %v12268_v47 = vld [vmem:[#allocation22 + $0x87c] sm:$0xf] }
 0x50d   :  { %6929 = vmatpush.bf16.msrb.mxu3 %v10952_v1  ;;  %6955 = vmatpush.bf16.msra.mxu1 %v10956_v19  ;;  %v6701_v0 = vpop.f32.mrf.mxu1  ;;  %v11344_v1 = vor.u32 %v12352_v62, %v11343_v13  ;;  %v11348_v19 = vor.u32 %v12340_v22, %v11345_v4  ;;  %v13294_v13 = vld [vmem:[#allocation22 + $0x878] sm:$0xf]  ;;  %v11057_v4 = vld [vmem:[#allocation22 + $0x8d8] sm:$0xf0] }
 0x50e   :  { %v12411_v20 = vpop.eup %12410 }
 0x50f   :  { %6915 = vmatpush.bf16.msrb.mxu2 %v10280_v21  ;;  %6941 = vmatpush.bf16.msra.mxu0 %v10284_v23  ;;  %v9996_v21 = vor.u32 %v12003_v15, %v9993_v12  ;;  %v4633_v23 = vperm.slane %v13271_v41, 2  ;;  %v13284_v48 = vadd.f32 1.0, %v12411_v20  ;;  %v12112_v15 = vld [vmem:[#allocation22 + $0x394] sm:$0xf0]  ;;  %v12100_v12 = vld [vmem:[#allocation22 + $0x33c] sm:$0xf] }
 0x510   :  { %v10961_v20 = vld [vmem:[#allocation22 + $0x818] sm:$0xf0]  ;;  %v10384_v24 = vor.u32 %v12112_v15, %v13301_v5  ;;  %v10388_v26 = vor.u32 %v12100_v12, %v10385_v3 }
 0x511   :  { %6930 = vmatpush.bf16.msrb.mxu3 %v10856_v33  ;;  %6956 = vmatpush.bf16.msra.mxu1 %v10860_v28  ;;  %v13288_v39 = vpop.eup %12412  ;;  %12414 = vrcp.f32 %v13284_v48  ;;  %v6700_v33 = vadd.f32 %v13277_v34, %v6687_v8  ;;  %v6660_v28 = vpop.f32.mrf.mxu2  ;;  %v10576_v34 = vor.u32 %v12160_v55, %v10575_v36  ;;  %v13310_v8 = vld [vmem:[#allocation22 + $0x814] sm:$0xf0]  ;;  %v7330_v36 = vand.u32 2147483648, %v13284_v48 }
 0x512   :  { %v7335_v30 = vmul.f32 %v13288_v39, %v13279_v60  ;;  %vm7340_vm0 = vweird.f32 %v13288_v39  ;;  %vm7324_vm4 = vweird.f32 %v13284_v48 }
 0x513   :  { %6916 = vmatpush.bf16.msrb.mxu2 %v10184_v37  ;;  %6942 = vmatpush.bf16.msra.mxu0 %v10188_v40  ;;  %v6661_v37 = vadd.f32 %v6660_v28, %v4633_v23  ;;  %v11252_v40 = vor.u32 %v12316_v27, %v11249_v25  ;;  %v6675_v54 = vpop.f32.mrf.mxu3  ;;  %v6688_v43 = vpop.f32.mrf.mxu0  ;;  %v11480_v18 = vmul.f32 -1.442695, %v6700_v33  ;;  %v12088_v27 = vld [vmem:[#allocation22 + $0x2d4] sm:$0xf0]  ;;  %v7345_v25 = vand.u32 2147483648, %v13279_v60  ;;  %vm13329_vm3 = vmor %vm7339_vm1, %vm7340_vm0 }
 0x514   :  { %v7336_v56 = vsub.f32 1.0, %v7335_v30  ;;  %v7328_v28 = vand.u32 2147483647, %v13284_v48 }
 0x515   :  { %6931 = vmatpush.bf16.msrb.mxu3 %v10760_v57  ;;  %6957 = vmatpush.bf16.msra.mxu1 %v10764_v58  ;;  %v6674_v57 = vadd.f32 %v6673_v6, %v6661_v37  ;;  %v10481_v58 = vld [vmem:[#allocation22 + $0x458] sm:$0xf0]  ;;  %v10480_v6 = vor.u32 %v12136_v10, %v10479_v46 }
 0x516   :  { %v7337_v62 = vmul.f32 %v13288_v39, %v7336_v56  ;;  %v10484_v9 = vor.u32 %v12124_v50, %v10481_v58  ;;  %v12220_v46 = vld [vmem:[#allocation22 + $0x6fc] sm:$0xf]  ;;  %v7346_v50 = vor.u32 1.1754944e-38, %v7345_v25  ;;  %v7331_v56 = vor.u32 1.1754944e-38, %v7330_v36 }
 0x517   :  { %6917 = vmatpush.bf16.msrb.mxu2 %v10088_v49  ;;  %6943 = vmatpush.bf16.msra.mxu0 %v10092_v2  ;;  %v11479_v22 = vmul.f32 -1.442695, %v6674_v57  ;;  %v11152_v49 = vor.u32 %v12304_v45, %v11151_v29  ;;  %v11156_v2 = vor.u32 %v12292_v11, %v11153_v53  ;;  %v13303_v52 = vpop.eup %12414  ;;  %v10964_v45 = vor.u32 %v12244_v31, %v10961_v20  ;;  %v10865_v57 = vld [vmem:[#allocation22 + $0x758] sm:$0xf0]  ;;  %v12365_v31 = vld [vmem:[#allocation22 + $0xb84] sm:$0xf] }
 0x518   :  { %6932 = vmatmul.bf16.vlgmr.msrb.gmra.mxu3 %v13245_v59  ;;  %6958 = vmatmul.bf16.vlgmr.msra.gmra.mxu1 %v13245_v59  ;;  %v7320_v14 = vmul.f32 %v13303_v52, %v13284_v48  ;;  %vm7325_vm2 = vweird.f32 %v13303_v52  ;;  %vm7329_vm7 = vcmp.eq.f32.partialorder %v7328_v28, 8.507059e+37  ;;  %v12341_v28 = vld [vmem:[#allocation22 + $0xac4] sm:$0xf] }
 0x519   :  { %6976 = vmatpush.bf16.msra.mxu3 %v11440_v61  ;;  %7002 = vmatpush.bf16.msrb.mxu1 %v11444_v17  ;;  %v13298_v61 = vpop.f32.mrf.mxu1  ;;  %v12280_v17 = vld [vmem:[#allocation22 + $0x8d4] sm:$0xf0]  ;;  %12416 = vpow2.f32 %v11479_v22  ;;  %v6662_v0 = vpop.f32.mrf.mxu2  ;;  %vm7326_vm6 = vmor %vm7324_vm4, %vm7325_vm2  ;;  %v12052_v22 = vld [vmem:[#allocation22 + $0x1bc] sm:$0xf]  ;;  %vm7734_vm4 = vcmask 1044484  }
 0x51a   :  { %12418 = vpow2.f32 %v11480_v18  ;;  %v7321_v23 = vsub.f32 1.0, %v7320_v14  ;;  %v10191_v18 = vld [vmem:[#allocation22 + $0x1b8] sm:$0xf]  ;;  %v12196_v14 = vld [vmem:[#allocation22 + $0x63c] sm:$0xf] }
 0x51b   :  { %6918 = vmatpush.bf16.msrb.mxu2 %v9992_v44  ;;  %6944 = vmatpush.bf16.msra.mxu0 %v9996_v21  ;;  %v13313_v44 = vld [vmem:[#allocation22 + $0x278] sm:$0xf]  ;;  %v7338_v21 = vadd.f32 %v13288_v39, %v7337_v62  ;;  %v13321_v55 = vpop.f32.mrf.mxu3 }
 0x51c   :  { %v7322_v33 = vmul.f32 %v13303_v52, %v7321_v23  ;;  %v12040_v23 = vld [vmem:[#allocation22 + $0x154] sm:$0xf0] }
 0x51d   :  { %6977 = vmatpush.bf16.msra.mxu3 %v11344_v1  ;;  %7003 = vmatpush.bf16.msrb.mxu1 %v11348_v19  ;;  %v11056_v1 = vor.u32 %v12280_v17, %v13294_v13  ;;  %v11060_v19 = vor.u32 %v12268_v47, %v11057_v4  ;;  %v7342_v53 = vsel %vm13329_vm3, %v13288_v39, %v7338_v21  ;;  %v4635_v39 = vperm.slane %v13271_v41, 4  ;;  %v12064_v17 = vld [vmem:[#allocation22 + $0x214] sm:$0xf0] }
 0x51e   :  { %6919 = vmatmul.bf16.vlgmr.msrb.gmra.mxu2 %v13249_v63  ;;  %6945 = vmatmul.bf16.vlgmr.msra.gmra.mxu0 %v13249_v63  ;;  %v7323_v54 = vadd.f32 %v13303_v52, %v7322_v33  ;;  %v10192_v3 = vor.u32 %v12064_v17, %v10191_v18  ;;  %v10095_v21 = vld [vmem:[#allocation22 + $0xf8] sm:$0xf]  ;;  %v12317_v18 = vld [vmem:[#allocation22 + $0xa04] sm:$0xf] }
 0x51f   :  { %6963 = vmatpush.bf16.msra.mxu2 %v10672_v35  ;;  %6989 = vmatpush.bf16.msrb.mxu0 %v10676_v51  ;;  %v12076_v35 = vld [vmem:[#allocation22 + $0x27c] sm:$0xf]  ;;  %v7343_v51 = vand.u32 2147483647, %v13279_v60  ;;  %v10288_v60 = vor.u32 %v12088_v27, %v13313_v44  ;;  %v12417_v11 = vpop.eup %12416  ;;  %v11449_v44 = vld [vmem:[#allocation22 + $0xbe0] sm:$0xf0]  ;;  %v10096_v33 = vor.u32 %v12040_v23, %v10095_v21 }
 0x520   :  { %v10292_v43 = vor.u32 %v12076_v35, %v10289_v32  ;;  %v12419_v10 = vpop.eup %12418  ;;  %v7327_v48 = vsel %vm7326_vm6, %v13303_v52, %v7323_v54  ;;  %v13345_v58 = vadd.f32 1.0, %v12417_v11  ;;  %v10767_v52 = vld [vmem:[#allocation22 + $0x638] sm:$0xf]  ;;  %v12028_v27 = vld [vmem:[#allocation22 + $0xfc] sm:$0xf]  ;;  %v11452_v32 = vor.u32 %v12365_v31, %v11449_v44 }
 0x521   :  { %6978 = vmatpush.bf16.msra.mxu3 %v11248_v38  ;;  %7004 = vmatpush.bf16.msrb.mxu1 %v11252_v40  ;;  %v6738_v38 = vpop.f32.mrf.mxu0  ;;  %v6753_v37 = vpop.f32.mrf.mxu1  ;;  %v10960_v40 = vor.u32 %v13310_v8, %v13308_v16  ;;  %vm7344_vm5 = vcmp.eq.f32.partialorder %v7343_v51, 8.507059e+37  ;;  %v7332_v62 = vsel %vm7329_vm7, %v7331_v56, %v7327_v48  ;;  %v13350_v4 = vadd.f32 1.0, %v12419_v10  ;;  %v11447_v16 = vld [vmem:[#allocation22 + $0xb80] sm:$0xf]  ;;  %v10097_v35 = vld [vmem:[#allocation22 + $0x158] sm:$0xf0] }
 0x522   :  { %v6739_v30 = vadd.f32 %v6738_v38, %v4636_v7  ;;  %v7347_v47 = vsel %vm7344_vm5, %v7346_v50, %v7342_v53  ;;  %v6712_v5 = vpop.f32.mrf.mxu2  ;;  %v10769_v7 = vld [vmem:[#allocation22 + $0x698] sm:$0xf0]  ;;  %12420 = vrcp.f32 %v13345_v58  ;;  %v11353_v38 = vld [vmem:[#allocation22 + $0xb20] sm:$0xf0]  ;;  %v10100_v29 = vor.u32 %v12028_v27, %v10097_v35  ;;  %v12016_v37 = vld [vmem:[#allocation22 + $0x94] sm:$0xf0] }
 0x523   :  { %6964 = vmatpush.bf16.msra.mxu2 %v10576_v34  ;;  %6990 = vmatpush.bf16.msrb.mxu0 %v10580_v42  ;;  %v10863_v34 = vld [vmem:[#allocation22 + $0x6f8] sm:$0xf]  ;;  %v6713_v15 = vadd.f32 %v6712_v5, %v4635_v39  ;;  %v6727_v12 = vpop.f32.mrf.mxu3  ;;  %12422 = vrcp.f32 %v13350_v4  ;;  %v10772_v25 = vor.u32 %v12196_v14, %v10769_v7  ;;  %v10001_v11 = vld [vmem:[#allocation22 + $0x98] sm:$0xf0]  ;;  %v10679_v53 = vld [vmem:[#allocation22 + $0x580] sm:$0xf]  ;;  %v11356_v10 = vor.u32 %v12341_v28, %v11353_v38 }
 0x524   :  { %v12232_v42 = vld [vmem:[#allocation22 + $0x754] sm:$0xf0]  ;;  %v6752_v13 = vadd.f32 %v13298_v61, %v6739_v30  ;;  %v10868_v61 = vor.u32 %v12220_v46, %v10865_v57  ;;  %v12185_v54 = vld [vmem:[#allocation22 + $0x5dc] sm:$0xf0]  ;;  %v11257_v17 = vld [vmem:[#allocation22 + $0xa60] sm:$0xf0]  ;;  %vm7369_vm11 = vweird.f32 %v13350_v4  ;;  %vm7354_vm0 = vweird.f32 %v13345_v58 }
 0x525   :  { %6979 = vmatpush.bf16.msra.mxu3 %v11152_v49  ;;  %7005 = vmatpush.bf16.msrb.mxu1 %v11156_v2  ;;  %v10193_v49 = vld [vmem:[#allocation22 + $0x218] sm:$0xf0]  ;;  %v13348_v2 = vpack.c.bf16 %v7347_v47, %v7332_v62  ;;  %v6726_v20 = vadd.f32 %v13321_v55, %v6713_v15  ;;  %v12353_v55 = vld [vmem:[#allocation22 + $0xb1c] sm:$0xf0]  ;;  %v9999_v30 = vld [vmem:[#allocation22 + $0x38] sm:$0xf]  ;;  %v11260_v12 = vor.u32 %v12317_v18, %v11257_v17 }
 0x526   :  { %v11482_v8 = vmul.f32 -1.442695, %v6752_v13  ;;  %v10000_v50 = vor.u32 %v12016_v37, %v9999_v30  ;;  %v11255_v56 = vld [vmem:[#allocation22 + $0xa00] sm:$0xf]  ;;  %v10680_v13 = vor.u32 %v12185_v54, %v10679_v53  ;;  %v10585_v15 = vld [vmem:[#allocation22 + $0x520] sm:$0xf0] }
 0x527   :  { %6965 = vmatpush.bf16.msra.mxu2 %v10480_v6  ;;  %6991 = vmatpush.bf16.msrb.mxu0 %v10484_v9  ;;  %v10864_v6 = vor.u32 %v12232_v42, %v10863_v34  ;;  %v12208_v9 = vld [vmem:[#allocation22 + $0x694] sm:$0xf0]  ;;  %v11481_v51 = vmul.f32 -1.442695, %v6726_v20  ;;  %v12173_v34 = vld [vmem:[#allocation22 + $0x584] sm:$0xf] }
 0x528   :  { %12424 = vpow2.f32 %v11482_v8  ;;  %v10681_v42 = vld [vmem:[#allocation22 + $0x5e0] sm:$0xf0]  ;;  %v12329_v39 = vld [vmem:[#allocation22 + $0xa5c] sm:$0xf0]  ;;  %v4638_v28 = vperm.slane %v13271_v41, 7  ;;  %vm7782_vm5 = vcmask 1045509  }
 0x529   :  { %6980 = vmatpush.bf16.msra.mxu3 %v11056_v1  ;;  %7006 = vmatpush.bf16.msrb.mxu1 %v11060_v19  ;;  %v6740_v0 = vpop.f32.mrf.mxu0  ;;  %v10196_v1 = vor.u32 %v12052_v22, %v10193_v49  ;;  %v12377_v19 = vld [vmem:[#allocation22 + $0xbdc] sm:$0xf0]  ;;  %12426 = vpow2.f32 %v11481_v51  ;;  %v10684_v62 = vor.u32 %v12173_v34, %v10681_v42  ;;  %v12125_v21 = vld [vmem:[#allocation22 + $0x404] sm:$0xf]  ;;  %v7375_v34 = vand.u32 2147483648, %v13350_v4 }
 0x52a   :  { %v11448_v36 = vor.u32 %v12377_v19, %v11447_v16  ;;  %v10583_v22 = vld [vmem:[#allocation22 + $0x4c0] sm:$0xf]  ;;  %v12293_v0 = vld [vmem:[#allocation22 + $0x944] sm:$0xf]  ;;  %v7360_v42 = vand.u32 2147483648, %v13345_v58  ;;  %vm14214_vm6 = vcmask 1041408  }
 0x52b   :  { %6966 = vmatpush.bf16.msra.mxu2 %v10384_v24  ;;  %6992 = vmatpush.bf16.msrb.mxu0 %v10388_v26  ;;  %v10768_v24 = vor.u32 %v12208_v9, %v10767_v52  ;;  %v11351_v26 = vld [vmem:[#allocation22 + $0xac0] sm:$0xf]  ;;  %v11256_v52 = vor.u32 %v12329_v39, %v11255_v56  ;;  %v12149_v9 = vld [vmem:[#allocation22 + $0x4c4] sm:$0xf]  ;;  %vm14213_vm7 = vcmask 1042433  }
 0x52c   :  { %v12161_v49 = vld [vmem:[#allocation22 + $0x51c] sm:$0xf0]  ;;  %v10588_v19 = vor.u32 %v12149_v9, %v10585_v15  ;;  %v10489_v35 = vld [vmem:[#allocation22 + $0x460] sm:$0xf0] }
 0x52d   :  { %6981 = vmatpush.bf16.msra.mxu3 %v10960_v40  ;;  %7007 = vmatpush.bf16.msrb.mxu1 %v10964_v45  ;;  %v12004_v40 = vld [vmem:[#allocation22 + $0x3c] sm:$0xf]  ;;  %v13355_v45 = vpop.eup %12420  ;;  %v12305_v14 = vld [vmem:[#allocation22 + $0x99c] sm:$0xf0]  ;;  %v10584_v8 = vor.u32 %v12161_v49, %v10583_v22  ;;  %v12101_v37 = vld [vmem:[#allocation22 + $0x344] sm:$0xf] }
 0x52e   :  { %v13357_v46 = vpop.eup %12422  ;;  %v7350_v57 = vmul.f32 %v13355_v45, %v13345_v58  ;;  %v10004_v48 = vor.u32 %v12004_v40, %v10001_v11  ;;  %v10487_v20 = vld [vmem:[#allocation22 + $0x400] sm:$0xf]  ;;  %v10393_v40 = vld [vmem:[#allocation22 + $0x3a0] sm:$0xf0]  ;;  %v7358_v11 = vand.u32 2147483647, %v13345_v58  ;;  %vm7355_vm14 = vweird.f32 %v13355_v45 }
 0x52f   :  { %6967 = vmatpush.bf16.msra.mxu2 %v10288_v60  ;;  %6993 = vmatpush.bf16.msrb.mxu0 %v10292_v43  ;;  %v6714_v60 = vpop.f32.mrf.mxu2  ;;  %v11352_v43 = vor.u32 %v12353_v55, %v11351_v26  ;;  %v12425_v47 = vpop.eup %12424  ;;  %v12137_v44 = vld [vmem:[#allocation22 + $0x45c] sm:$0xf0]  ;;  %v12269_v26 = vld [vmem:[#allocation22 + $0x884] sm:$0xf]  ;;  %vm7370_vm15 = vweird.f32 %v13357_v46  ;;  %v10396_v49 = vor.u32 %v12101_v37, %v10393_v40  ;;  %vm13417_vm2 = vmor %vm7354_vm0, %vm7355_vm14 }
 0x530   :  { %v12427_v5 = vpop.eup %12426  ;;  %v7351_v7 = vsub.f32 1.0, %v7350_v57  ;;  %v13367_v16 = vadd.f32 1.0, %v12425_v47  ;;  %v11065_v55 = vld [vmem:[#allocation22 + $0x8e0] sm:$0xf0]  ;;  %v10391_v38 = vld [vmem:[#allocation22 + $0x340] sm:$0xf]  ;;  %vm13431_vm3 = vmor %vm7369_vm11, %vm7370_vm15 }
 0x531   :  { %6982 = vmatpush.bf16.msra.mxu3 %v10864_v6  ;;  %7008 = vmatpush.bf16.msrb.mxu1 %v10868_v61  ;;  %v7365_v6 = vmul.f32 %v13357_v46, %v13350_v4  ;;  %v13365_v61 = vadd.f32 1.0, %v12427_v5  ;;  %v12113_v30 = vld [vmem:[#allocation22 + $0x39c] sm:$0xf0]  ;;  %v12245_v39 = vld [vmem:[#allocation22 + $0x7c4] sm:$0xf]  ;;  %vm13402_vm1 = vcmp.eq.f32.partialorder %v7358_v11, 8.507059e+37 }
 0x532   :  { %v10967_v54 = vld [vmem:[#allocation22 + $0x7c0] sm:$0xf]  ;;  %v10392_v17 = vor.u32 %v12113_v30, %v10391_v38  ;;  %v10969_v47 = vld [vmem:[#allocation22 + $0x820] sm:$0xf0]  ;;  %v13461_v40 = vld [vmem:[#allocation22 + $0xb88] sm:$0xf] }
 0x533   :  { %6968 = vmatpush.bf16.msra.mxu2 %v10192_v3  ;;  %6994 = vmatpush.bf16.msrb.mxu0 %v10196_v1  ;;  %v11159_v3 = vld [vmem:[#allocation22 + $0x940] sm:$0xf]  ;;  %v11161_v1 = vld [vmem:[#allocation22 + $0x9a0] sm:$0xf0]  ;;  %v7366_v23 = vsub.f32 1.0, %v7365_v6  ;;  %12428 = vrcp.f32 %v13365_v61  ;;  %vm14212_vm11 = vcmask 1043458  }
 0x534   :  { %v11160_v27 = vor.u32 %v12305_v14, %v11159_v3  ;;  %v11164_v51 = vor.u32 %v12293_v0, %v11161_v1  ;;  %12430 = vrcp.f32 %v13367_v16  ;;  %v12089_v22 = vld [vmem:[#allocation22 + $0x2dc] sm:$0xf0]  ;;  %v10297_v9 = vld [vmem:[#allocation22 + $0x2e0] sm:$0xf0] }
 0x535   :  { %6983 = vmatpush.bf16.msra.mxu3 %v10768_v24  ;;  %7009 = vmatpush.bf16.msrb.mxu1 %v10772_v25  ;;  %v13369_v31 = vpop.f32.mrf.mxu1  ;;  %v7373_v24 = vand.u32 2147483647, %v13350_v4  ;;  %v11063_v25 = vld [vmem:[#allocation22 + $0x880] sm:$0xf]  ;;  %v7367_v60 = vmul.f32 %v13357_v46, %v7366_v23  ;;  %v13408_v1 = vld [vmem:[#allocation22 + $0x704] sm:$0xf] }
 0x536   :  { %v13397_v15 = vld [vmem:[#allocation22 + $0x700] sm:$0xf]  ;;  %v13457_v30 = vld [vmem:[#allocation22 + $0x644] sm:$0xf] }
 0x537   :  { %6969 = vmatpush.bf16.msra.mxu2 %v10096_v33  ;;  %6995 = vmatpush.bf16.msrb.mxu0 %v10100_v29  ;;  %v10488_v33 = vor.u32 %v12137_v44, %v10487_v20  ;;  %v10492_v29 = vor.u32 %v12125_v21, %v10489_v35  ;;  %vm13387_vm13 = vcmp.eq.f32.partialorder %v7373_v24, 8.507059e+37  ;;  %v7368_v3 = vadd.f32 %v13357_v46, %v7367_v60  ;;  %v12233_v0 = vld [vmem:[#allocation22 + $0x75c] sm:$0xf0]  ;;  %v10873_v21 = vld [vmem:[#allocation22 + $0x760] sm:$0xf0] }
 0x538   :  { %6984 = vmatmul.bf16.vlgmr.msra.gmra.mxu3 %v13245_v59  ;;  %7010 = vmatmul.bf16.vlgmr.msrb.gmra.mxu1 %v13245_v59  ;;  %v7361_v44 = vor.u32 1.1754944e-38, %v7360_v42  ;;  %v13425_v23 = vld [vmem:[#allocation22 + $0x1c0] sm:$0xf]  ;;  %v13459_v37 = vld [vmem:[#allocation22 + $0x6a0] sm:$0xf0]  ;;  %v7376_v60 = vor.u32 1.1754944e-38, %v7375_v34 }
 0x539   :  { %7028 = vmatpush.bf16.msrb.mxu3 %v11448_v36  ;;  %7054 = vmatpush.bf16.msra.mxu1 %v11452_v32  ;;  %v12281_v36 = vld [vmem:[#allocation22 + $0x8dc] sm:$0xf0]  ;;  %v7352_v32 = vmul.f32 %v13355_v45, %v7351_v7  ;;  %v13385_v57 = vpop.eup %12428  ;;  %v13469_v42 = vld [vmem:[#allocation22 + $0xbe4] sm:$0xf0]  ;;  %v13525_v20 = vld [vmem:[#allocation22 + $0xb28] sm:$0xf0] }
 0x53a   :  { %v11064_v53 = vor.u32 %v12281_v36, %v11063_v25  ;;  %v13440_v25 = vld [vmem:[#allocation22 + $0x1c4] sm:$0xf]  ;;  %vm7385_vm0 = vweird.f32 %v13385_v57 }
 0x53b   :  { %6970 = vmatpush.bf16.msra.mxu2 %v10000_v50  ;;  %6996 = vmatpush.bf16.msrb.mxu0 %v10004_v48  ;;  %v13383_v50 = vpop.f32.mrf.mxu3  ;;  %v6790_v56 = vpop.f32.mrf.mxu0  ;;  %v13539_v58 = vld [vmem:[#allocation22 + $0xa0] sm:$0xf0] }
 0x53c   :  { %v6791_v18 = vadd.f32 %v6790_v56, %v4638_v28  ;;  %v7372_v28 = vsel %vm13431_vm3, %v13357_v46, %v7368_v3  ;;  %v10876_v46 = vor.u32 %v13408_v1, %v10873_v21  ;;  %v13511_v3 = vld [vmem:[#allocation22 + $0xb24] sm:$0xf0]  ;;  %v13523_v1 = vld [vmem:[#allocation22 + $0xacc] sm:$0xf]  ;;  %vm7384_vm3 = vweird.f32 %v13365_v61 }
 0x53d   :  { %7029 = vmatpush.bf16.msrb.mxu3 %v11352_v43  ;;  %7055 = vmatpush.bf16.msra.mxu1 %v11356_v10  ;;  %v12257_v43 = vld [vmem:[#allocation22 + $0x81c] sm:$0xf0]  ;;  %v11068_v10 = vor.u32 %v12269_v26, %v11065_v55  ;;  %v6805_v5 = vpop.f32.mrf.mxu1 }
 0x53e   :  { %6971 = vmatmul.bf16.vlgmr.msra.gmra.mxu2 %v13249_v63  ;;  %6997 = vmatmul.bf16.vlgmr.msrb.gmra.mxu0 %v13249_v63  ;;  %v10968_v6 = vor.u32 %v12257_v43, %v10967_v54  ;;  %v6804_v7 = vadd.f32 %v13369_v31, %v6791_v18  ;;  %v13423_v31 = vmul.f32 %v13385_v57, %v13365_v61  ;;  %v13449_v55 = vld [vmem:[#allocation22 + $0x640] sm:$0xf]  ;;  %v13504_v5 = vld [vmem:[#allocation22 + $0x160] sm:$0xf0] }
 0x53f   :  { %7015 = vmatpush.bf16.msrb.mxu2 %v10680_v13  ;;  %7041 = vmatpush.bf16.msra.mxu0 %v10684_v62  ;;  %v7353_v13 = vadd.f32 %v13355_v45, %v7352_v32  ;;  %v10295_v62 = vld [vmem:[#allocation22 + $0x280] sm:$0xf] }
 0x540   :  { %v10296_v35 = vor.u32 %v12089_v22, %v10295_v62  ;;  %v13488_v18 = vld [vmem:[#allocation22 + $0x100] sm:$0xf]  ;;  %v7377_v62 = vsel %vm13387_vm13, %v7376_v60, %v7372_v28  ;;  %vm14211_vm13 = vcmask 1044483   ;;  %v13554_v28 = vld [vmem:[#allocation22 + $0x5e8] sm:$0xf0] }
 0x541   :  { %7030 = vmatpush.bf16.msrb.mxu3 %v11256_v52  ;;  %7056 = vmatpush.bf16.msra.mxu1 %v11260_v12  ;;  %v13395_v52 = vld [vmem:[#allocation22 + $0x284] sm:$0xf]  ;;  %v13399_v12 = vpop.eup %12430  ;;  %v7357_v24 = vsel %vm13417_vm2, %v13355_v45, %v7353_v13  ;;  %v6764_v32 = vpop.f32.mrf.mxu2  ;;  %v13451_v45 = vld [vmem:[#allocation22 + $0x69c] sm:$0xf0]  ;;  %v13486_v13 = vld [vmem:[#allocation22 + $0xbe8] sm:$0xf0] }
 0x542   :  { %v13444_v36 = vmul.f32 %v13399_v12, %v13367_v16  ;;  %v10300_v26 = vor.u32 %v13395_v52, %v10297_v9  ;;  %v7362_v11 = vsel %vm13402_vm1, %v7361_v44, %v7357_v24  ;;  %v7403_v52 = vand.u32 2147483647, %v13367_v16  ;;  %v13527_v44 = vld [vmem:[#allocation22 + $0x40] sm:$0xf]  ;;  %v13541_v24 = vld [vmem:[#allocation22 + $0x588] sm:$0xf] }
 0x543   :  { %7016 = vmatpush.bf16.msrb.mxu2 %v10584_v8  ;;  %7042 = vmatpush.bf16.msra.mxu0 %v10588_v19  ;;  %v4637_v8 = vperm.slane %v13271_v41, 6  ;;  %v13411_v19 = vrot.slane %v13348_v2, 3  ;;  %v10972_v41 = vor.u32 %v12245_v39, %v10969_v47  ;;  %v6779_v54 = vpop.f32.mrf.mxu3  ;;  %v6792_v43 = vpop.f32.mrf.mxu0  ;;  %v10776_v48 = vor.u32 %v13451_v45, %v13449_v55  ;;  %v13571_v60 = vld [vmem:[#allocation22 + $0xa0c] sm:$0xf] }
 0x544   :  { %vm7400_vm14 = vweird.f32 %v13399_v12  ;;  %v7390_v45 = vand.u32 2147483648, %v13365_v61  ;;  %vm13556_vm15 = vcmp.eq.f32.partialorder %v7403_v52, 8.507059e+37  ;;  %vm7399_vm1 = vweird.f32 %v13367_v16  ;;  %v13580_v54 = vld [vmem:[#allocation22 + $0xa68] sm:$0xf0]  ;;  %v13582_v43 = vld [vmem:[#allocation22 + $0x4c8] sm:$0xf] }
 0x545   :  { %7031 = vmatpush.bf16.msrb.mxu3 %v11160_v27  ;;  %7057 = vmatpush.bf16.msra.mxu1 %v11164_v51  ;;  %v11484_v27 = vmul.f32 -1.442695, %v6804_v7  ;;  %v13438_v51 = vld [vmem:[#allocation22 + $0x21c] sm:$0xf0]  ;;  %v6765_v38 = vadd.f32 %v6764_v32, %v4637_v8  ;;  %v13476_v56 = vsel %vm7724_vm8, %v13348_v2, %v13411_v19  ;;  %v13481_v4 = vsel %vm7776_vm9, %v13348_v2, %v13411_v19  ;;  %v13550_v32 = vld [vmem:[#allocation22 + $0x58c] sm:$0xf]  ;;  %vm13591_vm2 = vmor %vm7399_vm1, %vm7400_vm14 }
 0x546   :  { %v10200_v39 = vor.u32 %v13438_v51, %v13425_v23  ;;  %v13495_v47 = vsel %vm14216_vm10, %v13348_v2, %v13411_v19  ;;  %v13516_v14 = vsel %vm14215_vm12, %v13348_v2, %v13411_v19  ;;  %v10780_v8 = vor.u32 %v13457_v30, %v13459_v37  ;;  %v13531_v2 = vld [vmem:[#allocation22 + $0x44] sm:$0xf]  ;;  %v13567_v37 = vld [vmem:[#allocation22 + $0xa08] sm:$0xf]  ;;  %vm13608_vm14 = vmor %vm7384_vm3, %vm7385_vm0 }
 0x547   :  { %7017 = vmatpush.bf16.msrb.mxu2 %v10488_v33  ;;  %7043 = vmatpush.bf16.msra.mxu0 %v10492_v29  ;;  %v13447_v33 = vld [vmem:[#allocation22 + $0x220] sm:$0xf0]  ;;  %12432 = vpow2.f32 %v11484_v27  ;;  %v10872_v29 = vor.u32 %v12233_v0, %v13397_v15  ;;  %v6778_v34 = vadd.f32 %v13383_v50, %v6765_v38  ;;  %v7396_v50 = vsub.f32 1.0, %v13444_v36  ;;  %v13509_v15 = vld [vmem:[#allocation22 + $0xac8] sm:$0xf] }
 0x548   :  { %v10204_v22 = vor.u32 %v13440_v25, %v13447_v33  ;;  %v11456_v0 = vor.u32 %v13469_v42, %v13461_v40  ;;  %v13543_v27 = vld [vmem:[#allocation22 + $0x5e4] sm:$0xf0]  ;;  %v7405_v51 = vand.u32 2147483648, %v13367_v16  ;;  %v7388_v25 = vand.u32 2147483647, %v13365_v61 }
 0x549   :  { %7032 = vmatpush.bf16.msrb.mxu3 %v11064_v53  ;;  %7058 = vmatpush.bf16.msra.mxu1 %v11068_v10  ;;  %v7381_v53 = vsub.f32 1.0, %v13423_v31  ;;  %v13471_v10 = vld [vmem:[#allocation22 + $0xb8c] sm:$0xf]  ;;  %v11483_v9 = vmul.f32 -1.442695, %v6778_v34  ;;  %v11360_v30 = vor.u32 %v13511_v3, %v13509_v15  ;;  %vm7784_vm0 = vcmask 1046528  }
 0x54a   :  { %v13529_v31 = vld [vmem:[#allocation22 + $0x9c] sm:$0xf0]  ;;  %v13569_v40 = vld [vmem:[#allocation22 + $0xa64] sm:$0xf0]  ;;  %v13595_v34 = vor.u32 1.1754944e-38, %v7405_v51  ;;  %vm13612_vm1 = vcmp.eq.f32.partialorder %v7388_v25, 8.507059e+37 }
 0x54b   :  { %7018 = vmatpush.bf16.msrb.mxu2 %v10392_v17  ;;  %7044 = vmatpush.bf16.msra.mxu0 %v10396_v49  ;;  %v13490_v17 = vld [vmem:[#allocation22 + $0x15c] sm:$0xf0]  ;;  %v13502_v49 = vld [vmem:[#allocation22 + $0x104] sm:$0xf]  ;;  %v7382_v7 = vmul.f32 %v13385_v57, %v7381_v53  ;;  %12434 = vpow2.f32 %v11483_v9  ;;  %v10008_v53 = vor.u32 %v13529_v31, %v13527_v44  ;;  %v13584_v42 = vld [vmem:[#allocation22 + $0x524] sm:$0xf0]  ;;  %v11264_v15 = vor.u32 %v13569_v40, %v13567_v37 }
 0x54c   :  { %v10104_v21 = vor.u32 %v13490_v17, %v13488_v18  ;;  %v10108_v23 = vor.u32 %v13502_v49, %v13504_v5  ;;  %v13603_v18 = vld [vmem:[#allocation22 + $0x528] sm:$0xf0]  ;;  %v10692_v49 = vor.u32 %v13550_v32, %v13554_v28  ;;  %v13619_v5 = vld [vmem:[#allocation22 + $0x948] sm:$0xf] }
 0x54d   :  { %7033 = vmatpush.bf16.msrb.mxu3 %v10968_v6  ;;  %7059 = vmatpush.bf16.msra.mxu1 %v10972_v41  ;;  %v7680_v6 = vpack.c.bf16 %v7377_v62, %v7362_v11  ;;  %v12433_v19 = vpop.eup %12432  ;;  %v11460_v41 = vor.u32 %v13471_v10, %v13486_v13  ;;  %v11364_v11 = vor.u32 %v13523_v1, %v13525_v20  ;;  %v13601_v13 = vld [vmem:[#allocation22 + $0x4cc] sm:$0xf]  ;;  %v13642_v20 = vld [vmem:[#allocation22 + $0x408] sm:$0xf] }
 0x54e   :  { %v13548_v36 = vadd.f32 1.0, %v12433_v19  ;;  %v13632_v3 = vld [vmem:[#allocation22 + $0x94c] sm:$0xf]  ;;  %v13644_v44 = vld [vmem:[#allocation22 + $0x464] sm:$0xf0] }
 0x54f   :  { %7019 = vmatpush.bf16.msrb.mxu2 %v10296_v35  ;;  %7045 = vmatpush.bf16.msra.mxu0 %v10300_v26  ;;  %v7397_v35 = vmul.f32 %v13399_v12, %v7396_v50  ;;  %v6766_v26 = vpop.f32.mrf.mxu2  ;;  %v7704_v33 = vrot.slane %v7680_v6, 6  ;;  %v7705_v55 = vrot.slane %v7680_v6, 1  ;;  %v13621_v6 = vld [vmem:[#allocation22 + $0x9a4] sm:$0xf0]  ;;  %v13646_v31 = vld [vmem:[#allocation22 + $0x40c] sm:$0xf] }
 0x550   :  { %12436 = vrcp.f32 %v13548_v36  ;;  %v13650_v19 = vld [vmem:[#allocation22 + $0x888] sm:$0xf]  ;;  %v13675_v25 = vld [vmem:[#allocation22 + $0x34c] sm:$0xf]  ;;  %vm7429_vm3 = vweird.f32 %v13548_v36 }
 0x551   :  { %7034 = vmatpush.bf16.msrb.mxu3 %v10872_v29  ;;  %7060 = vmatpush.bf16.msra.mxu1 %v10876_v46  ;;  %v13561_v29 = vadd.f32 %v13385_v57, %v7382_v7  ;;  %v10012_v46 = vor.u32 %v13531_v2, %v13539_v58  ;;  %v13587_v10 = vadd.f32 %v13399_v12, %v7397_v35  ;;  %v12435_v17 = vpop.eup %12434  ;;  %v13634_v7 = vld [vmem:[#allocation22 + $0x9a8] sm:$0xf0]  ;;  %v13671_v51 = vld [vmem:[#allocation22 + $0x348] sm:$0xf] }
 0x552   :  { %v7731_v62 = vsel %vm14216_vm10, %v7704_v33, %v7705_v55  ;;  %v7779_v52 = vsel %vm14215_vm12, %v7704_v33, %v7705_v55  ;;  %v7841_v1 = vsel %vm7782_vm5, %v7704_v33, %v7705_v55  ;;  %v13648_v2 = vld [vmem:[#allocation22 + $0x468] sm:$0xf0]  ;;  %v13691_v28 = vld [vmem:[#allocation22 + $0x824] sm:$0xf0]  ;;  %vm14221_vm12 = vcmask 1045504  }
 0x553   :  { %7020 = vmatpush.bf16.msrb.mxu2 %v10200_v39  ;;  %7046 = vmatpush.bf16.msra.mxu0 %v10204_v22  ;;  %v10688_v39 = vor.u32 %v13543_v27, %v13541_v24  ;;  %v7391_v22 = vor.u32 1.1754944e-38, %v7390_v45  ;;  %v7387_v9 = vsel %vm13608_vm14, %v13385_v57, %v13561_v29  ;;  %v11268_v57 = vor.u32 %v13571_v60, %v13580_v54  ;;  %v13667_v27 = vld [vmem:[#allocation22 + $0x88c] sm:$0xf]  ;;  %v13689_v45 = vld [vmem:[#allocation22 + $0x7c8] sm:$0xf] }
 0x554   :  { %v7402_v58 = vsel %vm13591_vm2, %v13399_v12, %v13587_v10  ;;  %v10592_v24 = vor.u32 %v13584_v42, %v13582_v43  ;;  %v13669_v35 = vld [vmem:[#allocation22 + $0x8e8] sm:$0xf0]  ;;  %v13681_v12 = vsel %vm14213_vm7, %v13481_v4, %v7779_v52  ;;  %v13697_v4 = vld [vmem:[#allocation22 + $0x288] sm:$0xf]  ;;  %v13705_v40 = vsel %vm14211_vm13, %v13516_v14, %v7841_v1 }
 0x555   :  { %7035 = vmatpush.bf16.msrb.mxu3 %v10776_v48  ;;  %7061 = vmatpush.bf16.msra.mxu1 %v10780_v8  ;;  %v13628_v48 = vadd.f32 1.0, %v12435_v17  ;;  %v13636_v8 = vld [vmem:[#allocation23 + $0x8] sm:$0xff]  ;;  %v7392_v32 = vsel %vm13612_vm1, %v7391_v22, %v7387_v9  ;;  %v13708_v60 = vpop.f32.mrf.mxu1  ;;  %v11172_v43 = vor.u32 %v13632_v3, %v13634_v7  ;;  %v10500_v38 = vor.u32 %v13646_v31, %v13648_v2 }
 0x556   :  { %v13677_v26 = vld [vmem:[#allocation22 + $0x3a8] sm:$0xf0]  ;;  %v4640_v42 = vperm.slane %v13636_v8, 1  ;;  %v13725_v10 = vld [vmem:[#allocation22 + $0x708] sm:$0xf]  ;;  %v11076_v61 = vor.u32 %v13667_v27, %v13669_v35  ;;  %vm14222_vm7 = vcmask 1046533  }
 0x557   :  { %7021 = vmatpush.bf16.msrb.mxu2 %v10104_v21  ;;  %7047 = vmatpush.bf16.msra.mxu0 %v10108_v23  ;;  %v13654_v21 = vpop.eup %12436  ;;  %v13658_v23 = vsel %vm14214_vm6, %v13476_v56, %v7731_v62  ;;  %12438 = vrcp.f32 %v13628_v48  ;;  %v13673_v56 = vld [vmem:[#allocation22 + $0x3a4] sm:$0xf0]  ;;  %v13693_v29 = vld [vmem:[#allocation22 + $0x7cc] sm:$0xf]  ;;  %vm14218_vm6 = vcmask 1044481   ;;  %vm7414_vm1 = vweird.f32 %v13628_v48 }
 0x558   :  { %7036 = vmatmul.bf16.vlgmr.msrb.gmra.mxu3 %v13245_v59  ;;  %7062 = vmatmul.bf16.vlgmr.msra.gmra.mxu1 %v13245_v59  ;;  %v13716_v54 = vld [vmem:[#allocation22 + $0x2e8] sm:$0xf0]  ;;  %v13727_v16 = vld [vmem:[#allocation22 + $0x764] sm:$0xf0]  ;;  %v10400_v22 = vor.u32 %v13673_v56, %v13671_v51  ;;  %vm7430_vm2 = vweird.f32 %v13654_v21  ;;  %v7433_v56 = vand.u32 2147483647, %v13548_v36 }
 0x559   :  { %7080 = vmatpush.bf16.msra.mxu3 %v11456_v0  ;;  %7106 = vmatpush.bf16.msrb.mxu1 %v11460_v41  ;;  %v7811_v0 = vsel %vm7734_vm4, %v7704_v33, %v7705_v55  ;;  %v13652_v41 = vld [vmem:[#allocation22 + $0x8e4] sm:$0xf0]  ;;  %v7425_v33 = vmul.f32 %v13654_v21, %v13548_v36  ;;  %v10596_v55 = vor.u32 %v13601_v13, %v13603_v18  ;;  %v13735_v18 = vld [vmem:[#allocation22 + $0x70c] sm:$0xf]  ;;  %vm13793_vm13 = vmor %vm7429_vm3, %vm7430_vm2  ;;  %vm14220_vm3 = vcmask 1046529  }
 0x55a   :  { %v13701_v37 = vsel %vm14212_vm11, %v13495_v47, %v7811_v0  ;;  %v7407_v47 = vsel %vm13556_vm15, %v13595_v34, %v7402_v58  ;;  %v10496_v13 = vor.u32 %v13644_v44, %v13642_v20  ;;  %v11072_v34 = vor.u32 %v13652_v41, %v13650_v19  ;;  %v13737_v17 = vld [vmem:[#allocation22 + $0x768] sm:$0xf0]  ;;  %v13739_v62 = vld [vmem:[#allocation22 + $0x1c8] sm:$0xf] }
 0x55b   :  { %7022 = vmatpush.bf16.msrb.mxu2 %v10008_v53  ;;  %7048 = vmatpush.bf16.msra.mxu0 %v10012_v46  ;;  %v13712_v53 = vld [vmem:[#allocation22 + $0x2e4] sm:$0xf0]  ;;  %v13714_v46 = vld [vmem:[#allocation22 + $0x28c] sm:$0xf]  ;;  %v7426_v14 = vsub.f32 1.0, %v7425_v33  ;;  %vm7738_vm15 = vcmask 1046534   ;;  %v10880_v20 = vor.u32 %v13727_v16, %v13725_v10  ;;  %v10884_v44 = vor.u32 %v13735_v18, %v13737_v17  ;;  %v13775_v19 = vpop.f32.mrf.mxu3  ;;  %v6842_v41 = vpop.f32.mrf.mxu0 }
 0x55c   :  { %v13752_v52 = vld [vmem:[#allocation22 + $0x228] sm:$0xf0]  ;;  %v10304_v7 = vor.u32 %v13712_v53, %v13697_v4  ;;  %v10308_v0 = vor.u32 %v13714_v46, %v13716_v54  ;;  %v6843_v51 = vadd.f32 %v6842_v41, %v4640_v42  ;;  %vm14219_vm11 = vcmask 1043456   ;;  %v13812_v42 = vld [vmem:[#allocation22 + $0xbec] sm:$0xf0] }
 0x55d   :  { %7081 = vmatpush.bf16.msra.mxu3 %v11360_v30  ;;  %7107 = vmatpush.bf16.msrb.mxu1 %v11364_v11  ;;  %v13695_v30 = vld [vmem:[#allocation22 + $0x828] sm:$0xf0]  ;;  %v11168_v11 = vor.u32 %v13621_v6, %v13619_v5  ;;  %v7427_v50 = vmul.f32 %v13654_v21, %v7426_v14  ;;  %v13748_v5 = vld [vmem:[#allocation22 + $0x224] sm:$0xf0]  ;;  %v13754_v9 = vpop.eup %12438  ;;  %vm13814_vm2 = vcmp.eq.f32.partialorder %v7433_v56, 8.507059e+37 }
 0x55e   :  { %7023 = vmatmul.bf16.vlgmr.msrb.gmra.mxu2 %v13249_v63  ;;  %7049 = vmatmul.bf16.vlgmr.msra.gmra.mxu0 %v13249_v63  ;;  %v13750_v6 = vld [vmem:[#allocation22 + $0x1cc] sm:$0xf]  ;;  %v10980_v3 = vor.u32 %v13693_v29, %v13695_v30  ;;  %v7410_v1 = vmul.f32 %v13754_v9, %v13628_v48  ;;  %v10208_v58 = vor.u32 %v13748_v5, %v13739_v62  ;;  %vm7415_vm14 = vweird.f32 %v13754_v9  ;;  %v13846_v56 = vld [vmem:[#allocation22 + $0xad0] sm:$0xf]  ;;  %v10015_v62 = vld [vmem:[#allocation22 + $0x48] sm:$0xf] }
 0x55f   :  { %7067 = vmatpush.bf16.msra.mxu2 %v10688_v39  ;;  %7093 = vmatpush.bf16.msrb.mxu0 %v10692_v49  ;;  %v7681_v39 = vpack.c.bf16 %v7407_v47, %v7392_v32  ;;  %v10404_v49 = vor.u32 %v13675_v25, %v13677_v26  ;;  %v7428_v27 = vadd.f32 %v13654_v21, %v7427_v50  ;;  %v7435_v25 = vand.u32 2147483648, %v13548_v36  ;;  %v6857_v32 = vpop.f32.mrf.mxu1  ;;  %v13806_v47 = vld [vmem:[#allocation22 + $0x64c] sm:$0xf]  ;;  %v13826_v50 = vld [vmem:[#allocation22 + $0xbf0] sm:$0xf0] }
 0x560   :  { %v7411_v35 = vsub.f32 1.0, %v7410_v1  ;;  %v7420_v26 = vand.u32 2147483648, %v13628_v48  ;;  %v13808_v14 = vld [vmem:[#allocation22 + $0x6a8] sm:$0xf0]  ;;  %v13833_v1 = vld [vmem:[#allocation22 + $0x164] sm:$0xf0] }
 0x561   :  { %7082 = vmatpush.bf16.msra.mxu3 %v11264_v15  ;;  %7108 = vmatpush.bf16.msrb.mxu1 %v11268_v57  ;;  %v10976_v15 = vor.u32 %v13691_v28, %v13689_v45  ;;  %v4639_v57 = vperm.slane %v13636_v8, 0  ;;  %v13771_v31 = vrot.slane %v7681_v39, 4  ;;  %v13773_v2 = vrot.slane %v7681_v39, 7  ;;  %v13858_v53 = vld [vmem:[#allocation22 + $0xb2c] sm:$0xf0] }
 0x562   :  { %v7412_v33 = vmul.f32 %v13754_v9, %v7411_v35  ;;  %v6856_v45 = vadd.f32 %v13708_v60, %v6843_v51  ;;  %v7432_v36 = vsel %vm13793_vm13, %v13654_v21, %v7428_v27  ;;  %v13802_v60 = vld [vmem:[#allocation22 + $0x648] sm:$0xf]  ;;  %v7436_v39 = vor.u32 1.1754944e-38, %v7435_v25  ;;  %vm13820_vm13 = vmor %vm7414_vm1, %vm7415_vm14  ;;  %v12030_v35 = vld [vmem:[#allocation22 + $0x10c] sm:$0xf] }
 0x563   :  { %7068 = vmatpush.bf16.msra.mxu2 %v10592_v24  ;;  %7094 = vmatpush.bf16.msrb.mxu0 %v10596_v55  ;;  %v10212_v24 = vor.u32 %v13750_v6, %v13752_v52  ;;  %v7418_v55 = vand.u32 2147483647, %v13628_v48  ;;  %v7783_v41 = vsel %vm7782_vm5, %v13771_v31, %v13773_v2  ;;  %v10113_v51 = vld [vmem:[#allocation22 + $0x168] sm:$0xf0]  ;;  %v7814_v25 = vsel %vm7738_vm15, %v13771_v31, %v13773_v2  ;;  %v12018_v5 = vld [vmem:[#allocation22 + $0xa4] sm:$0xf0] }
 0x564   :  { %v7413_v29 = vadd.f32 %v13754_v9, %v7412_v33  ;;  %v11486_v30 = vmul.f32 -1.442695, %v6856_v45  ;;  %v7437_v27 = vsel %vm13814_vm2, %v7436_v39, %v7432_v36  ;;  %v13862_v33 = vld [vmem:[#allocation22 + $0xb30] sm:$0xf0]  ;;  %v10788_v46 = vor.u32 %v13806_v47, %v13808_v14  ;;  %v12006_v47 = vld [vmem:[#allocation22 + $0x4c] sm:$0xf] }
 0x565   :  { %7083 = vmatpush.bf16.msra.mxu3 %v11168_v11  ;;  %7109 = vmatpush.bf16.msrb.mxu1 %v11172_v43  ;;  %v13804_v11 = vld [vmem:[#allocation22 + $0x6a4] sm:$0xf0]  ;;  %v13810_v43 = vld [vmem:[#allocation22 + $0xb90] sm:$0xf]  ;;  %vm7419_vm10 = vcmp.eq.f32.partialorder %v7418_v55, 8.507059e+37  ;;  %v11368_v55 = vor.u32 %v13858_v53, %v13846_v56  ;;  %vm14249_vm14 = vcmask 1045508  }
 0x566   :  { %12440 = vpow2.f32 %v11486_v30  ;;  %v11464_v54 = vor.u32 %v13812_v42, %v13810_v43  ;;  %v10017_v14 = vld [vmem:[#allocation22 + $0xa8] sm:$0xf0]  ;;  %v10695_v43 = vld [vmem:[#allocation22 + $0x590] sm:$0xf]  ;;  %vm14250_vm1 = vcmask 1045506  }
 0x567   :  { %7069 = vmatpush.bf16.msra.mxu2 %v10496_v13  ;;  %7095 = vmatpush.bf16.msrb.mxu0 %v10500_v38  ;;  %v7421_v13 = vor.u32 1.1754944e-38, %v7420_v26  ;;  %v6816_v38 = vpop.f32.mrf.mxu2  ;;  %v7844_v26 = vsel %vm7784_vm0, %v13773_v2, %v13771_v31  ;;  %v12187_v21 = vld [vmem:[#allocation22 + $0x5ec] sm:$0xf0]  ;;  %v12175_v39 = vld [vmem:[#allocation22 + $0x594] sm:$0xf] }
 0x568   :  { %v10697_v48 = vld [vmem:[#allocation22 + $0x5f0] sm:$0xf0] }
 0x569   :  { %7084 = vmatpush.bf16.msra.mxu3 %v11072_v34  ;;  %7110 = vmatpush.bf16.msrb.mxu1 %v11076_v61  ;;  %v13824_v34 = vld [vmem:[#allocation22 + $0xb94] sm:$0xf]  ;;  %v7417_v61 = vsel %vm13820_vm13, %v13754_v9, %v7413_v29 }
 0x56a   :  { %v7422_v9 = vsel %vm7419_vm10, %v7421_v13, %v7417_v61  ;;  %vm14217_vm10 = vcmask 1046531   ;;  %v12331_v61 = vld [vmem:[#allocation22 + $0xa6c] sm:$0xf0] }
 0x56b   :  { %7070 = vmatpush.bf16.msra.mxu2 %v10400_v22  ;;  %7096 = vmatpush.bf16.msrb.mxu0 %v10404_v49  ;;  %v6817_v22 = vadd.f32 %v6816_v38, %v4639_v57  ;;  %v13831_v49 = vld [vmem:[#allocation22 + $0x108] sm:$0xf]  ;;  %v6844_v57 = vpop.f32.mrf.mxu0  ;;  %v7682_v32 = vpack.c.bf16 %v7437_v27, %v7422_v9  ;;  %v12151_v27 = vld [vmem:[#allocation22 + $0x4d4] sm:$0xf] }
 0x56c   :  { %v10112_v10 = vor.u32 %v13833_v1, %v13831_v49  ;;  %v12441_v18 = vpop.eup %12440  ;;  %v10696_v49 = vor.u32 %v12187_v21, %v10695_v43  ;;  %v10700_v1 = vor.u32 %v12175_v39, %v10697_v48  ;;  %v10601_v9 = vld [vmem:[#allocation22 + $0x530] sm:$0xf0]  ;;  %v10311_v43 = vld [vmem:[#allocation22 + $0x290] sm:$0xf] }
 0x56d   :  { %7085 = vmatpush.bf16.msra.mxu3 %v10976_v15  ;;  %7111 = vmatpush.bf16.msrb.mxu1 %v10980_v3  ;;  %v7737_v15 = vsel %vm7734_vm4, %v13771_v31, %v13773_v2  ;;  %v6831_v3 = vpop.f32.mrf.mxu3  ;;  %v6830_v4 = vadd.f32 %v13775_v19, %v6817_v22  ;;  %v10784_v31 = vor.u32 %v13804_v11, %v13802_v60  ;;  %v7709_v2 = vrot.slane %v7682_v32, 5  ;;  %v11273_v22 = vld [vmem:[#allocation22 + $0xa70] sm:$0xf0] }
 0x56e   :  { %v11468_v19 = vor.u32 %v13824_v34, %v13826_v50  ;;  %v13906_v50 = vadd.f32 1.0, %v12441_v18  ;;  %v12079_v39 = vld [vmem:[#allocation22 + $0x294] sm:$0xf] }
 0x56f   :  { %7071 = vmatpush.bf16.msra.mxu2 %v10304_v7  ;;  %7097 = vmatpush.bf16.msrb.mxu0 %v10308_v0  ;;  %v13860_v7 = vld [vmem:[#allocation22 + $0xad4] sm:$0xf]  ;;  %v7708_v0 = vrot.slane %v7682_v32, 2  ;;  %v11485_v16 = vmul.f32 -1.442695, %v6830_v4  ;;  %v6818_v11 = vpop.f32.mrf.mxu2 }
 0x570   :  { %v11372_v45 = vor.u32 %v13860_v7, %v13862_v33  ;;  %v11177_v32 = vld [vmem:[#allocation22 + $0x9b0] sm:$0xf0]  ;;  %v10503_v4 = vld [vmem:[#allocation22 + $0x410] sm:$0xf]  ;;  %vm7459_vm2 = vweird.f32 %v13906_v50 }
 0x571   :  { %7086 = vmatpush.bf16.msra.mxu3 %v10880_v20  ;;  %7112 = vmatpush.bf16.msrb.mxu1 %v10884_v44  ;;  %v10116_v20 = vor.u32 %v12030_v35, %v10113_v51  ;;  %v7741_v17 = vsel %vm7738_vm15, %v7708_v0, %v7709_v2  ;;  %v7785_v44 = vsel %vm7784_vm0, %v7709_v2, %v7708_v0  ;;  %12442 = vpow2.f32 %v11485_v16  ;;  %v11175_v35 = vld [vmem:[#allocation22 + $0x950] sm:$0xf]  ;;  %v12127_v33 = vld [vmem:[#allocation22 + $0x414] sm:$0xf] }
 0x572   :  { %v7815_v28 = vsel %vm7724_vm8, %v7708_v0, %v7709_v2  ;;  %v7845_v36 = vsel %vm7776_vm9, %v7708_v0, %v7709_v2  ;;  %v7787_v29 = vsel %vm14222_vm7, %v7783_v41, %v7785_v44  ;;  %12444 = vrcp.f32 %v13906_v50  ;;  %v12163_v41 = vld [vmem:[#allocation22 + $0x52c] sm:$0xf0]  ;;  %v10313_v48 = vld [vmem:[#allocation22 + $0x2f0] sm:$0xf0] }
 0x573   :  { %7072 = vmatpush.bf16.msra.mxu2 %v10208_v58  ;;  %7098 = vmatpush.bf16.msrb.mxu0 %v10212_v24  ;;  %v7743_v58 = vsel %vm14249_vm14, %v7737_v15, %v7741_v17  ;;  %v7817_v30 = vsel %vm14221_vm12, %v7815_v28, %v7814_v25  ;;  %v7847_v60 = vsel %vm14220_vm3, %v7845_v36, %v7844_v26  ;;  %v10599_v15 = vld [vmem:[#allocation22 + $0x4d0] sm:$0xf]  ;;  %v12295_v26 = vld [vmem:[#allocation22 + $0x954] sm:$0xf] }
 0x574   :  { %v7745_v42 = vsel %vm14219_vm11, %v13658_v23, %v7743_v58  ;;  %v7789_v6 = vsel %vm14218_vm6, %v13681_v12, %v7787_v29  ;;  %v7819_v52 = vsel %vm14250_vm1, %v13701_v37, %v7817_v30  ;;  %v7849_v24 = vsel %vm14217_vm10, %v13705_v40, %v7847_v60  ;;  %v11271_v23 = vld [vmem:[#allocation22 + $0xa10] sm:$0xf]  ;;  %v12319_v40 = vld [vmem:[#allocation22 + $0xa14] sm:$0xf] }
 0x575   :  { %7087 = vmatpush.bf16.msra.mxu3 %v10784_v31  ;;  %7113 = vmatpush.bf16.msrb.mxu1 %v10788_v46  ;;  %v7791_v13 = vrot.slane %v7789_v6, 1  ;;  %v7821_v38 = vrot.slane %v7819_v52, 2  ;;  %v7851_v34 = vrot.slane %v7849_v24, 3  ;;  %7882 = vst [vmem:[#allocation25] sm:$0xff] %v7745_v42  ;;  %v10016_v12 = vor.u32 %v12018_v5, %v10015_v62  ;;  %v12307_v51 = vld [vmem:[#allocation22 + $0x9ac] sm:$0xf0]  ;;  %v6907_v0 = vpop.f32.mrf.mxu1 }
 0x576   :  { %v10020_v37 = vor.u32 %v12006_v47, %v10017_v14  ;;  %v11272_v3 = vor.u32 %v12331_v61, %v11271_v23  ;;  %v11276_v57 = vor.u32 %v12319_v40, %v11273_v22  ;;  %v10600_v56 = vor.u32 %v12163_v41, %v10599_v15  ;;  %v12139_v7 = vld [vmem:[#allocation22 + $0x46c] sm:$0xf0]  ;;  %v10505_v31 = vld [vmem:[#allocation22 + $0x470] sm:$0xf0] }
 0x577   :  { %7073 = vmatpush.bf16.msra.mxu2 %v10112_v10  ;;  %7099 = vmatpush.bf16.msrb.mxu0 %v10116_v20  ;;  %7885 = vst [vmem:[#allocation25 + $0x18] sm:$0xff] %v7791_v13  ;;  %v10604_v25 = vor.u32 %v12151_v27, %v10601_v9  ;;  %v12443_v53 = vpop.eup %12442  ;;  %v11180_v10 = vor.u32 %v12295_v26, %v11177_v32  ;;  %v11079_v16 = vld [vmem:[#allocation22 + $0x890] sm:$0xf]  ;;  %v11081_v17 = vld [vmem:[#allocation22 + $0x8f0] sm:$0xf0]  ;;  %v4642_v62 = vperm.slane %v13636_v8, 3 }
 0x578   :  { %7088 = vmatmul.bf16.vlgmr.msra.gmra.mxu3 %v13245_v59  ;;  %7114 = vmatmul.bf16.vlgmr.msrb.gmra.mxu1 %v13245_v59  ;;  %7888 = vst [vmem:[#allocation25 + $0x30] sm:$0xff] %v7821_v38  ;;  %v13911_v46 = vpop.eup %12444  ;;  %v12283_v20 = vld [vmem:[#allocation22 + $0x8ec] sm:$0xf0]  ;;  %v10508_v18 = vor.u32 %v12127_v33, %v10505_v31  ;;  %v12103_v5 = vld [vmem:[#allocation22 + $0x354] sm:$0xf]  ;;  %vm14262_vm6 = vcmask 1044483  }
 0x579   :  { %7132 = vmatpush.bf16.msrb.mxu3 %v11464_v54  ;;  %7158 = vmatpush.bf16.msra.mxu1 %v11468_v19  ;;  %7891 = vst [vmem:[#allocation25 + $0x48] sm:$0xff] %v7851_v34  ;;  %v13913_v54 = vadd.f32 1.0, %v12443_v53  ;;  %v7455_v2 = vmul.f32 %v13911_v46, %v13906_v50  ;;  %v11176_v19 = vor.u32 %v12307_v51, %v11175_v35  ;;  %v10407_v44 = vld [vmem:[#allocation22 + $0x350] sm:$0xf]  ;;  %v10409_v58 = vld [vmem:[#allocation22 + $0x3b0] sm:$0xf0]  ;;  %vm7460_vm13 = vweird.f32 %v13911_v46 }
 0x57a   :  { %v12115_v28 = vld [vmem:[#allocation22 + $0x3ac] sm:$0xf0]  ;;  %v12247_v60 = vld [vmem:[#allocation22 + $0x7d4] sm:$0xf]  ;;  %v11080_v11 = vor.u32 %v12283_v20, %v11079_v16  ;;  %v10412_v21 = vor.u32 %v12103_v5, %v10409_v58  ;;  %v10316_v35 = vor.u32 %v12079_v39, %v10313_v48  ;;  %v7463_v31 = vand.u32 2147483647, %v13906_v50  ;;  %vm13962_vm1 = vmor %vm7459_vm2, %vm7460_vm13 }
 0x57b   :  { %7074 = vmatpush.bf16.msra.mxu2 %v10016_v12  ;;  %7100 = vmatpush.bf16.msrb.mxu0 %v10020_v37  ;;  %12446 = vrcp.f32 %v13913_v54  ;;  %v7456_v36 = vsub.f32 1.0, %v7455_v2  ;;  %v10983_v29 = vld [vmem:[#allocation22 + $0x7d0] sm:$0xf]  ;;  %v10985_v14 = vld [vmem:[#allocation22 + $0x830] sm:$0xf0]  ;;  %v13921_v6 = vpop.f32.mrf.mxu3  ;;  %v6894_v52 = vpop.f32.mrf.mxu0  ;;  %v10408_v24 = vor.u32 %v12115_v28, %v10407_v44  ;;  %vm7444_vm2 = vweird.f32 %v13913_v54 }
 0x57c   :  { %v12259_v30 = vld [vmem:[#allocation22 + $0x82c] sm:$0xf0]  ;;  %v6895_v34 = vadd.f32 %v6894_v52, %v4642_v62  ;;  %v13928_v12 = vld [vmem:[#allocation22 + $0x714] sm:$0xf]  ;;  %v7448_v2 = vand.u32 2147483647, %v13913_v54 }
 0x57d   :  { %7133 = vmatpush.bf16.msrb.mxu3 %v11368_v55  ;;  %7159 = vmatpush.bf16.msra.mxu1 %v11372_v45  ;;  %v12271_v55 = vld [vmem:[#allocation22 + $0x894] sm:$0xf]  ;;  %v10504_v45 = vor.u32 %v12139_v7, %v10503_v4  ;;  %v12091_v42 = vld [vmem:[#allocation22 + $0x2ec] sm:$0xf0]  ;;  %v7457_v38 = vmul.f32 %v13911_v46, %v7456_v36  ;;  %v6909_v40 = vpop.f32.mrf.mxu1  ;;  %v10984_v22 = vor.u32 %v12259_v30, %v10983_v29  ;;  %v12368_v30 = vld [vmem:[#allocation22 + $0xb9c] sm:$0xf] }
 0x57e   :  { %7075 = vmatmul.bf16.vlgmr.msra.gmra.mxu2 %v13249_v63  ;;  %7101 = vmatmul.bf16.vlgmr.msrb.gmra.mxu0 %v13249_v63  ;;  %v11084_v47 = vor.u32 %v12271_v55, %v11081_v17  ;;  %v13923_v13 = vld [vmem:[#allocation22 + $0x710] sm:$0xf]  ;;  %v13930_v37 = vld [vmem:[#allocation22 + $0x770] sm:$0xf0]  ;;  %v6908_v41 = vadd.f32 %v6907_v0, %v6895_v34  ;;  %v10312_v27 = vor.u32 %v12091_v42, %v10311_v43  ;;  %v7465_v0 = vand.u32 2147483648, %v13906_v50 }
 0x57f   :  { %7119 = vmatpush.bf16.msrb.mxu2 %v10696_v49  ;;  %7145 = vmatpush.bf16.msra.mxu0 %v10700_v1  ;;  %v13926_v23 = vld [vmem:[#allocation22 + $0x76c] sm:$0xf0]  ;;  %v10988_v49 = vor.u32 %v12247_v60, %v10985_v14  ;;  %v4641_v1 = vperm.slane %v13636_v8, 2  ;;  %v7458_v4 = vadd.f32 %v13911_v46, %v7457_v38  ;;  %v13950_v33 = vld [vmem:[#allocation22 + $0x654] sm:$0xf]  ;;  %vm7449_vm10 = vcmp.eq.f32.partialorder %v7448_v2, 8.507059e+37 }
 0x580   :  { %v13937_v9 = vld [vmem:[#allocation22 + $0x1d0] sm:$0xf]  ;;  %v10888_v51 = vor.u32 %v13926_v23, %v13923_v13  ;;  %v11488_v7 = vmul.f32 -1.442695, %v6908_v41  ;;  %v10793_v55 = vld [vmem:[#allocation22 + $0x6b0] sm:$0xf0] }
 0x581   :  { %7134 = vmatpush.bf16.msrb.mxu3 %v11272_v3  ;;  %7160 = vmatpush.bf16.msra.mxu1 %v11276_v57  ;;  %v13932_v61 = vpop.eup %12446  ;;  %v12067_v3 = vld [vmem:[#allocation22 + $0x22c] sm:$0xf0]  ;;  %v12055_v57 = vld [vmem:[#allocation22 + $0x1d4] sm:$0xf]  ;;  %v7462_v58 = vsel %vm13962_vm1, %v13911_v46, %v7458_v4  ;;  %v11473_v60 = vld [vmem:[#allocation22 + $0xbf8] sm:$0xf0]  ;;  %v10796_v43 = vor.u32 %v13950_v33, %v10793_v55 }
 0x582   :  { %v7440_v15 = vmul.f32 %v13932_v61, %v13913_v54  ;;  %v13944_v26 = vld [vmem:[#allocation22 + $0x650] sm:$0xf]  ;;  %vm7445_vm14 = vweird.f32 %v13932_v61  ;;  %12448 = vpow2.f32 %v11488_v7  ;;  %v10216_v36 = vor.u32 %v12067_v3, %v13937_v9  ;;  %v11375_v13 = vld [vmem:[#allocation22 + $0xad8] sm:$0xf]  ;;  %v11377_v40 = vld [vmem:[#allocation22 + $0xb38] sm:$0xf0] }
 0x583   :  { %7120 = vmatpush.bf16.msrb.mxu2 %v10600_v56  ;;  %7146 = vmatpush.bf16.msra.mxu0 %v10604_v25  ;;  %v10892_v56 = vor.u32 %v13928_v12, %v13930_v37  ;;  %v10217_v25 = vld [vmem:[#allocation22 + $0x230] sm:$0xf0]  ;;  %v13946_v32 = vld [vmem:[#allocation22 + $0x6ac] sm:$0xf0]  ;;  %v6883_v44 = vpop.f32.mrf.mxu3  ;;  %v6896_v28 = vpop.f32.mrf.mxu0  ;;  %vm7446_vm13 = vmor %vm7444_vm2, %vm7445_vm14  ;;  %vm7464_vm1 = vcmp.eq.f32.partialorder %v7463_v31, 8.507059e+37  ;;  %v11476_v48 = vor.u32 %v12368_v30, %v11473_v60 }
 0x584   :  { %v7441_v53 = vsub.f32 1.0, %v7440_v15  ;;  %v10220_v62 = vor.u32 %v12055_v57, %v10217_v25  ;;  %v10792_v5 = vor.u32 %v13946_v32, %v13944_v26  ;;  %v12043_v52 = vld [vmem:[#allocation22 + $0x16c] sm:$0xf0]  ;;  %v12356_v38 = vld [vmem:[#allocation22 + $0xb34] sm:$0xf0] }
 0x585   :  { %7135 = vmatpush.bf16.msrb.mxu3 %v11176_v19  ;;  %7161 = vmatpush.bf16.msra.mxu1 %v11180_v10  ;;  %v7450_v19 = vand.u32 2147483648, %v13913_v54  ;;  %v6868_v10 = vpop.f32.mrf.mxu2  ;;  %v12344_v37 = vld [vmem:[#allocation22 + $0xadc] sm:$0xf]  ;;  %v12019_v15 = vld [vmem:[#allocation22 + $0xac] sm:$0xf0]  ;;  %v11376_v57 = vor.u32 %v12356_v38, %v11375_v13 }
 0x586   :  { %v7442_v16 = vmul.f32 %v13932_v61, %v7441_v53  ;;  %v6869_v20 = vadd.f32 %v6868_v10, %v4641_v1  ;;  %v12007_v41 = vld [vmem:[#allocation22 + $0x54] sm:$0xf]  ;;  %v10703_v9 = vld [vmem:[#allocation22 + $0x598] sm:$0xf]  ;;  %v12320_v7 = vld [vmem:[#allocation22 + $0xa1c] sm:$0xf] }
 0x587   :  { %7121 = vmatpush.bf16.msrb.mxu2 %v10504_v45  ;;  %7147 = vmatpush.bf16.msra.mxu0 %v10508_v18  ;;  %v11471_v45 = vld [vmem:[#allocation22 + $0xb98] sm:$0xf]  ;;  %v7451_v14 = vor.u32 1.1754944e-38, %v7450_v19  ;;  %v11281_v33 = vld [vmem:[#allocation22 + $0xa78] sm:$0xf0] }
 0x588   :  { %v12380_v18 = vld [vmem:[#allocation22 + $0xbf4] sm:$0xf0]  ;;  %v7443_v50 = vadd.f32 %v13932_v61, %v7442_v16  ;;  %v6882_v29 = vadd.f32 %v13921_v6, %v6869_v20  ;;  %v10121_v6 = vld [vmem:[#allocation22 + $0x170] sm:$0xf0]  ;;  %v12449_v34 = vpop.eup %12448  ;;  %v12152_v20 = vld [vmem:[#allocation22 + $0x4dc] sm:$0xf] }
 0x589   :  { %7136 = vmatpush.bf16.msrb.mxu3 %v11080_v11  ;;  %7162 = vmatpush.bf16.msra.mxu1 %v11084_v47  ;;  %v10119_v11 = vld [vmem:[#allocation22 + $0x110] sm:$0xf]  ;;  %v7466_v47 = vor.u32 1.1754944e-38, %v7465_v0  ;;  %v11472_v42 = vor.u32 %v12380_v18, %v11471_v45  ;;  %v12188_v3 = vld [vmem:[#allocation22 + $0x5f4] sm:$0xf0]  ;;  %v11284_v45 = vor.u32 %v12320_v7, %v11281_v33 }
 0x58a   :  { %v7447_v46 = vsel %vm7446_vm13, %v13932_v61, %v7443_v50  ;;  %v11487_v54 = vmul.f32 -1.442695, %v6882_v29  ;;  %v10120_v12 = vor.u32 %v12043_v52, %v10119_v11  ;;  %v10023_v61 = vld [vmem:[#allocation22 + $0x50] sm:$0xf]  ;;  %v11279_v26 = vld [vmem:[#allocation22 + $0xa18] sm:$0xf]  ;;  %v10704_v53 = vor.u32 %v12188_v3, %v10703_v9 }
 0x58b   :  { %7122 = vmatpush.bf16.msrb.mxu2 %v10408_v24  ;;  %7148 = vmatpush.bf16.msra.mxu0 %v10412_v21  ;;  %v12031_v24 = vld [vmem:[#allocation22 + $0x114] sm:$0xf]  ;;  %v7467_v21 = vsel %vm7464_vm1, %v7466_v47, %v7462_v58  ;;  %v7452_v39 = vsel %vm7449_vm10, %v7451_v14, %v7447_v46  ;;  %v10024_v25 = vor.u32 %v12019_v15, %v10023_v61  ;;  %v12332_v32 = vld [vmem:[#allocation22 + $0xa74] sm:$0xf0]  ;;  %v10609_v55 = vld [vmem:[#allocation22 + $0x538] sm:$0xf0] }
 0x58c   :  { %v13979_v23 = vpack.c.bf16 %v7467_v21, %v7452_v39  ;;  %12450 = vpow2.f32 %v11487_v54  ;;  %v10607_v2 = vld [vmem:[#allocation22 + $0x4d8] sm:$0xf]  ;;  %v11280_v16 = vor.u32 %v12332_v32, %v11279_v26  ;;  %v10612_v58 = vor.u32 %v12152_v20, %v10609_v55  ;;  %v12128_v30 = vld [vmem:[#allocation22 + $0x41c] sm:$0xf] }
 0x58d   :  { %7137 = vmatpush.bf16.msrb.mxu3 %v10984_v22  ;;  %7163 = vmatpush.bf16.msra.mxu1 %v10988_v49  ;;  %v13981_v22 = vadd.f32 1.0, %v12449_v34  ;;  %v10124_v49 = vor.u32 %v12031_v24, %v10121_v6  ;;  %v6870_v1 = vpop.f32.mrf.mxu2  ;;  %v12164_v19 = vld [vmem:[#allocation22 + $0x534] sm:$0xf0]  ;;  %v10513_v47 = vld [vmem:[#allocation22 + $0x478] sm:$0xf0] }
 0x58e   :  { %v11183_v18 = vld [vmem:[#allocation22 + $0x958] sm:$0xf]  ;;  %v10608_v28 = vor.u32 %v12164_v19, %v10607_v2  ;;  %v12272_v24 = vld [vmem:[#allocation22 + $0x89c] sm:$0xf]  ;;  %v10516_v13 = vor.u32 %v12128_v30, %v10513_v47 }
 0x58f   :  { %7123 = vmatpush.bf16.msrb.mxu2 %v10312_v27  ;;  %7149 = vmatpush.bf16.msra.mxu0 %v10316_v35  ;;  %v10025_v27 = vld [vmem:[#allocation22 + $0xb0] sm:$0xf0]  ;;  %12452 = vrcp.f32 %v13981_v22  ;;  %v11380_v35 = vor.u32 %v12344_v37, %v11377_v40  ;;  %v12308_v17 = vld [vmem:[#allocation22 + $0x9b4] sm:$0xf0]  ;;  %v11089_v46 = vld [vmem:[#allocation22 + $0x8f8] sm:$0xf0]  ;;  %vm7489_vm14 = vweird.f32 %v13981_v22 }
 0x590   :  { %v10028_v4 = vor.u32 %v12007_v41, %v10025_v27  ;;  %v10511_v50 = vld [vmem:[#allocation22 + $0x418] sm:$0xf]  ;;  %v11184_v11 = vor.u32 %v12308_v17, %v11183_v18  ;;  %v12104_v39 = vld [vmem:[#allocation22 + $0x35c] sm:$0xf]  ;;  %v11092_v15 = vor.u32 %v12272_v24, %v11089_v46  ;;  %v4644_v41 = vperm.slane %v13636_v8, 5 }
 0x591   :  { %7138 = vmatpush.bf16.msrb.mxu3 %v10888_v51  ;;  %7164 = vmatpush.bf16.msra.mxu1 %v10892_v56  ;;  %v12176_v51 = vld [vmem:[#allocation22 + $0x59c] sm:$0xf]  ;;  %v12140_v29 = vld [vmem:[#allocation22 + $0x474] sm:$0xf0]  ;;  %v7493_v55 = vand.u32 2147483647, %v13981_v22 }
 0x592   :  { %v10705_v56 = vld [vmem:[#allocation22 + $0x5f8] sm:$0xf0]  ;;  %v12451_v31 = vpop.eup %12450  ;;  %v11087_v14 = vld [vmem:[#allocation22 + $0x898] sm:$0xf]  ;;  %v10512_v54 = vor.u32 %v12140_v29, %v10511_v50 }
 0x593   :  { %7124 = vmatpush.bf16.msrb.mxu2 %v10216_v36  ;;  %7150 = vmatpush.bf16.msra.mxu0 %v10220_v62  ;;  %v10708_v0 = vor.u32 %v12176_v51, %v10705_v56  ;;  %v13986_v10 = vadd.f32 1.0, %v12451_v31  ;;  %v12296_v36 = vld [vmem:[#allocation22 + $0x95c] sm:$0xf]  ;;  %v10415_v6 = vld [vmem:[#allocation22 + $0x358] sm:$0xf] }
 0x594   :  { %v11185_v62 = vld [vmem:[#allocation22 + $0x9b8] sm:$0xf0]  ;;  %v12116_v21 = vld [vmem:[#allocation22 + $0x3b4] sm:$0xf0] }
 0x595   :  { %7139 = vmatpush.bf16.msrb.mxu3 %v10792_v5  ;;  %7165 = vmatpush.bf16.msra.mxu1 %v10796_v43  ;;  %v13988_v44 = vpop.eup %12452  ;;  %12454 = vrcp.f32 %v13986_v10  ;;  %v13994_v60 = vpop.f32.mrf.mxu1  ;;  %v12284_v43 = vld [vmem:[#allocation22 + $0x8f4] sm:$0xf0]  ;;  %v11188_v52 = vor.u32 %v12296_v36, %v11185_v62  ;;  %v10417_v38 = vld [vmem:[#allocation22 + $0x3b8] sm:$0xf0]  ;;  %v7480_v2 = vand.u32 2147483648, %v13986_v10  ;;  %vm7474_vm1 = vweird.f32 %v13986_v10 }
 0x596   :  { %v7485_v5 = vmul.f32 %v13988_v44, %v13981_v22  ;;  %v13998_v34 = vld [vmem:[#allocation22 + $0x7d8] sm:$0xf]  ;;  %v11088_v40 = vor.u32 %v12284_v43, %v11087_v14  ;;  %v14004_v61 = vld [vmem:[#allocation22 + $0x7dc] sm:$0xf]  ;;  %v10420_v51 = vor.u32 %v12104_v39, %v10417_v38  ;;  %vm7490_vm10 = vweird.f32 %v13988_v44 }
 0x597   :  { %7125 = vmatpush.bf16.msrb.mxu2 %v10120_v12  ;;  %7151 = vmatpush.bf16.msra.mxu0 %v10124_v49  ;;  %v14000_v12 = vld [vmem:[#allocation22 + $0x834] sm:$0xf0]  ;;  %v14006_v49 = vld [vmem:[#allocation22 + $0x838] sm:$0xf0]  ;;  %v7478_v18 = vand.u32 2147483647, %v13986_v10  ;;  %vm14041_vm13 = vmor %vm7489_vm14, %vm7490_vm10 }
 0x598   :  { %7140 = vmatmul.bf16.vlgmr.msrb.gmra.mxu3 %v13245_v59  ;;  %7166 = vmatmul.bf16.vlgmr.msra.gmra.mxu1 %v13245_v59  ;;  %v14011_v27 = vld [vmem:[#allocation22 + $0x298] sm:$0xf]  ;;  %v10992_v56 = vor.u32 %v14000_v12, %v13998_v34  ;;  %v14021_v26 = vld [vmem:[#allocation22 + $0x2f8] sm:$0xf0]  ;;  %v10996_v7 = vor.u32 %v14004_v61, %v14006_v49  ;;  %v7481_v46 = vor.u32 1.1754944e-38, %v7480_v2  ;;  %vm7494_vm14 = vcmp.eq.f32.partialorder %v7493_v55, 8.507059e+37 }
 0x599   :  { %7184 = vmatpush.bf16.msra.mxu3 %v11472_v42  ;;  %7210 = vmatpush.bf16.msrb.mxu1 %v11476_v48  ;;  %v7486_v42 = vsub.f32 1.0, %v7485_v5  ;;  %v14013_v9 = vld [vmem:[#allocation22 + $0x2f4] sm:$0xf0]  ;;  %v14029_v31 = vld [vmem:[#allocation22 + $0x71c] sm:$0xf] }
 0x59a   :  { %v14023_v32 = vld [vmem:[#allocation22 + $0x718] sm:$0xf]  ;;  %v10897_v20 = vld [vmem:[#allocation22 + $0x778] sm:$0xf0] }
 0x59b   :  { %7126 = vmatpush.bf16.msrb.mxu2 %v10024_v25  ;;  %7152 = vmatpush.bf16.msra.mxu0 %v10028_v4  ;;  %v7487_v48 = vmul.f32 %v13988_v44, %v7486_v42  ;;  %v14002_v37 = vpop.eup %12454  ;;  %v14015_v3 = vpop.f32.mrf.mxu3  ;;  %v14019_v25 = vld [vmem:[#allocation22 + $0x29c] sm:$0xf]  ;;  %v12236_v33 = vld [vmem:[#allocation22 + $0x774] sm:$0xf0] }
 0x59c   :  { %v7470_v1 = vmul.f32 %v14002_v37, %v13986_v10  ;;  %vm7475_vm2 = vweird.f32 %v14002_v37  ;;  %v10223_v17 = vld [vmem:[#allocation22 + $0x1d8] sm:$0xf]  ;;  %v12056_v5 = vld [vmem:[#allocation22 + $0x1dc] sm:$0xf]  ;;  %v10896_v30 = vor.u32 %v12236_v33, %v14023_v32 }
 0x59d   :  { %7185 = vmatpush.bf16.msra.mxu3 %v11376_v57  ;;  %7211 = vmatpush.bf16.msrb.mxu1 %v11380_v35  ;;  %v6946_v57 = vpop.f32.mrf.mxu0  ;;  %v10416_v35 = vor.u32 %v12116_v21, %v10415_v6  ;;  %v7488_v4 = vadd.f32 %v13988_v44, %v7487_v48  ;;  %v6961_v19 = vpop.f32.mrf.mxu1  ;;  %v12212_v47 = vld [vmem:[#allocation22 + $0x6b4] sm:$0xf0]  ;;  %v12200_v14 = vld [vmem:[#allocation22 + $0x65c] sm:$0xf]  ;;  %vm7476_vm10 = vmor %vm7474_vm1, %vm7475_vm2  ;;  %vm14255_vm2 = vcmask 1042434   ;;  %vm14256_vm1 = vcmask 1043459  }
 0x59e   :  { %7127 = vmatmul.bf16.vlgmr.msrb.gmra.mxu2 %v13249_v63  ;;  %7153 = vmatmul.bf16.vlgmr.msra.gmra.mxu0 %v13249_v63  ;;  %v6947_v62 = vadd.f32 %v6946_v57, %v4644_v41  ;;  %v10801_v43 = vld [vmem:[#allocation22 + $0x6b8] sm:$0xf0]  ;;  %v10127_v42 = vld [vmem:[#allocation22 + $0x118] sm:$0xf] }
 0x59f   :  { %7171 = vmatpush.bf16.msra.mxu2 %v10704_v53  ;;  %7197 = vmatpush.bf16.msrb.mxu0 %v10708_v0  ;;  %v7471_v53 = vsub.f32 1.0, %v7470_v1  ;;  %v7495_v0 = vand.u32 2147483648, %v13981_v22  ;;  %v10324_v22 = vor.u32 %v14019_v25, %v14021_v26  ;;  %v7492_v50 = vsel %vm14041_vm13, %v13988_v44, %v7488_v4  ;;  %v12044_v10 = vld [vmem:[#allocation22 + $0x174] sm:$0xf0]  ;;  %v12032_v39 = vld [vmem:[#allocation22 + $0x11c] sm:$0xf] }
 0x5a0   :  { %vm7479_vm13 = vcmp.eq.f32.partialorder %v7478_v18, 8.507059e+37  ;;  %v10129_v48 = vld [vmem:[#allocation22 + $0x178] sm:$0xf0]  ;;  %v6960_v34 = vadd.f32 %v13994_v60, %v6947_v62  ;;  %v10804_v41 = vor.u32 %v12200_v14, %v10801_v43  ;;  %v10031_v33 = vld [vmem:[#allocation22 + $0x58] sm:$0xf] }
 0x5a1   :  { %7186 = vmatpush.bf16.msra.mxu3 %v11280_v16  ;;  %7212 = vmatpush.bf16.msrb.mxu1 %v11284_v45  ;;  %v4643_v16 = vperm.slane %v13636_v8, 4  ;;  %v7472_v45 = vmul.f32 %v14002_v37, %v7471_v53  ;;  %v10320_v8 = vor.u32 %v14013_v9, %v14011_v27  ;;  %v7496_v24 = vor.u32 1.1754944e-38, %v7495_v0  ;;  %v6920_v44 = vpop.f32.mrf.mxu2  ;;  %v10033_v55 = vld [vmem:[#allocation22 + $0xb8] sm:$0xf0] }
 0x5a2   :  { %v10128_v27 = vor.u32 %v12044_v10, %v10127_v42  ;;  %v10132_v9 = vor.u32 %v12032_v39, %v10129_v48  ;;  %v11490_v25 = vmul.f32 -1.442695, %v6960_v34 }
 0x5a3   :  { %7172 = vmatpush.bf16.msra.mxu2 %v10608_v28  ;;  %7198 = vmatpush.bf16.msrb.mxu0 %v10612_v58  ;;  %v12068_v28 = vld [vmem:[#allocation22 + $0x234] sm:$0xf0]  ;;  %v10225_v58 = vld [vmem:[#allocation22 + $0x238] sm:$0xf0]  ;;  %v7473_v29 = vadd.f32 %v14002_v37, %v7472_v45  ;;  %v6921_v21 = vadd.f32 %v6920_v44, %v4643_v16  ;;  %v6935_v12 = vpop.f32.mrf.mxu3 }
 0x5a4   :  { %v10224_v61 = vor.u32 %v12068_v28, %v10223_v17 }
 0x5a5   :  { %7187 = vmatpush.bf16.msra.mxu3 %v11184_v11  ;;  %7213 = vmatpush.bf16.msrb.mxu1 %v11188_v52  ;;  %v10799_v11 = vld [vmem:[#allocation22 + $0x658] sm:$0xf]  ;;  %v7710_v52 = vrot.slane %v13979_v23, 3  ;;  %v7477_v6 = vsel %vm7476_vm10, %v14002_v37, %v7473_v29  ;;  %v6934_v1 = vadd.f32 %v14015_v3, %v6921_v21  ;;  %vm14257_vm10 = vmmov %vm14255_vm2 }
 0x5a6   :  { %v7482_v38 = vsel %vm7479_vm13, %v7481_v46, %v7477_v6  ;;  %v10800_v37 = vor.u32 %v12212_v47, %v10799_v11  ;;  %vm14259_vm13 = vcmask 1041408  }
 0x5a7   :  { %7173 = vmatpush.bf16.msra.mxu2 %v10512_v54  ;;  %7199 = vmatpush.bf16.msrb.mxu0 %v10516_v13  ;;  %v10900_v54 = vor.u32 %v14029_v31, %v10897_v20  ;;  %v7497_v13 = vsel %vm7494_vm14, %v7496_v24, %v7492_v50  ;;  %v7748_v57 = vsel %vm7724_vm8, %v13979_v23, %v7710_v52  ;;  %v11489_v26 = vmul.f32 -1.442695, %v6934_v1  ;;  %vm14258_vm14 = vmmov %vm14256_vm1  ;;  %v12020_v31 = vld [vmem:[#allocation22 + $0xb4] sm:$0xf0]  ;;  %v12008_v20 = vld [vmem:[#allocation22 + $0x5c] sm:$0xf] }
 0x5a8   :  { %v7684_v49 = vpack.c.bf16 %v7497_v13, %v7482_v38  ;;  %v7792_v60 = vsel %vm7776_vm9, %v13979_v23, %v7710_v52  ;;  %v7852_v3 = vsel %vm14256_vm1, %v13979_v23, %v7710_v52  ;;  %vm14261_vm1 = vcmask 1043458  }
 0x5a9   :  { %7188 = vmatpush.bf16.msra.mxu3 %v11088_v40  ;;  %7214 = vmatpush.bf16.msrb.mxu1 %v11092_v15  ;;  %v6948_v40 = vpop.f32.mrf.mxu0  ;;  %v10228_v15 = vor.u32 %v12056_v5, %v10225_v58  ;;  %v6922_v16 = vpop.f32.mrf.mxu2  ;;  %12456 = vpow2.f32 %v11489_v26  ;;  %v10032_v45 = vor.u32 %v12020_v31, %v10031_v33  ;;  %v10036_v18 = vor.u32 %v12008_v20, %v10033_v55 }
 0x5aa   :  { %12458 = vpow2.f32 %v11490_v25 }
 0x5ab   :  { %7174 = vmatpush.bf16.msra.mxu2 %v10416_v35  ;;  %7200 = vmatpush.bf16.msrb.mxu0 %v10420_v51  ;;  %v7711_v35 = vrot.slane %v7684_v49, 6  ;;  %v7712_v51 = vrot.slane %v7684_v49, 1 }
 0x5ad   :  { %7189 = vmatpush.bf16.msra.mxu3 %v10992_v56  ;;  %7215 = vmatpush.bf16.msrb.mxu1 %v10996_v7  ;;  %v7822_v56 = vsel %vm14255_vm2, %v13979_v23, %v7710_v52  ;;  %v7751_v32 = vsel %vm14257_vm10, %v7711_v35, %v7712_v51  ;;  %v7793_v4 = vsel %vm14258_vm14, %v7711_v35, %v7712_v51  ;;  %vm14260_vm2 = vcmask 1042433  }
 0x5ae   :  { %v7823_v53 = vsel %vm7734_vm4, %v7711_v35, %v7712_v51  ;;  %v7853_v7 = vsel %vm7782_vm5, %v7711_v35, %v7712_v51  ;;  %v14075_v0 = vsel %vm14259_vm13, %v7748_v57, %v7751_v32  ;;  %v14078_v2 = vsel %vm14260_vm2, %v7792_v60, %v7793_v4  ;;  %v14093_v60 = vld [vmem:[#allocation23 + $0x10] sm:$0xff] }
 0x5af   :  { %7175 = vmatpush.bf16.msra.mxu2 %v10320_v8  ;;  %7201 = vmatpush.bf16.msrb.mxu0 %v10324_v22  ;;  %v14081_v23 = vsel %vm14261_vm1, %v7822_v56, %v7823_v53  ;;  %v14084_v19 = vsel %vm14262_vm6, %v7852_v3, %v7853_v7  ;;  %v12457_v17 = vpop.eup %12456  ;;  %v12505_v22 = vld [vmem:[#allocation23 + $0x8] sm:$0xff]  ;;  %v4648_v32 = vperm.slane %v14093_v60, 1  ;;  %v4647_v55 = vperm.slane %v14093_v60, 0 }
 0x5b0   :  { %v12459_v28 = vpop.eup %12458  ;;  %v7307_v36 = vadd.f32 1.0, %v12457_v17  ;;  %v4646_v5 = vperm.slane %v12505_v22, 7 }
 0x5b1   :  { %7190 = vmatpush.bf16.msra.mxu3 %v10896_v30  ;;  %7216 = vmatpush.bf16.msrb.mxu1 %v10900_v54  ;;  %v7308_v8 = vadd.f32 1.0, %v12459_v28 }
 0x5b2   :  { %12460 = vrcp.f32 %v7307_v36  ;;  %v7510_v49 = vand.u32 2147483648, %v7307_v36  ;;  %vm7504_vm14 = vweird.f32 %v7307_v36 }
 0x5b3   :  { %7176 = vmatpush.bf16.msra.mxu2 %v10224_v61  ;;  %7202 = vmatpush.bf16.msrb.mxu0 %v10228_v15  ;;  %12462 = vrcp.f32 %v7308_v8  ;;  %v7508_v15 = vand.u32 2147483647, %v7307_v36  ;;  %vm7519_vm2 = vweird.f32 %v7308_v8 }
 0x5b4   :  { %v7511_v35 = vor.u32 1.1754944e-38, %v7510_v49 }
 0x5b5   :  { %7191 = vmatpush.bf16.msra.mxu3 %v10800_v37  ;;  %7217 = vmatpush.bf16.msrb.mxu1 %v10804_v41  ;;  %v7011_v62 = vpop.f32.mrf.mxu1  ;;  %v7525_v37 = vand.u32 2147483648, %v7308_v8  ;;  %vm7509_vm11 = vcmp.eq.f32.partialorder %v7508_v15, 8.507059e+37 }
 0x5b7   :  { %7177 = vmatpush.bf16.msra.mxu2 %v10128_v27  ;;  %7203 = vmatpush.bf16.msrb.mxu0 %v10132_v9  ;;  %v7523_v27 = vand.u32 2147483647, %v7308_v8  ;;  %v7526_v3 = vor.u32 1.1754944e-38, %v7525_v37 }
 0x5b8   :  { %7192 = vmatmul.bf16.vlgmr.msra.gmra.mxu3 %v13245_v59  ;;  %7218 = vmatmul.bf16.vlgmr.msrb.gmra.mxu1 %v13245_v59  ;;  %v4645_v59 = vperm.slane %v12505_v22, 6  ;;  %v12461_v47 = vpop.eup %12460 }
 0x5b9   :  { %v12463_v42 = vpop.eup %12462  ;;  %v7500_v24 = vmul.f32 %v12461_v47, %v7307_v36  ;;  %vm7505_vm6 = vweird.f32 %v12461_v47 }
 0x5ba   :  { %v7515_v54 = vmul.f32 %v12463_v42, %v7308_v8  ;;  %vm7520_vm10 = vweird.f32 %v12463_v42  ;;  %vm7506_vm13 = vmor %vm7504_vm14, %vm7505_vm6  ;;  %vm7524_vm6 = vcmp.eq.f32.partialorder %v7523_v27, 8.507059e+37 }
 0x5bb   :  { %7178 = vmatpush.bf16.msra.mxu2 %v10032_v45  ;;  %7204 = vmatpush.bf16.msrb.mxu0 %v10036_v18  ;;  %v6985_v58 = vpop.f32.mrf.mxu3  ;;  %v6998_v50 = vpop.f32.mrf.mxu0  ;;  %v7501_v6 = vsub.f32 1.0, %v7500_v24  ;;  %vm7521_vm1 = vmor %vm7519_vm2, %vm7520_vm10 }
 0x5bc   :  { %v6999_v29 = vadd.f32 %v6998_v50, %v4646_v5  ;;  %v7516_v39 = vsub.f32 1.0, %v7515_v54 }
 0x5bd   :  { %v7013_v30 = vpop.f32.mrf.mxu1  ;;  %v7502_v13 = vmul.f32 %v12461_v47, %v7501_v6 }
 0x5be   :  { %7179 = vmatmul.bf16.vlgmr.msra.gmra.mxu2 %v13249_v63  ;;  %7205 = vmatmul.bf16.vlgmr.msrb.gmra.mxu0 %v13249_v63  ;;  %v7012_v11 = vadd.f32 %v7011_v62, %v6999_v29  ;;  %v7517_v34 = vmul.f32 %v12463_v42, %v7516_v39 }
 0x5bf   :  { %v7503_v40 = vadd.f32 %v12461_v47, %v7502_v13 }
 0x5c0   :  { %v11492_v14 = vmul.f32 -1.442695, %v7012_v11  ;;  %v7518_v1 = vadd.f32 %v12463_v42, %v7517_v34 }
 0x5c1   :  { %v6972_v43 = vpop.f32.mrf.mxu2  ;;  %v7507_v9 = vsel %vm7506_vm13, %v12461_v47, %v7503_v40 }
 0x5c2   :  { %v6973_v52 = vadd.f32 %v6972_v43, %v4645_v59  ;;  %12464 = vpow2.f32 %v11492_v14  ;;  %v7522_v56 = vsel %vm7521_vm1, %v12463_v42, %v7518_v1  ;;  %v7512_v25 = vsel %vm7509_vm11, %v7511_v35, %v7507_v9 }
 0x5c3   :  { %v6987_v63 = vpop.f32.mrf.mxu3  ;;  %v7000_v44 = vpop.f32.mrf.mxu0  ;;  %v7527_v53 = vsel %vm7524_vm6, %v7526_v3, %v7522_v56 }
 0x5c4   :  { %v6986_v46 = vadd.f32 %v6985_v58, %v6973_v52  ;;  %v7685_v16 = vpack.c.bf16 %v7527_v53, %v7512_v25 }
 0x5c6   :  { %v11491_v10 = vmul.f32 -1.442695, %v6986_v46  ;;  %v7713_v50 = vrot.slane %v7685_v16, 4  ;;  %v7714_v14 = vrot.slane %v7685_v16, 7 }
 0x5c8   :  { %12466 = vpow2.f32 %v11491_v10  ;;  %v12465_v21 = vpop.eup %12464  ;;  %v7755_v39 = vsel %vm7734_vm4, %v7713_v50, %v7714_v14  ;;  %v7825_v34 = vsel %vm7738_vm15, %v7713_v50, %v7714_v14 }
 0x5c9   :  { %v6974_v48 = vpop.f32.mrf.mxu2  ;;  %v14090_v38 = vadd.f32 1.0, %v12465_v21 }
 0x5cb   :  { %12468 = vrcp.f32 %v14090_v38  ;;  %vm7549_vm14 = vweird.f32 %v14090_v38  ;;  %v7553_v28 = vand.u32 2147483647, %v14090_v38  ;;  %v7555_v36 = vand.u32 2147483648, %v14090_v38 }
 0x5cd   :  { %v7556_v43 = vor.u32 1.1754944e-38, %v7555_v36  ;;  %vm7554_vm6 = vcmp.eq.f32.partialorder %v7553_v28, 8.507059e+37 }
 0x5ce   :  { %v12467_v12 = vpop.eup %12466 }
 0x5cf   :  { %v7309_v61 = vadd.f32 1.0, %v12467_v12  ;;  %v7855_v12 = vsel %vm7784_vm0, %v7714_v14, %v7713_v50 }
 0x5d1   :  { %12470 = vrcp.f32 %v7309_v61  ;;  %v12469_v41 = vpop.eup %12468  ;;  %v7540_v62 = vand.u32 2147483648, %v7309_v61  ;;  %v7538_v5 = vand.u32 2147483647, %v7309_v61  ;;  %vm7534_vm2 = vweird.f32 %v7309_v61 }
 0x5d2   :  { %v7545_v51 = vmul.f32 %v12469_v41, %v14090_v38  ;;  %vm7550_vm10 = vweird.f32 %v12469_v41  ;;  %v7795_v38 = vsel %vm7782_vm5, %v7713_v50, %v7714_v14 }
 0x5d3   :  { %vm14101_vm13 = vmor %vm7549_vm14, %vm7550_vm10  ;;  %v7541_v42 = vor.u32 1.1754944e-38, %v7540_v62  ;;  %vm7539_vm3 = vcmp.eq.f32.partialorder %v7538_v5, 8.507059e+37  ;;  %vm14266_vm10 = vcmask 1046529   ;;  %vm14267_vm14 = vcmask 1043456  }
 0x5d4   :  { %v7546_v26 = vsub.f32 1.0, %v7545_v51 }
 0x5d5   :  { %v7063_v57 = vpop.f32.mrf.mxu1 }
 0x5d6   :  { %v7547_v7 = vmul.f32 %v12469_v41, %v7546_v26 }
 0x5d7   :  { %v12471_v4 = vpop.eup %12470 }
 0x5d8   :  { %v7530_v33 = vmul.f32 %v12471_v4, %v7309_v61  ;;  %v7548_v45 = vadd.f32 %v12469_v41, %v7547_v7  ;;  %vm7535_vm11 = vweird.f32 %v12471_v4 }
 0x5d9   :  { %vm7536_vm1 = vmor %vm7534_vm2, %vm7535_vm11  ;;  %vm14268_vm11 = vcmask 1044481   ;;  %vm14270_vm2 = vcmask 1046531  }
 0x5da   :  { %v7531_v18 = vsub.f32 1.0, %v7530_v33  ;;  %v7552_v30 = vsel %vm14101_vm13, %v12469_v41, %v7548_v45  ;;  %vm14269_vm13 = vcmask 1045506  }
 0x5db   :  { %v7037_v31 = vpop.f32.mrf.mxu3  ;;  %v7050_v20 = vpop.f32.mrf.mxu0  ;;  %v7557_v46 = vsel %vm7554_vm6, %v7556_v43, %v7552_v30 }
 0x5dc   :  { %v7051_v17 = vadd.f32 %v7050_v20, %v4648_v32  ;;  %v7532_v22 = vmul.f32 %v12471_v4, %v7531_v18  ;;  %v4649_v18 = vperm.slane %v14093_v60, 2 }
 0x5dd   :  { %v7065_v8 = vpop.f32.mrf.mxu1 }
 0x5de   :  { %v7064_v58 = vadd.f32 %v7063_v57, %v7051_v17  ;;  %v7533_v59 = vadd.f32 %v12471_v4, %v7532_v22 }
 0x5e0   :  { %v11494_v11 = vmul.f32 -1.442695, %v7064_v58  ;;  %v7537_v24 = vsel %vm7536_vm1, %v12471_v4, %v7533_v59 }
 0x5e1   :  { %v7024_v47 = vpop.f32.mrf.mxu2  ;;  %v7542_v44 = vsel %vm7539_vm3, %v7541_v42, %v7537_v24  ;;  %vm14265_vm3 = vcmask 1045508  }
 0x5e2   :  { %v7025_v52 = vadd.f32 %v7024_v47, %v4647_v55  ;;  %12472 = vpow2.f32 %v11494_v11  ;;  %v7686_v6 = vpack.c.bf16 %v7557_v46, %v7542_v44 }
 0x5e3   :  { %v7039_v63 = vpop.f32.mrf.mxu3  ;;  %v7052_v10 = vpop.f32.mrf.mxu0 }
 0x5e4   :  { %v7038_v54 = vadd.f32 %v7037_v31, %v7025_v52  ;;  %v7715_v48 = vrot.slane %v7686_v6, 2  ;;  %v7716_v13 = vrot.slane %v7686_v6, 5 }
 0x5e6   :  { %v11493_v21 = vmul.f32 -1.442695, %v7038_v54  ;;  %v7758_v61 = vsel %vm7738_vm15, %v7715_v48, %v7716_v13  ;;  %v7796_v49 = vsel %vm7784_vm0, %v7716_v13, %v7715_v48  ;;  %v7826_v1 = vsel %vm7724_vm8, %v7715_v48, %v7716_v13 }
 0x5e7   :  { %v7856_v15 = vsel %vm7776_vm9, %v7715_v48, %v7716_v13  ;;  %v7759_v41 = vsel %vm14265_vm3, %v7755_v39, %v7758_v61  ;;  %v7797_v27 = vsel %vm14222_vm7, %v7795_v38, %v7796_v49  ;;  %v7827_v9 = vsel %vm14221_vm12, %v7826_v1, %v7825_v34 }
 0x5e8   :  { %12474 = vpow2.f32 %v11493_v21  ;;  %v12473_v40 = vpop.eup %12472  ;;  %v7857_v57 = vsel %vm14266_vm10, %v7856_v15, %v7855_v12  ;;  %v7760_v35 = vsel %vm14267_vm14, %v14075_v0, %v7759_v41  ;;  %v7798_v51 = vsel %vm14268_vm11, %v14078_v2, %v7797_v27 }
 0x5e9   :  { %v7026_v37 = vpop.f32.mrf.mxu2  ;;  %v7828_v56 = vsel %vm14269_vm13, %v14081_v23, %v7827_v9  ;;  %v7858_v3 = vsel %vm14270_vm2, %v14084_v19, %v7857_v57  ;;  %v7800_v25 = vrot.slane %v7798_v51, 1  ;;  %7883 = vst [vmem:[#allocation25 + $0x8] sm:$0xff] %v7760_v35  ;;  %v7312_v4 = vadd.f32 1.0, %v12473_v40 }
 0x5ea   :  { %v7830_v26 = vrot.slane %v7828_v56, 2  ;;  %v7860_v32 = vrot.slane %v7858_v3, 3  ;;  %v4650_v23 = vperm.slane %v14093_v60, 3  ;;  %v4652_v57 = vperm.slane %v14093_v60, 5 }
 0x5eb   :  { %7886 = vst [vmem:[#allocation25 + $0x20] sm:$0xff] %v7800_v25  ;;  %12476 = vrcp.f32 %v7312_v4  ;;  %vm7579_vm1 = vweird.f32 %v7312_v4  ;;  %v7583_v62 = vand.u32 2147483647, %v7312_v4  ;;  %v7585_v8 = vand.u32 2147483648, %v7312_v4 }
 0x5ec   :  { %7889 = vst [vmem:[#allocation25 + $0x38] sm:$0xff] %v7830_v26  ;;  %v4651_v3 = vperm.slane %v14093_v60, 4 }
 0x5ed   :  { %7892 = vst [vmem:[#allocation25 + $0x50] sm:$0xff] %v7860_v32  ;;  %vm7584_vm11 = vcmp.eq.f32.partialorder %v7583_v62, 8.507059e+37  ;;  %v7586_v47 = vor.u32 1.1754944e-38, %v7585_v8 }
 0x5ee   :  { %v12475_v53 = vpop.eup %12474 }
 0x5ef   :  { %v7311_v7 = vadd.f32 1.0, %v12475_v53 }
 0x5f1   :  { %12478 = vrcp.f32 %v7311_v7  ;;  %v12477_v2 = vpop.eup %12476  ;;  %v7570_v22 = vand.u32 2147483648, %v7311_v7  ;;  %v7568_v50 = vand.u32 2147483647, %v7311_v7  ;;  %vm7564_vm14 = vweird.f32 %v7311_v7 }
 0x5f2   :  { %v7575_v33 = vmul.f32 %v12477_v2, %v7312_v4  ;;  %vm7580_vm6 = vweird.f32 %v12477_v2 }
 0x5f3   :  { %vm7581_vm10 = vmor %vm7579_vm1, %vm7580_vm6  ;;  %v7571_v14 = vor.u32 1.1754944e-38, %v7570_v22  ;;  %vm7569_vm2 = vcmp.eq.f32.partialorder %v7568_v50, 8.507059e+37 }
 0x5f4   :  { %v7576_v16 = vsub.f32 1.0, %v7575_v33 }
 0x5f5   :  { %v7115_v0 = vpop.f32.mrf.mxu1 }
 0x5f6   :  { %v7577_v20 = vmul.f32 %v12477_v2, %v7576_v16 }
 0x5f7   :  { %v12479_v31 = vpop.eup %12478 }
 0x5f8   :  { %v7560_v19 = vmul.f32 %v12479_v31, %v7311_v7  ;;  %v7578_v36 = vadd.f32 %v12477_v2, %v7577_v20  ;;  %vm7565_vm3 = vweird.f32 %v12479_v31 }
 0x5f9   :  { %vm7566_vm13 = vmor %vm7564_vm14, %vm7565_vm3 }
 0x5fa   :  { %v7561_v17 = vsub.f32 1.0, %v7560_v19  ;;  %v7582_v30 = vsel %vm7581_vm10, %v12477_v2, %v7578_v36 }
 0x5fb   :  { %v7089_v55 = vpop.f32.mrf.mxu3  ;;  %v7102_v45 = vpop.f32.mrf.mxu0  ;;  %v7587_v24 = vsel %vm7584_vm11, %v7586_v47, %v7582_v30 }
 0x5fc   :  { %v7103_v28 = vadd.f32 %v7102_v45, %v4650_v23  ;;  %v7562_v58 = vmul.f32 %v12479_v31, %v7561_v17 }
 0x5fd   :  { %v7117_v5 = vpop.f32.mrf.mxu1 }
 0x5fe   :  { %v7116_v29 = vadd.f32 %v7115_v0, %v7103_v28  ;;  %v7563_v59 = vadd.f32 %v12479_v31, %v7562_v58 }
 0x600   :  { %v11496_v11 = vmul.f32 -1.442695, %v7116_v29  ;;  %v7567_v42 = vsel %vm7566_vm13, %v12479_v31, %v7563_v59 }
 0x601   :  { %v7076_v43 = vpop.f32.mrf.mxu2  ;;  %v7572_v63 = vsel %vm7569_vm2, %v7571_v14, %v7567_v42 }
 0x602   :  { %12480 = vpow2.f32 %v11496_v11  ;;  %v7077_v52 = vadd.f32 %v7076_v43, %v4649_v18  ;;  %v7687_v54 = vpack.c.bf16 %v7587_v24, %v7572_v63 }
 0x603   :  { %v7091_v46 = vpop.f32.mrf.mxu3  ;;  %v7104_v44 = vpop.f32.mrf.mxu0 }
 0x604   :  { %v7090_v10 = vadd.f32 %v7089_v55, %v7077_v52  ;;  %v7717_v2 = vrot.slane %v7687_v54, 3 }
 0x606   :  { %v11495_v6 = vmul.f32 -1.442695, %v7090_v10  ;;  %v7763_v36 = vsel %vm7724_vm8, %v7687_v54, %v7717_v2  ;;  %v7801_v5 = vsel %vm7776_vm9, %v7687_v54, %v7717_v2  ;;  %v4654_v10 = vperm.slane %v14093_v60, 7 }
 0x608   :  { %v12481_v21 = vpop.eup %12480  ;;  %12482 = vpow2.f32 %v11495_v6 }
 0x609   :  { %v7314_v39 = vadd.f32 1.0, %v12481_v21  ;;  %v7078_v48 = vpop.f32.mrf.mxu2 }
 0x60b   :  { %12484 = vrcp.f32 %v7314_v39  ;;  %vm7609_vm6 = vweird.f32 %v7314_v39  ;;  %v7615_v35 = vand.u32 2147483648, %v7314_v39  ;;  %v7613_v25 = vand.u32 2147483647, %v7314_v39 }
 0x60d   :  { %v7616_v33 = vor.u32 1.1754944e-38, %v7615_v35  ;;  %vm7614_vm13 = vcmp.eq.f32.partialorder %v7613_v25, 8.507059e+37 }
 0x60e   :  { %v12483_v13 = vpop.eup %12482 }
 0x60f   :  { %v7313_v38 = vadd.f32 1.0, %v12483_v13 }
 0x611   :  { %v12485_v34 = vpop.eup %12484  ;;  %12486 = vrcp.f32 %v7313_v38  ;;  %v7600_v51 = vand.u32 2147483648, %v7313_v38  ;;  %v7598_v32 = vand.u32 2147483647, %v7313_v38  ;;  %vm7594_vm14 = vweird.f32 %v7313_v38 }
 0x612   :  { %v7605_v12 = vmul.f32 %v12485_v34, %v7314_v39  ;;  %vm7610_vm1 = vweird.f32 %v12485_v34 }
 0x613   :  { %vm14131_vm10 = vmor %vm7609_vm6, %vm7610_vm1  ;;  %v7601_v23 = vor.u32 1.1754944e-38, %v7600_v51  ;;  %vm7599_vm2 = vcmp.eq.f32.partialorder %v7598_v32, 8.507059e+37  ;;  %vm14273_vm1 = vcmask 1042434   ;;  %vm14274_vm6 = vcmask 1043459  }
 0x614   :  { %v7606_v40 = vsub.f32 1.0, %v7605_v12  ;;  %v7831_v58 = vsel %vm14273_vm1, %v7687_v54, %v7717_v2  ;;  %v7861_v50 = vsel %vm14274_vm6, %v7687_v54, %v7717_v2 }
 0x615   :  { %v7167_v61 = vpop.f32.mrf.mxu1 }
 0x616   :  { %v7607_v49 = vmul.f32 %v12485_v34, %v7606_v40 }
 0x617   :  { %v12487_v1 = vpop.eup %12486 }
 0x618   :  { %v7590_v15 = vmul.f32 %v12487_v1, %v7313_v38  ;;  %v7608_v27 = vadd.f32 %v12485_v34, %v7607_v49  ;;  %vm7595_vm3 = vweird.f32 %v12487_v1 }
 0x619   :  { %vm7596_vm11 = vmor %vm7594_vm14, %vm7595_vm3  ;;  %vm14277_vm14 = vcmask 1041408  }
 0x61a   :  { %v7591_v9 = vsub.f32 1.0, %v7590_v15  ;;  %v7612_v53 = vsel %vm14131_vm10, %v12485_v34, %v7608_v27  ;;  %vm14275_vm3 = vmmov %vm14273_vm1  ;;  %v4653_v34 = vperm.slane %v14093_v60, 6 }
 0x61b   :  { %v7141_v37 = vpop.f32.mrf.mxu3  ;;  %v7154_v41 = vpop.f32.mrf.mxu0  ;;  %v7617_v55 = vsel %vm7614_vm13, %v7616_v33, %v7612_v53  ;;  %vm14276_vm10 = vmmov %vm14274_vm6  ;;  %vm14279_vm13 = vcmask 1043458  }
 0x61c   :  { %v7592_v26 = vmul.f32 %v12487_v1, %v7591_v9  ;;  %v7155_v19 = vadd.f32 %v7154_v41, %v4652_v57 }
 0x61d   :  { %v7169_v56 = vpop.f32.mrf.mxu1 }
 0x61e   :  { %v7593_v7 = vadd.f32 %v12487_v1, %v7592_v26  ;;  %v7168_v22 = vadd.f32 %v7167_v61, %v7155_v19 }
 0x620   :  { %v7597_v16 = vsel %vm7596_vm11, %v12487_v1, %v7593_v7  ;;  %vm14278_vm11 = vcmask 1042433   ;;  %v11498_v63 = vmul.f32 -1.442695, %v7168_v22 }
 0x621   :  { %v7128_v0 = vpop.f32.mrf.mxu2  ;;  %v7602_v45 = vsel %vm7599_vm2, %v7601_v23, %v7597_v16  ;;  %vm14280_vm2 = vcmask 1044483  }
 0x622   :  { %v7129_v31 = vadd.f32 %v7128_v0, %v4651_v3  ;;  %v7688_v28 = vpack.c.bf16 %v7617_v55, %v7602_v45 }
 0x623   :  { %v7143_v20 = vpop.f32.mrf.mxu3  ;;  %v7156_v17 = vpop.f32.mrf.mxu0 }
 0x624   :  { %v7142_v18 = vadd.f32 %v7141_v37, %v7129_v31  ;;  %v7718_v62 = vrot.slane %v7688_v28, 6  ;;  %v7719_v8 = vrot.slane %v7688_v28, 1 }
 0x626   :  { %v11497_v29 = vmul.f32 -1.442695, %v7142_v18  ;;  %v7766_v30 = vsel %vm14275_vm3, %v7718_v62, %v7719_v8  ;;  %v7802_v59 = vsel %vm14276_vm10, %v7718_v62, %v7719_v8  ;;  %v7832_v11 = vsel %vm7734_vm4, %v7718_v62, %v7719_v8 }
 0x627   :  { %v7862_v47 = vsel %vm7782_vm5, %v7718_v62, %v7719_v8  ;;  %v14146_v43 = vsel %vm14277_vm14, %v7763_v36, %v7766_v30  ;;  %v14149_v42 = vsel %vm14278_vm11, %v7801_v5, %v7802_v59  ;;  %v14152_v52 = vsel %vm14279_vm13, %v7831_v58, %v7832_v11 }
 0x628   :  { %v14155_v24 = vsel %vm14280_vm2, %v7861_v50, %v7862_v47  ;;  %12488 = vpow2.f32 %v11497_v29 }
 0x629   :  { %v7130_v14 = vpop.f32.mrf.mxu2  ;;  %12490 = vpow2.f32 %v11498_v63 }
 0x62e   :  { %v12489_v44 = vpop.eup %12488 }
 0x62f   :  { %v12491_v54 = vpop.eup %12490  ;;  %v7315_v6 = vadd.f32 1.0, %v12489_v44 }
 0x630   :  { %v7316_v21 = vadd.f32 1.0, %v12491_v54 }
 0x631   :  { %12492 = vrcp.f32 %v7315_v6  ;;  %v7630_v31 = vand.u32 2147483648, %v7315_v6  ;;  %vm7624_vm3 = vweird.f32 %v7315_v6  ;;  %v7628_v19 = vand.u32 2147483647, %v7315_v6 }
 0x632   :  { %12494 = vrcp.f32 %v7316_v21  ;;  %v7643_v23 = vand.u32 2147483647, %v7316_v21  ;;  %v7645_v16 = vand.u32 2147483648, %v7316_v21  ;;  %vm7639_vm10 = vweird.f32 %v7316_v21 }
 0x633   :  { %v7631_v28 = vor.u32 1.1754944e-38, %v7630_v31  ;;  %vm7629_vm2 = vcmp.eq.f32.partialorder %v7628_v19, 8.507059e+37 }
 0x634   :  { %vm7644_vm13 = vcmp.eq.f32.partialorder %v7643_v23, 8.507059e+37  ;;  %v7646_v62 = vor.u32 1.1754944e-38, %v7645_v16 }
 0x635   :  { %v7219_v46 = vpop.f32.mrf.mxu1 }
 0x637   :  { %v12493_v15 = vpop.eup %12492 }
 0x638   :  { %v12495_v27 = vpop.eup %12494  ;;  %v7620_v57 = vmul.f32 %v12493_v15, %v7315_v6  ;;  %vm7625_vm1 = vweird.f32 %v12493_v15 }
 0x639   :  { %v7635_v35 = vmul.f32 %v12495_v27, %v7316_v21  ;;  %vm7640_vm6 = vweird.f32 %v12495_v27  ;;  %vm7626_vm14 = vmor %vm7624_vm3, %vm7625_vm1 }
 0x63a   :  { %v7621_v25 = vsub.f32 1.0, %v7620_v57  ;;  %vm7641_vm11 = vmor %vm7639_vm10, %vm7640_vm6 }
 0x63b   :  { %v7193_v39 = vpop.f32.mrf.mxu3  ;;  %v7206_v48 = vpop.f32.mrf.mxu0  ;;  %v7636_v60 = vsub.f32 1.0, %v7635_v35 }
 0x63c   :  { %v7207_v13 = vadd.f32 %v7206_v48, %v4654_v10  ;;  %v7622_v32 = vmul.f32 %v12493_v15, %v7621_v25 }
 0x63d   :  { %v7221_v38 = vpop.f32.mrf.mxu1  ;;  %v7637_v53 = vmul.f32 %v12495_v27, %v7636_v60 }
 0x63e   :  { %v7220_v12 = vadd.f32 %v7219_v46, %v7207_v13  ;;  %v7623_v0 = vadd.f32 %v12493_v15, %v7622_v32 }
 0x63f   :  { %v7638_v33 = vadd.f32 %v12495_v27, %v7637_v53 }
 0x640   :  { %v11500_v40 = vmul.f32 -1.442695, %v7220_v12  ;;  %v7627_v45 = vsel %vm7626_vm14, %v12493_v15, %v7623_v0 }
 0x641   :  { %v7180_v61 = vpop.f32.mrf.mxu2  ;;  %v7642_v17 = vsel %vm7641_vm11, %v12495_v27, %v7638_v33  ;;  %v7632_v8 = vsel %vm7629_vm2, %v7631_v28, %v7627_v45  ;;  %vm14286_vm2 = vcmask 1044481  }
 0x642   :  { %v7181_v49 = vadd.f32 %v7180_v61, %v4653_v34  ;;  %12496 = vpow2.f32 %v11500_v40  ;;  %v7647_v58 = vsel %vm7644_vm13, %v7646_v62, %v7642_v17  ;;  %vm14283_vm13 = vcmask 1045504  }
 0x643   :  { %v7195_v1 = vpop.f32.mrf.mxu3  ;;  %v7208_v41 = vpop.f32.mrf.mxu0  ;;  %v7689_v47 = vpack.c.bf16 %v7647_v58, %v7632_v8 }
 0x644   :  { %v7194_v37 = vadd.f32 %v7193_v39, %v7181_v49 }
 0x645   :  { %v7720_v10 = vrot.slane %v7689_v47, 4  ;;  %v7721_v6 = vrot.slane %v7689_v47, 7 }
 0x646   :  { %v11499_v9 = vmul.f32 -1.442695, %v7194_v37 }
 0x647   :  { %v7770_v34 = vsel %vm7734_vm4, %v7720_v10, %v7721_v6  ;;  %v7804_v12 = vsel %vm7782_vm5, %v7720_v10, %v7721_v6  ;;  %v7834_v40 = vsel %vm7738_vm15, %v7720_v10, %v7721_v6  ;;  %v7864_v61 = vsel %vm7784_vm0, %v7721_v6, %v7720_v10 }
 0x648   :  { %12498 = vpow2.f32 %v11499_v9  ;;  %v12497_v51 = vpop.eup %12496  ;;  %vm14284_vm4 = vcmask 1046529   ;;  %vm14285_vm5 = vcmask 1043456  }
 0x649   :  { %v7182_v56 = vpop.f32.mrf.mxu2  ;;  %v7318_v3 = vadd.f32 1.0, %v12497_v51 }
 0x64b   :  { %12500 = vrcp.f32 %v7318_v3  ;;  %vm7669_vm7 = vweird.f32 %v7318_v3  ;;  %v7675_v50 = vand.u32 2147483648, %v7318_v3  ;;  %v7673_v30 = vand.u32 2147483647, %v7318_v3 }
 0x64d   :  { %v7676_v46 = vor.u32 1.1754944e-38, %v7675_v50  ;;  %vm7674_vm14 = vcmp.eq.f32.partialorder %v7673_v30, 8.507059e+37 }
 0x64e   :  { %v12499_v26 = vpop.eup %12498 }
 0x64f   :  { %v7317_v4 = vadd.f32 1.0, %v12499_v26 }
 0x651   :  { %12502 = vrcp.f32 %v7317_v4  ;;  %v12501_v7 = vpop.eup %12500  ;;  %v7660_v29 = vand.u32 2147483648, %v7317_v4  ;;  %v7658_v11 = vand.u32 2147483647, %v7317_v4  ;;  %vm7654_vm3 = vweird.f32 %v7317_v4 }
 0x652   :  { %v7665_v2 = vmul.f32 %v12501_v7, %v7318_v3  ;;  %vm7670_vm12 = vweird.f32 %v12501_v7 }
 0x653   :  { %vm7671_vm6 = vmor %vm7669_vm7, %vm7670_vm12  ;;  %v7661_v44 = vor.u32 1.1754944e-38, %v7660_v29  ;;  %vm7659_vm11 = vcmp.eq.f32.partialorder %v7658_v11, 8.507059e+37  ;;  %vm14281_vm12 = vcmask 1045508   ;;  %vm14282_vm7 = vcmask 1046533  }
 0x654   :  { %v7666_v20 = vsub.f32 1.0, %v7665_v2 }
 0x656   :  { %v7667_v18 = vmul.f32 %v12501_v7, %v7666_v20 }
 0x657   :  { %v12503_v55 = vpop.eup %12502 }
 0x658   :  { %v7650_v36 = vmul.f32 %v12503_v55, %v7317_v4  ;;  %v7668_v22 = vadd.f32 %v12501_v7, %v7667_v18  ;;  %vm7655_vm1 = vweird.f32 %v12503_v55 }
 0x659   :  { %vm7656_vm10 = vmor %vm7654_vm3, %vm7655_vm1 }
 0x65a   :  { %v7651_v5 = vsub.f32 1.0, %v7650_v36  ;;  %v7672_v14 = vsel %vm7671_vm6, %v12501_v7, %v7668_v22 }
 0x65b   :  { %v7677_v21 = vsel %vm7674_vm14, %v7676_v46, %v7672_v14 }
 0x65c   :  { %v7652_v59 = vmul.f32 %v12503_v55, %v7651_v5 }
 0x65e   :  { %v7653_v63 = vadd.f32 %v12503_v55, %v7652_v59 }
 0x660   :  { %v7657_v54 = vsel %vm7656_vm10, %v12503_v55, %v7653_v63 }
 0x661   :  { %v7662_v39 = vsel %vm7659_vm11, %v7661_v44, %v7657_v54 }
 0x662   :  { %v7690_v48 = vpack.c.bf16 %v7677_v21, %v7662_v39 }
 0x664   :  { %v7722_v13 = vrot.slane %v7690_v48, 2  ;;  %v7723_v38 = vrot.slane %v7690_v48, 5 }
 0x666   :  { %v7773_v49 = vsel %vm7738_vm15, %v7722_v13, %v7723_v38  ;;  %v7805_v1 = vsel %vm7784_vm0, %v7723_v38, %v7722_v13  ;;  %v7835_v15 = vsel %vm7724_vm8, %v7722_v13, %v7723_v38  ;;  %v7865_v37 = vsel %vm7776_vm9, %v7722_v13, %v7723_v38 }
 0x667   :  { %v7774_v41 = vsel %vm14281_vm12, %v7770_v34, %v7773_v49  ;;  %v7806_v27 = vsel %vm14282_vm7, %v7804_v12, %v7805_v1  ;;  %v7836_v9 = vsel %vm14283_vm13, %v7835_v15, %v7834_v40  ;;  %v7866_v57 = vsel %vm14284_vm4, %v7865_v37, %v7864_v61 }
 0x668   :  { %v7775_v35 = vsel %vm14285_vm5, %v14146_v43, %v7774_v41  ;;  %v7807_v51 = vsel %vm14286_vm2, %v14149_v42, %v7806_v27  ;;  %vm14287_vm15 = vcmask 1045506   ;;  %vm14288_vm8 = vcmask 1046531  }
 0x669   :  { %v7837_v56 = vsel %vm14287_vm15, %v14152_v52, %v7836_v9  ;;  %v7867_v3 = vsel %vm14288_vm8, %v14155_v24, %v7866_v57  ;;  %v7809_v25 = vrot.slane %v7807_v51, 1  ;;  %7884 = vst [vmem:[#allocation25 + $0x10] sm:$0xff] %v7775_v35 }
 0x66a   :  { %v7839_v60 = vrot.slane %v7837_v56, 2  ;;  %v7869_v26 = vrot.slane %v7867_v3, 3 }
 0x66b   :  { %7887 = vst [vmem:[#allocation25 + $0x28] sm:$0xff] %v7809_v25 }
 0x66c   :  { %7890 = vst [vmem:[#allocation25 + $0x40] sm:$0xff] %v7839_v60 }
 0x66d   :  { %7893 = vst [vmem:[#allocation25 + $0x58] sm:$0xff] %v7869_v26 }
 0x66e   :  { %7899 = vsyncadd [#allocation4], 1152  ;;  %s7902_s19 = sshll.u32 %s14208_s14, 4  ;;  %s12956_s25 = smov [#allocation25]   ;;  %s7903_s19 = int_to_ptr.hbm [resolvable:$true] %s7902_s19 }
 0x66f   :  { %s7900_s26 = sshll.u32 %s12956_s25, 4  ;;  %s12957_s7 = smov 384   ;;  %s7901_s26 = int_to_ptr.vmem [resolvable:$true] %s7900_s26 }
 0x670   :  { %s12958_s27 = smov 24  }
 0x671   :  { %7908 = dma.vmem_to_hbm [thread:$0]  %s7901_s26, 384, %s7903_s19, [#allocation4], %s12957_s7, %s12957_s7, %s12958_s27  }
 0x672   :  { %7912 = vsyncadd [#allocation27], 96  ;;  %s7915_s28 = sshll.u32 %s14209_s15, 4  ;;  %s12959_s29 = smov [#allocation26]   ;;  %s7916_s28 = int_to_ptr.hbm [resolvable:$true] %s7915_s28 }
 0x673   :  { %s7913_s30 = sshll.u32 %s12959_s29, 4  ;;  %s7914_s30 = int_to_ptr.vmem [resolvable:$true] %s7913_s30 }
 0x674   :  { %7921 = dma.vmem_to_hbm [thread:$0]  %s7914_s30, 32, %s7916_s28, [#allocation27], %s12938_s22, %s12938_s22, %s12939_s23  }
 0x675   :  { %7925 = vsyncadd [#allocation27], 96  ;;  %s7928_s9 = sshll.u32 %s14210_s16, 4  ;;  %s12960_s3 = smov [#allocation28]   ;;  %s7929_s9 = int_to_ptr.hbm [resolvable:$true] %s7928_s9 }
 0x676   :  { %s7926_s17 = sshll.u32 %s12960_s3, 4  ;;  %s7927_s17 = int_to_ptr.vmem [resolvable:$true] %s7926_s17 }
 0x677   :  { %7934 = dma.vmem_to_hbm [thread:$0]  %s7927_s17, 32, %s7929_s9, [#allocation27], %s12938_s22, %s12938_s22, %s12939_s23  }
 0x678   :  { %12930 = dma.done.wait [#allocation4], 1536  }
 0x679   :  { %12931 = vsyncadd [#allocation4], 4294965760 }
 0x67a   :  { %12932 = dma.done.wait [#allocation27], 256  }
 0x67b   :  { %12933 = vsyncadd [#allocation27], 4294967040 }
 0x67c   :  { %7947 = vsyncpa [#allocation3], 1 }
 0x67d   :  { %7948 = vsyncpa [#allocation6], 1 }
 0x67e   :  { %7949 = vsyncpa [#allocation9], 1 }
 0x67f   :  { %7950 = vsyncpa [#allocation12], 1 }
 0x680   :  { %7951 = vsyncpa [#allocation15], 1 }
 0x681   :  { %7952 = vsyncpa [#allocation18], 1 }
 0x682   :  { %7953 = vsyncpa [#allocation21], 1 }
 0x683   :  { %7954 = vsyncpa [#allocation24], 1 }
 0x684   :  { %7955 = vsyncpa [#allocation4], 1 }
 0x685   :  { %7956 = vsyncpa [#allocation27], 1 }

</bundles_post_ra>
